<compile_context>
chip_gen: v6e
topology: v6e:2x2x1
jax: 0.10.0
libtpu: 0.0.40
codegen_flags: <defaults>
</compile_context>

<pallas_src>
import functools

import jax
import jax.numpy as jnp
from jax.experimental import pallas as pl
from jax.experimental.pallas import tpu as pltpu


# ----------------------------------------------------------------------------- kernel helpers
def _im2col_3x3(pad3):
    # pad3: [H+2, W+2, C] -> [H*W, 9*C]; columns ordered tap-major (dy, dx) then channel,
    # matching weights reshaped as w[9, C, Cout] -> [9*C, Cout].
    H = pad3.shape[0] - 2
    W = pad3.shape[1] - 2
    C = pad3.shape[2]
    cols = []
    for dy in range(3):
        for dx in range(3):
            cols.append(pad3[dy:dy + H, dx:dx + W, :].reshape(H * W, C))
    return jnp.concatenate(cols, axis=-1)


def _convgru_kernel(sp_ref, xp_ref, ym_ref, ys_ref, fm_ref,
                    wgs_ref, wgx_ref, bg_ref, wns_ref, wnx_ref, bn_ref,
                    out_ref, *, H, W, L, masked_update):
    sp = sp_ref[0]                                            # [H+2, W+2, 2L] f32 (mean|std)
    xp = xp_ref[0]                                            # [H+2, W+2, Cx] f32

    # ---- im2col slabs (bf16 for the MXU).  The x slab is reused by both convs. ----
    p_s = _im2col_3x3(sp).astype(jnp.bfloat16)                # [H*W, 9*2L]
    p_x = _im2col_3x3(xp).astype(jnp.bfloat16)                # [H*W, 9*Cx]

    # ---- fused update|reset gate conv: state-part + x-part matmuls, f32 accumulation ----
    gates = (jnp.dot(p_s, wgs_ref[...], preferred_element_type=jnp.float32)
             + jnp.dot(p_x, wgx_ref[...], preferred_element_type=jnp.float32)
             + bg_ref[...])                                   # [H*W, 2L]
    update_gate = jax.nn.sigmoid(gates[:, :L])                # [H*W, L] f32
    reset_gate = jax.nn.sigmoid(gates[:, L:])                 # [H*W, L] f32

    # ---- new-state conv: apply reset gate to the (mean, std) channels of the *padded* state.
    # reflect_pad(state * r) == reflect_pad(state) * reflect_pad(r), so pad r in-kernel and
    # reuse the already-padded state; the x-tap contribution reuses p_x (independent of r).
    r3 = reset_gate.reshape(H, W, L)
    r_pad = jnp.concatenate([r3[1:2], r3, r3[H - 2:H - 1]], axis=0)
    r_pad = jnp.concatenate([r_pad[:, 1:2], r_pad, r_pad[:, W - 2:W - 1]], axis=1)
    r2_pad = jnp.concatenate([r_pad, r_pad], axis=-1)         # [H+2, W+2, 2L]
    gated_sp = sp * r2_pad                                    # gated (mean, std) channels

    q_s = _im2col_3x3(gated_sp).astype(jnp.bfloat16)          # [H*W, 9*2L]
    ns = (jnp.dot(q_s, wns_ref[...], preferred_element_type=jnp.float32)
          + jnp.dot(p_x, wnx_ref[...], preferred_element_type=jnp.float32)
          + bn_ref[...])                                      # [H*W, 2L]
    new_state = ns[:, :L]
    new_state_std = jnp.abs(ns[:, L:])

    # ---- GRU blend + masked update (f32, flattened [H*W, L]) ----
    ym = ym_ref[0]                                            # [H*W, L]
    ys = ys_ref[0]                                            # [H*W, L]
    one_minus_u = 1.0 - update_gate
    new_y = one_minus_u * new_state + update_gate * ym
    new_y_std = one_minus_u * new_state_std + update_gate * ys

    if masked_update:
        fm = fm_ref[0]                                        # [H*W, 1] (shared over batch)
        one_minus_fm = 1.0 - fm
        new_y = fm * new_y + one_minus_fm * ym
        new_y_std = fm * new_y_std + one_minus_fm * ys

    new_y_std = jnp.abs(new_y_std)                            # second abs, as in the original module

    # single merged store: [..., 0:L] = new_y, [..., L:2L] = new_y_std
    out_ref[0] = jnp.concatenate([new_y, new_y_std], axis=-1)  # [H*W, 2L]


# ----------------------------------------------------------------------------- wrapper
@functools.partial(jax.jit, static_argnames=("masked_update",))
def convgru_standard_unit(y_mean, y_std, x, params, masked_update=True):
    """y_mean/y_std: [B, L, H, W] (NCHW); x: [T, B, Cx, H, W]. Returns (new_y, new_y_std) NCHW."""
    x0 = x[0]
    ym = jnp.transpose(y_mean, (0, 2, 3, 1)).astype(jnp.float32)     # [B, H, W, L]
    ys = jnp.transpose(y_std, (0, 2, 3, 1)).astype(jnp.float32)      # [B, H, W, L]
    xx = jnp.transpose(x0, (0, 2, 3, 1)).astype(jnp.float32)         # [B, H, W, Cx]
    B, H, W, L = ym.shape
    Cx = xx.shape[-1]

    # state / x slabs + one reflect pad each, all in XLA (no in-kernel channel slicing of a
    # fused concat at non-128-aligned lane offsets).
    state = jnp.concatenate([ym, ys], axis=-1)                       # [B, H, W, 2L]
    sp = jnp.pad(state, ((0, 0), (1, 1), (1, 1), (0, 0)), mode="reflect")
    xp = jnp.pad(xx, ((0, 0), (1, 1), (1, 1), (0, 0)), mode="reflect")

    # flattened blend inputs (kernel never reshapes the spatial dims of the f32 blend path).
    ym_flat = ym.reshape(B, H * W, L)
    ys_flat = ys.reshape(B, H * W, L)

    # filtermask: sum of observation-mask channels over (batch, channel), as in the PyTorch
    # module (filtermask = mask.sum((0, 1)) != 0 -> shared across batch & channels).
    n_data = Cx // 2
    fm = (jnp.sum(xx[..., n_data:], axis=(0, 3)) != 0).astype(jnp.float32)
    fm = fm.reshape(1, H * W, 1)

    # host/XLA-side weight prep: im2col-ready, update|reset fused, state/x rows split, bf16.
    def _split(wk):
        ws = wk[:, :2 * L, :].reshape(9 * 2 * L, wk.shape[-1])
        wx = wk[:, 2 * L:, :].reshape(9 * Cx, wk.shape[-1])
        return ws, wx

    wu_s, wu_x = _split(params["wu"])
    wr_s, wr_x = _split(params["wr"])
    wn_s, wn_x = _split(params["wn"])
    wgs = jnp.concatenate([wu_s, wr_s], axis=-1).astype(jnp.bfloat16)   # [9*2L, 2L]
    wgx = jnp.concatenate([wu_x, wr_x], axis=-1).astype(jnp.bfloat16)   # [9*Cx, 2L]
    wns = wn_s.astype(jnp.bfloat16)                                     # [9*2L, 2L]
    wnx = wn_x.astype(jnp.bfloat16)                                     # [9*Cx, 2L]
    bg = jnp.concatenate([params["bu"], params["br"]], axis=-1).astype(jnp.float32)
    bn = params["bn"].astype(jnp.float32)

    kernel = functools.partial(_convgru_kernel, H=H, W=W, L=L, masked_update=masked_update)

    out = pl.pallas_call(
        kernel,
        out_shape=jax.ShapeDtypeStruct((B, H * W, 2 * L), jnp.float32),
        grid_spec=pltpu.PrefetchScalarGridSpec(
            num_scalar_prefetch=0,
            grid=(B,),
            in_specs=[
                pl.BlockSpec((1, H + 2, W + 2, 2 * L), lambda b: (b, 0, 0, 0)),   # padded state (mean|std)
                pl.BlockSpec((1, H + 2, W + 2, Cx), lambda b: (b, 0, 0, 0)),      # padded x (data|mask)
                pl.BlockSpec((1, H * W, L), lambda b: (b, 0, 0)),                 # y_mean (f32 blend path)
                pl.BlockSpec((1, H * W, L), lambda b: (b, 0, 0)),                 # y_std
                pl.BlockSpec((1, H * W, 1), lambda b: (0, 0, 0)),                 # filtermask (broadcast)
                pl.BlockSpec((9 * 2 * L, 2 * L), lambda b: (0, 0)),               # fused gate weights, state rows
                pl.BlockSpec((9 * Cx, 2 * L), lambda b: (0, 0)),                  # fused gate weights, x rows
                pl.BlockSpec((1, 2 * L), lambda b: (0, 0)),                       # fused gate bias
                pl.BlockSpec((9 * 2 * L, 2 * L), lambda b: (0, 0)),               # new-state weights, state rows
                pl.BlockSpec((9 * Cx, 2 * L), lambda b: (0, 0)),                  # new-state weights, x rows
                pl.BlockSpec((1, 2 * L), lambda b: (0, 0)),                       # new-state bias
            ],
            out_specs=pl.BlockSpec((1, H * W, 2 * L), lambda b: (b, 0, 0)),
        ),
        compiler_params=pltpu.CompilerParams(
            dimension_semantics=("parallel",),
            vmem_limit_bytes=48 * 1024 * 1024,
        ),
    )(sp, xp, ym_flat, ys_flat, fm, wgs, wgx, bg, wns, wnx, bn)

    out = out.reshape(B, H, W, 2 * L)
    new_y = jnp.transpose(out[..., :L], (0, 3, 1, 2))
    new_y_std = jnp.transpose(out[..., L:], (0, 3, 1, 2))
    return new_y, new_y_std


# ----------------------------------------------------------------------------- params & reference
def init_params(key, latent_dim, input_dim, std=0.1):
    # Conv weights stored as [9, Cin, Cout] (taps row-major over (dy, dx)); biases [1, Cout].
    cin = 2 * latent_dim + input_dim
    ks = jax.random.split(key, 6)
    return dict(
        wu=std * jax.random.normal(ks[0], (9, cin, latent_dim), jnp.float32),
        bu=std * jax.random.normal(ks[1], (1, latent_dim), jnp.float32),
        wr=std * jax.random.normal(ks[2], (9, cin, latent_dim), jnp.float32),
        br=std * jax.random.normal(ks[3], (1, latent_dim), jnp.float32),
        wn=std * jax.random.normal(ks[4], (9, cin, 2 * latent_dim), jnp.float32),
        bn=std * jax.random.normal(ks[5], (1, 2 * latent_dim), jnp.float32),
    )


def _reflect_pad_hw(a):
    a = jnp.concatenate([a[:, 1:2], a, a[:, -2:-1]], axis=1)
    a = jnp.concatenate([a[:, :, 1:2], a, a[:, :, -2:-1]], axis=2)
    return a


def _conv3x3_reflect_ref(inp, w, b):
    B, H, W, Cin = inp.shape
    Cout = w.shape[-1]
    p = _reflect_pad_hw(inp)
    acc = jnp.zeros((B * H * W, Cout), dtype=jnp.float32)
    for k in range(9):
        dy, dx = k // 3, k % 3
        patch = p[:, dy:dy + H, dx:dx + W, :].reshape(B * H * W, Cin)
        acc = acc + jnp.dot(patch, w[k], preferred_element_type=jnp.float32)
    return (acc + b).reshape(B, H, W, Cout)


def _reference(y_mean, y_std, x, params, masked_update=True):
    # Pure-JAX f32 reference mirroring the module's forward (nan asserts / prints omitted).
    x0 = x[0]
    ym = jnp.transpose(y_mean, (0, 2, 3, 1)).astype(jnp.float32)
    ys = jnp.transpose(y_std, (0, 2, 3, 1)).astype(jnp.float32)
    xx = jnp.transpose(x0, (0, 2, 3, 1)).astype(jnp.float32)
    L = ym.shape[-1]
    Cx = xx.shape[-1]

    y_concat = jnp.concatenate([ym, ys, xx], axis=-1)
    update_gate = jax.nn.sigmoid(_conv3x3_reflect_ref(y_concat, params["wu"], params["bu"]))
    reset_gate = jax.nn.sigmoid(_conv3x3_reflect_ref(y_concat, params["wr"], params["br"]))

    concat = jnp.concatenate([ym * reset_gate, ys * reset_gate, xx], axis=-1)
    ns = _conv3x3_reflect_ref(concat, params["wn"], params["bn"])
    new_state, new_state_std = ns[..., :L], jnp.abs(ns[..., L:])

    new_y = (1.0 - update_gate) * new_state + update_gate * ym
    new_y_std = (1.0 - update_gate) * new_state_std + update_gate * ys

    if masked_update:
        mask = xx[..., Cx // 2:]
        fm = (jnp.sum(mask, axis=(0, 3), keepdims=True) != 0).astype(jnp.float32)
        new_y = fm * new_y + (1.0 - fm) * ym
        new_y_std = fm * new_y_std + (1.0 - fm) * ys

    new_y_std = jnp.abs(new_y_std)
    return jnp.transpose(new_y, (0, 3, 1, 2)), jnp.transpose(new_y_std, (0, 3, 1, 2))


# ----------------------------------------------------------------------------- demo / self-check
if __name__ == "__main__":
    B, L, Cx, H, W = 2, 8, 4, 16, 16   # batch, latent_dim, input_dim (data+mask), spatial

    key = jax.random.PRNGKey(0)
    kp, k1, k2, k3, k4 = jax.random.split(key, 5)
    params = init_params(kp, L, Cx)

    y_mean = jax.random.normal(k1, (B, L, H, W), jnp.float32)
    y_std = jnp.abs(jax.random.normal(k2, (B, L, H, W), jnp.float32))
    x_data = jax.random.normal(k3, (1, B, Cx // 2, H, W), jnp.float32)
    x_mask = (jax.random.uniform(k4, (1, B, Cx // 2, H, W)) > 0.6).astype(jnp.float32)
    x = jnp.concatenate([x_data, x_mask], axis=2)          # [T=1, B, Cx, H, W]

    new_y, new_y_std = convgru_standard_unit(y_mean, y_std, x, params, masked_update=True)
    jax.block_until_ready((new_y, new_y_std))

    ref_y, ref_y_std = _reference(y_mean, y_std, x, params, masked_update=True)
    assert new_y.shape == (B, L, H, W) and new_y_std.shape == (B, L, H, W)
    assert bool(jnp.all(jnp.isfinite(new_y))) and bool(jnp.all(jnp.isfinite(new_y_std)))
    assert jnp.allclose(new_y, ref_y, atol=2e-2, rtol=2e-2)          # bf16 MXU operands, f32 accum
    assert jnp.allclose(new_y_std, ref_y_std, atol=2e-2, rtol=2e-2)

    print("KERNEL_OK")
</pallas_src>

<mosaic_0001>
module attributes {stable_mosaic.version = 11 : i64} {
  func.func @_convgru_kernel(%arg0: i32, %arg1: memref<1x18x18x16xf32, #tpu.memory_space<vmem>>, %arg2: memref<1x18x18x4xf32, #tpu.memory_space<vmem>>, %arg3: memref<1x256x8xf32, #tpu.memory_space<vmem>>, %arg4: memref<1x256x8xf32, #tpu.memory_space<vmem>>, %arg5: memref<1x256x1xf32, #tpu.memory_space<vmem>>, %arg6: memref<144x16xbf16, #tpu.memory_space<vmem>>, %arg7: memref<36x16xbf16, #tpu.memory_space<vmem>>, %arg8: memref<1x16xf32, #tpu.memory_space<vmem>>, %arg9: memref<144x16xbf16, #tpu.memory_space<vmem>>, %arg10: memref<36x16xbf16, #tpu.memory_space<vmem>>, %arg11: memref<1x16xf32, #tpu.memory_space<vmem>>, %arg12: memref<1x256x16xf32, #tpu.memory_space<vmem>>) attributes {dimension_semantics = [#tpu.dimension_semantics<parallel>], iteration_bounds = array<i64: 2>, scalar_prefetch = 0 : i64, scratch_operands = 0 : i64, tpu.core_type = #tpu.core_type<tc>, window_params = [{transform_indices = @transform_0, window_bounds = array<i64: 1, 18, 18, 16>}, {transform_indices = @transform_1, window_bounds = array<i64: 1, 18, 18, 4>}, {transform_indices = @transform_2, window_bounds = array<i64: 1, 256, 8>}, {transform_indices = @transform_3, window_bounds = array<i64: 1, 256, 8>}, {pipeline_mode = #tpu.pipeline_mode<synchronous>, transform_indices = @transform_4, window_bounds = array<i64: 1, 256, 1>}, {pipeline_mode = #tpu.pipeline_mode<synchronous>, transform_indices = @transform_5, window_bounds = array<i64: 144, 16>}, {pipeline_mode = #tpu.pipeline_mode<synchronous>, transform_indices = @transform_6, window_bounds = array<i64: 36, 16>}, {pipeline_mode = #tpu.pipeline_mode<synchronous>, transform_indices = @transform_7, window_bounds = array<i64: 1, 16>}, {pipeline_mode = #tpu.pipeline_mode<synchronous>, transform_indices = @transform_8, window_bounds = array<i64: 144, 16>}, {pipeline_mode = #tpu.pipeline_mode<synchronous>, transform_indices = @transform_9, window_bounds = array<i64: 36, 16>}, {pipeline_mode = #tpu.pipeline_mode<synchronous>, transform_indices = @transform_10, window_bounds = array<i64: 1, 16>}, {transform_indices = @transform_11, window_bounds = array<i64: 1, 256, 16>}]} {
    %c0 = arith.constant 0 : index
    %c0_0 = arith.constant 0 : index
    %c0_1 = arith.constant 0 : index
    %c0_2 = arith.constant 0 : index
    %0 = vector.load %arg1[%c0, %c0_0, %c0_1, %c0_2] : memref<1x18x18x16xf32, #tpu.memory_space<vmem>>, vector<1x18x18x16xf32>
    %1 = vector.shape_cast %0 : vector<1x18x18x16xf32> to vector<18x18x16xf32>
    %c0_3 = arith.constant 0 : index
    %c0_4 = arith.constant 0 : index
    %c0_5 = arith.constant 0 : index
    %c0_6 = arith.constant 0 : index
    %2 = vector.load %arg2[%c0_3, %c0_4, %c0_5, %c0_6] : memref<1x18x18x4xf32, #tpu.memory_space<vmem>>, vector<1x18x18x4xf32>
    %3 = vector.shape_cast %2 : vector<1x18x18x4xf32> to vector<18x18x4xf32>
    %4 = vector.extract_strided_slice %1 {offsets = [0, 0, 0], sizes = [16, 16, 16], strides = [1, 1, 1]} : vector<18x18x16xf32> to vector<16x16x16xf32>
    %5 = vector.shape_cast %4 : vector<16x16x16xf32> to vector<256x16xf32>
    %6 = vector.extract_strided_slice %1 {offsets = [0, 1, 0], sizes = [16, 16, 16], strides = [1, 1, 1]} : vector<18x18x16xf32> to vector<16x16x16xf32>
    %7 = vector.shape_cast %6 : vector<16x16x16xf32> to vector<256x16xf32>
    %8 = vector.extract_strided_slice %1 {offsets = [0, 2, 0], sizes = [16, 16, 16], strides = [1, 1, 1]} : vector<18x18x16xf32> to vector<16x16x16xf32>
    %9 = vector.shape_cast %8 : vector<16x16x16xf32> to vector<256x16xf32>
    %10 = vector.extract_strided_slice %1 {offsets = [1, 0, 0], sizes = [16, 16, 16], strides = [1, 1, 1]} : vector<18x18x16xf32> to vector<16x16x16xf32>
    %11 = vector.shape_cast %10 : vector<16x16x16xf32> to vector<256x16xf32>
    %12 = vector.extract_strided_slice %1 {offsets = [1, 1, 0], sizes = [16, 16, 16], strides = [1, 1, 1]} : vector<18x18x16xf32> to vector<16x16x16xf32>
    %13 = vector.shape_cast %12 : vector<16x16x16xf32> to vector<256x16xf32>
    %14 = vector.extract_strided_slice %1 {offsets = [1, 2, 0], sizes = [16, 16, 16], strides = [1, 1, 1]} : vector<18x18x16xf32> to vector<16x16x16xf32>
    %15 = vector.shape_cast %14 : vector<16x16x16xf32> to vector<256x16xf32>
    %16 = vector.extract_strided_slice %1 {offsets = [2, 0, 0], sizes = [16, 16, 16], strides = [1, 1, 1]} : vector<18x18x16xf32> to vector<16x16x16xf32>
    %17 = vector.shape_cast %16 : vector<16x16x16xf32> to vector<256x16xf32>
    %18 = vector.extract_strided_slice %1 {offsets = [2, 1, 0], sizes = [16, 16, 16], strides = [1, 1, 1]} : vector<18x18x16xf32> to vector<16x16x16xf32>
    %19 = vector.shape_cast %18 : vector<16x16x16xf32> to vector<256x16xf32>
    %20 = vector.extract_strided_slice %1 {offsets = [2, 2, 0], sizes = [16, 16, 16], strides = [1, 1, 1]} : vector<18x18x16xf32> to vector<16x16x16xf32>
    %21 = vector.shape_cast %20 : vector<16x16x16xf32> to vector<256x16xf32>
    %22 = tpu.concatenate %5, %7, %9, %11, %13, %15, %17, %19, %21 in 1 : vector<256x16xf32>, vector<256x16xf32>, vector<256x16xf32>, vector<256x16xf32>, vector<256x16xf32>, vector<256x16xf32>, vector<256x16xf32>, vector<256x16xf32>, vector<256x16xf32> -> vector<256x144xf32>
    %23 = arith.truncf %22 : vector<256x144xf32> to vector<256x144xbf16>
    %24 = vector.extract_strided_slice %3 {offsets = [0, 0, 0], sizes = [16, 16, 4], strides = [1, 1, 1]} : vector<18x18x4xf32> to vector<16x16x4xf32>
    %25 = vector.shape_cast %24 : vector<16x16x4xf32> to vector<256x4xf32>
    %26 = vector.extract_strided_slice %3 {offsets = [0, 1, 0], sizes = [16, 16, 4], strides = [1, 1, 1]} : vector<18x18x4xf32> to vector<16x16x4xf32>
    %27 = vector.shape_cast %26 : vector<16x16x4xf32> to vector<256x4xf32>
    %28 = vector.extract_strided_slice %3 {offsets = [0, 2, 0], sizes = [16, 16, 4], strides = [1, 1, 1]} : vector<18x18x4xf32> to vector<16x16x4xf32>
    %29 = vector.shape_cast %28 : vector<16x16x4xf32> to vector<256x4xf32>
    %30 = vector.extract_strided_slice %3 {offsets = [1, 0, 0], sizes = [16, 16, 4], strides = [1, 1, 1]} : vector<18x18x4xf32> to vector<16x16x4xf32>
    %31 = vector.shape_cast %30 : vector<16x16x4xf32> to vector<256x4xf32>
    %32 = vector.extract_strided_slice %3 {offsets = [1, 1, 0], sizes = [16, 16, 4], strides = [1, 1, 1]} : vector<18x18x4xf32> to vector<16x16x4xf32>
    %33 = vector.shape_cast %32 : vector<16x16x4xf32> to vector<256x4xf32>
    %34 = vector.extract_strided_slice %3 {offsets = [1, 2, 0], sizes = [16, 16, 4], strides = [1, 1, 1]} : vector<18x18x4xf32> to vector<16x16x4xf32>
    %35 = vector.shape_cast %34 : vector<16x16x4xf32> to vector<256x4xf32>
    %36 = vector.extract_strided_slice %3 {offsets = [2, 0, 0], sizes = [16, 16, 4], strides = [1, 1, 1]} : vector<18x18x4xf32> to vector<16x16x4xf32>
    %37 = vector.shape_cast %36 : vector<16x16x4xf32> to vector<256x4xf32>
    %38 = vector.extract_strided_slice %3 {offsets = [2, 1, 0], sizes = [16, 16, 4], strides = [1, 1, 1]} : vector<18x18x4xf32> to vector<16x16x4xf32>
    %39 = vector.shape_cast %38 : vector<16x16x4xf32> to vector<256x4xf32>
    %40 = vector.extract_strided_slice %3 {offsets = [2, 2, 0], sizes = [16, 16, 4], strides = [1, 1, 1]} : vector<18x18x4xf32> to vector<16x16x4xf32>
    %41 = vector.shape_cast %40 : vector<16x16x4xf32> to vector<256x4xf32>
    %42 = tpu.concatenate %25, %27, %29, %31, %33, %35, %37, %39, %41 in 1 : vector<256x4xf32>, vector<256x4xf32>, vector<256x4xf32>, vector<256x4xf32>, vector<256x4xf32>, vector<256x4xf32>, vector<256x4xf32>, vector<256x4xf32>, vector<256x4xf32> -> vector<256x36xf32>
    %43 = arith.truncf %42 : vector<256x36xf32> to vector<256x36xbf16>
    %c0_7 = arith.constant 0 : index
    %c0_8 = arith.constant 0 : index
    %44 = vector.load %arg6[%c0_7, %c0_8] : memref<144x16xbf16, #tpu.memory_space<vmem>>, vector<144x16xbf16>
    %cst = arith.constant dense<0.000000e+00> : vector<256x16xf32>
    %45 = tpu.matmul %23, %44, %cst {dimension_numbers = #tpu.dot_dimension_numbers<[1], [0], [0], [1], [0, 0, 1, 1], [], []>} : vector<256x144xbf16>, vector<144x16xbf16>, vector<256x16xf32> -> vector<256x16xf32>
    %c0_9 = arith.constant 0 : index
    %c0_10 = arith.constant 0 : index
    %46 = vector.load %arg7[%c0_9, %c0_10] : memref<36x16xbf16, #tpu.memory_space<vmem>>, vector<36x16xbf16>
    %cst_11 = arith.constant dense<0.000000e+00> : vector<256x16xf32>
    %47 = tpu.matmul %43, %46, %cst_11 {dimension_numbers = #tpu.dot_dimension_numbers<[1], [0], [0], [1], [0, 0, 1, 1], [], []>} : vector<256x36xbf16>, vector<36x16xbf16>, vector<256x16xf32> -> vector<256x16xf32>
    %48 = arith.addf %45, %47 : vector<256x16xf32>
    %c0_12 = arith.constant 0 : index
    %c0_13 = arith.constant 0 : index
    %49 = vector.load %arg8[%c0_12, %c0_13] : memref<1x16xf32, #tpu.memory_space<vmem>>, vector<1x16xf32>
    %50 = vector.broadcast %49 : vector<1x16xf32> to vector<256x16xf32>
    %51 = arith.addf %48, %50 : vector<256x16xf32>
    %52 = vector.extract_strided_slice %51 {offsets = [0, 0], sizes = [256, 8], strides = [1, 1]} : vector<256x16xf32> to vector<256x8xf32>
    %53 = arith.negf %52 : vector<256x8xf32>
    %54 = math.exp %53 : vector<256x8xf32>
    %cst_14 = arith.constant 1.000000e+00 : f32
    %55 = vector.broadcast %cst_14 : f32 to vector<256x8xf32>
    %56 = arith.addf %55, %54 : vector<256x8xf32>
    %57 = arith.divf %55, %56 : vector<256x8xf32>
    %58 = vector.extract_strided_slice %51 {offsets = [0, 8], sizes = [256, 8], strides = [1, 1]} : vector<256x16xf32> to vector<256x8xf32>
    %59 = arith.negf %58 : vector<256x8xf32>
    %60 = math.exp %59 : vector<256x8xf32>
    %cst_15 = arith.constant 1.000000e+00 : f32
    %61 = vector.broadcast %cst_15 : f32 to vector<256x8xf32>
    %62 = arith.addf %61, %60 : vector<256x8xf32>
    %63 = arith.divf %61, %62 : vector<256x8xf32>
    %64 = vector.shape_cast %63 : vector<256x8xf32> to vector<16x16x8xf32>
    %65 = vector.extract_strided_slice %64 {offsets = [1, 0, 0], sizes = [1, 16, 8], strides = [1, 1, 1]} : vector<16x16x8xf32> to vector<1x16x8xf32>
    %66 = vector.extract_strided_slice %64 {offsets = [14, 0, 0], sizes = [1, 16, 8], strides = [1, 1, 1]} : vector<16x16x8xf32> to vector<1x16x8xf32>
    %67 = tpu.concatenate %65, %64, %66 in 0 : vector<1x16x8xf32>, vector<16x16x8xf32>, vector<1x16x8xf32> -> vector<18x16x8xf32>
    %68 = vector.extract_strided_slice %67 {offsets = [0, 1, 0], sizes = [18, 1, 8], strides = [1, 1, 1]} : vector<18x16x8xf32> to vector<18x1x8xf32>
    %69 = vector.extract_strided_slice %67 {offsets = [0, 14, 0], sizes = [18, 1, 8], strides = [1, 1, 1]} : vector<18x16x8xf32> to vector<18x1x8xf32>
    %70 = tpu.concatenate %68, %67, %69 in 1 : vector<18x1x8xf32>, vector<18x16x8xf32>, vector<18x1x8xf32> -> vector<18x18x8xf32>
    %71 = tpu.concatenate %70, %70 in 2 : vector<18x18x8xf32>, vector<18x18x8xf32> -> vector<18x18x16xf32>
    %72 = arith.mulf %1, %71 : vector<18x18x16xf32>
    %73 = vector.extract_strided_slice %72 {offsets = [0, 0, 0], sizes = [16, 16, 16], strides = [1, 1, 1]} : vector<18x18x16xf32> to vector<16x16x16xf32>
    %74 = vector.shape_cast %73 : vector<16x16x16xf32> to vector<256x16xf32>
    %75 = vector.extract_strided_slice %72 {offsets = [0, 1, 0], sizes = [16, 16, 16], strides = [1, 1, 1]} : vector<18x18x16xf32> to vector<16x16x16xf32>
    %76 = vector.shape_cast %75 : vector<16x16x16xf32> to vector<256x16xf32>
    %77 = vector.extract_strided_slice %72 {offsets = [0, 2, 0], sizes = [16, 16, 16], strides = [1, 1, 1]} : vector<18x18x16xf32> to vector<16x16x16xf32>
    %78 = vector.shape_cast %77 : vector<16x16x16xf32> to vector<256x16xf32>
    %79 = vector.extract_strided_slice %72 {offsets = [1, 0, 0], sizes = [16, 16, 16], strides = [1, 1, 1]} : vector<18x18x16xf32> to vector<16x16x16xf32>
    %80 = vector.shape_cast %79 : vector<16x16x16xf32> to vector<256x16xf32>
    %81 = vector.extract_strided_slice %72 {offsets = [1, 1, 0], sizes = [16, 16, 16], strides = [1, 1, 1]} : vector<18x18x16xf32> to vector<16x16x16xf32>
    %82 = vector.shape_cast %81 : vector<16x16x16xf32> to vector<256x16xf32>
    %83 = vector.extract_strided_slice %72 {offsets = [1, 2, 0], sizes = [16, 16, 16], strides = [1, 1, 1]} : vector<18x18x16xf32> to vector<16x16x16xf32>
    %84 = vector.shape_cast %83 : vector<16x16x16xf32> to vector<256x16xf32>
    %85 = vector.extract_strided_slice %72 {offsets = [2, 0, 0], sizes = [16, 16, 16], strides = [1, 1, 1]} : vector<18x18x16xf32> to vector<16x16x16xf32>
    %86 = vector.shape_cast %85 : vector<16x16x16xf32> to vector<256x16xf32>
    %87 = vector.extract_strided_slice %72 {offsets = [2, 1, 0], sizes = [16, 16, 16], strides = [1, 1, 1]} : vector<18x18x16xf32> to vector<16x16x16xf32>
    %88 = vector.shape_cast %87 : vector<16x16x16xf32> to vector<256x16xf32>
    %89 = vector.extract_strided_slice %72 {offsets = [2, 2, 0], sizes = [16, 16, 16], strides = [1, 1, 1]} : vector<18x18x16xf32> to vector<16x16x16xf32>
    %90 = vector.shape_cast %89 : vector<16x16x16xf32> to vector<256x16xf32>
    %91 = tpu.concatenate %74, %76, %78, %80, %82, %84, %86, %88, %90 in 1 : vector<256x16xf32>, vector<256x16xf32>, vector<256x16xf32>, vector<256x16xf32>, vector<256x16xf32>, vector<256x16xf32>, vector<256x16xf32>, vector<256x16xf32>, vector<256x16xf32> -> vector<256x144xf32>
    %92 = arith.truncf %91 : vector<256x144xf32> to vector<256x144xbf16>
    %c0_16 = arith.constant 0 : index
    %c0_17 = arith.constant 0 : index
    %93 = vector.load %arg9[%c0_16, %c0_17] : memref<144x16xbf16, #tpu.memory_space<vmem>>, vector<144x16xbf16>
    %cst_18 = arith.constant dense<0.000000e+00> : vector<256x16xf32>
    %94 = tpu.matmul %92, %93, %cst_18 {dimension_numbers = #tpu.dot_dimension_numbers<[1], [0], [0], [1], [0, 0, 1, 1], [], []>} : vector<256x144xbf16>, vector<144x16xbf16>, vector<256x16xf32> -> vector<256x16xf32>
    %c0_19 = arith.constant 0 : index
    %c0_20 = arith.constant 0 : index
    %95 = vector.load %arg10[%c0_19, %c0_20] : memref<36x16xbf16, #tpu.memory_space<vmem>>, vector<36x16xbf16>
    %cst_21 = arith.constant dense<0.000000e+00> : vector<256x16xf32>
    %96 = tpu.matmul %43, %95, %cst_21 {dimension_numbers = #tpu.dot_dimension_numbers<[1], [0], [0], [1], [0, 0, 1, 1], [], []>} : vector<256x36xbf16>, vector<36x16xbf16>, vector<256x16xf32> -> vector<256x16xf32>
    %97 = arith.addf %94, %96 : vector<256x16xf32>
    %c0_22 = arith.constant 0 : index
    %c0_23 = arith.constant 0 : index
    %98 = vector.load %arg11[%c0_22, %c0_23] : memref<1x16xf32, #tpu.memory_space<vmem>>, vector<1x16xf32>
    %99 = vector.broadcast %98 : vector<1x16xf32> to vector<256x16xf32>
    %100 = arith.addf %97, %99 : vector<256x16xf32>
    %101 = vector.extract_strided_slice %100 {offsets = [0, 0], sizes = [256, 8], strides = [1, 1]} : vector<256x16xf32> to vector<256x8xf32>
    %102 = vector.extract_strided_slice %100 {offsets = [0, 8], sizes = [256, 8], strides = [1, 1]} : vector<256x16xf32> to vector<256x8xf32>
    %103 = math.absf %102 : vector<256x8xf32>
    %c0_24 = arith.constant 0 : index
    %c0_25 = arith.constant 0 : index
    %c0_26 = arith.constant 0 : index
    %104 = vector.load %arg3[%c0_24, %c0_25, %c0_26] : memref<1x256x8xf32, #tpu.memory_space<vmem>>, vector<1x256x8xf32>
    %105 = vector.shape_cast %104 : vector<1x256x8xf32> to vector<256x8xf32>
    %c0_27 = arith.constant 0 : index
    %c0_28 = arith.constant 0 : index
    %c0_29 = arith.constant 0 : index
    %106 = vector.load %arg4[%c0_27, %c0_28, %c0_29] : memref<1x256x8xf32, #tpu.memory_space<vmem>>, vector<1x256x8xf32>
    %107 = vector.shape_cast %106 : vector<1x256x8xf32> to vector<256x8xf32>
    %cst_30 = arith.constant 1.000000e+00 : f32
    %108 = vector.broadcast %cst_30 : f32 to vector<256x8xf32>
    %109 = arith.subf %108, %57 : vector<256x8xf32>
    %110 = arith.mulf %109, %101 : vector<256x8xf32>
    %111 = arith.mulf %57, %105 : vector<256x8xf32>
    %112 = arith.addf %110, %111 : vector<256x8xf32>
    %113 = arith.mulf %109, %103 : vector<256x8xf32>
    %114 = arith.mulf %57, %107 : vector<256x8xf32>
    %115 = arith.addf %113, %114 : vector<256x8xf32>
    %c0_31 = arith.constant 0 : index
    %c0_32 = arith.constant 0 : index
    %c0_33 = arith.constant 0 : index
    %116 = vector.load %arg5[%c0_31, %c0_32, %c0_33] : memref<1x256x1xf32, #tpu.memory_space<vmem>>, vector<1x256x1xf32>
    %117 = vector.shape_cast %116 : vector<1x256x1xf32> to vector<256x1xf32>
    %cst_34 = arith.constant 1.000000e+00 : f32
    %118 = vector.broadcast %cst_34 : f32 to vector<256x1xf32>
    %119 = arith.subf %118, %117 : vector<256x1xf32>
    %120 = vector.broadcast %117 : vector<256x1xf32> to vector<256x8xf32>
    %121 = arith.mulf %120, %112 : vector<256x8xf32>
    %122 = vector.broadcast %119 : vector<256x1xf32> to vector<256x8xf32>
    %123 = arith.mulf %122, %105 : vector<256x8xf32>
    %124 = arith.addf %121, %123 : vector<256x8xf32>
    %125 = vector.broadcast %117 : vector<256x1xf32> to vector<256x8xf32>
    %126 = arith.mulf %125, %115 : vector<256x8xf32>
    %127 = vector.broadcast %119 : vector<256x1xf32> to vector<256x8xf32>
    %128 = arith.mulf %127, %107 : vector<256x8xf32>
    %129 = arith.addf %126, %128 : vector<256x8xf32>
    %130 = math.absf %129 : vector<256x8xf32>
    %131 = tpu.concatenate %124, %130 in 1 : vector<256x8xf32>, vector<256x8xf32> -> vector<256x16xf32>
    %c0_35 = arith.constant 0 : index
    %c0_36 = arith.constant 0 : index
    %c0_37 = arith.constant 0 : index
    %132 = vector.load %arg12[%c0_35, %c0_36, %c0_37] : memref<1x256x16xf32, #tpu.memory_space<vmem>>, vector<1x256x16xf32>
    %133 = vector.shape_cast %132 : vector<1x256x16xf32> to vector<256x16xf32>
    %134 = vector.shape_cast %131 : vector<256x16xf32> to vector<1x256x16xf32>
    tpu.vector_store %arg12[%c0_35, %c0_36, %c0_37], %134 {strides = array<i32>} : memref<1x256x16xf32, #tpu.memory_space<vmem>>, vector<1x256x16xf32>,
    return
  }
  func.func @transform_0(%arg0: i32) -> (i32, i32, i32, i32) {
    %c0_i32 = arith.constant 0 : i32
    %c0_i32_0 = arith.constant 0 : i32
    %c0_i32_1 = arith.constant 0 : i32
    %c0_i32_2 = arith.constant 0 : i32
    return %arg0, %c0_i32, %c0_i32_0, %c0_i32_1 : i32, i32, i32, i32
  }
  func.func @transform_1(%arg0: i32) -> (i32, i32, i32, i32) {
    %c0_i32 = arith.constant 0 : i32
    %c0_i32_0 = arith.constant 0 : i32
    %c0_i32_1 = arith.constant 0 : i32
    %c0_i32_2 = arith.constant 0 : i32
    return %arg0, %c0_i32, %c0_i32_0, %c0_i32_1 : i32, i32, i32, i32
  }
  func.func @transform_2(%arg0: i32) -> (i32, i32, i32) {
    %c0_i32 = arith.constant 0 : i32
    %c0_i32_0 = arith.constant 0 : i32
    %c0_i32_1 = arith.constant 0 : i32
    return %arg0, %c0_i32, %c0_i32_0 : i32, i32, i32
  }
  func.func @transform_3(%arg0: i32) -> (i32, i32, i32) {
    %c0_i32 = arith.constant 0 : i32
    %c0_i32_0 = arith.constant 0 : i32
    %c0_i32_1 = arith.constant 0 : i32
    return %arg0, %c0_i32, %c0_i32_0 : i32, i32, i32
  }
  func.func @transform_4(%arg0: i32) -> (i32, i32, i32) {
    %c0_i32 = arith.constant 0 : i32
    %c0_i32_0 = arith.constant 0 : i32
    %c0_i32_1 = arith.constant 0 : i32
    %c0_i32_2 = arith.constant 0 : i32
    return %c0_i32, %c0_i32_0, %c0_i32_1 : i32, i32, i32
  }
  func.func @transform_5(%arg0: i32) -> (i32, i32) {
    %c0_i32 = arith.constant 0 : i32
    %c0_i32_0 = arith.constant 0 : i32
    %c0_i32_1 = arith.constant 0 : i32
    return %c0_i32, %c0_i32_0 : i32, i32
  }
  func.func @transform_6(%arg0: i32) -> (i32, i32) {
    %c0_i32 = arith.constant 0 : i32
    %c0_i32_0 = arith.constant 0 : i32
    %c0_i32_1 = arith.constant 0 : i32
    return %c0_i32, %c0_i32_0 : i32, i32
  }
  func.func @transform_7(%arg0: i32) -> (i32, i32) {
    %c0_i32 = arith.constant 0 : i32
    %c0_i32_0 = arith.constant 0 : i32
    %c0_i32_1 = arith.constant 0 : i32
    return %c0_i32, %c0_i32_0 : i32, i32
  }
  func.func @transform_8(%arg0: i32) -> (i32, i32) {
    %c0_i32 = arith.constant 0 : i32
    %c0_i32_0 = arith.constant 0 : i32
    %c0_i32_1 = arith.constant 0 : i32
    return %c0_i32, %c0_i32_0 : i32, i32
  }
  func.func @transform_9(%arg0: i32) -> (i32, i32) {
    %c0_i32 = arith.constant 0 : i32
    %c0_i32_0 = arith.constant 0 : i32
    %c0_i32_1 = arith.constant 0 : i32
    return %c0_i32, %c0_i32_0 : i32, i32
  }
  func.func @transform_10(%arg0: i32) -> (i32, i32) {
    %c0_i32 = arith.constant 0 : i32
    %c0_i32_0 = arith.constant 0 : i32
    %c0_i32_1 = arith.constant 0 : i32
    return %c0_i32, %c0_i32_0 : i32, i32
  }
  func.func @transform_11(%arg0: i32) -> (i32, i32, i32) {
    %c0_i32 = arith.constant 0 : i32
    %c0_i32_0 = arith.constant 0 : i32
    %c0_i32_1 = arith.constant 0 : i32
    return %arg0, %c0_i32, %c0_i32_0 : i32, i32, i32
  }
}

</mosaic_0001>

<bundles_post_ra>
// kernel: convgru_standard_unit.1
= control target key start
LH: loop header
LB: loop body
LE: loop exit
PB: predicated region body
PF: predicated region fallthrough
CT: control target
= control target key end

     0   :  { %s9745_s17 = smov 0   ;;  %s16538_s0 = inlined_call_operand.vmem [shape: f32[2,18,18,16], index: 0, kind: input, shape index: {}]   ;;  %s16539_s1 = inlined_call_operand.vmem [shape: f32[2,18,18,4], index: 1, kind: input, shape index: {}]   ;;  %s16540_s2 = inlined_call_operand.vmem [shape: f32[2,256,8], index: 2, kind: input, shape index: {}]   ;;  %s16541_s3 = inlined_call_operand.vmem [shape: f32[2,256,8], index: 3, kind: input, shape index: {}]   ;;  %s16542_s4 = inlined_call_operand.vmem [shape: f32[1,256,1], index: 4, kind: input, shape index: {}]   ;;  %s16543_s5 = inlined_call_operand.vmem [shape: bf16[144,16], index: 5, kind: input, shape index: {}]   ;;  %s16544_s6 = inlined_call_operand.vmem [shape: bf16[36,16], index: 6, kind: input, shape index: {}]   ;;  %s16545_s7 = inlined_call_operand.vmem [shape: f32[1,16], index: 7, kind: input, shape index: {}]   ;;  %s16546_s8 = inlined_call_operand.vmem [shape: bf16[144,16], index: 8, kind: input, shape index: {}]   ;;  %s16547_s9 = inlined_call_operand.vmem [shape: bf16[36,16], index: 9, kind: input, shape index: {}]   ;;  %s16548_s10 = inlined_call_operand.vmem [shape: f32[1,16], index: 10, kind: input, shape index: {}]   ;;  %s16549_s11 = inlined_call_operand.vmem [shape: f32[2,256,16], index: 11, kind: output, shape index: {}]  }
   0x1 LB: > { %s7325_s18 = sadd.s32 4294967295, %s9668_s17   ;;  %p7329_p0 = scmp.ge.s32.totalorder %s9668_s17, 1  ;;  %s9668_s17 = sphi %s9745_s17, %s21_s17  }
   0x2   : > { %p367_p1 = scmp.lt.s32.totalorder %s9668_s17, 3 }
   0x4   : > { %p368_p2 = pnand %p7329_p0, %p367_p1 }
   0x6   : > { %371 = sbr.rel (%p368_p2) target bundleno = 1897 (0x769), region = 64 }
   0xb   : > { %p422_p3 = scmp.lt.s32.totalorder %s7325_s18, 1  ;;  %vm604_vm0 = vcmask 1046528   ;;  %s9670_s23 = smov 16   ;;  %vm685_vm1 = vcmask 1045504   ;;  %vm3126_vm2 = vcmask 1041408   ;;  %vm2761_vm3 = vcmask 31744  }
   0xc   : > { %s9671_s24 = smov 32   ;;  %s9672_s25 = smov 48   ;;  %vm2794_vm4 = vcmask 64512   ;;  %vm2827_vm5 = vcmask 97280   ;;  %vm1496_vm6 = vcmask 130048   ;;  %vm2892_vm7 = vcmask 162816  }
   0xd   : > { %s18141_s18 = smov (!%p422_p3, %s7325_s18), 1  ;;  %s9673_s26 = smov 64   ;;  %vm2925_vm8 = vcmask 195584   ;;  %vm2958_vm9 = vcmask 228352   ;;  %vm1529_vm10 = vcmask 261120   ;;  %vm3077_vm11 = vcmask 293888  }
   0xe   : > { %s7581_s19 = smul.u32 432, %s18141_s18  ;;  %s9674_s27 = smov 80   ;;  %vm1562_vm12 = vcmask 392192   ;;  %vm1595_vm13 = vcmask 523264   ;;  %vm1628_vm14 = vcmask 654336   ;;  %vm1661_vm15 = vcmask 785408  }
   0xf   : > { %s9675_s28 = smov 96   ;;  %s9676_s29 = smov 112  }
  0x10   : > { %s9761_s22 = scalar_lea.vmem %s16538_s0, %s7581_s19  ;;  %s10593_s13 = scalar_lea.vmem %s16539_s1, %s7581_s19 }
  0x11   : > { %v9764_v0 = vld [vmem:[%s9761_s22 + $0x30] sm:$0xff]  ;;  %v9767_v1 = vld [vmem:[%s9761_s22 + $0x38] sm:$0xff]  ;;  %v9770_v2 = vld [vmem:[%s9761_s22 + $0x40] sm:$0x3]  ;;  %s9677_s14 = smov 4   ;;  %s9678_s15 = smov 8  }
  0x12   : > { %v615_v3 = vrot.slane %v9764_v0, 1  ;;  %v616_v4 = vrot.slane %v9767_v1, 1  ;;  %v618_v5 = vrot.slane %v9770_v2, 1  ;;  %v9776_v6 = vld [vmem:[%s9761_s22] sm:$0xff]  ;;  %v9779_v7 = vld [vmem:[%s9761_s22 + $0x8] sm:$0xff]  ;;  %v9790_v12 = vld [vmem:[%s9761_s22 + $0x50] sm:$0xff] }
  0x13   : > { %v9782_v8 = vld [vmem:[%s9761_s22 + $0x48] sm:$0xff]  ;;  %v9785_v9 = vld [vmem:[%s9761_s22 + $0x10] sm:$0x3]  ;;  %v605_v10 = vrot.slane %v9776_v6, 1  ;;  %v606_v11 = vrot.slane %v9779_v7, 1  ;;  %v621_v18 = vrot.slane %v9790_v12, 1 }
  0x14   : > { %v620_v13 = vrot.slane %v9782_v8, 1  ;;  %v617_v14 = vsel %vm604_vm0, %v615_v3, %v616_v4  ;;  %v619_v15 = vsel %vm604_vm0, %v616_v4, %v618_v5  ;;  %v608_v16 = vrot.slane %v9785_v9, 1  ;;  %v9797_v17 = vld [vmem:[%s9761_s22 + $0x58] sm:$0x3]  ;;  %v9804_v20 = vld [vmem:[%s9761_s22 + $0x20] sm:$0xff]  ;;  %v9831_v34 = vld [vmem:[%s9761_s22 + $0x68] sm:$0xff] }
  0x15   : > { %v9801_v19 = vld [vmem:[%s9761_s22 + $0x18] sm:$0xff]  ;;  %v9806_v21 = vpack.i.bf16 %v619_v15, %v617_v14  ;;  %v607_v22 = vsel %vm604_vm0, %v605_v10, %v606_v11  ;;  %v623_v23 = vrot.slane %v9797_v17, 1  ;;  %v9811_v24 = vld [vmem:[%s9761_s22 + $0x28] sm:$0x3]  ;;  %v9818_v27 = vld [vmem:[%s9761_s22 + $0x80] sm:$0xff]  ;;  %v611_v30 = vrot.slane %v9804_v20, 1 }
  0x16   : > { %v610_v25 = vrot.slane %v9801_v19, 1  ;;  %v9815_v26 = vld [vmem:[%s9761_s22 + $0x78] sm:$0xff]  ;;  %v609_v28 = vsel %vm604_vm0, %v606_v11, %v608_v16  ;;  %v622_v29 = vsel %vm604_vm0, %v620_v13, %v621_v18  ;;  %v613_v31 = vrot.slane %v9811_v24, 1  ;;  %v9825_v32 = vld [vmem:[%s9761_s22 + $0x88] sm:$0x3]  ;;  %v9828_v33 = vld [vmem:[%s9761_s22 + $0x60] sm:$0xff] }
  0x17   : > { %17097 = vst [vmem:[#allocation2_spill] sm:$0xff] %v9806_v21  ;;  %7616 = vrot.lane.b32.xlu1 %v9806_v21, %s9670_s23  ;;  %v7605_v35 = vpack.i.bf16 %v609_v28, %v607_v22  ;;  %v624_v36 = vsel %vm604_vm0, %v621_v18, %v623_v23  ;;  %v630_v37 = vrot.slane %v9815_v26, 1  ;;  %v631_v38 = vrot.slane %v9818_v27, 1  ;;  %v9839_v39 = vld [vmem:[%s9761_s22 + $0x70] sm:$0x3]  ;;  %v9842_v40 = vld [vmem:[%s9761_s22 + $0xa8] sm:$0xff] }
  0x18   : > { %v9845_v41 = vld [vmem:[%s9761_s22 + $0xb0] sm:$0xff]  ;;  %v9847_v42 = vpack.i.bf16 %v624_v36, %v622_v29  ;;  %v612_v43 = vsel %vm604_vm0, %v610_v25, %v611_v30  ;;  %v614_v44 = vsel %vm604_vm0, %v611_v30, %v613_v31  ;;  %v633_v45 = vrot.slane %v9825_v32, 1  ;;  %v9853_v46 = vld [vmem:[%s9761_s22 + $0xb8] sm:$0x3]  ;;  %v9868_v53 = vld [vmem:[%s9761_s22 + $0xa0] sm:$0x3] }
  0x19   : > { %v9856_v47 = vld [vmem:[%s9761_s22 + $0x90] sm:$0xff]  ;;  %7606 = vrot.lane.b32.xlu0 %v7605_v35, %s9670_s23  ;;  %v9859_v48 = vpack.i.bf16 %v614_v44, %v612_v43  ;;  %v632_v49 = vsel %vm604_vm0, %v630_v37, %v631_v38  ;;  %v625_v50 = vrot.slane %v9828_v33, 1  ;;  %v626_v51 = vrot.slane %v9831_v34, 1  ;;  %v9865_v52 = vld [vmem:[%s9761_s22 + $0x98] sm:$0xff]  ;;  %v9878_v59 = vld [vmem:[%s9761_s22 + $0xe0] sm:$0xff]  ;;  %s9679_s16 = smov 12  }
  0x1a   : > { %17098 = vst [vmem:[#allocation3_spill] sm:$0xff] %v9847_v42  ;;  %v634_v54 = vsel %vm604_vm0, %v631_v38, %v633_v45  ;;  %v628_v55 = vrot.slane %v9839_v39, 1  ;;  %v640_v56 = vrot.slane %v9842_v40, 1  ;;  %v641_v57 = vrot.slane %v9845_v41, 1  ;;  %v9875_v58 = vld [vmem:[%s9761_s22 + $0xd8] sm:$0xff]  ;;  %v9895_v13 = vld [vmem:[%s9761_s22 + $0xc0] sm:$0xff] }
  0x1b   : > { %17099 = vst [vmem:[#allocation4_spill] sm:$0xff] %v9859_v48  ;;  %7621 = vrot.lane.b32.xlu1 %v9847_v42, %s9670_s23  ;;  %v9882_v60 = vpack.i.bf16 %v634_v54, %v632_v49  ;;  %v627_v61 = vsel %vm604_vm0, %v625_v50, %v626_v51  ;;  %v643_v62 = vrot.slane %v9853_v46, 1  ;;  %v635_v63 = vrot.slane %v9856_v47, 1  ;;  %v9888_v3 = vld [vmem:[%s9761_s22 + $0xe8] sm:$0x3]  ;;  %v9914_v28 = vld [vmem:[%s9761_s22 + $0x110] sm:$0xff] }
  0x1c   : > { %v629_v4 = vsel %vm604_vm0, %v626_v51, %v628_v55  ;;  %v642_v5 = vsel %vm604_vm0, %v640_v56, %v641_v57  ;;  %v636_v10 = vrot.slane %v9865_v52, 1  ;;  %v638_v11 = vrot.slane %v9868_v53, 1  ;;  %v9898_v14 = vld [vmem:[%s9761_s22 + $0xc8] sm:$0xff]  ;;  %v9908_v23 = vld [vmem:[%s9761_s22 + $0xd0] sm:$0x3]  ;;  %v9933_v45 = vld [vmem:[%s9761_s22 + $0xf8] sm:$0xff] }
  0x1d   : > { %17100 = vst [vmem:[#allocation5_spill] sm:$0xff] %v9882_v60  ;;  %7611 = vrot.lane.b32.xlu0 %v9859_v48, %s9670_s23  ;;  %v9902_v15 = vpack.i.bf16 %v629_v4, %v627_v61  ;;  %v644_v16 = vsel %vm604_vm0, %v641_v57, %v643_v62  ;;  %v650_v18 = vrot.slane %v9875_v58, 1  ;;  %v651_v22 = vrot.slane %v9878_v59, 1  ;;  %v9911_v25 = vld [vmem:[%s9761_s22 + $0x108] sm:$0xff]  ;;  %v9920_v35 = vld [vmem:[%s9761_s22 + $0x118] sm:$0x3] }
  0x1e   : > { %v637_v29 = vsel %vm604_vm0, %v635_v63, %v636_v10  ;;  %v639_v30 = vsel %vm604_vm0, %v636_v10, %v638_v11  ;;  %v653_v31 = vrot.slane %v9888_v3, 1  ;;  %v9923_v36 = vld [vmem:[%s9761_s22 + $0xf0] sm:$0xff]  ;;  %v9927_v37 = vpack.i.bf16 %v644_v16, %v642_v5  ;;  %17103 = vst [vmem:[#allocation8_spill] sm:$0xff] %v9933_v45  ;;  %v9936_v49 = vld [vmem:[%s9761_s22 + $0x100] sm:$0x3]  ;;  %v9939_v50 = vld [vmem:[%s9761_s22 + $0x138] sm:$0xff] }
  0x1f   : > { %17101 = vst [vmem:[#allocation6_spill] sm:$0xff] %v9902_v15  ;;  %7631 = vrot.lane.b32.xlu1 %v9882_v60, %s9670_s23  ;;  %v652_v38 = vsel %vm604_vm0, %v650_v18, %v651_v22  ;;  %v645_v43 = vrot.slane %v9895_v13, 1  ;;  %v646_v44 = vrot.slane %v9898_v14, 1  ;;  %17104 = vst [vmem:[#allocation9_spill] sm:$0xff] %v9936_v49  ;;  %v648_v54 = vrot.slane %v9908_v23, 1  ;;  %v9946_v57 = vld [vmem:[%s9761_s22 + $0x140] sm:$0xff] }
  0x20   : > { %17102 = vst [vmem:[#allocation7_spill] sm:$0xff] %v9927_v37  ;;  %v654_v51 = vsel %vm604_vm0, %v651_v22, %v653_v31  ;;  %v660_v55 = vrot.slane %v9911_v25, 1  ;;  %v661_v56 = vrot.slane %v9914_v28, 1  ;;  %v9949_v61 = vld [vmem:[%s9761_s22 + $0x148] sm:$0x3]  ;;  %v9953_v62 = vpack.i.bf16 %v639_v30, %v637_v29  ;;  %v9958_v5 = vld [vmem:[%s9761_s22 + $0x120] sm:$0xff] }
  0x21   : > { %7626 = vrot.lane.b32.xlu0 %v9902_v15, %s9670_s23  ;;  %v663_v63 = vrot.slane %v9920_v35, 1  ;;  %v655_v4 = vrot.slane %v9923_v36, 1  ;;  %v9961_v10 = vld [vmem:[%s9761_s22 + $0x128] sm:$0xff]  ;;  %v9964_v11 = vld [vmem:[%s9761_s22 + $0x130] sm:$0x3]  ;;  %v647_v16 = vsel %vm604_vm0, %v645_v43, %v646_v44  ;;  %v649_v18 = vsel %vm604_vm0, %v646_v44, %v648_v54  ;;  %v9990_v48 = vld [vmem:[%s9761_s22 + $0x158] sm:$0xff] }
  0x22   : > { %17105 = vst [vmem:[#allocation10_spill] sm:$0xff] %v9953_v62  ;;  %17106 = vst [vmem:[#allocation11_spill] sm:$0xff] %v9961_v10  ;;  %v656_v22 = vrot.slane %v9933_v45, 1  ;;  %v658_v29 = vrot.slane %v9936_v49, 1  ;;  %v9971_v30 = vld [vmem:[%s9761_s22 + $0x168] sm:$0xff]  ;;  %v9974_v31 = vld [vmem:[%s9761_s22 + $0x170] sm:$0xff]  ;;  %v9981_v42 = vpack.i.bf16 %v654_v51, %v652_v38  ;;  %v662_v43 = vsel %vm604_vm0, %v660_v55, %v661_v56 }
  0x23   : > { %17107 = vst [vmem:[#allocation12_spill] sm:$0xff] %v9964_v11  ;;  %17108 = vst [vmem:[#allocation13_spill] sm:$0xff] %v9971_v30  ;;  %v9977_v60 = vld [vmem:[%s9761_s22 + $0x178] sm:$0x3]  ;;  %7641 = vrot.lane.b32.xlu1 %v9927_v37, %s9670_s23  ;;  %v664_v44 = vsel %vm604_vm0, %v661_v56, %v663_v63  ;;  %v670_v54 = vrot.slane %v9939_v50, 1  ;;  %v9987_v15 = vld [vmem:[%s9761_s22 + $0x150] sm:$0xff]  ;;  %v9998_v51 = vpack.i.bf16 %v649_v18, %v647_v16 }
  0x24   : > { %17109 = vst [vmem:[#allocation14_spill] sm:$0xff] %v9981_v42  ;;  %v657_v21 = vsel %vm604_vm0, %v655_v4, %v656_v22  ;;  %v659_v49 = vsel %vm604_vm0, %v656_v22, %v658_v29  ;;  %v671_v45 = vrot.slane %v9946_v57, 1  ;;  %v673_v38 = vrot.slane %v9949_v61, 1  ;;  %v10005_v4 = vld [vmem:[%s9761_s22 + $0x160] sm:$0x3]  ;;  %s9680_s19 = smov 20  }
  0x25   : > { %7636 = vrot.lane.b32.xlu0 %v9953_v62, %s9670_s23  ;;  %17110 = vst [vmem:[#allocation15_spill] sm:$0xff] %v9998_v51  ;;  %v665_v55 = vrot.slane %v9958_v5, 1  ;;  %v666_v56 = vrot.slane %v9961_v10, 1  ;;  %v668_v63 = vrot.slane %v9964_v11, 1  ;;  %v680_v37 = vrot.slane %v9971_v30, 1  ;;  %s9681_s20 = smov 24  }
  0x26   : > { %v10009_v22 = vpack.i.bf16 %v664_v44, %v662_v43  ;;  %v10011_v29 = vpack.i.bf16 %v659_v49, %v657_v21  ;;  %v681_v16 = vrot.slane %v9974_v31, 1  ;;  %v683_v18 = vrot.slane %v9977_v60, 1  ;;  %s9682_s21 = smov 28  }
  0x27   : > { %7651 = vrot.lane.b32.xlu1 %v9981_v42, %s9670_s23  ;;  %v672_v62 = vsel %vm604_vm0, %v670_v54, %v671_v45  ;;  %v674_v10 = vsel %vm604_vm0, %v671_v45, %v673_v38  ;;  %v675_v11 = vrot.slane %v9987_v15, 1  ;;  %v676_v30 = vrot.slane %v9990_v48, 1 }
  0x28   : > { %17111 = vst [vmem:[#allocation16_spill] sm:$0xff] %v10009_v22  ;;  %v667_v43 = vsel %vm604_vm0, %v665_v55, %v666_v56  ;;  %v669_v21 = vsel %vm604_vm0, %v666_v56, %v668_v63  ;;  %v678_v49 = vrot.slane %v10005_v4, 1  ;;  %v691_v44 = vrot.slane %v9801_v19, 2 }
  0x29   : > { %7646 = vrot.lane.b32.xlu0 %v9998_v51, %s9670_s23  ;;  %v692_v42 = vrot.slane %v9804_v20, 2  ;;  %v694_v54 = vrot.slane %v9811_v24, 2  ;;  %v10029_v45 = vpack.i.bf16 %v674_v10, %v672_v62  ;;  %v10031_v38 = vpack.i.bf16 %v669_v21, %v667_v43 }
  0x2a   : > { %v682_v55 = vsel %vm604_vm0, %v680_v37, %v681_v16  ;;  %v684_v56 = vsel %vm604_vm0, %v681_v16, %v683_v18  ;;  %v677_v63 = vsel %vm604_vm0, %v675_v11, %v676_v30  ;;  %v679_v51 = vsel %vm604_vm0, %v676_v30, %v678_v49 }
  0x2b   : > { %7661 = vrot.lane.b32.xlu1 %v10009_v22, %s9670_s23  ;;  %v686_v24 = vrot.slane %v9776_v6, 2  ;;  %v687_v22 = vrot.slane %v9779_v7, 2  ;;  %v693_v62 = vsel %vm685_vm1, %v691_v44, %v692_v42  ;;  %v695_v10 = vsel %vm685_vm1, %v692_v42, %v694_v54 }
  0x2c   : > { %v689_v43 = vrot.slane %v9785_v9, 2  ;;  %v701_v37 = vrot.slane %v9782_v8, 2  ;;  %v10047_v16 = vpack.i.bf16 %v684_v56, %v682_v55  ;;  %v702_v11 = vrot.slane %v9790_v12, 2 }
  0x2d   : > { %7656 = vrot.lane.b32.xlu0 %v10011_v29, %s9670_s23  ;;  %v704_v30 = vrot.slane %v9797_v17, 2  ;;  %v10053_v6 = vpack.i.bf16 %v679_v51, %v677_v63  ;;  %v10055_v7 = vpack.i.bf16 %v695_v10, %v693_v62  ;;  %v688_v9 = vsel %vm685_vm1, %v686_v24, %v687_v22 }
  0x2e   : > { %v690_v42 = vsel %vm685_vm1, %v687_v22, %v689_v43  ;;  %v696_v18 = vrot.slane %v9764_v0, 2  ;;  %v697_v21 = vrot.slane %v9767_v1, 2  ;;  %v699_v49 = vrot.slane %v9770_v2, 2 }
  0x2f   : > { %7671 = vrot.lane.b32.xlu1 %v10029_v45, %s9670_s23  ;;  %v10065_v17 = vsel %vm685_vm1, %v701_v37, %v702_v11  ;;  %v10068_v51 = vsel %vm685_vm1, %v702_v11, %v704_v30  ;;  %v711_v44 = vrot.slane %v9815_v26, 2  ;;  %v712_v54 = vrot.slane %v9818_v27, 2 }
  0x30   : > { %17112 = vst [vmem:[#allocation17_spill] sm:$0xff] %v10065_v17  ;;  %17113 = vst [vmem:[#allocation18_spill] sm:$0xff] %v10068_v51  ;;  %v714_v22 = vrot.slane %v9825_v32, 2  ;;  %v706_v55 = vrot.slane %v9828_v33, 2  ;;  %v707_v56 = vrot.slane %v9831_v34, 2  ;;  %v709_v2 = vrot.slane %v9839_v39, 2 }
  0x31   : > { %7666 = vrot.lane.b32.xlu0 %v10031_v38, %s9670_s23  ;;  %v7685_v63 = vpack.i.bf16 %v690_v42, %v688_v9  ;;  %v10079_v24 = vsel %vm685_vm1, %v696_v18, %v697_v21  ;;  %v10082_v62 = vsel %vm685_vm1, %v697_v21, %v699_v49  ;;  %v10088_v32 = vpack.i.bf16 %v10068_v51, %v10065_v17  ;;  %v17127_v51 = vld [vmem:[#allocation9_spill] sm:$0xff] }
  0x32   : > { %17114 = vst [vmem:[#allocation19_spill] sm:$0xff] %v10079_v24  ;;  %17115 = vst [vmem:[#allocation20_spill] sm:$0xff] %v10082_v62  ;;  %v10091_v39 = vsel %vm685_vm1, %v711_v44, %v712_v54  ;;  %v721_v10 = vrot.slane %v9842_v40, 2  ;;  %v722_v43 = vrot.slane %v9845_v41, 2  ;;  %v10096_v37 = vsel %vm685_vm1, %v712_v54, %v714_v22 }
  0x33   : > { %7681 = vrot.lane.b32.xlu1 %v10047_v16, %s9670_s23  ;;  %17116 = vst [vmem:[#allocation21_spill] sm:$0xff] %v10091_v39  ;;  %17117 = vst [vmem:[#allocation22_spill] sm:$0xff] %v10096_v37  ;;  %v10099_v11 = vsel %vm685_vm1, %v706_v55, %v707_v56  ;;  %v10102_v30 = vsel %vm685_vm1, %v707_v56, %v709_v2  ;;  %v724_v9 = vrot.slane %v9853_v46, 2  ;;  %v716_v18 = vrot.slane %v9856_v47, 2 }
  0x34   : > { %17118 = vst [vmem:[#allocation23_spill] sm:$0xff] %v10099_v11  ;;  %17119 = vst [vmem:[#allocation24_spill] sm:$0xff] %v10102_v30  ;;  %v10108_v42 = vpack.i.bf16 %v10082_v62, %v10079_v24  ;;  %v717_v21 = vrot.slane %v9865_v52, 2  ;;  %v719_v49 = vrot.slane %v9868_v53, 2  ;;  %v10117_v44 = vpack.i.bf16 %v10096_v37, %v10091_v39  ;;  %v496_v62 = vld [vmem:[%s9761_s22 + $0x180] sm:$0xff] }
  0x35   : > { %7676 = vrot.lane.b32.xlu0 %v10053_v6, %s9670_s23  ;;  %v10121_v46 = vpack.i.bf16 %v10102_v30, %v10099_v11  ;;  %v10124_v54 = vsel %vm685_vm1, %v721_v10, %v722_v43  ;;  %v10127_v22 = vsel %vm685_vm1, %v722_v43, %v724_v9  ;;  %v731_v55 = vrot.slane %v9875_v58, 2  ;;  %v17126_v11 = vld [vmem:[#allocation8_spill] sm:$0xff] }
  0x36   : > { %17120 = vst [vmem:[#allocation25_spill] sm:$0xff] %v10117_v44  ;;  %17121 = vst [vmem:[#allocation26_spill] sm:$0xff] %v10124_v54  ;;  %v732_v53 = vrot.slane %v9878_v59, 2  ;;  %v734_v56 = vrot.slane %v9888_v3, 2  ;;  %v10135_v2 = vsel %vm685_vm1, %v716_v18, %v717_v21  ;;  %v727_v10 = vrot.slane %v9898_v14, 2 }
  0x37   : > { %7691 = vrot.lane.b32.xlu1 %v10055_v7, %s9671_s24  ;;  %17122 = vst [vmem:[#allocation27_spill] sm:$0xff] %v10127_v22  ;;  %17123 = vst [vmem:[#allocation28_spill] sm:$0xff] %v10135_v2  ;;  %v729_v37 = vrot.slane %v9908_v23, 2  ;;  %v10141_v43 = vsel %vm685_vm1, %v717_v21, %v719_v49  ;;  %v741_v9 = vrot.slane %v9911_v25, 2  ;;  %v742_v39 = vrot.slane %v9914_v28, 2 }
  0x38   : > { %17124 = vst [vmem:[#allocation29_spill] sm:$0xff] %v10141_v43  ;;  %v744_v3 = vrot.slane %v9920_v35, 2  ;;  %v10150_v18 = vpack.i.bf16 %v10127_v22, %v10124_v54  ;;  %v736_v30 = vrot.slane %v9923_v36, 2  ;;  %v737_v23 = vrot.slane %v17126_v11, 2 }
  0x39   : > { %7686 = vrot.lane.b32.xlu0 %v7685_v63, %s9671_s24  ;;  %v726_v63 = vrot.slane %v9895_v13, 2  ;;  %v739_v21 = vrot.slane %v17127_v51, 2  ;;  %v10156_v49 = vsel %vm685_vm1, %v731_v55, %v732_v53  ;;  %v10159_v17 = vsel %vm685_vm1, %v732_v53, %v734_v56 }
  0x3a   : > { %17125 = vst [vmem:[#allocation30_spill] sm:$0xff] %v10150_v18  ;;  %17128 = vst [vmem:[#allocation8_spill] sm:$0xff] %v10156_v49  ;;  %v10165_v35 = vpack.i.bf16 %v10141_v43, %v10135_v2  ;;  %v10171_v54 = vsel %vm685_vm1, %v727_v10, %v729_v37  ;;  %v10174_v51 = vsel %vm685_vm1, %v741_v9, %v742_v39  ;;  %v751_v53 = vrot.slane %v9939_v50, 2 }
  0x3b   : > { %7701 = vrot.lane.b32.xlu1 %v10088_v32, %s9671_s24  ;;  %17129 = vst [vmem:[#allocation9_spill] sm:$0xff] %v10159_v17  ;;  %v10168_v22 = vsel %vm685_vm1, %v726_v63, %v727_v10  ;;  %17131 = vst [vmem:[#allocation32_spill] sm:$0xff] %v10171_v54  ;;  %v10177_v55 = vsel %vm685_vm1, %v742_v39, %v744_v3  ;;  %v752_v56 = vrot.slane %v9946_v57, 2  ;;  %v754_v9 = vrot.slane %v9949_v61, 2 }
  0x3c   : > { %17130 = vst [vmem:[#allocation31_spill] sm:$0xff] %v10168_v22  ;;  %17132 = vst [vmem:[#allocation33_spill] sm:$0xff] %v10174_v51  ;;  %v10185_v63 = vpack.i.bf16 %v10159_v17, %v10156_v49  ;;  %v10188_v37 = vsel %vm685_vm1, %v736_v30, %v737_v23  ;;  %v10191_v10 = vsel %vm685_vm1, %v737_v23, %v739_v21  ;;  %v746_v30 = vrot.slane %v9958_v5, 2  ;;  %v17139_v17 = vld [vmem:[#allocation11_spill] sm:$0xff]  ;;  %v17140_v21 = vld [vmem:[#allocation12_spill] sm:$0xff] }
  0x3d   : > { %7696 = vrot.lane.b32.xlu0 %v10108_v42, %s9671_s24  ;;  %17133 = vst [vmem:[#allocation34_spill] sm:$0xff] %v10177_v55  ;;  %17135 = vst [vmem:[#allocation36_spill] sm:$0xff] %v10188_v37  ;;  %v10195_v39 = vpack.i.bf16 %v10171_v54, %v10168_v22  ;;  %v10202_v3 = vpack.i.bf16 %v10177_v55, %v10174_v51  ;;  %v747_v23 = vrot.slane %v17139_v17, 2  ;;  %v749_v49 = vrot.slane %v17140_v21, 2  ;;  %v498_v22 = vld [vmem:[%s9761_s22 + $0x190] sm:$0x3] }
  0x3e   : > { %17134 = vst [vmem:[#allocation35_spill] sm:$0xff] %v10185_v63  ;;  %17136 = vst [vmem:[#allocation37_spill] sm:$0xff] %v10191_v10  ;;  %v10209_v54 = vpack.i.bf16 %v10191_v10, %v10188_v37  ;;  %v10212_v61 = vsel %vm685_vm1, %v751_v53, %v752_v56  ;;  %v10218_v55 = vsel %vm685_vm1, %v752_v56, %v754_v9  ;;  %v17143_v51 = vld [vmem:[#allocation13_spill] sm:$0xff]  ;;  %v762_v2 = vrot.slane %v9974_v31, 2  ;;  %v497_v56 = vld [vmem:[%s9761_s22 + $0x188] sm:$0xff] }
  0x3f   : > { %7711 = vrot.lane.b32.xlu1 %v10117_v44, %s9671_s24  ;;  %17137 = vst [vmem:[#allocation38_spill] sm:$0xff] %v10195_v39  ;;  %17138 = vst [vmem:[#allocation39_spill] sm:$0xff] %v10202_v3  ;;  %v761_v43 = vrot.slane %v17143_v51, 2  ;;  %v764_v21 = vrot.slane %v9977_v60, 2  ;;  %v10227_v53 = vsel %vm685_vm1, %v746_v30, %v747_v23  ;;  %v10230_v10 = vsel %vm685_vm1, %v747_v23, %v749_v49 }
  0x40   : > { %17141 = vst [vmem:[#allocation11_spill] sm:$0xff] %v10212_v61  ;;  %17142 = vst [vmem:[#allocation12_spill] sm:$0xff] %v10218_v55  ;;  %v756_v37 = vrot.slane %v9987_v15, 2  ;;  %v769_v9 = vrot.slane %v496_v62, 1  ;;  %v757_v24 = vrot.slane %v9990_v48, 2  ;;  %v772_v60 = vrot.slane %v498_v22, 1 }
  0x41   : > { %7706 = vrot.lane.b32.xlu0 %v10121_v46, %s9671_s24  ;;  %17144 = vst [vmem:[#allocation13_spill] sm:$0xff] %v10227_v53  ;;  %17145 = vst [vmem:[#allocation40_spill] sm:$0xff] %v10230_v10  ;;  %v10240_v30 = vpack.i.bf16 %v10218_v55, %v10212_v61  ;;  %v10243_v49 = vsel %vm685_vm1, %v761_v43, %v762_v2  ;;  %v10246_v23 = vsel %vm685_vm1, %v762_v2, %v764_v21 }
  0x42   : > { %17146 = vst [vmem:[#allocation41_spill] sm:$0xff] %v10243_v49  ;;  %17147 = vst [vmem:[#allocation42_spill] sm:$0xff] %v10246_v23  ;;  %v10259_v55 = vsel %vm685_vm1, %v756_v37, %v757_v24  ;;  %v10268_v2 = vpack.i.bf16 %v10246_v23, %v10243_v49  ;;  %v775_v21 = vrot.slane %v497_v56, 2  ;;  %v10286_v37 = vpack.i.bf16 %v9767_v1, %v9764_v0 }
  0x43   : > { %7721 = vrot.lane.b32.xlu1 %v10150_v18, %s9671_s24  ;;  %v770_v18 = vrot.slane %v497_v56, 1  ;;  %17148 = vst [vmem:[#allocation43_spill] sm:$0xff] %v10259_v55  ;;  %v10303_v0 = vpack.i.bf16 %v9790_v12, %v9782_v8  ;;  %v10309_v1 = vpack.i.bf16 %v9865_v52, %v9856_v47  ;;  %v10321_v8 = vpack.i.bf16 %v9898_v14, %v9895_v13  ;;  %v17153_v52 = vld [vmem:[#allocation4_spill] sm:$0xff]  ;;  %v17156_v13 = vld [vmem:[#allocation10_spill] sm:$0xff]  ;;  %v17157_v14 = vld [vmem:[#allocation5_spill] sm:$0xff] }
  0x44   : > { %v10327_v12 = vpack.i.bf16 %v9845_v41, %v9842_v40  ;;  %v10363_v40 = vpack.i.bf16 %v9946_v57, %v9939_v50  ;;  %v10367_v41 = vpack.i.bf16 %v497_v56, %v496_v62  ;;  %v10373_v47 = vpack.i.bf16 %v9974_v31, %v17143_v51  ;;  %v17163_v57 = vld [vmem:[#allocation16_spill] sm:$0xff] }
  0x45   : > { %7716 = vrot.lane.b32.xlu0 %v10165_v35, %s9671_s24  ;;  %v773_v44 = vsel %vm604_vm0, %v770_v18, %v772_v60  ;;  %v10298_v60 = vpack.i.bf16 %v9831_v34, %v9828_v33  ;;  %v10351_v33 = vpack.i.bf16 %v9914_v28, %v9911_v25  ;;  %v10357_v34 = vpack.i.bf16 %v9990_v48, %v9987_v15  ;;  %v17152_v48 = vld [vmem:[#allocation2_spill] sm:$0xff]  ;;  %v17158_v15 = vld [vmem:[#allocation15_spill] sm:$0xff] }
  0x46   : > { %v17159_v25 = vld [vmem:[#allocation7_spill] sm:$0xff]  ;;  %v17160_v28 = vld [vmem:[#allocation14_spill] sm:$0xff] }
  0x47   : > { %7731 = vrot.lane.b32.xlu1 %v10185_v63, %s9671_s24  ;;  %v759_v63 = vrot.slane %v10005_v4, 2  ;;  %v10254_v4 = vpack.i.bf16 %v10230_v10, %v10227_v53 }
  0x49   : > { %7726 = vrot.lane.b32.xlu0 %v10195_v39, %s9671_s24  ;;  %v771_v39 = vsel %vm604_vm0, %v769_v9, %v770_v18  ;;  %v10262_v43 = vsel %vm685_vm1, %v757_v24, %v759_v63  ;;  %v774_v18 = vrot.slane %v496_v62, 2  ;;  %v777_v9 = vrot.slane %v498_v22, 2 }
  0x4a   : > { %17149 = vst [vmem:[#allocation44_spill] sm:$0xff] %v10262_v43 }
  0x4b   : > { %7741 = vrot.lane.b32.xlu1 %v10202_v3, %s9671_s24  ;;  %v10256_v3 = vpack.i.bf16 %v773_v44, %v771_v39  ;;  %v10274_v44 = vpack.i.bf16 %v10262_v43, %v10259_v55  ;;  %v10277_v24 = vsel %vm685_vm1, %v774_v18, %v775_v21  ;;  %v10280_v63 = vsel %vm685_vm1, %v775_v21, %v777_v9 }
  0x4c   : > { %17150 = vst [vmem:[#allocation45_spill] sm:$0xff] %v10277_v24  ;;  %17151 = vst [vmem:[#allocation46_spill] sm:$0xff] %v10280_v63  ;;  %v7765_v39 = vpack.i.bf16 %v9804_v20, %v9801_v19  ;;  %v10315_v19 = vpack.i.bf16 %v9818_v27, %v9815_v26  ;;  %v10333_v20 = vpack.i.bf16 %v17126_v11, %v9923_v36 }
  0x4d   : > { %7736 = vrot.lane.b32.xlu0 %v10209_v54, %s9671_s24  ;;  %v10339_v26 = vpack.i.bf16 %v9878_v59, %v9875_v58  ;;  %v10345_v27 = vpack.i.bf16 %v17139_v17, %v9958_v5  ;;  %v17154_v58 = vld [vmem:[#allocation6_spill] sm:$0xff]  ;;  %v17155_v59 = vld [vmem:[#allocation3_spill] sm:$0xff] }
  0x4f   : > { %7751 = vrot.lane.b32.xlu1 %v10240_v30, %s9671_s24 }
  0x51   : > { %7746 = vrot.lane.b32.xlu0 %v10254_v4, %s9671_s24 }
  0x53   : > { %7761 = vrot.lane.b32.xlu1 %v10268_v2, %s9671_s24 }
  0x55   : > { %7756 = vrot.lane.b32.xlu0 %v10274_v44, %s9671_s24 }
  0x57   : > { %7771 = vrot.lane.b32.xlu1 %v10286_v37, %s9672_s25 }
  0x59   : > { %7766 = vrot.lane.b32.xlu0 %v7765_v39, %s9672_s25 }
  0x5b   : > { %7781 = vrot.lane.b32.xlu1 %v10298_v60, %s9672_s25 }
  0x5d   : > { %7776 = vrot.lane.b32.xlu0 %v10303_v0, %s9672_s25 }
  0x5f   : > { %7791 = vrot.lane.b32.xlu1 %v10309_v1, %s9672_s25 }
  0x61   : > { %7786 = vrot.lane.b32.xlu0 %v10315_v19, %s9672_s25 }
  0x63   : > { %7801 = vrot.lane.b32.xlu1 %v10321_v8, %s9672_s25 }
  0x65   : > { %7796 = vrot.lane.b32.xlu0 %v10327_v12, %s9672_s25 }
  0x67   : > { %7811 = vrot.lane.b32.xlu1 %v10333_v20, %s9672_s25 }
  0x69   : > { %7806 = vrot.lane.b32.xlu0 %v10339_v26, %s9672_s25 }
  0x6b   : > { %7821 = vrot.lane.b32.xlu1 %v10345_v27, %s9672_s25 }
  0x6d   : > { %7816 = vrot.lane.b32.xlu0 %v10351_v33, %s9672_s25 }
  0x6f   : > { %7831 = vrot.lane.b32.xlu1 %v10357_v34, %s9672_s25 }
  0x71   : > { %7826 = vrot.lane.b32.xlu0 %v10363_v40, %s9672_s25 }
  0x73   : > { %7841 = vrot.lane.b32.xlu1 %v10367_v41, %s9672_s25 }
  0x75   : > { %7836 = vrot.lane.b32.xlu0 %v10373_v47, %s9672_s25 }
  0x77   : > { %7851 = vrot.lane.b32.xlu1 %v17152_v48, %s9673_s26 }
  0x79   : > { %7846 = vrot.lane.b32.xlu0 %v17153_v52, %s9673_s26  ;;  %v17177_v52 = vld [vmem:[#allocation38_spill] sm:$0xff] }
  0x7b   : > { %7861 = vrot.lane.b32.xlu1 %v17154_v58, %s9673_s26 }
  0x7d   : > { %7856 = vrot.lane.b32.xlu0 %v17155_v59, %s9673_s26 }
  0x7f   : > { %7871 = vrot.lane.b32.xlu1 %v17156_v13, %s9673_s26 }
  0x81   : > { %7866 = vrot.lane.b32.xlu0 %v17157_v14, %s9673_s26 }
  0x83   : > { %7881 = vrot.lane.b32.xlu1 %v17158_v15, %s9673_s26 }
  0x85   : > { %7876 = vrot.lane.b32.xlu0 %v17159_v25, %s9673_s26 }
  0x87   : > { %7891 = vrot.lane.b32.xlu1 %v10011_v29, %s9673_s26 }
  0x89   : > { %7886 = vrot.lane.b32.xlu0 %v17160_v28, %s9673_s26  ;;  %v10399_v36 = vpop.permute.xlu1 %7616 }
  0x8a   : > { %17161 = vst [vmem:[#allocation2_spill] sm:$0xff] %v10399_v36  ;;  %v10809_v36 = vld [vmem:[%s10593_s13 + $0xf8] sm:$0xff] }
  0x8b   : > { %v10401_v50 = vpop.permute.xlu0 %7606  ;;  %7901 = vrot.lane.b32.xlu1 %v10031_v38, %s9673_s26 }
  0x8c   : > { %17162 = vst [vmem:[#allocation4_spill] sm:$0xff] %v10401_v50  ;;  %v10842_v50 = vld [vmem:[%s10593_s13 + $0x128] sm:$0xff] }
  0x8d   : > { %7896 = vrot.lane.b32.xlu0 %v17163_v57, %s9673_s26  ;;  %v10407_v5 = vpop.permute.xlu1 %7621  ;;  %17237 = vst [vmem:[#allocation102_spill] sm:$0xff] %v10842_v50 }
  0x8e   : > { %17164 = vst [vmem:[#allocation6_spill] sm:$0xff] %v10407_v5  ;;  %v10787_v5 = vld [vmem:[%s10593_s13 + $0x108] sm:$0xff] }
  0x8f   : > { %v10409_v31 = vpop.permute.xlu0 %7611  ;;  %7911 = vrot.lane.b32.xlu1 %v10053_v6, %s9673_s26 }
  0x90   : > { %17165 = vst [vmem:[#allocation3_spill] sm:$0xff] %v10409_v31  ;;  %v1858_v31 = vrot.slane %v10809_v36, 1 }
  0x91   : > { %7906 = vrot.lane.b32.xlu0 %v10029_v45, %s9673_s26  ;;  %v10415_v17 = vpop.permute.xlu1 %7631 }
  0x92   : > { %17166 = vst [vmem:[#allocation10_spill] sm:$0xff] %v10415_v17 }
  0x93   : > { %v10417_v62 = vpop.permute.xlu0 %7626  ;;  %7921 = vrot.lane.b32.xlu1 %v10256_v3, %s9673_s26 }
  0x94   : > { %17167 = vst [vmem:[#allocation5_spill] sm:$0xff] %v10417_v62  ;;  %v10759_v62 = vld [vmem:[%s10593_s13 + $0xc0] sm:$0xff] }
  0x95   : > { %7916 = vrot.lane.b32.xlu0 %v10047_v16, %s9673_s26  ;;  %v10423_v11 = vpop.permute.xlu1 %7641 }
  0x96   : > { %17168 = vst [vmem:[#allocation15_spill] sm:$0xff] %v10423_v11 }
  0x97   : > { %v10425_v51 = vpop.permute.xlu0 %7636  ;;  %7931 = vrot.lane.b32.xlu1 %v10108_v42, %s9674_s27  ;;  %v17174_v42 = vld [vmem:[#allocation25_spill] sm:$0xff] }
  0x98   : > { %17169 = vst [vmem:[#allocation7_spill] sm:$0xff] %v10425_v51  ;;  %v10727_v51 = vld [vmem:[%s10593_s13 + $0x90] sm:$0xff] }
  0x99   : > { %7926 = vrot.lane.b32.xlu0 %v10055_v7, %s9674_s27  ;;  %v10431_v56 = vpop.permute.xlu1 %7651 }
  0x9a   : > { %17170 = vst [vmem:[#allocation14_spill] sm:$0xff] %v10431_v56  ;;  %v10683_v56 = vld [vmem:[%s10593_s13 + $0x60] sm:$0xff] }
  0x9b   : > { %v10433_v18 = vpop.permute.xlu0 %7646  ;;  %7941 = vrot.lane.b32.xlu1 %v10121_v46, %s9674_s27  ;;  %v17178_v46 = vld [vmem:[#allocation30_spill] sm:$0xff] }
  0x9c   : > { %17171 = vst [vmem:[#allocation16_spill] sm:$0xff] %v10433_v18 }
  0x9d   : > { %7936 = vrot.lane.b32.xlu0 %v10088_v32, %s9674_s27  ;;  %v10439_v21 = vpop.permute.xlu1 %7661 }
  0x9e   : > { %17172 = vst [vmem:[#allocation47_spill] sm:$0xff] %v10439_v21  ;;  %v10658_v21 = vld [vmem:[%s10593_s13 + $0x40] sm:$0x3] }
  0x9f   : > { %v10441_v9 = vpop.permute.xlu0 %7656  ;;  %7951 = vrot.lane.b32.xlu1 %v10165_v35, %s9674_s27  ;;  %v17181_v35 = vld [vmem:[#allocation35_spill] sm:$0xff] }
  0xa0   : > { %17173 = vst [vmem:[#allocation48_spill] sm:$0xff] %v10441_v9  ;;  %v10676_v9 = vld [vmem:[%s10593_s13 + $0x88] sm:$0x3] }
  0xa1   : > { %7946 = vrot.lane.b32.xlu0 %v17174_v42, %s9674_s27  ;;  %v10447_v7 = vpop.permute.xlu1 %7671 }
  0xa2   : > { %17175 = vst [vmem:[#allocation25_spill] sm:$0xff] %v10447_v7 }
  0xa3   : > { %v10449_v39 = vpop.permute.xlu0 %7666  ;;  %7961 = vrot.lane.b32.xlu1 %v17177_v52, %s9674_s27  ;;  %v17184_v52 = vld [vmem:[#allocation39_spill] sm:$0xff] }
  0xa4   : > { %17176 = vst [vmem:[#allocation49_spill] sm:$0xff] %v10449_v39  ;;  %v10643_v39 = vld [vmem:[%s10593_s13 + $0x58] sm:$0x3] }
  0xa5   : > { %7956 = vrot.lane.b32.xlu0 %v17178_v46, %s9674_s27  ;;  %v10455_v32 = vpop.permute.xlu1 %7681 }
  0xa6   : > { %17179 = vst [vmem:[#allocation38_spill] sm:$0xff] %v10455_v32 }
  0xa7   : > { %v10457_v22 = vpop.permute.xlu0 %7676  ;;  %7971 = vrot.lane.b32.xlu1 %v10209_v54, %s9674_s27  ;;  %v8000_v54 = vpack.i.bf16 %v10280_v63, %v10277_v24  ;;  %v500_v24 = vld [vmem:[%s9761_s22 + $0x1a0] sm:$0xff] }
  0xa8   : > { %17180 = vst [vmem:[#allocation30_spill] sm:$0xff] %v10457_v22 }
  0xa9   : > { %7966 = vrot.lane.b32.xlu0 %v17181_v35, %s9674_s27  ;;  %v10463_v42 = vpop.permute.xlu1 %7691 }
  0xaa   : > { %17182 = vst [vmem:[#allocation35_spill] sm:$0xff] %v10463_v42 }
  0xab   : > { %v10465_v23 = vpop.permute.xlu0 %7686  ;;  %7981 = vrot.lane.b32.xlu1 %v10254_v4, %s9674_s27 }
  0xac   : > { %17183 = vst [vmem:[#allocation50_spill] sm:$0xff] %v10465_v23  ;;  %v10839_v23 = vld [vmem:[%s10593_s13 + $0x120] sm:$0xff] }
  0xad   : > { %7976 = vrot.lane.b32.xlu0 %v17184_v52, %s9674_s27  ;;  %v10471_v46 = vpop.permute.xlu1 %7701  ;;  %17236 = vst [vmem:[#allocation101_spill] sm:$0xff] %v10839_v23 }
  0xae   : > { %17185 = vst [vmem:[#allocation39_spill] sm:$0xff] %v10471_v46 }
  0xaf   : > { %v10473_v32 = vpop.permute.xlu0 %7696  ;;  %7991 = vrot.lane.b32.xlu1 %v10274_v44, %s9674_s27 }
  0xb0   : > { %17186 = vst [vmem:[#allocation51_spill] sm:$0xff] %v10473_v32  ;;  %v10806_v32 = vld [vmem:[%s10593_s13 + $0xf0] sm:$0xff] }
  0xb1   : > { %7986 = vrot.lane.b32.xlu0 %v10240_v30, %s9674_s27  ;;  %v10481_v35 = vpop.permute.xlu1 %7711 }
  0xb2   : > { %17187 = vst [vmem:[#allocation52_spill] sm:$0xff] %v10481_v35 }
  0xb3   : > { %v10483_v22 = vpop.permute.xlu0 %7706  ;;  %8001 = vrot.lane.b32.xlu1 %v8000_v54, %s9674_s27 }
  0xb4   : > { %17188 = vst [vmem:[#allocation53_spill] sm:$0xff] %v10483_v22 }
  0xb5   : > { %7996 = vrot.lane.b32.xlu0 %v10268_v2, %s9674_s27  ;;  %v10488_v4 = vpop.permute.xlu1 %7721 }
  0xb6   : > { %17189 = vst [vmem:[#allocation54_spill] sm:$0xff] %v10488_v4  ;;  %v1835_v4 = vrot.slane %v10676_v9, 1 }
  0xb7   : > { %v10490_v52 = vpop.permute.xlu0 %7716  ;;  %8011 = vrot.lane.b32.xlu1 %v10303_v0, %s9675_s28 }
  0xb8   : > { %17190 = vst [vmem:[#allocation55_spill] sm:$0xff] %v10490_v52 }
  0xb9   : > { %8006 = vrot.lane.b32.xlu0 %v10286_v37, %s9675_s28  ;;  %v10496_v30 = vpop.permute.xlu1 %7731 }
  0xba   : > { %17191 = vst [vmem:[#allocation56_spill] sm:$0xff] %v10496_v30  ;;  %v1820_v30 = vrot.slane %v10658_v21, 1 }
  0xbb   : > { %v10498_v44 = vpop.permute.xlu0 %7726  ;;  %8021 = vrot.lane.b32.xlu1 %v10315_v19, %s9675_s28 }
  0xbc   : > { %17192 = vst [vmem:[#allocation57_spill] sm:$0xff] %v10498_v44  ;;  %v10696_v44 = vld [vmem:[%s10593_s13 + $0x70] sm:$0x3] }
  0xbd   : > { %8016 = vrot.lane.b32.xlu0 %v10298_v60, %s9675_s28  ;;  %v10504_v2 = vpop.permute.xlu1 %7741 }
  0xbe   : > { %17193 = vst [vmem:[#allocation58_spill] sm:$0xff] %v10504_v2  ;;  %v10655_v2 = vld [vmem:[%s10593_s13 + $0x38] sm:$0xff] }
  0xbf   : > { %v10506_v54 = vpop.permute.xlu0 %7736  ;;  %8031 = vrot.lane.b32.xlu1 %v10327_v12, %s9675_s28 }
  0xc0   : > { %17194 = vst [vmem:[#allocation59_spill] sm:$0xff] %v10506_v54  ;;  %v1825_v54 = vrot.slane %v10643_v39, 1 }
  0xc1   : > { %8026 = vrot.lane.b32.xlu0 %v10309_v1, %s9675_s28  ;;  %v10512_v37 = vpop.permute.xlu1 %7751 }
  0xc2   : > { %17195 = vst [vmem:[#allocation60_spill] sm:$0xff] %v10512_v37 }
  0xc3   : > { %v10514_v0 = vpop.permute.xlu0 %7746  ;;  %8041 = vrot.lane.b32.xlu1 %v10339_v26, %s9675_s28  ;;  %v499_v26 = vld [vmem:[%s9761_s22 + $0x198] sm:$0xff] }
  0xc4   : > { %17196 = vst [vmem:[#allocation61_spill] sm:$0xff] %v10514_v0  ;;  %v10637_v0 = vld [vmem:[%s10593_s13 + $0x48] sm:$0xff] }
  0xc5   : > { %8036 = vrot.lane.b32.xlu0 %v10321_v8, %s9675_s28  ;;  %v10520_v60 = vpop.permute.xlu1 %7761  ;;  %v1822_v53 = vrot.slane %v10637_v0, 1 }
  0xc6   : > { %17197 = vst [vmem:[#allocation62_spill] sm:$0xff] %v10520_v60 }
  0xc7   : > { %v10522_v19 = vpop.permute.xlu0 %7756  ;;  %8051 = vrot.lane.b32.xlu1 %v10351_v33, %s9675_s28 }
  0xc8   : > { %17198 = vst [vmem:[#allocation63_spill] sm:$0xff] %v10522_v19  ;;  %v10603_v19 = vld [vmem:[%s10593_s13 + $0x20] sm:$0xff] }
  0xc9   : > { %8046 = vrot.lane.b32.xlu0 %v10333_v20, %s9675_s28  ;;  %v10528_v1 = vpop.permute.xlu1 %7771  ;;  %v8080_v20 = vpack.i.bf16 %v500_v24, %v499_v26  ;;  %17215 = vst [vmem:[#allocation80_spill] sm:$0xff] %v10603_v19 }
  0xca   : > { %17199 = vst [vmem:[#allocation64_spill] sm:$0xff] %v10528_v1 }
  0xcb   : > { %v10530_v12 = vpop.permute.xlu0 %7766  ;;  %8061 = vrot.lane.b32.xlu1 %v10363_v40, %s9675_s28 }
  0xcc   : > { %17200 = vst [vmem:[#allocation65_spill] sm:$0xff] %v10530_v12 }
  0xcd   : > { %8056 = vrot.lane.b32.xlu0 %v10345_v27, %s9675_s28  ;;  %v10538_v8 = vpop.permute.xlu1 %7781 }
  0xce   : > { %17201 = vst [vmem:[#allocation66_spill] sm:$0xff] %v10538_v8 }
  0xcf   : > { %v10540_v63 = vpop.permute.xlu0 %7776  ;;  %8071 = vrot.lane.b32.xlu1 %v10373_v47, %s9675_s28 }
  0xd0   : > { %17202 = vst [vmem:[#allocation67_spill] sm:$0xff] %v10540_v63 }
  0xd1   : > { %8066 = vrot.lane.b32.xlu0 %v10357_v34, %s9675_s28  ;;  %v10546_v33 = vpop.permute.xlu1 %7791 }
  0xd2   : > { %17203 = vst [vmem:[#allocation68_spill] sm:$0xff] %v10546_v33 }
  0xd3   : > { %v10548_v60 = vpop.permute.xlu0 %7786  ;;  %8081 = vrot.lane.b32.xlu1 %v8080_v20, %s9675_s28 }
  0xd4   : > { %17204 = vst [vmem:[#allocation69_spill] sm:$0xff] %v10548_v60 }
  0xd5   : > { %8076 = vrot.lane.b32.xlu0 %v10367_v41, %s9675_s28  ;;  %v10553_v27 = vpop.permute.xlu1 %7801 }
  0xd6   : > { %17205 = vst [vmem:[#allocation70_spill] sm:$0xff] %v10553_v27 }
  0xd7   : > { %v10555_v40 = vpop.permute.xlu0 %7796  ;;  %8091 = vrot.lane.b32.xlu1 %v17155_v59, %s9676_s29 }
  0xd8   : > { %17206 = vst [vmem:[#allocation71_spill] sm:$0xff] %v10555_v40  ;;  %v10708_v40 = vld [vmem:[%s10593_s13 + $0xa8] sm:$0xff] }
  0xd9   : > { %8086 = vrot.lane.b32.xlu0 %v17152_v48, %s9676_s29  ;;  %v10561_v34 = vpop.permute.xlu1 %7811 }
  0xda   : > { %17207 = vst [vmem:[#allocation72_spill] sm:$0xff] %v10561_v34  ;;  %v1818_v34 = vrot.slane %v10655_v2, 1 }
  0xdb   : > { %v10563_v47 = vpop.permute.xlu0 %7806  ;;  %8101 = vrot.lane.b32.xlu1 %v17157_v14, %s9676_s29  ;;  %v501_v14 = vld [vmem:[%s9761_s22 + $0x1a8] sm:$0x3] }
  0xdc   : > { %17208 = vst [vmem:[#allocation73_spill] sm:$0xff] %v10563_v47  ;;  %v10686_v47 = vld [vmem:[%s10593_s13 + $0x68] sm:$0xff] }
  0xdd   : > { %8096 = vrot.lane.b32.xlu0 %v17154_v58, %s9676_s29  ;;  %v10569_v41 = vpop.permute.xlu1 %7821 }
  0xde   : > { %17209 = vst [vmem:[#allocation74_spill] sm:$0xff] %v10569_v41  ;;  %v10652_v41 = vld [vmem:[%s10593_s13 + $0x30] sm:$0xff] }
  0xdf   : > { %v10571_v20 = vpop.permute.xlu0 %7816  ;;  %8111 = vrot.lane.b32.xlu1 %v17159_v25, %s9676_s29  ;;  %v782_v25 = vrot.slane %v499_v26, 1 }
  0xe0   : > { %17210 = vst [vmem:[#allocation75_spill] sm:$0xff] %v10571_v20 }
  0xe1   : > { %8106 = vrot.lane.b32.xlu0 %v17156_v13, %s9676_s29  ;;  %v10577_v48 = vpop.permute.xlu1 %7831 }
  0xe2   : > { %17211 = vst [vmem:[#allocation76_spill] sm:$0xff] %v10577_v48  ;;  %v10610_v48 = vld [vmem:[%s10593_s13 + $0x28] sm:$0x3] }
  0xe3   : > { %v10579_v59 = vpop.permute.xlu0 %7826  ;;  %8121 = vrot.lane.b32.xlu1 %v17160_v28, %s9676_s29  ;;  %v785_v28 = vrot.slane %v501_v14, 1  ;;  %v10625_v14 = vld [vmem:[%s10593_s13 + $0x10] sm:$0x3]  ;;  %v1815_v43 = vrot.slane %v10610_v48, 1 }
  0xe4   : > { %17212 = vst [vmem:[#allocation77_spill] sm:$0xff] %v10579_v59 }
  0xe5   : > { %8116 = vrot.lane.b32.xlu0 %v17158_v15, %s9676_s29  ;;  %v10585_v58 = vpop.permute.xlu1 %7841  ;;  %v783_v15 = vrot.slane %v500_v24, 1 }
  0xe6   : > { %17213 = vst [vmem:[#allocation78_spill] sm:$0xff] %v10585_v58  ;;  %v10600_v58 = vld [vmem:[%s10593_s13 + $0x18] sm:$0xff] }
  0xe7   : > { %v10595_v13 = vpop.permute.xlu0 %7836  ;;  %8131 = vrot.lane.b32.xlu1 %v17163_v57, %s9676_s29  ;;  %v10616_v57 = vld [vmem:[%s10593_s13 + $0x8] sm:$0xff]  ;;  %v1812_v26 = vrot.slane %v10600_v58, 1  ;;  %v784_v37 = vsel %vm604_vm0, %v782_v25, %v783_v15  ;;  %v786_v7 = vsel %vm604_vm0, %v783_v15, %v785_v28  ;;  %v10640_v25 = vld [vmem:[%s10593_s13 + $0x50] sm:$0xff]  ;;  %v1810_v15 = vrot.slane %v10625_v14, 1 }
  0xe8   : > { %17214 = vst [vmem:[#allocation79_spill] sm:$0xff] %v10595_v13  ;;  %v10613_v13 = vld [vmem:[%s10593_s13] sm:$0xff]  ;;  %v1808_v59 = vrot.slane %v10616_v57, 1  ;;  %v1823_v20 = vrot.slane %v10640_v25, 1 }
  0xe9   : > { %8126 = vrot.lane.b32.xlu0 %v10011_v29, %s9676_s29  ;;  %v10607_v49 = vpop.permute.xlu1 %7851  ;;  %v1813_v29 = vrot.slane %v10603_v19, 1 }
  0xea   : > { %17216 = vst [vmem:[#allocation81_spill] sm:$0xff] %v10607_v49  ;;  %v1824_v18 = vsel %vm604_vm0, %v1822_v53, %v1823_v20  ;;  %v1826_v27 = vsel %vm604_vm0, %v1823_v20, %v1825_v54  ;;  %v10711_v53 = vld [vmem:[%s10593_s13 + $0xb0] sm:$0xff]  ;;  %v10714_v54 = vld [vmem:[%s10593_s13 + $0xb8] sm:$0x3]  ;;  %v10812_v49 = vld [vmem:[%s10593_s13 + $0x100] sm:$0x3] }
  0xeb   : > { %v10618_v24 = vpop.permute.xlu0 %7846  ;;  %8141 = vrot.lane.b32.xlu1 %v10029_v45, %s9676_s29  ;;  %v1807_v45 = vrot.slane %v10613_v13, 1  ;;  %v1814_v61 = vsel %vm604_vm0, %v1812_v26, %v1813_v29  ;;  %v1816_v10 = vsel %vm604_vm0, %v1813_v29, %v1815_v43  ;;  %v1811_v43 = vsel %vm604_vm0, %v1808_v59, %v1810_v15 }
  0xec   : > { %17217 = vst [vmem:[#allocation82_spill] sm:$0xff] %v10618_v24  ;;  %v1817_v29 = vrot.slane %v10652_v41, 1  ;;  %v1845_v33 = vrot.slane %v10714_v54, 1  ;;  %v1857_v24 = vrot.slane %v10806_v32, 1  ;;  %v1860_v12 = vrot.slane %v10812_v49, 1 }
  0xed   : > { %8136 = vrot.lane.b32.xlu0 %v10031_v38, %s9676_s29  ;;  %v10632_v55 = vpop.permute.xlu1 %7861  ;;  %v8160_v38 = vpack.i.bf16 %v786_v7, %v784_v37  ;;  %v10668_v7 = vld [vmem:[%s10593_s13 + $0x80] sm:$0xff]  ;;  %v1809_v26 = vsel %vm604_vm0, %v1807_v45, %v1808_v59  ;;  %v10691_v45 = vpack.i.bf16 %v1816_v10, %v1814_v61  ;;  %v1827_v61 = vrot.slane %v10683_v56, 1 }
  0xee   : > { %17218 = vst [vmem:[#allocation83_spill] sm:$0xff] %v10632_v55  ;;  %v1833_v15 = vrot.slane %v10668_v7, 1  ;;  %v8165_v10 = vpack.i.bf16 %v1811_v43, %v1809_v26  ;;  %v1819_v20 = vsel %vm604_vm0, %v1817_v29, %v1818_v34  ;;  %v10723_v43 = vpack.i.bf16 %v1826_v27, %v1824_v18  ;;  %v10733_v29 = vld [vmem:[%s10593_s13 + $0xa0] sm:$0x3]  ;;  %v10740_v18 = vld [vmem:[%s10593_s13 + $0xd8] sm:$0xff] }
  0xef   : > { %v10646_v28 = vpop.permute.xlu0 %7856  ;;  %8151 = vrot.lane.b32.xlu1 %v10047_v16, %s9676_s29  ;;  %v10665_v16 = vld [vmem:[%s10593_s13 + $0x78] sm:$0xff]  ;;  %17222 = vst [vmem:[#allocation87_spill] sm:$0xff] %v10691_v45  ;;  %v10743_v27 = vld [vmem:[%s10593_s13 + $0xe0] sm:$0xff]  ;;  %v1840_v22 = vrot.slane %v10733_v29, 1 }
  0xf0   : > { %17219 = vst [vmem:[#allocation84_spill] sm:$0xff] %v10646_v28  ;;  %v1832_v59 = vrot.slane %v10665_v16, 1  ;;  %17225 = vst [vmem:[#allocation90_spill] sm:$0xff] %v10723_v43 }
  0xf1   : > { %8146 = vrot.lane.b32.xlu0 %v10053_v6, %s9676_s29  ;;  %v10672_v37 = vpop.permute.xlu1 %7871 }
  0xf2   : > { %17220 = vst [vmem:[#allocation85_spill] sm:$0xff] %v10672_v37  ;;  %v1834_v52 = vsel %vm604_vm0, %v1832_v59, %v1833_v15  ;;  %v10730_v37 = vld [vmem:[%s10593_s13 + $0x98] sm:$0xff] }
  0xf3   : > { %v10688_v6 = vpop.permute.xlu0 %7866  ;;  %8161 = vrot.lane.b32.xlu1 %v8160_v38, %s9676_s29  ;;  %v1828_v38 = vrot.slane %v10686_v47, 1  ;;  %v1838_v60 = vrot.slane %v10730_v37, 1 }
  0xf4   : > { %17221 = vst [vmem:[#allocation86_spill] sm:$0xff] %v10688_v6  ;;  %v1837_v6 = vrot.slane %v10727_v51, 1 }
  0xf5   : > { %8156 = vrot.lane.b32.xlu0 %v10256_v3, %s9676_s29  ;;  %v10703_v11 = vpop.permute.xlu1 %7881  ;;  %v1821_v3 = vsel %vm604_vm0, %v1818_v34, %v1820_v30  ;;  %v1836_v30 = vsel %vm604_vm0, %v1833_v15, %v1835_v4  ;;  %v1842_v34 = vrot.slane %v10708_v40, 1  ;;  %v1829_v4 = vsel %vm604_vm0, %v1827_v61, %v1828_v38  ;;  %v10752_v15 = vld [vmem:[%s10593_s13 + $0xe8] sm:$0x3] }
  0xf6   : > { %17223 = vst [vmem:[#allocation88_spill] sm:$0xff] %v10703_v11  ;;  %v1830_v11 = vrot.slane %v10696_v44, 1  ;;  %v10748_v35 = vpack.i.bf16 %v1821_v3, %v1819_v20  ;;  %v10768_v61 = vpack.i.bf16 %v1836_v30, %v1834_v52  ;;  %v10773_v3 = vld [vmem:[%s10593_s13 + $0xd0] sm:$0x3]  ;;  %v1855_v8 = vrot.slane %v10752_v15, 1 }
  0xf7   : > { %v10719_v26 = vpop.permute.xlu0 %7876  ;;  %8171 = vrot.lane.b32.xlu1 %v10691_v45, %s9677_s14  ;;  %v1847_v30 = vrot.slane %v10759_v62, 1  ;;  %v1841_v28 = vsel %vm604_vm0, %v1838_v60, %v1840_v22 }
  0xf8   : > { %17224 = vst [vmem:[#allocation89_spill] sm:$0xff] %v10719_v26  ;;  %v1843_v26 = vrot.slane %v10711_v53, 1  ;;  %17227 = vst [vmem:[#allocation92_spill] sm:$0xff] %v10748_v35  ;;  %v1831_v17 = vsel %vm604_vm0, %v1828_v38, %v1830_v11  ;;  %v1852_v11 = vrot.slane %v10740_v18, 1  ;;  %v1853_v38 = vrot.slane %v10743_v27, 1 }
  0xf9   : > { %8166 = vrot.lane.b32.xlu0 %v8165_v10, %s9677_s14  ;;  %v10746_v59 = vpop.permute.xlu1 %7891  ;;  %v10762_v10 = vld [vmem:[%s10593_s13 + $0xc8] sm:$0xff]  ;;  %17229 = vst [vmem:[#allocation94_spill] sm:$0xff] %v10768_v61  ;;  %v10782_v52 = vpack.i.bf16 %v1831_v17, %v1829_v4 }
  0xfa   : > { %17226 = vst [vmem:[#allocation91_spill] sm:$0xff] %v10746_v59  ;;  %v1844_v59 = vsel %vm604_vm0, %v1842_v34, %v1843_v26  ;;  %v1846_v55 = vsel %vm604_vm0, %v1843_v26, %v1845_v33  ;;  %v1848_v46 = vrot.slane %v10762_v10, 1  ;;  %v10790_v34 = vld [vmem:[%s10593_s13 + $0x110] sm:$0xff]  ;;  %v10793_v33 = vld [vmem:[%s10593_s13 + $0x118] sm:$0x3]  ;;  %v1839_v26 = vsel %vm604_vm0, %v1837_v6, %v1838_v60 }
  0xfb   : > { %v10764_v20 = vpop.permute.xlu0 %7886  ;;  %8181 = vrot.lane.b32.xlu1 %v10723_v43, %s9677_s14  ;;  %17231 = vst [vmem:[#allocation96_spill] sm:$0xff] %v10782_v52  ;;  %v10802_v4 = vpack.i.bf16 %v1846_v55, %v1844_v59  ;;  %v1854_v63 = vsel %vm604_vm0, %v1852_v11, %v1853_v38  ;;  %v1856_v22 = vsel %vm604_vm0, %v1853_v38, %v1855_v8  ;;  %v1862_v60 = vrot.slane %v10787_v5, 1  ;;  %v10819_v55 = vld [vmem:[%s10593_s13 + $0x138] sm:$0xff]  ;;  %v10822_v59 = vld [vmem:[%s10593_s13 + $0x140] sm:$0xff]  ;;  %v10832_v38 = vld [vmem:[%s10593_s13 + $0x148] sm:$0x3] }
  0xfc   : > { %17228 = vst [vmem:[#allocation93_spill] sm:$0xff] %v10764_v20  ;;  %v1863_v6 = vrot.slane %v10790_v34, 1  ;;  %v10828_v1 = vpack.i.bf16 %v1841_v28, %v1839_v26  ;;  %v1849_v8 = vsel %vm604_vm0, %v1847_v30, %v1848_v46  ;;  %v10848_v30 = vpack.i.bf16 %v1856_v22, %v1854_v63  ;;  %v10853_v26 = vld [vmem:[%s10593_s13 + $0x130] sm:$0x3] }
  0xfd   : > { %8176 = vrot.lane.b32.xlu0 %v10748_v35, %s9677_s14  ;;  %v10780_v20 = vpop.permute.xlu1 %7901  ;;  %17233 = vst [vmem:[#allocation98_spill] sm:$0xff] %v10802_v4  ;;  %17240 = vst [vmem:[#allocation105_spill] sm:$0xff] %v10853_v26  ;;  %v1875_v43 = vrot.slane %v10832_v38, 1  ;;  %v1867_v22 = vrot.slane %v10839_v23, 1  ;;  %v1870_v45 = vrot.slane %v10853_v26, 1  ;;  %v10886_v35 = vld [vmem:[%s10593_s13 + $0x150] sm:$0xff] }
  0xfe   : > { %17230 = vst [vmem:[#allocation95_spill] sm:$0xff] %v10780_v20  ;;  %v1850_v20 = vrot.slane %v10773_v3, 1  ;;  %17235 = vst [vmem:[#allocation100_spill] sm:$0xff] %v10828_v1  ;;  %v10892_v23 = vld [vmem:[%s10593_s13 + $0x160] sm:$0x3]  ;;  %v1877_v26 = vrot.slane %v10886_v35, 1 }
  0xff   : > { %v10798_v17 = vpop.permute.xlu0 %7896  ;;  %8191 = vrot.lane.b32.xlu1 %v10768_v61, %s9677_s14  ;;  %17239 = vst [vmem:[#allocation104_spill] sm:$0xff] %v10848_v30 }
 0x100   : > { %17232 = vst [vmem:[#allocation97_spill] sm:$0xff] %v10798_v17  ;;  %v1865_v17 = vrot.slane %v10793_v33, 1  ;;  %v1851_v42 = vsel %vm604_vm0, %v1848_v46, %v1850_v20  ;;  %v1872_v46 = vrot.slane %v10819_v55, 1  ;;  %v1873_v20 = vrot.slane %v10822_v59, 1 }
 0x101   : > { %8186 = vrot.lane.b32.xlu0 %v10782_v52, %s9677_s14  ;;  %v10826_v11 = vpop.permute.xlu1 %7911  ;;  %v10862_v63 = vpack.i.bf16 %v1851_v42, %v1849_v8  ;;  %v10867_v52 = vld [vmem:[%s10593_s13 + $0x168] sm:$0xff] }
 0x102   : > { %17234 = vst [vmem:[#allocation99_spill] sm:$0xff] %v10826_v11  ;;  %v1864_v11 = vsel %vm604_vm0, %v1862_v60, %v1863_v6  ;;  %v1866_v61 = vsel %vm604_vm0, %v1863_v6, %v1865_v17  ;;  %v10870_v60 = vld [vmem:[%s10593_s13 + $0x170] sm:$0xff]  ;;  %v10873_v17 = vld [vmem:[%s10593_s13 + $0x178] sm:$0x3]  ;;  %v1859_v6 = vsel %vm604_vm0, %v1857_v24, %v1858_v31  ;;  %v1874_v8 = vsel %vm604_vm0, %v1872_v46, %v1873_v20 }
 0x103   : > { %v10844_v28 = vpop.permute.xlu0 %7906  ;;  %8201 = vrot.lane.b32.xlu1 %v10802_v4, %s9677_s14  ;;  %17242 = vst [vmem:[#allocation107_spill] sm:$0xff] %v10862_v63  ;;  %v1868_v4 = vrot.slane %v10842_v50, 1  ;;  %17243 = vst [vmem:[#allocation108_spill] sm:$0xff] %v10870_v60  ;;  %v10882_v42 = vpack.i.bf16 %v1866_v61, %v1864_v11  ;;  %v10889_v50 = vld [vmem:[%s10593_s13 + $0x158] sm:$0xff]  ;;  %v1876_v24 = vsel %vm604_vm0, %v1873_v20, %v1875_v43  ;;  %v1880_v20 = vrot.slane %v10892_v23, 1 }
 0x104   : > { %17238 = vst [vmem:[#allocation103_spill] sm:$0xff] %v10844_v28  ;;  %v1878_v43 = vrot.slane %v10889_v50, 1 }
 0x105   : > { %8196 = vrot.lane.b32.xlu0 %v10828_v1, %s9677_s14  ;;  %v10860_v28 = vpop.permute.xlu1 %7921  ;;  %v1861_v1 = vsel %vm604_vm0, %v1858_v31, %v1860_v12  ;;  %17245 = vst [vmem:[#allocation110_spill] sm:$0xff] %v10882_v42  ;;  %v1882_v31 = vrot.slane %v10867_v52, 1  ;;  %v1883_v12 = vrot.slane %v10870_v60, 1  ;;  %v1869_v46 = vsel %vm604_vm0, %v1867_v22, %v1868_v4 }
 0x106   : > { %17241 = vst [vmem:[#allocation106_spill] sm:$0xff] %v10860_v28  ;;  %v10902_v11 = vpack.i.bf16 %v1861_v1, %v1859_v6  ;;  %v1892_v1 = vrot.slane %v10600_v58, 2  ;;  %v1893_v6 = vrot.slane %v10603_v19, 2  ;;  %v1881_v19 = vsel %vm604_vm0, %v1878_v43, %v1880_v20 }
 0x107   : > { %v10878_v28 = vpop.permute.xlu0 %7916  ;;  %8211 = vrot.lane.b32.xlu1 %v10848_v30, %s9677_s14  ;;  %v1871_v30 = vsel %vm604_vm0, %v1868_v4, %v1870_v45  ;;  %v1884_v22 = vsel %vm604_vm0, %v1882_v31, %v1883_v12  ;;  %v1895_v4 = vrot.slane %v10610_v48, 2  ;;  %v1890_v31 = vrot.slane %v10625_v14, 2 }
 0x108   : > { %17244 = vst [vmem:[#allocation109_spill] sm:$0xff] %v10878_v28  ;;  %v1885_v28 = vrot.slane %v10873_v17, 1 }
 0x109   : > { %8206 = vrot.lane.b32.xlu0 %v10862_v63, %s9677_s14  ;;  %v10900_v61 = vpop.permute.xlu1 %7931  ;;  %v10913_v63 = vpack.i.bf16 %v1876_v24, %v1874_v8  ;;  %v1887_v8 = vrot.slane %v10613_v13, 2  ;;  %v1888_v24 = vrot.slane %v10616_v57, 2  ;;  %v1902_v13 = vrot.slane %v10637_v0, 2 }
 0x10a   : > { %17246 = vst [vmem:[#allocation111_spill] sm:$0xff] %v10900_v61  ;;  %v1886_v45 = vsel %vm604_vm0, %v1883_v12, %v1885_v28  ;;  %v1896_v12 = vsel %vm685_vm1, %v1893_v6, %v1895_v4  ;;  %v1903_v57 = vrot.slane %v10640_v25, 2 }
 0x10b   : > { %v10909_v60 = vpop.permute.xlu0 %7926  ;;  %8221 = vrot.lane.b32.xlu1 %v10882_v42, %s9677_s14  ;;  %v1879_v42 = vsel %vm604_vm0, %v1877_v26, %v1878_v43  ;;  %v10935_v48 = vpack.i.bf16 %v1886_v45, %v1884_v22  ;;  %v1905_v26 = vrot.slane %v10643_v39, 2  ;;  %v1889_v43 = vsel %vm685_vm1, %v1887_v8, %v1888_v24 }
 0x10c   : > { %17247 = vst [vmem:[#allocation112_spill] sm:$0xff] %v10909_v60  ;;  %v10924_v60 = vpack.i.bf16 %v1871_v30, %v1869_v46  ;;  %v1894_v30 = vsel %vm685_vm1, %v1892_v1, %v1893_v6  ;;  %v10946_v46 = vpack.i.bf16 %v1881_v19, %v1879_v42  ;;  %v1891_v20 = vsel %vm685_vm1, %v1888_v24, %v1890_v31 }
 0x10d   : > { %8216 = vrot.lane.b32.xlu0 %v10902_v11, %s9677_s14  ;;  %v10922_v61 = vpop.permute.xlu1 %7941  ;;  %v1897_v1 = vrot.slane %v10652_v41, 2  ;;  %v1898_v6 = vrot.slane %v10655_v2, 2  ;;  %v1900_v22 = vrot.slane %v10658_v21, 2  ;;  %v10957_v39 = vpack.i.bf16 %v1896_v12, %v1894_v30 }
 0x10e   : > { %17248 = vst [vmem:[#allocation113_spill] sm:$0xff] %v10922_v61  ;;  %v1912_v19 = vrot.slane %v10665_v16, 2  ;;  %v1913_v42 = vrot.slane %v10668_v7, 2  ;;  %v1904_v4 = vsel %vm685_vm1, %v1902_v13, %v1903_v57  ;;  %v1906_v8 = vsel %vm685_vm1, %v1903_v57, %v1905_v26 }
 0x10f   : > { %v10931_v28 = vpop.permute.xlu0 %7936  ;;  %8231 = vrot.lane.b32.xlu1 %v10913_v63, %s9677_s14  ;;  %v1915_v24 = vrot.slane %v10676_v9, 2  ;;  %v8245_v31 = vpack.i.bf16 %v1891_v20, %v1889_v43  ;;  %v1908_v30 = vrot.slane %v10686_v47, 2  ;;  %v1899_v12 = vsel %vm685_vm1, %v1897_v1, %v1898_v6 }
 0x110   : > { %17249 = vst [vmem:[#allocation114_spill] sm:$0xff] %v10931_v28  ;;  %v1910_v13 = vrot.slane %v10696_v44, 2  ;;  %v10977_v9 = vpack.i.bf16 %v1906_v8, %v1904_v4  ;;  %v1914_v57 = vsel %vm685_vm1, %v1912_v19, %v1913_v42  ;;  %v1922_v43 = vrot.slane %v10708_v40, 2 }
 0x111   : > { %8226 = vrot.lane.b32.xlu0 %v10924_v60, %s9677_s14  ;;  %v10944_v14 = vpop.permute.xlu1 %7951  ;;  %v1916_v26 = vsel %vm685_vm1, %v1913_v42, %v1915_v24  ;;  %v1923_v20 = vrot.slane %v10711_v53, 2  ;;  %v1925_v1 = vrot.slane %v10714_v54, 2  ;;  %v1917_v19 = vrot.slane %v10727_v51, 2 }
 0x112   : > { %17250 = vst [vmem:[#allocation115_spill] sm:$0xff] %v10944_v14  ;;  %v1907_v14 = vrot.slane %v10683_v56, 2  ;;  %v1911_v4 = vsel %vm685_vm1, %v1908_v30, %v1910_v13  ;;  %v1918_v42 = vrot.slane %v10730_v37, 2  ;;  %v1920_v8 = vrot.slane %v10733_v29, 2 }
 0x113   : > { %v10953_v45 = vpop.permute.xlu0 %7946  ;;  %8241 = vrot.lane.b32.xlu1 %v10935_v48, %s9677_s14  ;;  %v10998_v54 = vpack.i.bf16 %v1916_v26, %v1914_v57  ;;  %v1927_v57 = vrot.slane %v10759_v62, 2  ;;  %v1928_v26 = vrot.slane %v10762_v10, 2 }
 0x114   : > { %17251 = vst [vmem:[#allocation116_spill] sm:$0xff] %v10953_v45  ;;  %v1901_v45 = vsel %vm685_vm1, %v1898_v6, %v1900_v22  ;;  %v1909_v22 = vsel %vm685_vm1, %v1907_v14, %v1908_v30  ;;  %v1924_v14 = vsel %vm685_vm1, %v1922_v43, %v1923_v20  ;;  %v1926_v30 = vsel %vm685_vm1, %v1923_v20, %v1925_v1 }
 0x115   : > { %8236 = vrot.lane.b32.xlu0 %v10946_v46, %s9677_s14  ;;  %v10966_v21 = vpop.permute.xlu1 %7961  ;;  %v10987_v6 = vpack.i.bf16 %v1901_v45, %v1899_v12  ;;  %v1932_v45 = vrot.slane %v10740_v18, 2  ;;  %v1935_v12 = vrot.slane %v10752_v15, 2  ;;  %v11009_v13 = vpack.i.bf16 %v1911_v4, %v1909_v22  ;;  %s9684_s14 = smov 120  }
 0x116   : > { %17252 = vst [vmem:[#allocation117_spill] sm:$0xff] %v10966_v21  ;;  %v1930_v43 = vrot.slane %v10773_v3, 2  ;;  %v11020_v15 = vpack.i.bf16 %v1926_v30, %v1924_v14  ;;  %v1942_v4 = vrot.slane %v10787_v5, 2  ;;  %v1940_v30 = vrot.slane %v10812_v49, 2 }
 0x117   : > { %v10973_v61 = vpop.permute.xlu0 %7956  ;;  %8251 = vrot.lane.b32.xlu1 %v10957_v39, %s9678_s15 }
 0x118   : > { %17253 = vst [vmem:[#allocation118_spill] sm:$0xff] %v10973_v61  ;;  %17258 = vst [vmem:[#allocation123_spill] sm:$0xff] %v11020_v15  ;;  %v1931_v14 = vsel %vm685_vm1, %v1928_v26, %v1930_v43  ;;  %v1955_v43 = vrot.slane %v10832_v38, 2 }
 0x119   : > { %8246 = vrot.lane.b32.xlu0 %v8245_v31, %s9678_s15  ;;  %v10985_v44 = vpop.permute.xlu1 %7971  ;;  %v1933_v31 = vrot.slane %v10743_v27, 2 }
 0x11a   : > { %17254 = vst [vmem:[#allocation119_spill] sm:$0xff] %v10985_v44  ;;  %v1919_v44 = vsel %vm685_vm1, %v1917_v19, %v1918_v42  ;;  %v1945_v19 = vrot.slane %v10793_v33, 2 }
 0x11b   : > { %v10994_v24 = vpop.permute.xlu0 %7966  ;;  %8261 = vrot.lane.b32.xlu1 %v10977_v9, %s9678_s15  ;;  %v1934_v1 = vsel %vm685_vm1, %v1932_v45, %v1933_v31  ;;  %v1936_v22 = vsel %vm685_vm1, %v1933_v31, %v1935_v12  ;;  %v1937_v45 = vrot.slane %v10806_v32, 2  ;;  %v1938_v31 = vrot.slane %v10809_v36, 2 }
 0x11c   : > { %17255 = vst [vmem:[#allocation120_spill] sm:$0xff] %v10994_v24  ;;  %v1921_v24 = vsel %vm685_vm1, %v1918_v42, %v1920_v8  ;;  %v1929_v8 = vsel %vm685_vm1, %v1927_v57, %v1928_v26  ;;  %v11042_v33 = vpack.i.bf16 %v1936_v22, %v1934_v1  ;;  %v17263_v22 = vld [vmem:[#allocation102_spill] sm:$0xff] }
 0x11d   : > { %8256 = vrot.lane.b32.xlu0 %v10987_v6, %s9678_s15  ;;  %v11007_v29 = vpop.permute.xlu1 %7981  ;;  %v11031_v42 = vpack.i.bf16 %v1921_v24, %v1919_v44  ;;  %v1952_v44 = vrot.slane %v10819_v55, 2  ;;  %v1953_v24 = vrot.slane %v10822_v59, 2  ;;  %v1939_v21 = vsel %vm685_vm1, %v1937_v45, %v1938_v31 }
 0x11e   : > { %17256 = vst [vmem:[#allocation121_spill] sm:$0xff] %v11007_v29  ;;  %v1943_v29 = vrot.slane %v10790_v34, 2  ;;  %v1941_v61 = vsel %vm685_vm1, %v1938_v31, %v1940_v30  ;;  %v1965_v45 = vrot.slane %v10873_v17, 2 }
 0x11f   : > { %v11016_v20 = vpop.permute.xlu0 %7976  ;;  %8271 = vrot.lane.b32.xlu1 %v10998_v54, %s9678_s15  ;;  %v11075_v30 = vpack.i.bf16 %v1941_v61, %v1939_v21 }
 0x120   : > { %17257 = vst [vmem:[#allocation122_spill] sm:$0xff] %v11016_v20  ;;  %v1944_v57 = vsel %vm685_vm1, %v1942_v4, %v1943_v29  ;;  %v1946_v26 = vsel %vm685_vm1, %v1943_v29, %v1945_v19  ;;  %v1948_v20 = vrot.slane %v17263_v22, 2  ;;  %v17264_v4 = vld [vmem:[#allocation105_spill] sm:$0xff]  ;;  %v1954_v19 = vsel %vm685_vm1, %v1952_v44, %v1953_v24 }
 0x121   : > { %8266 = vrot.lane.b32.xlu0 %v11009_v13, %s9678_s15  ;;  %v11029_v3 = vpop.permute.xlu1 %7991  ;;  %v1950_v28 = vrot.slane %v17264_v4, 2  ;;  %v11064_v38 = vpack.i.bf16 %v1946_v26, %v1944_v57  ;;  %v1957_v44 = vrot.slane %v10886_v35, 2 }
 0x122   : > { %17259 = vst [vmem:[#allocation124_spill] sm:$0xff] %v11029_v3  ;;  %v11053_v3 = vpack.i.bf16 %v1931_v14, %v1929_v8  ;;  %v1956_v8 = vsel %vm685_vm1, %v1953_v24, %v1955_v43  ;;  %v1962_v14 = vrot.slane %v10867_v52, 2  ;;  %v1958_v24 = vrot.slane %v10889_v50, 2 }
 0x123   : > { %v11038_v12 = vpop.permute.xlu0 %7986  ;;  %8281 = vrot.lane.b32.xlu1 %v11020_v15, %s9678_s15  ;;  %v1951_v26 = vsel %vm685_vm1, %v1948_v20, %v1950_v28  ;;  %v1960_v43 = vrot.slane %v10892_v23, 2  ;;  %v11086_v17 = vpack.i.bf16 %v1956_v8, %v1954_v19 }
 0x124   : > { %17260 = vst [vmem:[#allocation125_spill] sm:$0xff] %v11038_v12  ;;  %v17262_v12 = vld [vmem:[#allocation101_spill] sm:$0xff]  ;;  %v1959_v23 = vsel %vm685_vm1, %v1957_v44, %v1958_v24 }
 0x125   : > { %8276 = vrot.lane.b32.xlu0 %v11031_v42, %s9678_s15  ;;  %v11051_v49 = vpop.permute.xlu1 %8001  ;;  %v1947_v1 = vrot.slane %v17262_v12, 2 }
 0x126   : > { %17261 = vst [vmem:[#allocation126_spill] sm:$0xff] %v11051_v49  ;;  %v17266_v49 = vld [vmem:[#allocation108_spill] sm:$0xff] }
 0x127   : > { %v11060_v29 = vpop.permute.xlu0 %7996  ;;  %8291 = vrot.lane.b32.xlu1 %v11042_v33, %s9678_s15  ;;  %v1963_v15 = vrot.slane %v17266_v49, 2  ;;  %v1949_v57 = vsel %vm685_vm1, %v1947_v1, %v1948_v20  ;;  %v1961_v1 = vsel %vm685_vm1, %v1958_v24, %v1960_v43  ;;  %v11130_v43 = vpack.i.bf16 %v10686_v47, %v10683_v56 }
 0x128   : > { %17265 = vst [vmem:[#allocation101_spill] sm:$0xff] %v11060_v29  ;;  %v11094_v20 = vpack.i.bf16 %v1951_v26, %v1949_v57  ;;  %v11108_v8 = vpack.i.bf16 %v1961_v1, %v1959_v23  ;;  %v17274_v26 = vld [vmem:[#allocation80_spill] sm:$0xff]  ;;  %v11153_v47 = vpack.i.bf16 %v10668_v7, %v10665_v16  ;;  %v11239_v23 = vpack.i.bf16 %v17266_v49, %v10867_v52 }
 0x129   : > { %8286 = vrot.lane.b32.xlu0 %v11053_v3, %s9678_s15  ;;  %v11073_v31 = vpop.permute.xlu1 %8011  ;;  %v1964_v61 = vsel %vm685_vm1, %v1962_v14, %v1963_v15  ;;  %v1966_v21 = vsel %vm685_vm1, %v1963_v15, %v1965_v45  ;;  %v11116_v45 = vpack.i.bf16 %v10655_v2, %v10652_v41  ;;  %v8325_v44 = vpack.i.bf16 %v17274_v26, %v10600_v58  ;;  %v17292_v26 = vld [vmem:[#allocation92_spill] sm:$0xff] }
 0x12a   : > { %17267 = vst [vmem:[#allocation102_spill] sm:$0xff] %v11073_v31  ;;  %v11102_v19 = vpack.i.bf16 %v1966_v21, %v1964_v61  ;;  %v11137_v41 = vpack.i.bf16 %v10640_v25, %v10637_v0  ;;  %v11145_v58 = vpack.i.bf16 %v10730_v37, %v10727_v51  ;;  %v11161_v25 = vpack.i.bf16 %v10762_v10, %v10759_v62 }
 0x12b   : > { %v11082_v4 = vpop.permute.xlu0 %8006  ;;  %8301 = vrot.lane.b32.xlu1 %v11064_v38, %s9678_s15  ;;  %v11169_v37 = vpack.i.bf16 %v10711_v53, %v10708_v40  ;;  %v11177_v62 = vpack.i.bf16 %v10809_v36, %v10806_v32  ;;  %v11185_v40 = vpack.i.bf16 %v10743_v27, %v10740_v18  ;;  %v11193_v10 = vpack.i.bf16 %v17263_v22, %v17262_v12  ;;  %v11212_v12 = vld [vmem:[%s10593_s13 + $0x180] sm:$0xff]  ;;  %v11215_v22 = vld [vmem:[%s10593_s13 + $0x188] sm:$0xff] }
 0x12c   : > { %17268 = vst [vmem:[#allocation105_spill] sm:$0xff] %v11082_v4  ;;  %v11201_v32 = vpack.i.bf16 %v10790_v34, %v10787_v5  ;;  %v11209_v27 = vpack.i.bf16 %v10889_v50, %v10886_v35  ;;  %v11223_v5 = vpack.i.bf16 %v10822_v59, %v10819_v55  ;;  %v11231_v50 = vpack.i.bf16 %v11215_v22, %v11212_v12 }
 0x12d   : > { %8296 = vrot.lane.b32.xlu0 %v11075_v30, %s9678_s15  ;;  %v11092_v28 = vpop.permute.xlu1 %8021  ;;  %v1975_v4 = vrot.slane %v11212_v12, 2 }
 0x12e   : > { %17269 = vst [vmem:[#allocation108_spill] sm:$0xff] %v11092_v28 }
 0x12f   : > { %v11098_v29 = vpop.permute.xlu0 %8016  ;;  %8311 = vrot.lane.b32.xlu1 %v11086_v17, %s9678_s15 }
 0x130   : > { %17270 = vst [vmem:[#allocation127_spill] sm:$0xff] %v11098_v29 }
 0x131   : > { %8306 = vrot.lane.b32.xlu0 %v11094_v20, %s9678_s15  ;;  %v11106_v15 = vpop.permute.xlu1 %8031 }
 0x132   : > { %17271 = vst [vmem:[#allocation128_spill] sm:$0xff] %v11106_v15 }
 0x133   : > { %v11110_v14 = vpop.permute.xlu0 %8026  ;;  %8321 = vrot.lane.b32.xlu1 %v11102_v19, %s9678_s15 }
 0x134   : > { %17272 = vst [vmem:[#allocation129_spill] sm:$0xff] %v11110_v14 }
 0x135   : > { %8316 = vrot.lane.b32.xlu0 %v11108_v8, %s9678_s15  ;;  %v11120_v57 = vpop.permute.xlu1 %8041 }
 0x136   : > { %17273 = vst [vmem:[#allocation130_spill] sm:$0xff] %v11120_v57 }
 0x137   : > { %v11124_v24 = vpop.permute.xlu0 %8036  ;;  %8331 = vrot.lane.b32.xlu1 %v11116_v45, %s9679_s16 }
 0x138   : > { %17275 = vst [vmem:[#allocation80_spill] sm:$0xff] %v11124_v24 }
 0x139   : > { %8326 = vrot.lane.b32.xlu0 %v8325_v44, %s9679_s16  ;;  %v11133_v2 = vpop.permute.xlu1 %8051  ;;  %v17293_v44 = vld [vmem:[#allocation87_spill] sm:$0xff] }
 0x13a   : > { %17276 = vst [vmem:[#allocation131_spill] sm:$0xff] %v11133_v2  ;;  %v17304_v2 = vld [vmem:[#allocation107_spill] sm:$0xff] }
 0x13b   : > { %v11139_v61 = vpop.permute.xlu0 %8046  ;;  %8341 = vrot.lane.b32.xlu1 %v11130_v43, %s9679_s16 }
 0x13c   : > { %17277 = vst [vmem:[#allocation132_spill] sm:$0xff] %v11139_v61 }
 0x13d   : > { %8336 = vrot.lane.b32.xlu0 %v11137_v41, %s9679_s16  ;;  %v11149_v56 = vpop.permute.xlu1 %8061 }
 0x13e   : > { %17278 = vst [vmem:[#allocation133_spill] sm:$0xff] %v11149_v56  ;;  %v17300_v56 = vld [vmem:[#allocation100_spill] sm:$0xff] }
 0x13f   : > { %v11155_v0 = vpop.permute.xlu0 %8056  ;;  %8351 = vrot.lane.b32.xlu1 %v11145_v58, %s9679_s16 }
 0x140   : > { %17279 = vst [vmem:[#allocation134_spill] sm:$0xff] %v11155_v0  ;;  %v17301_v0 = vld [vmem:[#allocation94_spill] sm:$0xff] }
 0x141   : > { %8346 = vrot.lane.b32.xlu0 %v11153_v47, %s9679_s16  ;;  %v11165_v51 = vpop.permute.xlu1 %8071 }
 0x142   : > { %17280 = vst [vmem:[#allocation135_spill] sm:$0xff] %v11165_v51 }
 0x143   : > { %v11171_v16 = vpop.permute.xlu0 %8066  ;;  %8361 = vrot.lane.b32.xlu1 %v11161_v25, %s9679_s16 }
 0x144   : > { %17281 = vst [vmem:[#allocation136_spill] sm:$0xff] %v11171_v16 }
 0x145   : > { %8356 = vrot.lane.b32.xlu0 %v11169_v37, %s9679_s16  ;;  %v11181_v7 = vpop.permute.xlu1 %8081 }
 0x146   : > { %17282 = vst [vmem:[#allocation137_spill] sm:$0xff] %v11181_v7  ;;  %v17296_v7 = vld [vmem:[#allocation96_spill] sm:$0xff] }
 0x147   : > { %v11187_v53 = vpop.permute.xlu0 %8076  ;;  %8371 = vrot.lane.b32.xlu1 %v11177_v62, %s9679_s16 }
 0x148   : > { %17283 = vst [vmem:[#allocation138_spill] sm:$0xff] %v11187_v53  ;;  %v17297_v53 = vld [vmem:[#allocation90_spill] sm:$0xff] }
 0x149   : > { %8366 = vrot.lane.b32.xlu0 %v11185_v40, %s9679_s16  ;;  %v11197_v36 = vpop.permute.xlu1 %8091 }
 0x14a   : > { %17284 = vst [vmem:[#allocation139_spill] sm:$0xff] %v11197_v36  ;;  %v17314_v36 = vld [vmem:[#allocation123_spill] sm:$0xff] }
 0x14b   : > { %v11203_v18 = vpop.permute.xlu0 %8086  ;;  %8381 = vrot.lane.b32.xlu1 %v11193_v10, %s9679_s16 }
 0x14c   : > { %17285 = vst [vmem:[#allocation140_spill] sm:$0xff] %v11203_v18 }
 0x14d   : > { %8376 = vrot.lane.b32.xlu0 %v11201_v32, %s9679_s16  ;;  %v11219_v21 = vpop.permute.xlu1 %8101 }
 0x14e   : > { %17286 = vst [vmem:[#allocation141_spill] sm:$0xff] %v11219_v21 }
 0x14f   : > { %v11225_v34 = vpop.permute.xlu0 %8096  ;;  %8391 = vrot.lane.b32.xlu1 %v11209_v27, %s9679_s16 }
 0x150   : > { %17287 = vst [vmem:[#allocation142_spill] sm:$0xff] %v11225_v34 }
 0x151   : > { %8386 = vrot.lane.b32.xlu0 %v11223_v5, %s9679_s16  ;;  %v11235_v35 = vpop.permute.xlu1 %8111 }
 0x152   : > { %17288 = vst [vmem:[#allocation143_spill] sm:$0xff] %v11235_v35  ;;  %v17309_v35 = vld [vmem:[#allocation110_spill] sm:$0xff] }
 0x153   : > { %v11241_v55 = vpop.permute.xlu0 %8106  ;;  %8401 = vrot.lane.b32.xlu1 %v11231_v50, %s9679_s16 }
 0x154   : > { %17289 = vst [vmem:[#allocation144_spill] sm:$0xff] %v11241_v55 }
 0x155   : > { %8396 = vrot.lane.b32.xlu0 %v11239_v23, %s9679_s16  ;;  %v11247_v59 = vpop.permute.xlu1 %8121 }
 0x156   : > { %17290 = vst [vmem:[#allocation145_spill] sm:$0xff] %v11247_v59  ;;  %v1970_v59 = vrot.slane %v11212_v12, 1 }
 0x157   : > { %v11249_v1 = vpop.permute.xlu0 %8116  ;;  %8411 = vrot.lane.b32.xlu1 %v17292_v26, %s9670_s23 }
 0x158   : > { %17291 = vst [vmem:[#allocation146_spill] sm:$0xff] %v11249_v1 }
 0x159   : > { %8406 = vrot.lane.b32.xlu0 %v17293_v44, %s9670_s23  ;;  %v11255_v52 = vpop.permute.xlu1 %8131 }
 0x15a   : > { %17294 = vst [vmem:[#allocation92_spill] sm:$0xff] %v11255_v52 }
 0x15b   : > { %v11257_v49 = vpop.permute.xlu0 %8126  ;;  %8421 = vrot.lane.b32.xlu1 %v17296_v7, %s9670_s23 }
 0x15c   : > { %17295 = vst [vmem:[#allocation87_spill] sm:$0xff] %v11257_v49  ;;  %v17305_v49 = vld [vmem:[#allocation98_spill] sm:$0xff] }
 0x15d   : > { %8416 = vrot.lane.b32.xlu0 %v17297_v53, %s9670_s23  ;;  %v11263_v51 = vpop.permute.xlu1 %8141 }
 0x15e   : > { %17298 = vst [vmem:[#allocation96_spill] sm:$0xff] %v11263_v51  ;;  %v552_v51 = vld [vmem:[%s10593_s13 + $0x190] sm:$0x3] }
 0x15f   : > { %v11265_v16 = vpop.permute.xlu0 %8136  ;;  %8431 = vrot.lane.b32.xlu1 %v17300_v56, %s9670_s23  ;;  %v1973_v57 = vrot.slane %v552_v51, 1 }
 0x160   : > { %17299 = vst [vmem:[#allocation90_spill] sm:$0xff] %v11265_v16 }
 0x161   : > { %8426 = vrot.lane.b32.xlu0 %v17301_v0, %s9670_s23  ;;  %v11271_v44 = vpop.permute.xlu1 %8151 }
 0x162   : > { %17302 = vst [vmem:[#allocation100_spill] sm:$0xff] %v11271_v44  ;;  %v1971_v44 = vrot.slane %v11215_v22, 1 }
 0x163   : > { %v11273_v52 = vpop.permute.xlu0 %8146  ;;  %8441 = vrot.lane.b32.xlu1 %v17304_v2, %s9670_s23 }
 0x164   : > { %17303 = vst [vmem:[#allocation94_spill] sm:$0xff] %v11273_v52  ;;  %v17308_v52 = vld [vmem:[#allocation104_spill] sm:$0xff] }
 0x165   : > { %8436 = vrot.lane.b32.xlu0 %v17305_v49, %s9670_s23  ;;  %v11279_v61 = vpop.permute.xlu1 %8161 }
 0x166   : > { %17306 = vst [vmem:[#allocation107_spill] sm:$0xff] %v11279_v61  ;;  %v1972_v61 = vsel %vm604_vm0, %v1970_v59, %v1971_v44 }
 0x167   : > { %v11282_v16 = vpop.permute.xlu0 %8156  ;;  %8451 = vrot.lane.b32.xlu1 %v10902_v11, %s9670_s23 }
 0x168   : > { %17307 = vst [vmem:[#allocation98_spill] sm:$0xff] %v11282_v16  ;;  %v1974_v16 = vsel %vm604_vm0, %v1971_v44, %v1973_v57 }
 0x169   : > { %8446 = vrot.lane.b32.xlu0 %v17308_v52, %s9670_s23  ;;  %v11290_v1 = vpop.permute.xlu1 %8171  ;;  %v11306_v14 = vpack.i.bf16 %v1974_v16, %v1972_v61 }
 0x16b   : > { %v11292_v24 = vpop.permute.xlu0 %8166  ;;  %8461 = vrot.lane.b32.xlu1 %v10924_v60, %s9670_s23 }
 0x16d   : > { %8456 = vrot.lane.b32.xlu0 %v17309_v35, %s9670_s23  ;;  %v11300_v15 = vpop.permute.xlu1 %8181 }
 0x16f   : > { %v11302_v55 = vpop.permute.xlu0 %8176  ;;  %8471 = vrot.lane.b32.xlu1 %v10946_v46, %s9670_s23 }
 0x171   : > { %8466 = vrot.lane.b32.xlu0 %v10913_v63, %s9670_s23  ;;  %v11310_v21 = vpop.permute.xlu1 %8191 }
 0x173   : > { %v11312_v59 = vpop.permute.xlu0 %8186  ;;  %8481 = vrot.lane.b32.xlu1 %v11306_v14, %s9670_s23 }
 0x175   : > { %8476 = vrot.lane.b32.xlu0 %v10935_v48, %s9670_s23  ;;  %v11318_v57 = vpop.permute.xlu1 %8201 }
 0x177   : > { %v11320_v44 = vpop.permute.xlu0 %8196  ;;  %8491 = vrot.lane.b32.xlu1 %v10987_v6, %s9680_s19 }
 0x179   : > { %8486 = vrot.lane.b32.xlu0 %v10957_v39, %s9680_s19  ;;  %v11326_v61 = vpop.permute.xlu1 %8211 }
 0x17b   : > { %v11328_v16 = vpop.permute.xlu0 %8206  ;;  %8501 = vrot.lane.b32.xlu1 %v11009_v13, %s9680_s19 }
 0x17d   : > { %8496 = vrot.lane.b32.xlu0 %v10977_v9, %s9680_s19  ;;  %v11334_v28 = vpop.permute.xlu1 %8221 }
 0x17e   : > { %17310 = vst [vmem:[#allocation104_spill] sm:$0xff] %v11334_v28 }
 0x17f   : > { %v11336_v34 = vpop.permute.xlu0 %8216  ;;  %8511 = vrot.lane.b32.xlu1 %v11031_v42, %s9680_s19 }
 0x180   : > { %17311 = vst [vmem:[#allocation110_spill] sm:$0xff] %v11336_v34  ;;  %v1976_v34 = vrot.slane %v11215_v22, 2 }
 0x181   : > { %8506 = vrot.lane.b32.xlu0 %v10998_v54, %s9680_s19  ;;  %v11342_v39 = vpop.permute.xlu1 %8231 }
 0x182   : > { %17312 = vst [vmem:[#allocation147_spill] sm:$0xff] %v11342_v39  ;;  %v1978_v39 = vrot.slane %v552_v51, 2 }
 0x183   : > { %v11344_v29 = vpop.permute.xlu0 %8226  ;;  %8521 = vrot.lane.b32.xlu1 %v11053_v3, %s9680_s19 }
 0x184   : > { %17313 = vst [vmem:[#allocation148_spill] sm:$0xff] %v11344_v29 }
 0x185   : > { %8516 = vrot.lane.b32.xlu0 %v17314_v36, %s9680_s19  ;;  %v11350_v31 = vpop.permute.xlu1 %8241 }
 0x186   : > { %17315 = vst [vmem:[#allocation123_spill] sm:$0xff] %v11350_v31  ;;  %v1979_v31 = vsel %vm685_vm1, %v1976_v34, %v1978_v39 }
 0x187   : > { %v11352_v18 = vpop.permute.xlu0 %8236  ;;  %8531 = vrot.lane.b32.xlu1 %v11075_v30, %s9680_s19 }
 0x188   : > { %17316 = vst [vmem:[#allocation149_spill] sm:$0xff] %v11352_v18  ;;  %v1977_v18 = vsel %vm685_vm1, %v1975_v4, %v1976_v34 }
 0x189   : > { %8526 = vrot.lane.b32.xlu0 %v11042_v33, %s9680_s19  ;;  %v11360_v29 = vpop.permute.xlu1 %8251  ;;  %v11376_v22 = vpack.i.bf16 %v1979_v31, %v1977_v18 }
 0x18b   : > { %v11362_v28 = vpop.permute.xlu0 %8246  ;;  %8541 = vrot.lane.b32.xlu1 %v11094_v20, %s9680_s19 }
 0x18c   : > { %17317 = vst [vmem:[#allocation150_spill] sm:$0xff] %v11362_v28 }
 0x18d   : > { %8536 = vrot.lane.b32.xlu0 %v11064_v38, %s9680_s19  ;;  %v11370_v12 = vpop.permute.xlu1 %8261 }
 0x18f   : > { %v11372_v51 = vpop.permute.xlu0 %8256  ;;  %8551 = vrot.lane.b32.xlu1 %v11108_v8, %s9680_s19 }
 0x191   : > { %8546 = vrot.lane.b32.xlu0 %v11086_v17, %s9680_s19  ;;  %v11380_v28 = vpop.permute.xlu1 %8271 }
 0x193   : > { %v11382_v4 = vpop.permute.xlu0 %8266  ;;  %8561 = vrot.lane.b32.xlu1 %v11376_v22, %s9680_s19 }
 0x195   : > { %8556 = vrot.lane.b32.xlu0 %v11102_v19, %s9680_s19  ;;  %v11388_v34 = vpop.permute.xlu1 %8281 }
 0x196   : > { %17318 = vst [vmem:[#allocation151_spill] sm:$0xff] %v11388_v34 }
 0x197   : > { %v11390_v39 = vpop.permute.xlu0 %8276  ;;  %8571 = vrot.lane.b32.xlu1 %v11137_v41, %s9681_s20 }
 0x198   : > { %17319 = vst [vmem:[#allocation152_spill] sm:$0xff] %v11390_v39 }
 0x199   : > { %8566 = vrot.lane.b32.xlu0 %v11116_v45, %s9681_s20  ;;  %v11396_v31 = vpop.permute.xlu1 %8291 }
 0x19b   : > { %v11398_v18 = vpop.permute.xlu0 %8286  ;;  %8581 = vrot.lane.b32.xlu1 %v11153_v47, %s9681_s20 }
 0x19d   : > { %8576 = vrot.lane.b32.xlu0 %v11130_v43, %s9681_s20  ;;  %v11404_v34 = vpop.permute.xlu1 %8301 }
 0x19f   : > { %v11406_v39 = vpop.permute.xlu0 %8296  ;;  %8591 = vrot.lane.b32.xlu1 %v11169_v37, %s9681_s20 }
 0x1a1   : > { %8586 = vrot.lane.b32.xlu0 %v11145_v58, %s9681_s20  ;;  %v11412_v45 = vpop.permute.xlu1 %8311 }
 0x1a3   : > { %v11414_v41 = vpop.permute.xlu0 %8306  ;;  %8601 = vrot.lane.b32.xlu1 %v11185_v40, %s9681_s20  ;;  %v11435_v40 = vld [vmem:[%s10593_s13 + $0x198] sm:$0xff] }
 0x1a5   : > { %8596 = vrot.lane.b32.xlu0 %v11161_v25, %s9681_s20  ;;  %v11420_v43 = vpop.permute.xlu1 %8321  ;;  %v11438_v25 = vld [vmem:[%s10593_s13 + $0x1a0] sm:$0xff] }
 0x1a7   : > { %v11422_v47 = vpop.permute.xlu0 %8316  ;;  %8611 = vrot.lane.b32.xlu1 %v11201_v32, %s9681_s20 }
 0x1a8   : > { %17320 = vst [vmem:[#allocation153_spill] sm:$0xff] %v11422_v47 }
 0x1a9   : > { %8606 = vrot.lane.b32.xlu0 %v11177_v62, %s9681_s20  ;;  %v11428_v58 = vpop.permute.xlu1 %8331  ;;  %v8640_v62 = vpack.i.bf16 %v11438_v25, %v11435_v40 }
 0x1ab   : > { %v11430_v37 = vpop.permute.xlu0 %8326  ;;  %8621 = vrot.lane.b32.xlu1 %v11223_v5, %s9681_s20 }
 0x1ac   : > { %17321 = vst [vmem:[#allocation154_spill] sm:$0xff] %v11430_v37 }
 0x1ad   : > { %8616 = vrot.lane.b32.xlu0 %v11193_v10, %s9681_s20  ;;  %v11442_v47 = vpop.permute.xlu1 %8341 }
 0x1af   : > { %v11444_v32 = vpop.permute.xlu0 %8336  ;;  %8631 = vrot.lane.b32.xlu1 %v11239_v23, %s9681_s20 }
 0x1b0   : > { %17322 = vst [vmem:[#allocation155_spill] sm:$0xff] %v11444_v32 }
 0x1b1   : > { %8626 = vrot.lane.b32.xlu0 %v11209_v27, %s9681_s20  ;;  %v11452_v5 = vpop.permute.xlu1 %8351 }
 0x1b3   : > { %v11454_v37 = vpop.permute.xlu0 %8346  ;;  %8641 = vrot.lane.b32.xlu1 %v8640_v62, %s9681_s20 }
 0x1b5   : > { %8636 = vrot.lane.b32.xlu0 %v11231_v50, %s9681_s20  ;;  %v11459_v10 = vpop.permute.xlu1 %8361 }
 0x1b7   : > { %v11461_v32 = vpop.permute.xlu0 %8356  ;;  %8651 = vrot.lane.b32.xlu1 %v17297_v53, %s9682_s21 }
 0x1b8   : > { %17323 = vst [vmem:[#allocation156_spill] sm:$0xff] %v11461_v32 }
 0x1b9   : > { %8646 = vrot.lane.b32.xlu0 %v17292_v26, %s9682_s21  ;;  %v11467_v27 = vpop.permute.xlu1 %8371 }
 0x1ba   : > { %17324 = vst [vmem:[#allocation157_spill] sm:$0xff] %v11467_v27 }
 0x1bb   : > { %v11469_v23 = vpop.permute.xlu0 %8366  ;;  %8661 = vrot.lane.b32.xlu1 %v17301_v0, %s9682_s21  ;;  %v9367_v0 = vld [vmem:[%s16544_s6 + $0x10] ss:$0 sps:$4 sm:$0x33]  }
 0x1bc   : > { %17325 = vst [vmem:[#allocation158_spill] sm:$0xff] %v11469_v23  ;;  %7579 = vmatprep.subr.msk.bf16.mxu1 %vm3126_vm2, %v9367_v0  ;;  %v8258_v23 = vunpack.i.l.bf16 %v11372_v51 }
 0x1bd   : > { %8656 = vrot.lane.b32.xlu0 %v17296_v7, %s9682_s21  ;;  %v11475_v50 = vpop.permute.xlu1 %8381  ;;  %v9368_v7 = vld [vmem:[%s16547_s9 + $0x10] ss:$0 sps:$4 sm:$0x33]  }
 0x1be   : > { %17326 = vst [vmem:[#allocation159_spill] sm:$0xff] %v11475_v50  ;;  %7580 = vmatprep.subr.msk.bf16.mxu0 %vm3126_vm2, %v9368_v7  ;;  %v1983_v50 = vrot.slane %v11435_v40, 1 }
 0x1bf   : > { %v11477_v62 = vpop.permute.xlu0 %8376  ;;  %8671 = vrot.lane.b32.xlu1 %v17305_v49, %s9682_s21 }
 0x1c0   : > { %17327 = vst [vmem:[#allocation160_spill] sm:$0xff] %v11477_v62  ;;  %v1984_v62 = vrot.slane %v11438_v25, 1 }
 0x1c1   : > { %8666 = vrot.lane.b32.xlu0 %v17300_v56, %s9682_s21  ;;  %v11483_v53 = vpop.permute.xlu1 %8391  ;;  %v11500_v56 = vld [vmem:[%s10593_s13 + $0x1a8] sm:$0x3] }
 0x1c2   : > { %17328 = vst [vmem:[#allocation161_spill] sm:$0xff] %v11483_v53  ;;  %v5521_v53 = vsel %vm3126_vm2, %v9368_v7, 0 }
 0x1c3   : > { %v11485_v26 = vpop.permute.xlu0 %8386  ;;  %8681 = vrot.lane.b32.xlu1 %v17308_v52, %s9682_s21  ;;  %v3128_v52 = vsel %vm3126_vm2, %v9367_v0, 0  ;;  %7542 = vmatpush3.bf16.msra.mxu0 %v5521_v53  ;;  %v1985_v53 = vsel %vm604_vm0, %v1983_v50, %v1984_v62  ;;  %vm1694_vm2 = vcmask 916480  }
 0x1c4   : > { %17329 = vst [vmem:[#allocation162_spill] sm:$0xff] %v11485_v26  ;;  %7504 = vmatpush3.bf16.msra.mxu1 %v3128_v52  ;;  %v9371_v52 = vld [vmem:[%s16544_s6] sm:$0xff]  }
 0x1c5   : > { %8676 = vrot.lane.b32.xlu0 %v17304_v2, %s9682_s21  ;;  %v11497_v49 = vpop.permute.xlu1 %8401  ;;  %v1986_v2 = vrot.slane %v11500_v56, 1 }
 0x1c6   : > { %17330 = vst [vmem:[#allocation163_spill] sm:$0xff] %v11497_v49  ;;  %v9369_v49 = vld [vmem:[%s16544_s6 + $0x8] sm:$0xff]  }
 0x1c7   : > { %v11502_v26 = vpop.permute.xlu0 %8396  ;;  %8691 = vrot.lane.b32.xlu1 %v17309_v35, %s9682_s21  ;;  %7505 = vmatprep.subr.bf16.mxu1 %v9369_v49  ;;  %v1987_v7 = vsel %vm604_vm0, %v1984_v62, %v1986_v2 }
 0x1c8   : > { %17331 = vst [vmem:[#allocation164_spill] sm:$0xff] %v11502_v26  ;;  %v9370_v26 = vld [vmem:[%s16547_s9 + $0x8] sm:$0xff]   ;;  %7506 = vmatpush3.bf16.msra.mxu1 %v9369_v49  ;;  %v8720_v50 = vpack.i.bf16 %v1987_v7, %v1985_v53  ;;  %v1991_v7 = vrot.slane %v11500_v56, 2 }
 0x1c9   : > { %8686 = vrot.lane.b32.xlu0 %v10902_v11, %s9682_s21  ;;  %v11517_v35 = vpop.permute.xlu1 %8411  ;;  %7543 = vmatprep.subr.bf16.mxu0 %v9370_v26  ;;  %v9372_v11 = vld [vmem:[%s16547_s9] sm:$0xff]  }
 0x1ca   : > { %17332 = vst [vmem:[#allocation165_spill] sm:$0xff] %v11517_v35  ;;  %7544 = vmatpush3.bf16.msra.mxu0 %v9370_v26  ;;  %7507 = vmatprep.subr.bf16.mxu1 %v9371_v52 }
 0x1cb   : > { %v11519_v0 = vpop.permute.xlu0 %8406  ;;  %8701 = vrot.lane.b32.xlu1 %v10913_v63, %s9682_s21  ;;  %7545 = vmatprep.subr.bf16.mxu0 %v9372_v11 }
 0x1cc   : > { %17333 = vst [vmem:[#allocation166_spill] sm:$0xff] %v11519_v0  ;;  %7508 = vmatpush3.bf16.msra.mxu1 %v9371_v52 }
 0x1cd   : > { %8696 = vrot.lane.b32.xlu0 %v10924_v60, %s9682_s21  ;;  %v11533_v0 = vpop.permute.xlu1 %8421  ;;  %v16772_v60 = vmov 0  }
 0x1ce   : > { %17334 = vst [vmem:[#allocation167_spill] sm:$0xff] %v11533_v0  ;;  %7546 = vmatpush3.bf16.msra.mxu0 %v9372_v11  ;;  %3393 = vmatprep.subr.bf16.mxu1 %v16772_v60  ;;  %v8264_v0 = vunpack.i.h.bf16 %v11370_v12 }
 0x1cf   : > { %v11535_v63 = vpop.permute.xlu0 %8416  ;;  %8711 = vrot.lane.b32.xlu1 %v10935_v48, %s9682_s21  ;;  %5786 = vmatprep.subr.bf16.mxu0 %v16772_v60 }
 0x1d0   : > { %17335 = vst [vmem:[#allocation168_spill] sm:$0xff] %v11535_v63  ;;  %9366 = vset.pattern.permute.xlu1 %v16772_v60  ;;  %9365 = vset.pattern.permute.xlu0 %v16772_v60  ;;  %v8179_v60 = vunpack.i.h.bf16 %v11302_v55  ;;  %v9546_v63 = vld [vmem:[%s10593_s13 + $0x120] sm:$0xff] }
 0x1d1   : > { %8706 = vrot.lane.b32.xlu0 %v10946_v46, %s9682_s21  ;;  %v11541_v62 = vpop.permute.xlu1 %8431 }
 0x1d2   : > { %17336 = vst [vmem:[#allocation169_spill] sm:$0xff] %v11541_v62 }
 0x1d3   : > { %v11543_v26 = vpop.permute.xlu0 %8426  ;;  %8721 = vrot.lane.b32.xlu1 %v8720_v50, %s9682_s21 }
 0x1d4   : > { %17337 = vst [vmem:[#allocation170_spill] sm:$0xff] %v11543_v26 }
 0x1d5   : > { %8716 = vrot.lane.b32.xlu0 %v11306_v14, %s9682_s21  ;;  %v11550_v48 = vpop.permute.xlu1 %8441 }
 0x1d6   : > { %17338 = vst [vmem:[#allocation171_spill] sm:$0xff] %v11550_v48  ;;  %v9542_v48 = vld [vmem:[%s10593_s13 + $0xf0] sm:$0xff] }
 0x1d7   : > { %v11554_v46 = vpop.permute.xlu0 %8436  ;;  %8731 = vrot.lane.b32.xlu1 %v10977_v9, %s9671_s24 }
 0x1d8   : > { %17339 = vst [vmem:[#allocation172_spill] sm:$0xff] %v11554_v46 }
 0x1d9   : > { %8726 = vrot.lane.b32.xlu0 %v10987_v6, %s9671_s24  ;;  %v11560_v49 = vpop.permute.xlu1 %8451 }
 0x1da   : > { %17340 = vst [vmem:[#allocation173_spill] sm:$0xff] %v11560_v49 }
 0x1db   : > { %v11562_v2 = vpop.permute.xlu0 %8446  ;;  %8741 = vrot.lane.b32.xlu1 %v10998_v54, %s9671_s24 }
 0x1dc   : > { %17341 = vst [vmem:[#allocation174_spill] sm:$0xff] %v11562_v2 }
 0x1dd   : > { %8736 = vrot.lane.b32.xlu0 %v11009_v13, %s9671_s24  ;;  %v11568_v14 = vpop.permute.xlu1 %8461 }
 0x1de   : > { %17342 = vst [vmem:[#allocation175_spill] sm:$0xff] %v11568_v14 }
 0x1df   : > { %v11570_v53 = vpop.permute.xlu0 %8456  ;;  %8751 = vrot.lane.b32.xlu1 %v17314_v36, %s9671_s24  ;;  %v1989_v36 = vrot.slane %v11438_v25, 2 }
 0x1e0   : > { %17343 = vst [vmem:[#allocation176_spill] sm:$0xff] %v11570_v53 }
 0x1e1   : > { %8746 = vrot.lane.b32.xlu0 %v11031_v42, %s9671_s24  ;;  %v11576_v9 = vpop.permute.xlu1 %8471  ;;  %v1988_v42 = vrot.slane %v11435_v40, 2 }
 0x1e2   : > { %17344 = vst [vmem:[#allocation177_spill] sm:$0xff] %v11576_v9  ;;  %v9534_v9 = vld [vmem:[%s10593_s13 + $0x90] sm:$0xff] }
 0x1e3   : > { %v11578_v6 = vpop.permute.xlu0 %8466  ;;  %8761 = vrot.lane.b32.xlu1 %v11042_v33, %s9671_s24 }
 0x1e4   : > { %17345 = vst [vmem:[#allocation178_spill] sm:$0xff] %v11578_v6  ;;  %v9533_v6 = vld [vmem:[%s10593_s13 + $0x98] sm:$0xff] }
 0x1e5   : > { %8756 = vrot.lane.b32.xlu0 %v11053_v3, %s9671_s24  ;;  %v11584_v54 = vpop.permute.xlu1 %8481  ;;  %v1990_v3 = vsel %vm685_vm1, %v1988_v42, %v1989_v36  ;;  %v8173_v42 = vunpack.i.l.bf16 %v11290_v1 }
 0x1e6   : > { %17346 = vst [vmem:[#allocation179_spill] sm:$0xff] %v11584_v54  ;;  %v8188_v54 = vunpack.i.l.bf16 %v11312_v59 }
 0x1e7   : > { %v11586_v13 = vpop.permute.xlu0 %8476  ;;  %8771 = vrot.lane.b32.xlu1 %v11064_v38, %s9671_s24  ;;  %v1992_v38 = vsel %vm685_vm1, %v1989_v36, %v1991_v7  ;;  %v8169_v7 = vunpack.i.h.bf16 %v11292_v24 }
 0x1e8   : > { %17347 = vst [vmem:[#allocation180_spill] sm:$0xff] %v11586_v13 }
 0x1e9   : > { %8766 = vrot.lane.b32.xlu0 %v11075_v30, %s9671_s24  ;;  %v11595_v33 = vpop.permute.xlu1 %8491  ;;  %v8800_v30 = vpack.i.bf16 %v1992_v38, %v1990_v3  ;;  %v8184_v38 = vunpack.i.h.bf16 %v11300_v15 }
 0x1ea   : > { %17348 = vst [vmem:[#allocation181_spill] sm:$0xff] %v11595_v33  ;;  %v17366_v33 = vld [vmem:[#allocation110_spill] sm:$0xff] }
 0x1eb   : > { %v11597_v52 = vpop.permute.xlu0 %8486  ;;  %8781 = vrot.lane.b32.xlu1 %v11086_v17, %s9671_s24  ;;  %v8218_v13 = vunpack.i.l.bf16 %v17366_v33 }
 0x1ec   : > { %17349 = vst [vmem:[#allocation182_spill] sm:$0xff] %v11597_v52  ;;  %v9532_v52 = vld [vmem:[%s10593_s13 + $0xa8] sm:$0xff] }
 0x1ed   : > { %8776 = vrot.lane.b32.xlu0 %v11094_v20, %s9671_s24  ;;  %v11605_v40 = vpop.permute.xlu1 %8501 }
 0x1ee   : > { %17350 = vst [vmem:[#allocation183_spill] sm:$0xff] %v11605_v40  ;;  %v9529_v40 = vld [vmem:[%s10593_s13 + $0x68] sm:$0xff] }
 0x1ef   : > { %v11607_v25 = vpop.permute.xlu0 %8496  ;;  %8791 = vrot.lane.b32.xlu1 %v11102_v19, %s9671_s24 }
 0x1f0   : > { %17351 = vst [vmem:[#allocation184_spill] sm:$0xff] %v11607_v25 }
 0x1f1   : > { %8786 = vrot.lane.b32.xlu0 %v11108_v8, %s9671_s24  ;;  %v11613_v56 = vpop.permute.xlu1 %8511  ;;  %v8174_v8 = vunpack.i.h.bf16 %v11290_v1  ;;  %v8194_v1 = vunpack.i.h.bf16 %v11310_v21 }
 0x1f2   : > { %17352 = vst [vmem:[#allocation185_spill] sm:$0xff] %v11613_v56 }
 0x1f3   : > { %v11615_v17 = vpop.permute.xlu0 %8506  ;;  %8801 = vrot.lane.b32.xlu1 %v8800_v30, %s9671_s24  ;;  %v8183_v30 = vunpack.i.l.bf16 %v11300_v15  ;;  %v9519_v15 = vld [vmem:[%s10593_s13 + $0x20] sm:$0xff] }
 0x1f4   : > { %17353 = vst [vmem:[#allocation186_spill] sm:$0xff] %v11615_v17 }
 0x1f5   : > { %8796 = vrot.lane.b32.xlu0 %v11376_v22, %s9671_s24  ;;  %v11620_v20 = vpop.permute.xlu1 %8521  ;;  %v8168_v22 = vunpack.i.l.bf16 %v11292_v24  ;;  %v8193_v24 = vunpack.i.l.bf16 %v11310_v21 }
 0x1f6   : > { %17354 = vst [vmem:[#allocation187_spill] sm:$0xff] %v11620_v20  ;;  %v11649_v20 = vsel %vm2761_vm3, %v9519_v15, %v8174_v8  ;;  %v9523_v8 = vld [vmem:[%s10593_s13 + $0x50] sm:$0xff] }
 0x1f7   : > { %v11622_v11 = vpop.permute.xlu0 %8516  ;;  %v11668_v15 = vsel %vm2761_vm3, %v9523_v8, %v8184_v38  ;;  %v8203_v8 = vunpack.i.l.bf16 %v11318_v57 }
 0x1f8   : > { %17355 = vst [vmem:[#allocation188_spill] sm:$0xff] %v11622_v11  ;;  %v8189_v11 = vunpack.i.h.bf16 %v11312_v59  ;;  %v9525_v59 = vld [vmem:[%s10593_s13 + $0x38] sm:$0xff] }
 0x1f9   : > { %v11624_v50 = vpop.permute.xlu1 %8531 }
 0x1fa   : > { %17356 = vst [vmem:[#allocation189_spill] sm:$0xff] %v11624_v50  ;;  %v9522_v50 = vld [vmem:[%s10593_s13] sm:$0xff] }
 0x1fb   : > { %v11626_v19 = vpop.permute.xlu0 %8526  ;;  %v11664_v56 = vsel %vm2761_vm3, %v9522_v50, %v8168_v22  ;;  %v9527_v22 = vld [vmem:[%s10593_s13 + $0x80] sm:$0xff] }
 0x1fc   : > { %17357 = vst [vmem:[#allocation190_spill] sm:$0xff] %v11626_v19  ;;  %v11685_v38 = vsel %vm2761_vm3, %v9527_v22, %v8194_v1  ;;  %v8213_v22 = vunpack.i.l.bf16 %v11326_v61 }
 0x1fd   : > { %v11628_v36 = vpop.permute.xlu1 %8541 }
 0x1fe   : > { %17358 = vst [vmem:[#allocation191_spill] sm:$0xff] %v11628_v36  ;;  %v8178_v36 = vunpack.i.l.bf16 %v11302_v55  ;;  %v9520_v55 = vld [vmem:[%s10593_s13 + $0x18] sm:$0xff] }
 0x1ff   : > { %v11633_v3 = vpop.permute.xlu0 %8536  ;;  %v11653_v17 = vsel %vm2761_vm3, %v9520_v55, %v8173_v42  ;;  %v9524_v42 = vld [vmem:[%s10593_s13 + $0x48] sm:$0xff] }
 0x200   : > { %17359 = vst [vmem:[#allocation192_spill] sm:$0xff] %v11633_v3  ;;  %v11672_v55 = vsel %vm2761_vm3, %v9524_v42, %v8183_v30  ;;  %v9528_v42 = vld [vmem:[%s10593_s13 + $0x78] sm:$0xff] }
 0x201   : > { %v11641_v19 = vpop.permute.xlu1 %8551  ;;  %v11692_v25 = vsel %vm2761_vm3, %v9528_v42, %v8193_v24  ;;  %v8209_v24 = vunpack.i.h.bf16 %v11328_v16 }
 0x202   : > { %17360 = vst [vmem:[#allocation193_spill] sm:$0xff] %v11641_v19  ;;  %v9521_v19 = vld [vmem:[%s10593_s13 + $0x8] sm:$0xff] }
 0x203   : > { %v11657_v3 = vsel %vm2761_vm3, %v9521_v19, %v8169_v7  ;;  %v11660_v21 = vpop.permute.xlu0 %8546  ;;  %v8204_v19 = vunpack.i.h.bf16 %v11318_v57  ;;  %v11677_v7 = vsel %vm2761_vm3, %v9525_v59, %v8179_v60  ;;  %v11696_v60 = vsel %vm2761_vm3, %v9529_v40, %v8189_v11  ;;  %v9530_v59 = vld [vmem:[%s10593_s13 + $0x60] sm:$0xff]  ;;  %v9531_v40 = vld [vmem:[%s10593_s13 + $0xb0] sm:$0xff] }
 0x204   : > { %17362 = vst [vmem:[#allocation194_spill] sm:$0xff] %v11660_v21  ;;  %v9526_v21 = vld [vmem:[%s10593_s13 + $0x30] sm:$0xff]  ;;  %v11702_v1 = vsel %vm2761_vm3, %v9530_v59, %v8188_v54  ;;  %v8214_v57 = vunpack.i.h.bf16 %v11326_v61  ;;  %v11718_v61 = vsel %vm2761_vm3, %v9532_v52, %v8203_v8 }
 0x205   : > { %v11681_v50 = vsel %vm2761_vm3, %v9526_v21, %v8178_v36  ;;  %v11688_v30 = vpop.permute.xlu1 %8561  ;;  %v8199_v36 = vunpack.i.h.bf16 %v11320_v44  ;;  %v8198_v21 = vunpack.i.l.bf16 %v11320_v44  ;;  %v11711_v11 = vsel %vm2761_vm3, %v9531_v40, %v8204_v19  ;;  %v17367_v19 = vld [vmem:[#allocation147_spill] sm:$0xff]  ;;  %v17369_v8 = vld [vmem:[#allocation148_spill] sm:$0xff] }
 0x206   : > { %17363 = vst [vmem:[#allocation195_spill] sm:$0xff] %v11688_v30  ;;  %v8208_v44 = vunpack.i.l.bf16 %v11328_v16  ;;  %v17365_v30 = vld [vmem:[#allocation104_spill] sm:$0xff]  ;;  %v8234_v40 = vunpack.i.h.bf16 %v17367_v19  ;;  %v8233_v52 = vunpack.i.l.bf16 %v17367_v19  ;;  %v8229_v14 = vunpack.i.h.bf16 %v17369_v8  ;;  %v9538_v19 = vld [vmem:[%s10593_s13 + $0xc0] sm:$0xff] }
 0x207   : > { %v11707_v42 = vpop.permute.xlu0 %8556  ;;  %v8224_v54 = vunpack.i.h.bf16 %v17365_v30  ;;  %v8223_v59 = vunpack.i.l.bf16 %v17365_v30  ;;  %v11727_v30 = vsel %vm2761_vm3, %v9533_v6, %v8199_v36  ;;  %v11731_v53 = vsel %vm2761_vm3, %v9534_v9, %v8198_v21  ;;  %v9537_v6 = vld [vmem:[%s10593_s13 + $0xc8] sm:$0xff] }
 0x208   : > { %17364 = vst [vmem:[#allocation196_spill] sm:$0xff] %v11707_v42  ;;  %v8219_v42 = vunpack.i.h.bf16 %v17366_v33  ;;  %v9535_v33 = vld [vmem:[%s10593_s13 + $0xe0] sm:$0xff]  ;;  %v11745_v36 = vsel %vm2761_vm3, %v9537_v6, %v8209_v24  ;;  %v8228_v9 = vunpack.i.l.bf16 %v17369_v8  ;;  %v11752_v46 = vsel %vm2761_vm3, %v9538_v19, %v8208_v44  ;;  %v17371_v24 = vld [vmem:[#allocation123_spill] sm:$0xff]  ;;  %v9541_v8 = vld [vmem:[%s10593_s13 + $0xf8] sm:$0xff] }
 0x209   : > { %v11723_v16 = vpop.permute.xlu1 %8571  ;;  %v11737_v2 = vsel %vm2761_vm3, %v9535_v33, %v8214_v57  ;;  %v9539_v57 = vld [vmem:[%s10593_s13 + $0x110] sm:$0xff]  ;;  %v8244_v6 = vunpack.i.h.bf16 %v17371_v24  ;;  %v11769_v44 = vsel %vm2761_vm3, %v9542_v48, %v8218_v13  ;;  %v9543_v19 = vld [vmem:[%s10593_s13 + $0x140] sm:$0xff]  ;;  %v17373_v48 = vld [vmem:[#allocation149_spill] sm:$0xff] }
 0x20a   : > { %17368 = vst [vmem:[#allocation104_spill] sm:$0xff] %v11723_v16  ;;  %v9536_v16 = vld [vmem:[%s10593_s13 + $0xd8] sm:$0xff]  ;;  %v11756_v33 = vsel %vm2761_vm3, %v9539_v57, %v8224_v54  ;;  %v11773_v54 = vsel %vm2761_vm3, %v9543_v19, %v8234_v40  ;;  %v8243_v57 = vunpack.i.l.bf16 %v17371_v24  ;;  %v8239_v13 = vunpack.i.h.bf16 %v17373_v48 }
 0x20b   : > { %v11741_v49 = vsel %vm2761_vm3, %v9536_v16, %v8213_v22  ;;  %v11748_v21 = vpop.permute.xlu0 %8566  ;;  %v9540_v22 = vld [vmem:[%s10593_s13 + $0x108] sm:$0xff]  ;;  %v8238_v62 = vunpack.i.l.bf16 %v17373_v48  ;;  %v11790_v40 = vsel %vm2761_vm3, %v9546_v63, %v8228_v9  ;;  %v8254_v24 = vunpack.i.h.bf16 %v11360_v29 }
 0x20c   : > { %17370 = vst [vmem:[#allocation110_spill] sm:$0xff] %v11748_v21  ;;  %v11760_v16 = vsel %vm2761_vm3, %v9540_v22, %v8223_v59  ;;  %v11765_v21 = vsel %vm2761_vm3, %v9541_v8, %v8219_v42  ;;  %v9544_v22 = vld [vmem:[%s10593_s13 + $0x138] sm:$0xff]  ;;  %v9545_v42 = vld [vmem:[%s10593_s13 + $0x128] sm:$0xff]  ;;  %v8253_v19 = vunpack.i.l.bf16 %v11360_v29  ;;  %v8263_v63 = vunpack.i.l.bf16 %v11370_v12 }
 0x20d   : > { %v11776_v59 = vpop.permute.xlu1 %8581  ;;  %v11780_v26 = vsel %vm2761_vm3, %v9544_v22, %v8233_v52  ;;  %v11784_v8 = vsel %vm2761_vm3, %v9545_v42, %v8229_v14  ;;  %v17374_v52 = vld [vmem:[#allocation150_spill] sm:$0xff]  ;;  %v9547_v14 = vld [vmem:[%s10593_s13 + $0x170] sm:$0xff]  ;;  %v9548_v9 = vld [vmem:[%s10593_s13 + $0x168] sm:$0xff]  ;;  %v8259_v29 = vunpack.i.h.bf16 %v11372_v51  ;;  %v8274_v12 = vunpack.i.h.bf16 %v11380_v28 }
 0x20e   : > { %17372 = vst [vmem:[#allocation147_spill] sm:$0xff] %v11776_v59  ;;  %v8248_v22 = vunpack.i.l.bf16 %v17374_v52  ;;  %v11799_v42 = vsel %vm2761_vm3, %v9547_v14, %v8244_v6  ;;  %v8249_v48 = vunpack.i.h.bf16 %v17374_v52  ;;  %v11806_v35 = vsel %vm2761_vm3, %v9548_v9, %v8243_v57  ;;  %v9549_v6 = vld [vmem:[%s10593_s13 + $0x158] sm:$0xff]  ;;  %v9550_v52 = vld [vmem:[%s10593_s13 + $0x150] sm:$0xff] }
 0x20f   : > { %v11795_v59 = vpop.permute.xlu0 %8576  ;;  %v11815_v14 = vsel %vm2761_vm3, %v9549_v6, %v8239_v13  ;;  %v11819_v32 = vsel %vm2761_vm3, %v9550_v52, %v8238_v62  ;;  %v8268_v57 = vunpack.i.l.bf16 %v11382_v4  ;;  %v11825_v9 = vsel %vm2794_vm4, %v11653_v17, %v8253_v19 }
 0x210   : > { %17375 = vst [vmem:[#allocation148_spill] sm:$0xff] %v11795_v59  ;;  %v8273_v59 = vunpack.i.l.bf16 %v11380_v28  ;;  %v11829_v51 = vsel %vm2794_vm4, %v11649_v20, %v8254_v24  ;;  %v11833_v13 = vsel %vm2794_vm4, %v11664_v56, %v8248_v22  ;;  %v8269_v6 = vunpack.i.h.bf16 %v11382_v4  ;;  %v17376_v24 = vld [vmem:[#allocation151_spill] sm:$0xff] }
 0x211   : > { %v11811_v27 = vpop.permute.xlu1 %8591  ;;  %v11840_v28 = vsel %vm2794_vm4, %v11657_v3, %v8249_v48  ;;  %v11844_v17 = vsel %vm2794_vm4, %v11672_v55, %v8263_v63  ;;  %v11848_v20 = vsel %vm2794_vm4, %v11668_v15, %v8264_v0  ;;  %v8283_v19 = vunpack.i.l.bf16 %v17376_v24  ;;  %v17377_v15 = vld [vmem:[#allocation152_spill] sm:$0xff] }
 0x212   : > { %v11853_v56 = vsel %vm2794_vm4, %v11681_v50, %v8258_v23  ;;  %v11857_v4 = vsel %vm2794_vm4, %v11677_v7, %v8259_v29  ;;  %v11861_v3 = vsel %vm2794_vm4, %v11692_v25, %v8273_v59  ;;  %v8284_v55 = vunpack.i.h.bf16 %v17376_v24 }
 0x213   : > { %v11836_v62 = vpop.permute.xlu0 %8586  ;;  %v11868_v0 = vsel %vm2794_vm4, %v11685_v38, %v8274_v12  ;;  %v11872_v23 = vsel %vm2794_vm4, %v11702_v1, %v8268_v57  ;;  %v8279_v50 = vunpack.i.h.bf16 %v17377_v15  ;;  %v8278_v7 = vunpack.i.l.bf16 %v17377_v15 }
 0x214   : > { %v11878_v25 = vsel %vm2794_vm4, %v11696_v60, %v8269_v6  ;;  %v8294_v59 = vunpack.i.h.bf16 %v11396_v31  ;;  %v8293_v48 = vunpack.i.l.bf16 %v11396_v31  ;;  %v8288_v63 = vunpack.i.l.bf16 %v11398_v18 }
 0x215   : > { %v11864_v22 = vpop.permute.xlu1 %8601  ;;  %v11887_v1 = vsel %vm2794_vm4, %v11718_v61, %v8283_v19  ;;  %v8289_v29 = vunpack.i.h.bf16 %v11398_v18  ;;  %v8304_v52 = vunpack.i.h.bf16 %v11404_v34  ;;  %v8303_v12 = vunpack.i.l.bf16 %v11404_v34 }
 0x216   : > { %v11894_v60 = vsel %vm2794_vm4, %v11711_v11, %v8284_v55  ;;  %v8299_v31 = vunpack.i.h.bf16 %v11406_v39  ;;  %v8298_v57 = vunpack.i.l.bf16 %v11406_v39  ;;  %v8313_v6 = vunpack.i.l.bf16 %v11412_v45 }
 0x217   : > { %v11883_v38 = vpop.permute.xlu0 %8596  ;;  %v11903_v18 = vsel %vm2794_vm4, %v11731_v53, %v8278_v7  ;;  %v11907_v34 = vsel %vm2794_vm4, %v11727_v30, %v8279_v50  ;;  %v8314_v61 = vunpack.i.h.bf16 %v11412_v45  ;;  %v8308_v11 = vunpack.i.l.bf16 %v11414_v41  ;;  %v17379_v7 = vld [vmem:[#allocation153_spill] sm:$0xff] }
 0x218   : > { %v11913_v19 = vsel %vm2794_vm4, %v11741_v49, %v8293_v48  ;;  %v11917_v39 = vsel %vm2794_vm4, %v11737_v2, %v8294_v59  ;;  %v11921_v53 = vsel %vm2794_vm4, %v11752_v46, %v8288_v63  ;;  %v8309_v55 = vunpack.i.h.bf16 %v11414_v41  ;;  %v17380_v63 = vld [vmem:[#allocation154_spill] sm:$0xff] }
 0x219   : > { %v11899_v24 = vpop.permute.xlu1 %8611  ;;  %v11928_v45 = vsel %vm2794_vm4, %v11745_v36, %v8289_v29  ;;  %v11932_v49 = vsel %vm2794_vm4, %v11760_v16, %v8303_v12  ;;  %v11936_v2 = vsel %vm2794_vm4, %v11756_v33, %v8304_v52  ;;  %v8323_v15 = vunpack.i.l.bf16 %v11420_v43 }
 0x21a   : > { %v11941_v46 = vsel %vm2794_vm4, %v11769_v44, %v8298_v57  ;;  %v11945_v41 = vsel %vm2794_vm4, %v11765_v21, %v8299_v31  ;;  %v11949_v36 = vsel %vm2794_vm4, %v11780_v26, %v8313_v6  ;;  %v8324_v16 = vunpack.i.h.bf16 %v11420_v43  ;;  %v17383_v57 = vld [vmem:[#allocation155_spill] sm:$0xff] }
 0x21b   : > { %v11924_v30 = vpop.permute.xlu0 %8606  ;;  %v11956_v33 = vsel %vm2794_vm4, %v11773_v54, %v8314_v61  ;;  %v11960_v44 = vsel %vm2794_vm4, %v11790_v40, %v8308_v11  ;;  %v8319_v59 = vunpack.i.h.bf16 %v17379_v7  ;;  %v8318_v21 = vunpack.i.l.bf16 %v17379_v7 }
 0x21c   : > { %v11966_v26 = vsel %vm2794_vm4, %v11784_v8, %v8309_v55  ;;  %v8334_v43 = vunpack.i.h.bf16 %v11428_v58  ;;  %v8333_v48 = vunpack.i.l.bf16 %v11428_v58  ;;  %v8328_v29 = vunpack.i.l.bf16 %v17380_v63 }
 0x21d   : > { %v11952_v50 = vpop.permute.xlu1 %8621  ;;  %v11975_v40 = vsel %vm2794_vm4, %v11806_v35, %v8323_v15  ;;  %v8329_v52 = vunpack.i.h.bf16 %v17380_v63  ;;  %v8344_v12 = vunpack.i.h.bf16 %v11442_v47  ;;  %v8343_v31 = vunpack.i.l.bf16 %v11442_v47  ;;  %v17388_v63 = vld [vmem:[#allocation157_spill] sm:$0xff] }
 0x21e   : > { %17378 = vst [vmem:[#allocation123_spill] sm:$0xff] %v11952_v50  ;;  %17381 = vst [vmem:[#allocation149_spill] sm:$0xff] %v11975_v40  ;;  %v11982_v8 = vsel %vm2794_vm4, %v11799_v42, %v8324_v16  ;;  %v8339_v58 = vunpack.i.h.bf16 %v17383_v57  ;;  %v8338_v6 = vunpack.i.l.bf16 %v17383_v57  ;;  %v8353_v61 = vunpack.i.l.bf16 %v11452_v5  ;;  %v17391_v57 = vld [vmem:[#allocation159_spill] sm:$0xff] }
 0x21f   : > { %v11971_v54 = vpop.permute.xlu0 %8616  ;;  %17382 = vst [vmem:[#allocation150_spill] sm:$0xff] %v11982_v8  ;;  %v11991_v35 = vsel %vm2794_vm4, %v11819_v32, %v8318_v21  ;;  %v11995_v55 = vsel %vm2794_vm4, %v11815_v14, %v8319_v59  ;;  %v8354_v47 = vunpack.i.h.bf16 %v11452_v5  ;;  %v8348_v42 = vunpack.i.l.bf16 %v11454_v37  ;;  %v17401_v8 = vld [vmem:[#allocation169_spill] sm:$0xff] }
 0x220   : > { %v12001_v15 = vsel %vm2827_vm5, %v11825_v9, %v8333_v48  ;;  %v12005_v16 = vsel %vm2827_vm5, %v11829_v51, %v8334_v43  ;;  %v12009_v32 = vsel %vm2827_vm5, %v11833_v13, %v8328_v29  ;;  %v8349_v7 = vunpack.i.h.bf16 %v11454_v37  ;;  %v17387_v43 = vld [vmem:[#allocation156_spill] sm:$0xff] }
 0x221   : > { %v11987_v11 = vpop.permute.xlu1 %8631  ;;  %v12016_v5 = vsel %vm2827_vm5, %v11840_v28, %v8329_v52  ;;  %v12020_v9 = vsel %vm2827_vm5, %v11844_v17, %v8343_v31  ;;  %v12024_v51 = vsel %vm2827_vm5, %v11848_v20, %v8344_v12  ;;  %v8363_v59 = vunpack.i.l.bf16 %v11459_v10  ;;  %v17389_v52 = vld [vmem:[#allocation158_spill] sm:$0xff] }
 0x222   : > { %17384 = vst [vmem:[#allocation151_spill] sm:$0xff] %v11987_v11  ;;  %v12029_v13 = vsel %vm2827_vm5, %v11853_v56, %v8338_v6  ;;  %v12033_v37 = vsel %vm2827_vm5, %v11857_v4, %v8339_v58  ;;  %v12037_v28 = vsel %vm2827_vm5, %v11861_v3, %v8353_v61  ;;  %v8364_v17 = vunpack.i.h.bf16 %v11459_v10  ;;  %v17392_v61 = vld [vmem:[#allocation160_spill] sm:$0xff] }
 0x223   : > { %v12012_v14 = vpop.permute.xlu0 %8626  ;;  %v12044_v20 = vsel %vm2827_vm5, %v11868_v0, %v8354_v47  ;;  %v12048_v56 = vsel %vm2827_vm5, %v11872_v23, %v8348_v42  ;;  %v8359_v48 = vunpack.i.h.bf16 %v17387_v43  ;;  %v8358_v4 = vunpack.i.l.bf16 %v17387_v43 }
 0x224   : > { %17385 = vst [vmem:[#allocation152_spill] sm:$0xff] %v12012_v14  ;;  %v12054_v3 = vsel %vm2827_vm5, %v11878_v25, %v8349_v7  ;;  %v8374_v10 = vunpack.i.h.bf16 %v17388_v63  ;;  %v8373_v29 = vunpack.i.l.bf16 %v17388_v63  ;;  %v8368_v12 = vunpack.i.l.bf16 %v17389_v52  ;;  %v17393_v7 = vld [vmem:[#allocation161_spill] sm:$0xff] }
 0x225   : > { %v12040_v21 = vpop.permute.xlu1 %8641  ;;  %v12063_v23 = vsel %vm2827_vm5, %v11887_v1, %v8363_v59  ;;  %v8369_v31 = vunpack.i.h.bf16 %v17389_v52  ;;  %v8384_v58 = vunpack.i.h.bf16 %v17391_v57  ;;  %v8383_v6 = vunpack.i.l.bf16 %v17391_v57 }
 0x226   : > { %17386 = vst [vmem:[#allocation153_spill] sm:$0xff] %v12040_v21  ;;  %v12070_v25 = vsel %vm2827_vm5, %v11894_v60, %v8364_v17  ;;  %v8379_v47 = vunpack.i.h.bf16 %v17392_v61  ;;  %v8378_v42 = vunpack.i.l.bf16 %v17392_v61  ;;  %v8393_v43 = vunpack.i.l.bf16 %v17393_v7  ;;  %v17394_v60 = vld [vmem:[#allocation162_spill] sm:$0xff] }
 0x227   : > { %v12059_v0 = vpop.permute.xlu0 %8636  ;;  %v12079_v1 = vsel %vm2827_vm5, %v11903_v18, %v8358_v4  ;;  %v12083_v59 = vsel %vm2827_vm5, %v11907_v34, %v8359_v48  ;;  %v8394_v52 = vunpack.i.h.bf16 %v17393_v7  ;;  %v8388_v17 = vunpack.i.l.bf16 %v17394_v60 }
 0x228   : > { %17390 = vst [vmem:[#allocation154_spill] sm:$0xff] %v12059_v0  ;;  %v12089_v57 = vsel %vm2827_vm5, %v11913_v19, %v8373_v29  ;;  %v12093_v61 = vsel %vm2827_vm5, %v11917_v39, %v8374_v10  ;;  %v12097_v18 = vsel %vm2827_vm5, %v11921_v53, %v8368_v12  ;;  %v8389_v4 = vunpack.i.h.bf16 %v17394_v60  ;;  %v17395_v10 = vld [vmem:[#allocation164_spill] sm:$0xff] }
 0x229   : > { %v12075_v63 = vpop.permute.xlu1 %8651  ;;  %v12104_v48 = vsel %vm2827_vm5, %v11928_v45, %v8369_v31  ;;  %v12108_v19 = vsel %vm2827_vm5, %v11932_v49, %v8383_v6  ;;  %v12112_v39 = vsel %vm2827_vm5, %v11936_v2, %v8384_v58  ;;  %v8398_v29 = vunpack.i.l.bf16 %v17395_v10  ;;  %v17396_v58 = vld [vmem:[#allocation165_spill] sm:$0xff] }
 0x22a   : > { %v12117_v53 = vsel %vm2827_vm5, %v11941_v46, %v8378_v42  ;;  %v12121_v12 = vsel %vm2827_vm5, %v11945_v41, %v8379_v47  ;;  %v12125_v45 = vsel %vm2827_vm5, %v11949_v36, %v8393_v43  ;;  %v8399_v49 = vunpack.i.h.bf16 %v17395_v10  ;;  %v17397_v47 = vld [vmem:[#allocation166_spill] sm:$0xff]  ;;  %v17398_v43 = vld [vmem:[#allocation167_spill] sm:$0xff] }
 0x22b   : > { %v12100_v34 = vpop.permute.xlu0 %8646  ;;  %v12132_v2 = vsel %vm2827_vm5, %v11956_v33, %v8394_v52  ;;  %v12136_v46 = vsel %vm2827_vm5, %v11960_v44, %v8388_v17  ;;  %v8414_v6 = vunpack.i.h.bf16 %v17396_v58  ;;  %v8413_v41 = vunpack.i.l.bf16 %v17396_v58 }
 0x22c   : > { %v12142_v36 = vsel %vm2827_vm5, %v11966_v26, %v8389_v4  ;;  %v8409_v42 = vunpack.i.h.bf16 %v17397_v47  ;;  %v8408_v7 = vunpack.i.l.bf16 %v17397_v47  ;;  %v8423_v60 = vunpack.i.l.bf16 %v17398_v43  ;;  %v17400_v4 = vld [vmem:[#allocation168_spill] sm:$0xff] }
 0x22d   : > { %v12128_v31 = vpop.permute.xlu1 %8661  ;;  %v12153_v17 = vsel %vm2827_vm5, %v11991_v35, %v8398_v29  ;;  %v8424_v58 = vunpack.i.h.bf16 %v17398_v43  ;;  %v12158_v26 = vsel %vm2827_vm5, %v11995_v55, %v8399_v49  ;;  %v8419_v47 = vunpack.i.h.bf16 %v17400_v4  ;;  %v17402_v55 = vld [vmem:[#allocation170_spill] sm:$0xff] }
 0x22e   : > { %v8418_v21 = vunpack.i.l.bf16 %v17400_v4  ;;  %v8433_v40 = vunpack.i.l.bf16 %v17401_v8  ;;  %v12167_v10 = vsel %vm1496_vm6, %v12001_v15, %v8413_v41  ;;  %v12171_v35 = vsel %vm1496_vm6, %v12005_v16, %v8414_v6  ;;  %v17403_v6 = vld [vmem:[#allocation171_spill] sm:$0xff] }
 0x22f   : > { %v12147_v33 = vpop.permute.xlu0 %8656  ;;  %v8434_v29 = vunpack.i.h.bf16 %v17401_v8  ;;  %v8428_v49 = vunpack.i.l.bf16 %v17402_v55  ;;  %v12177_v43 = vsel %vm1496_vm6, %v12009_v32, %v8408_v7  ;;  %v12181_v4 = vsel %vm1496_vm6, %v12016_v5, %v8409_v42  ;;  %v17404_v7 = vld [vmem:[#allocation172_spill] sm:$0xff] }
 0x230   : > { %v12185_v15 = vsel %vm1496_vm6, %v12020_v9, %v8423_v60  ;;  %v8429_v41 = vunpack.i.h.bf16 %v17402_v55  ;;  %v12192_v8 = vsel %vm1496_vm6, %v12024_v51, %v8424_v58  ;;  %v8444_v44 = vunpack.i.h.bf16 %v17403_v6 }
 0x231   : > { %v12163_v0 = vpop.permute.xlu1 %8671  ;;  %v8443_v32 = vunpack.i.l.bf16 %v17403_v6  ;;  %v8438_v52 = vunpack.i.l.bf16 %v17404_v7  ;;  %v12199_v5 = vsel %vm1496_vm6, %v12029_v13, %v8418_v21  ;;  %v12203_v9 = vsel %vm1496_vm6, %v12033_v37, %v8419_v47  ;;  %v17405_v21 = vld [vmem:[#allocation173_spill] sm:$0xff] }
 0x232   : > { %v12207_v42 = vsel %vm1496_vm6, %v12037_v28, %v8433_v40  ;;  %v8439_v51 = vunpack.i.h.bf16 %v17404_v7  ;;  %v12214_v58 = vsel %vm1496_vm6, %v12044_v20, %v8434_v29  ;;  %v12218_v13 = vsel %vm1496_vm6, %v12048_v56, %v8428_v49  ;;  %v17406_v28 = vld [vmem:[#allocation174_spill] sm:$0xff]  ;;  %v17407_v7 = vld [vmem:[#allocation175_spill] sm:$0xff] }
 0x233   : > { %v12188_v16 = vpop.permute.xlu0 %8666  ;;  %v8454_v37 = vunpack.i.h.bf16 %v17405_v21  ;;  %v8453_v47 = vunpack.i.l.bf16 %v17405_v21  ;;  %v12224_v40 = vsel %vm1496_vm6, %v12054_v3, %v8429_v41  ;;  %v8449_v55 = vunpack.i.h.bf16 %v17406_v28  ;;  %v17408_v21 = vld [vmem:[#allocation176_spill] sm:$0xff] }
 0x234   : > { %v8448_v6 = vunpack.i.l.bf16 %v17406_v28  ;;  %v8463_v11 = vunpack.i.l.bf16 %v17407_v7  ;;  %v12233_v56 = vsel %vm1496_vm6, %v12063_v23, %v8443_v32  ;;  %v12237_v29 = vsel %vm1496_vm6, %v12070_v25, %v8444_v44  ;;  %v17409_v23 = vld [vmem:[#allocation177_spill] sm:$0xff] }
 0x235   : > { %v12210_v60 = vpop.permute.xlu1 %8681  ;;  %v12241_v3 = vsel %vm1496_vm6, %v12079_v1, %v8438_v52  ;;  %v8464_v49 = vunpack.i.h.bf16 %v17407_v7  ;;  %v12246_v41 = vsel %vm1496_vm6, %v12083_v59, %v8439_v51  ;;  %v8459_v28 = vunpack.i.h.bf16 %v17408_v21  ;;  %v17411_v59 = vld [vmem:[#allocation178_spill] sm:$0xff] }
 0x236   : > { %v8458_v14 = vunpack.i.l.bf16 %v17408_v21  ;;  %v8473_v32 = vunpack.i.l.bf16 %v17409_v23  ;;  %v12255_v25 = vsel %vm1496_vm6, %v12089_v57, %v8453_v47  ;;  %v12259_v1 = vsel %vm1496_vm6, %v12093_v61, %v8454_v37  ;;  %v17412_v21 = vld [vmem:[#allocation180_spill] sm:$0xff] }
 0x237   : > { %v12229_v20 = vpop.permute.xlu0 %8676  ;;  %v8474_v52 = vunpack.i.h.bf16 %v17409_v23  ;;  %v8468_v44 = vunpack.i.l.bf16 %v17411_v59  ;;  %v12265_v51 = vsel %vm1496_vm6, %v12097_v18, %v8448_v6  ;;  %v12269_v7 = vsel %vm1496_vm6, %v12104_v48, %v8449_v55  ;;  %v17413_v6 = vld [vmem:[#allocation181_spill] sm:$0xff] }
 0x238   : > { %v12273_v57 = vsel %vm1496_vm6, %v12108_v19, %v8463_v11  ;;  %v8469_v47 = vunpack.i.h.bf16 %v17411_v59  ;;  %v12280_v37 = vsel %vm1496_vm6, %v12112_v39, %v8464_v49  ;;  %v8479_v23 = vunpack.i.h.bf16 %v17412_v21 }
 0x239   : > { %v12251_v50 = vpop.permute.xlu1 %8691  ;;  %v8478_v18 = vunpack.i.l.bf16 %v17412_v21  ;;  %v12287_v48 = vsel %vm1496_vm6, %v12117_v53, %v8458_v14  ;;  %v12291_v11 = vsel %vm1496_vm6, %v12121_v12, %v8459_v28  ;;  %v12295_v19 = vsel %vm1496_vm6, %v12125_v45, %v8473_v32  ;;  %v17417_v53 = vld [vmem:[#allocation182_spill] sm:$0xff]  ;;  %v17419_v32 = vld [vmem:[#allocation183_spill] sm:$0xff] }
 0x23a   : > { %17410 = vst [vmem:[#allocation155_spill] sm:$0xff] %v12251_v50  ;;  %v8493_v50 = vunpack.i.l.bf16 %v17413_v6  ;;  %17414 = vst [vmem:[#allocation156_spill] sm:$0xff] %v12295_v19  ;;  %v8494_v39 = vunpack.i.h.bf16 %v17413_v6  ;;  %v12302_v49 = vsel %vm1496_vm6, %v12132_v2, %v8474_v52  ;;  %v12306_v14 = vsel %vm1496_vm6, %v12136_v46, %v8468_v44  ;;  %v17420_v6 = vld [vmem:[#allocation184_spill] sm:$0xff] }
 0x23b   : > { %v12276_v61 = vpop.permute.xlu0 %8686  ;;  %17415 = vst [vmem:[#allocation157_spill] sm:$0xff] %v12302_v49  ;;  %17416 = vst [vmem:[#allocation158_spill] sm:$0xff] %v12306_v14  ;;  %v8489_v12 = vunpack.i.h.bf16 %v17417_v53  ;;  %v8488_v28 = vunpack.i.l.bf16 %v17417_v53  ;;  %v12312_v45 = vsel %vm1496_vm6, %v12142_v36, %v8469_v47  ;;  %v8504_v59 = vunpack.i.h.bf16 %v17419_v32  ;;  %v17423_v53 = vld [vmem:[#allocation185_spill] sm:$0xff] }
 0x23c   : > { %17418 = vst [vmem:[#allocation159_spill] sm:$0xff] %v12312_v45  ;;  %v8503_v21 = vunpack.i.l.bf16 %v17419_v32  ;;  %v8498_v19 = vunpack.i.l.bf16 %v17420_v6  ;;  %v12321_v46 = vsel %vm1496_vm6, %v12153_v17, %v8478_v18  ;;  %v12325_v52 = vsel %vm1496_vm6, %v12158_v26, %v8479_v23  ;;  %v17424_v45 = vld [vmem:[#allocation186_spill] sm:$0xff]  ;;  %v17426_v23 = vld [vmem:[#allocation187_spill] sm:$0xff] }
 0x23d   : > { %v12298_v55 = vpop.permute.xlu1 %8701  ;;  %17421 = vst [vmem:[#allocation160_spill] sm:$0xff] %v12321_v46  ;;  %17422 = vst [vmem:[#allocation161_spill] sm:$0xff] %v12325_v52  ;;  %v2895_v36 = vsel %vm2892_vm7, %v12167_v10, %v8493_v50  ;;  %v8499_v44 = vunpack.i.h.bf16 %v17420_v6  ;;  %v2896_v47 = vsel %vm2892_vm7, %v12171_v35, %v8494_v39  ;;  %v8514_v32 = vunpack.i.h.bf16 %v17423_v53  ;;  %v17429_v52 = vld [vmem:[#allocation104_spill] sm:$0xff] }
 0x23e   : > { %v8513_v49 = vunpack.i.l.bf16 %v17423_v53  ;;  %v8508_v17 = vunpack.i.l.bf16 %v17424_v45  ;;  %v2893_v26 = vsel %vm2892_vm7, %v12177_v43, %v8488_v28  ;;  %v2894_v50 = vsel %vm2892_vm7, %v12181_v4, %v8489_v12  ;;  %v17428_v12 = vld [vmem:[#allocation188_spill] sm:$0xff] }
 0x23f   : > { %v12317_v2 = vpop.permute.xlu0 %8696  ;;  %v8509_v10 = vunpack.i.h.bf16 %v17424_v45  ;;  %v8523_v6 = vunpack.i.l.bf16 %v17426_v23  ;;  %v2899_v35 = vsel %vm2892_vm7, %v12185_v15, %v8503_v21  ;;  %v12347_v39 = vsel %vm2892_vm7, %v12192_v8, %v8504_v59  ;;  %v17430_v59 = vld [vmem:[#allocation110_spill] sm:$0xff] }
 0x240   : > { %v2897_v53 = vsel %vm2892_vm7, %v12199_v5, %v8498_v19  ;;  %v8524_v43 = vunpack.i.h.bf16 %v17426_v23  ;;  %v2898_v4 = vsel %vm2892_vm7, %v12203_v9, %v8499_v44  ;;  %v8518_v45 = vunpack.i.l.bf16 %v17428_v12 }
 0x241   : > { %v12335_v18 = vpop.permute.xlu1 %8711  ;;  %v8574_v46 = vunpack.i.h.bf16 %v17429_v52  ;;  %v8573_v15 = vunpack.i.l.bf16 %v17429_v52  ;;  %v12361_v8 = vsel %vm2892_vm7, %v12207_v42, %v8513_v49  ;;  %v12365_v5 = vsel %vm2892_vm7, %v12214_v58, %v8514_v32  ;;  %v17432_v58 = vld [vmem:[#allocation147_spill] sm:$0xff]  ;;  %v17433_v32 = vld [vmem:[#allocation148_spill] sm:$0xff] }
 0x242   : > { %17425 = vst [vmem:[#allocation162_spill] sm:$0xff] %v12335_v18  ;;  %v12369_v19 = vsel %vm2892_vm7, %v12218_v13, %v8508_v17  ;;  %v8568_v9 = vunpack.i.l.bf16 %v17430_v59  ;;  %v12376_v44 = vsel %vm2892_vm7, %v12224_v40, %v8509_v10  ;;  %v12380_v42 = vsel %vm2892_vm7, %v12233_v56, %v8523_v6 }
 0x243   : > { %v12352_v28 = vpop.permute.xlu0 %8706  ;;  %v8569_v49 = vunpack.i.h.bf16 %v17430_v59  ;;  %v8583_v52 = vunpack.i.l.bf16 %v17432_v58  ;;  %v12386_v13 = vsel %vm2892_vm7, %v12237_v29, %v8524_v43  ;;  %v8578_v17 = vunpack.i.l.bf16 %v17433_v32 }
 0x244   : > { %17427 = vst [vmem:[#allocation164_spill] sm:$0xff] %v12352_v28  ;;  %v8654_v23 = vunpack.i.h.bf16 %v12075_v63  ;;  %v8653_v40 = vunpack.i.l.bf16 %v12075_v63  ;;  %v12395_v56 = vsel %vm2892_vm7, %v12241_v3, %v8518_v45  ;;  %v2928_v6 = vsel %vm2925_vm8, %v2895_v36, %v8573_v15 }
 0x245   : > { %v12372_v21 = vpop.permute.xlu1 %8721  ;;  %v2929_v59 = vsel %vm2925_vm8, %v2896_v47, %v8574_v46  ;;  %v8579_v29 = vunpack.i.h.bf16 %v17433_v32  ;;  %v8649_v43 = vunpack.i.h.bf16 %v12100_v34  ;;  %v8648_v18 = vunpack.i.l.bf16 %v12100_v34 }
 0x246   : > { %17431 = vst [vmem:[#allocation165_spill] sm:$0xff] %v12372_v21  ;;  %v8584_v21 = vunpack.i.h.bf16 %v17432_v58  ;;  %v2926_v63 = vsel %vm2925_vm8, %v2893_v26, %v8568_v9  ;;  %v2927_v45 = vsel %vm2925_vm8, %v2894_v50, %v8569_v49  ;;  %v2930_v36 = vsel %vm2925_vm8, %v2897_v53, %v8578_v17 }
 0x247   : > { %v12391_v10 = vpop.permute.xlu0 %8716  ;;  %v2961_v46 = vsel %vm2958_vm9, %v2928_v6, %v8653_v40  ;;  %v2962_v47 = vsel %vm2958_vm9, %v2929_v59, %v8654_v23  ;;  %v8658_v15 = vunpack.i.l.bf16 %v12147_v33  ;;  %v2959_v50 = vsel %vm2958_vm9, %v2926_v63, %v8648_v18  ;;  %v9373_v18 = vld [vmem:[%s16543_s5 + $0x38] sm:$0xff]  }
 0x248   : > { %17434 = vst [vmem:[#allocation166_spill] sm:$0xff] %v12391_v10  ;;  %v2932_v10 = vsel %vm2925_vm8, %v2899_v35, %v8583_v52  ;;  %v2931_v35 = vsel %vm2925_vm8, %v2898_v4, %v8579_v29  ;;  %v2960_v53 = vsel %vm2958_vm9, %v2927_v45, %v8649_v43  ;;  %v8589_v49 = vunpack.i.h.bf16 %v11836_v62 }
 0x249   : > { %v8732_v14 = vpop.permute.xlu1 %8731  ;;  %v8664_v6 = vunpack.i.h.bf16 %v12128_v31  ;;  %v8663_v4 = vunpack.i.l.bf16 %v12128_v31  ;;  %v2963_v29 = vsel %vm2958_vm9, %v2930_v36, %v8658_v15  ;;  %v8668_v43 = vunpack.i.l.bf16 %v12188_v16  ;;  %v17435_v31 = vld [vmem:[#allocation179_spill] sm:$0xff] }
 0x24a   : > { %v8734_v28 = vunpack.i.h.bf16 %v8732_v14  ;;  %v8733_v3 = vunpack.i.l.bf16 %v8732_v14  ;;  %v8659_v14 = vunpack.i.h.bf16 %v12147_v33  ;;  %vm3849_vm3 = vcmask 1040384  }
 0x24b   : > { %v8727_v58 = vpop.permute.xlu0 %8726 }
 0x24c   : > { %v2993_v34 = vsel %vm1529_vm10, %v2961_v46, %v8733_v3  ;;  %v2994_v32 = vsel %vm1529_vm10, %v2962_v47, %v8734_v28  ;;  %v8729_v26 = vunpack.i.h.bf16 %v8727_v58  ;;  %v8728_v9 = vunpack.i.l.bf16 %v8727_v58 }
 0x24d   : > { %v8742_v52 = vpop.permute.xlu1 %8741  ;;  %v3024_v40 = vpack.c.bf16 %v2994_v32, %v2993_v34  ;;  %v8588_v28 = vunpack.i.l.bf16 %v11836_v62  ;;  %v2964_v45 = vsel %vm2958_vm9, %v2931_v35, %v8659_v14  ;;  %v8669_v62 = vunpack.i.h.bf16 %v12188_v16 }
 0x24e   : > { %v2991_v17 = vsel %vm1529_vm10, %v2959_v50, %v8728_v9  ;;  %v2992_v23 = vsel %vm1529_vm10, %v2960_v53, %v8729_v26  ;;  %v8744_v46 = vunpack.i.h.bf16 %v8742_v52  ;;  %v8743_v47 = vunpack.i.l.bf16 %v8742_v52 }
 0x24f   : > { %v8737_v59 = vpop.permute.xlu0 %8736  ;;  %v3023_v33 = vpack.c.bf16 %v2992_v23, %v2991_v17  ;;  %v8484_v58 = vunpack.i.h.bf16 %v17435_v31  ;;  %v2933_v34 = vsel %vm2925_vm8, %v12347_v39, %v8584_v21  ;;  %v2934_v16 = vsel %vm2925_vm8, %v12369_v19, %v8588_v28  ;;  %v9374_v39 = vld [vmem:[%s16543_s5 + $0x30] sm:$0xff]   ;;  %v17437_v17 = vld [vmem:[#allocation189_spill] sm:$0xff] }
 0x250   : > { %v8739_v63 = vunpack.i.h.bf16 %v8737_v59  ;;  %v8738_v3 = vunpack.i.l.bf16 %v8737_v59  ;;  %v2935_v32 = vsel %vm2925_vm8, %v12376_v44, %v8589_v49  ;;  %v2965_v26 = vsel %vm2958_vm9, %v2932_v10, %v8663_v4 }
 0x251   : > { %7509 = vmatprep.mubr.msk.bf16.mxu1 %vm3077_vm11, %v3023_v33  ;;  %7547 = vmatprep.mubr.msk.bf16.mxu0 %vm3077_vm11, %v3023_v33  ;;  %v2966_v21 = vsel %vm2958_vm9, %v2933_v34, %v8664_v6  ;;  %v2967_v14 = vsel %vm2958_vm9, %v2934_v16, %v8668_v43  ;;  %v17436_v52 = vmov 0   ;;  %v8519_v19 = vunpack.i.h.bf16 %v17428_v12  ;;  %v8752_v28 = vpop.permute.xlu1 %8751 }
 0x252   : > { %v2995_v36 = vsel %vm1529_vm10, %v2963_v29, %v8738_v3  ;;  %v2996_v15 = vsel %vm1529_vm10, %v2964_v45, %v8739_v63  ;;  %7510 = vmatmul.mubr.msk.bf16.vlgmr.msra.gmra.mxu1 %vm3077_vm11, %v3024_v40  ;;  %7548 = vmatmul.mubr.msk.bf16.vlgmr.msra.gmra.mxu0 %vm3077_vm11, %v3024_v40  ;;  %v2968_v44 = vsel %vm2958_vm9, %v2935_v32, %v8669_v62  ;;  %v8534_v23 = vunpack.i.h.bf16 %v17437_v17  ;;  %v9375_v62 = vld [vmem:[%s16543_s5 + $0x28] sm:$0xff]  }
 0x253   : > { %3394 = vmatpush1.bf16.msra.mxu1 %v9373_v18  ;;  %v8747_v9 = vpop.permute.xlu0 %8746  ;;  %v3025_v35 = vpack.c.bf16 %v2996_v15, %v2995_v36  ;;  %v2997_v10 = vsel %vm1529_vm10, %v2965_v26, %v8743_v47  ;;  %v2998_v49 = vsel %vm1529_vm10, %v2966_v21, %v8744_v46  ;;  %v8533_v40 = vunpack.i.l.bf16 %v17437_v17 }
 0x254   : > { %v8749_v50 = vunpack.i.h.bf16 %v8747_v9  ;;  %v8748_v53 = vunpack.i.l.bf16 %v8747_v9  ;;  %3395 = vmatprep.subr.bf16.mxu1 %v17436_v52  ;;  %v8594_v12 = vunpack.i.h.bf16 %v11811_v27  ;;  %v8593_v59 = vunpack.i.l.bf16 %v11811_v27 }
 0x255   : > { %7513 = vmatprep.mubr.msk.bf16.mxu1 %vm3077_vm11, %v3025_v35  ;;  %7551 = vmatprep.mubr.msk.bf16.mxu0 %vm3077_vm11, %v3025_v35  ;;  %v8599_v33 = vunpack.i.h.bf16 %v11883_v38  ;;  %v8598_v18 = vunpack.i.l.bf16 %v11883_v38  ;;  %v8674_v43 = vunpack.i.h.bf16 %v12163_v0  ;;  %v8673_v63 = vunpack.i.l.bf16 %v12163_v0 }
 0x256   : > { %v2999_v6 = vsel %vm1529_vm10, %v2967_v14, %v8748_v53  ;;  %v3000_v4 = vsel %vm1529_vm10, %v2968_v44, %v8749_v50  ;;  %v8679_v3 = vunpack.i.h.bf16 %v12229_v20  ;;  %v3026_v45 = vpack.c.bf16 %v2998_v49, %v2997_v10  ;;  %v17439_v50 = vld [vmem:[#allocation191_spill] sm:$0xff] }
 0x257   : > { %v8757_v29 = vpop.permute.xlu0 %8756  ;;  %3396 = vmatpush1.bf16.msra.mxu1 %v9374_v39  ;;  %v8678_v27 = vunpack.i.l.bf16 %v12229_v20  ;;  %v8754_v46 = vunpack.i.h.bf16 %v8752_v28  ;;  %v8753_v47 = vunpack.i.l.bf16 %v8752_v28  ;;  %v3027_v38 = vpack.c.bf16 %v3000_v4, %v2999_v6  ;;  %v17438_v20 = vld [vmem:[#allocation190_spill] sm:$0xff] }
 0x258   : > { %3397 = vmatprep.subr.bf16.mxu1 %v17436_v52  ;;  %v2906_v34 = vsel %vm2892_vm7, %v12246_v41, %v8519_v19  ;;  %v12475_v0 = vsel %vm2892_vm7, %v12255_v25, %v8533_v40  ;;  %v8759_v36 = vunpack.i.h.bf16 %v8757_v29  ;;  %v8758_v15 = vunpack.i.l.bf16 %v8757_v29  ;;  %v8762_v19 = vpop.permute.xlu1 %8761 }
 0x259   : > { %v12481_v16 = vsel %vm2892_vm7, %v12259_v1, %v8534_v23  ;;  %v8529_v32 = vunpack.i.h.bf16 %v17438_v20  ;;  %v2936_v26 = vsel %vm2925_vm8, %v12361_v8, %v8593_v59  ;;  %v2937_v41 = vsel %vm2925_vm8, %v12365_v5, %v8594_v12  ;;  %v9376_v8 = vld [vmem:[%s16543_s5 + $0x20] sm:$0xff]  }
 0x25a   : > { %7514 = vmatmul.mubr.msk.bf16.gmra.mxu1 %vm3077_vm11, %v3026_v45  ;;  %7552 = vmatmul.mubr.msk.bf16.gmra.mxu0 %vm3077_vm11, %v3026_v45  ;;  %v2938_v25 = vsel %vm2925_vm8, %v12395_v56, %v8598_v18  ;;  %v2939_v9 = vsel %vm2925_vm8, %v2906_v34, %v8599_v33  ;;  %v2969_v1 = vsel %vm2958_vm9, %v2936_v26, %v8673_v63  ;;  %v8528_v56 = vunpack.i.l.bf16 %v17438_v20  ;;  %v9377_v33 = vld [vmem:[%s16543_s5 + $0x18] sm:$0xff]  }
 0x25b   : > { %7517 = vmatprep.mubr.msk.bf16.mxu1 %vm3077_vm11, %v3027_v38  ;;  %7555 = vmatprep.mubr.msk.bf16.mxu0 %vm3077_vm11, %v3027_v38  ;;  %v2970_v35 = vsel %vm2958_vm9, %v2937_v41, %v8674_v43  ;;  %v2971_v5 = vsel %vm2958_vm9, %v2938_v25, %v8678_v27  ;;  %v2972_v39 = vsel %vm2958_vm9, %v2939_v9, %v8679_v3  ;;  %v8543_v53 = vunpack.i.l.bf16 %v17439_v50  ;;  %v8767_v28 = vpop.permute.xlu0 %8766 }
 0x25c   : > { %3398 = vmatpush1.bf16.msra.mxu1 %v9375_v62  ;;  %v3001_v21 = vsel %vm1529_vm10, %v2969_v1, %v8753_v47  ;;  %v3002_v14 = vsel %vm1529_vm10, %v2970_v35, %v8754_v46  ;;  %v3003_v44 = vsel %vm1529_vm10, %v2971_v5, %v8758_v15  ;;  %v3004_v10 = vsel %vm1529_vm10, %v2972_v39, %v8759_v36  ;;  %v17440_v36 = vld [vmem:[#allocation192_spill] sm:$0xff]  ;;  %v17441_v5 = vld [vmem:[#allocation155_spill] sm:$0xff] }
 0x25d   : > { %3399 = vmatprep.subr.bf16.mxu1 %v17436_v52  ;;  %v8604_v49 = vunpack.i.h.bf16 %v11864_v22  ;;  %v8603_v17 = vunpack.i.l.bf16 %v11864_v22  ;;  %v8609_v23 = vunpack.i.h.bf16 %v11924_v30  ;;  %v8608_v40 = vunpack.i.l.bf16 %v11924_v30 }
 0x25e   : > { %v8684_v6 = vunpack.i.h.bf16 %v12210_v60  ;;  %v8683_v4 = vunpack.i.l.bf16 %v12210_v60  ;;  %v8689_v12 = vunpack.i.h.bf16 %v12276_v61  ;;  %v3028_v59 = vpack.c.bf16 %v3002_v14, %v3001_v21 }
 0x25f   : > { %v8688_v18 = vunpack.i.l.bf16 %v12276_v61  ;;  %v8764_v22 = vunpack.i.h.bf16 %v8762_v19  ;;  %v8763_v29 = vunpack.i.l.bf16 %v8762_v19  ;;  %v3029_v43 = vpack.c.bf16 %v3004_v10, %v3003_v44 }
 0x260   : > { %3400 = vmatpush1.bf16.msra.mxu1 %v9376_v8  ;;  %v2909_v30 = vsel %vm2892_vm7, %v12265_v51, %v8528_v56  ;;  %v2910_v60 = vsel %vm2892_vm7, %v12269_v7, %v8529_v32  ;;  %v8769_v63 = vunpack.i.h.bf16 %v8767_v28  ;;  %v8768_v3 = vunpack.i.l.bf16 %v8767_v28  ;;  %v8772_v32 = vpop.permute.xlu1 %8771  ;;  %v8777_v8 = vpop.permute.xlu0 %8776 }
 0x261   : > { %3401 = vmatprep.subr.bf16.mxu1 %v17436_v52  ;;  %v8544_v45 = vunpack.i.h.bf16 %v17439_v50  ;;  %v12528_v61 = vsel %vm2892_vm7, %v12273_v57, %v8543_v53  ;;  %v2940_v62 = vsel %vm2925_vm8, %v12380_v42, %v8603_v17  ;;  %v2941_v51 = vsel %vm2925_vm8, %v12386_v13, %v8604_v49  ;;  %v9378_v57 = vld [vmem:[%s16543_s5 + $0x10] sm:$0xff]   ;;  %v9379_v50 = vld [vmem:[%s16543_s5 + $0x8] sm:$0xff]  }
 0x262   : > { %7518 = vmatmul.mubr.msk.bf16.gmra.mxu1 %vm3077_vm11, %v3028_v59  ;;  %7556 = vmatmul.mubr.msk.bf16.gmra.mxu0 %vm3077_vm11, %v3028_v59  ;;  %v2942_v7 = vsel %vm2925_vm8, %v2909_v30, %v8608_v40  ;;  %v2943_v27 = vsel %vm2925_vm8, %v2910_v60, %v8609_v23  ;;  %v2973_v46 = vsel %vm2958_vm9, %v2940_v62, %v8683_v4  ;;  %v8539_v15 = vunpack.i.h.bf16 %v17440_v36  ;;  %v17442_v23 = vld [vmem:[#allocation193_spill] sm:$0xff]  ;;  %v17445_v62 = vld [vmem:[#allocation152_spill] sm:$0xff] }
 0x263   : > { %7521 = vmatprep.mubr.msk.bf16.mxu1 %vm3077_vm11, %v3029_v43  ;;  %7559 = vmatprep.mubr.msk.bf16.mxu0 %vm3077_vm11, %v3029_v43  ;;  %v2974_v47 = vsel %vm2958_vm9, %v2941_v51, %v8684_v6  ;;  %v2975_v42 = vsel %vm2958_vm9, %v2942_v7, %v8688_v18  ;;  %v2976_v13 = vsel %vm2958_vm9, %v2943_v27, %v8689_v12  ;;  %v8538_v20 = vunpack.i.l.bf16 %v17440_v36  ;;  %v17443_v18 = vld [vmem:[#allocation194_spill] sm:$0xff] }
 0x264   : > { %3402 = vmatpush1.bf16.msra.mxu1 %v9377_v33  ;;  %v3005_v38 = vsel %vm1529_vm10, %v2973_v46, %v8763_v29  ;;  %v3006_v34 = vsel %vm1529_vm10, %v2974_v47, %v8764_v22  ;;  %v3007_v26 = vsel %vm1529_vm10, %v2975_v42, %v8768_v3  ;;  %v3008_v41 = vsel %vm1529_vm10, %v2976_v13, %v8769_v63  ;;  %v8782_v43 = vpop.permute.xlu1 %8781  ;;  %v17444_v63 = vld [vmem:[#allocation123_spill] sm:$0xff]  ;;  %v8787_v27 = vpop.permute.xlu0 %8786 }
 0x265   : > { %3403 = vmatprep.subr.bf16.mxu1 %v17436_v52  ;;  %v8614_v25 = vunpack.i.h.bf16 %v11899_v24  ;;  %v8613_v9 = vunpack.i.l.bf16 %v11899_v24  ;;  %v8619_v1 = vunpack.i.h.bf16 %v11971_v54  ;;  %v8618_v35 = vunpack.i.l.bf16 %v11971_v54 }
 0x266   : > { %v8694_v39 = vunpack.i.h.bf16 %v17441_v5  ;;  %v8693_v21 = vunpack.i.l.bf16 %v17441_v5  ;;  %v8699_v14 = vunpack.i.h.bf16 %v12317_v2  ;;  %v3030_v56 = vpack.c.bf16 %v3006_v34, %v3005_v38  ;;  %v9381_v38 = vld [vmem:[%s16543_s5 + $0x40] sm:$0xff]  }
 0x267   : > { %v8698_v53 = vunpack.i.l.bf16 %v12317_v2  ;;  %v8774_v24 = vunpack.i.h.bf16 %v8772_v32  ;;  %v8773_v19 = vunpack.i.l.bf16 %v8772_v32  ;;  %v3031_v44 = vpack.c.bf16 %v3008_v41, %v3007_v26  ;;  %v17447_v32 = vld [vmem:[#allocation156_spill] sm:$0xff]  ;;  %v17448_v41 = vld [vmem:[#allocation158_spill] sm:$0xff] }
 0x268   : > { %3404 = vmatpush1.bf16.msra.mxu1 %v9378_v57  ;;  %v2916_v54 = vsel %vm2892_vm7, %v12280_v37, %v8544_v45  ;;  %v2913_v10 = vsel %vm2892_vm7, %v12287_v48, %v8538_v20  ;;  %v8779_v49 = vunpack.i.h.bf16 %v8777_v8  ;;  %v8778_v17 = vunpack.i.l.bf16 %v8777_v8  ;;  %v17446_v57 = vld [vmem:[#allocation164_spill] sm:$0xff] }
 0x269   : > { %3405 = vmatprep.subr.bf16.mxu1 %v17436_v52  ;;  %v2914_v2 = vsel %vm2892_vm7, %v12291_v11, %v8539_v15  ;;  %v8553_v40 = vunpack.i.l.bf16 %v17442_v23  ;;  %v2944_v28 = vsel %vm2925_vm8, %v12475_v0, %v8613_v9  ;;  %v2945_v37 = vsel %vm2925_vm8, %v12481_v16, %v8614_v25  ;;  %v9380_v0 = vld [vmem:[%s16543_s5] sm:$0xff]  }
 0x26a   : > { %7522 = vmatmul.mubr.msk.bf16.gmra.mxu1 %vm3077_vm11, %v3030_v56  ;;  %7560 = vmatmul.mubr.msk.bf16.gmra.mxu0 %vm3077_vm11, %v3030_v56  ;;  %v2946_v48 = vsel %vm2925_vm8, %v2913_v10, %v8618_v35  ;;  %v2947_v6 = vsel %vm2925_vm8, %v2914_v2, %v8619_v1  ;;  %v2977_v4 = vsel %vm2958_vm9, %v2944_v28, %v8693_v21  ;;  %v8549_v22 = vunpack.i.h.bf16 %v17443_v18  ;;  %v17449_v35 = vld [vmem:[#allocation159_spill] sm:$0xff] }
 0x26b   : > { %7525 = vmatprep.mubr.msk.bf16.mxu1 %vm3077_vm11, %v3031_v44  ;;  %7563 = vmatprep.mubr.msk.bf16.mxu0 %vm3077_vm11, %v3031_v44  ;;  %v2978_v11 = vsel %vm2958_vm9, %v2945_v37, %v8694_v39  ;;  %v2979_v12 = vsel %vm2958_vm9, %v2946_v48, %v8698_v53  ;;  %v2980_v16 = vsel %vm2958_vm9, %v2947_v6, %v8699_v14  ;;  %v8548_v29 = vunpack.i.l.bf16 %v17443_v18  ;;  %v17450_v44 = vld [vmem:[#allocation196_spill] sm:$0xff]  ;;  %v17452_v37 = vld [vmem:[#allocation154_spill] sm:$0xff] }
 0x26c   : > { %3406 = vmatpush1.bf16.msra.mxu1 %v9379_v50  ;;  %v3009_v59 = vsel %vm1529_vm10, %v2977_v4, %v8773_v19  ;;  %v3010_v33 = vsel %vm1529_vm10, %v2978_v11, %v8774_v24  ;;  %v3011_v30 = vsel %vm1529_vm10, %v2979_v12, %v8778_v17  ;;  %v3012_v60 = vsel %vm1529_vm10, %v2980_v16, %v8779_v49  ;;  %v8792_v49 = vpop.permute.xlu1 %8791  ;;  %v8797_v4 = vpop.permute.xlu0 %8796  ;;  %v17453_v11 = vld [vmem:[#allocation162_spill] sm:$0xff] }
 0x26d   : > { %3407 = vmatprep.subr.bf16.mxu1 %v17436_v52  ;;  %v8624_v3 = vunpack.i.h.bf16 %v17444_v63  ;;  %v8623_v45 = vunpack.i.l.bf16 %v17444_v63  ;;  %v8629_v51 = vunpack.i.h.bf16 %v17445_v62  ;;  %v8628_v7 = vunpack.i.l.bf16 %v17445_v62  ;;  %v17454_v16 = vld [vmem:[#allocation166_spill] sm:$0xff]  ;;  %v17456_v63 = vld [vmem:[#allocation160_spill] sm:$0xff] }
 0x26e   : > { %v8704_v46 = vunpack.i.h.bf16 %v12298_v55  ;;  %v8703_v47 = vunpack.i.l.bf16 %v12298_v55  ;;  %v8709_v42 = vunpack.i.h.bf16 %v17446_v57  ;;  %v3032_v13 = vpack.c.bf16 %v3010_v33, %v3009_v59 }
 0x26f   : > { %v8708_v34 = vunpack.i.l.bf16 %v17446_v57  ;;  %v8784_v36 = vunpack.i.h.bf16 %v8782_v43  ;;  %v8783_v15 = vunpack.i.l.bf16 %v8782_v43  ;;  %v3033_v20 = vpack.c.bf16 %v3012_v60, %v3011_v30  ;;  %v17455_v30 = vld [vmem:[#allocation157_spill] sm:$0xff] }
 0x270   : > { %3408 = vmatpush1.bf16.msra.mxu1 %v9380_v0  ;;  %v2919_v26 = vsel %vm2892_vm7, %v17447_v32, %v8553_v40  ;;  %v2917_v55 = vsel %vm2892_vm7, %v17448_v41, %v8548_v29  ;;  %v8789_v25 = vunpack.i.h.bf16 %v8787_v27  ;;  %v8788_v9 = vunpack.i.l.bf16 %v8787_v27  ;;  %v17458_v32 = vld [vmem:[#allocation195_spill] sm:$0xff] }
 0x271   : > { %3423 = vmatprep.subr.bf16.mxu1 %v17436_v52  ;;  %v8554_v1 = vunpack.i.h.bf16 %v17442_v23  ;;  %v2918_v8 = vsel %vm2892_vm7, %v17449_v35, %v8549_v22  ;;  %v2948_v5 = vsel %vm2925_vm8, %v12528_v61, %v8623_v45  ;;  %v2949_v39 = vsel %vm2925_vm8, %v2916_v54, %v8624_v3  ;;  %v17451_v23 = vld [vmem:[#allocation151_spill] sm:$0xff] }
 0x272   : > { %7526 = vmatmul.mubr.msk.bf16.gmra.mxu1 %vm3077_vm11, %v3032_v13  ;;  %7564 = vmatmul.mubr.msk.bf16.gmra.mxu0 %vm3077_vm11, %v3032_v13  ;;  %v2950_v21 = vsel %vm2925_vm8, %v2917_v55, %v8628_v7  ;;  %v2951_v14 = vsel %vm2925_vm8, %v2918_v8, %v8629_v51  ;;  %v2981_v56 = vsel %vm2958_vm9, %v2948_v5, %v8703_v47  ;;  %v8559_v54 = vunpack.i.h.bf16 %v17450_v44  ;;  %v17457_v7 = vld [vmem:[#allocation161_spill] sm:$0xff]  ;;  %v8802_v55 = vpop.permute.xlu1 %8801 }
 0x273   : > { %7529 = vmatprep.mubr.msk.bf16.mxu1 %vm3077_vm11, %v3033_v20  ;;  %7567 = vmatprep.mubr.msk.bf16.mxu0 %vm3077_vm11, %v3033_v20  ;;  %v2982_v50 = vsel %vm2958_vm9, %v2949_v39, %v8704_v46  ;;  %v2983_v53 = vsel %vm2958_vm9, %v2950_v21, %v8708_v34  ;;  %v2984_v24 = vsel %vm2958_vm9, %v2951_v14, %v8709_v42  ;;  %v8558_v10 = vunpack.i.l.bf16 %v17450_v44  ;;  %v17461_v8 = vld [vmem:[#allocation149_spill] sm:$0xff]  ;;  %v17463_v21 = vld [vmem:[#allocation150_spill] sm:$0xff] }
 0x274   : > { %3424 = vmatpush2.bf16.msra.mxu1 %v9381_v38  ;;  %v3013_v61 = vsel %vm1529_vm10, %v2981_v56, %v8783_v15  ;;  %v3014_v19 = vsel %vm1529_vm10, %v2982_v50, %v8784_v36  ;;  %v3015_v17 = vsel %vm1529_vm10, %v2983_v53, %v8788_v9  ;;  %v3016_v2 = vsel %vm1529_vm10, %v2984_v24, %v8789_v25  ;;  %v17464_v56 = vld [vmem:[#allocation153_spill] sm:$0xff] }
 0x275   : > { %v8634_v40 = vunpack.i.h.bf16 %v17451_v23  ;;  %v8633_v28 = vunpack.i.l.bf16 %v17451_v23  ;;  %v8639_v48 = vunpack.i.h.bf16 %v17452_v37  ;;  %v8638_v6 = vunpack.i.l.bf16 %v17452_v37  ;;  %v17466_v23 = vld [vmem:[#allocation50_spill] sm:$0xff] }
 0x276   : > { %v8714_v0 = vunpack.i.h.bf16 %v17453_v11  ;;  %v8713_v12 = vunpack.i.l.bf16 %v17453_v11  ;;  %v8719_v59 = vunpack.i.h.bf16 %v17454_v16  ;;  %v3034_v33 = vpack.c.bf16 %v3014_v19, %v3013_v61  ;;  %v17465_v61 = vld [vmem:[#allocation165_spill] sm:$0xff] }
 0x277   : > { %v8718_v18 = vunpack.i.l.bf16 %v17454_v16  ;;  %v8794_v22 = vunpack.i.h.bf16 %v8792_v49  ;;  %v8793_v29 = vunpack.i.l.bf16 %v8792_v49  ;;  %v3035_v43 = vpack.c.bf16 %v3016_v2, %v3015_v17 }
 0x278   : > { %v2920_v60 = vsel %vm2892_vm7, %v17455_v30, %v8554_v1  ;;  %v2921_v3 = vsel %vm2892_vm7, %v17456_v63, %v8558_v10  ;;  %v8799_v45 = vunpack.i.h.bf16 %v8797_v4  ;;  %v8798_v62 = vunpack.i.l.bf16 %v8797_v4  ;;  %v17459_v1 = vld [vmem:[#allocation163_spill] sm:$0xff]  ;;  %v17467_v4 = vld [vmem:[#allocation4_spill] sm:$0xff] }
 0x279   : > { %v8483_v51 = vunpack.i.l.bf16 %v17435_v31  ;;  %v2922_v27 = vsel %vm2892_vm7, %v17457_v7, %v8559_v54  ;;  %v2952_v46 = vsel %vm2925_vm8, %v2919_v26, %v8633_v28  ;;  %v2953_v47 = vsel %vm2925_vm8, %v2920_v60, %v8634_v40  ;;  %v17471_v63 = vld [vmem:[#allocation3_spill] sm:$0xff] }
 0x27a   : > { %7530 = vmatmul.mubr.msk.bf16.gmra.mxu1 %vm3077_vm11, %v3034_v33  ;;  %7568 = vmatmul.mubr.msk.bf16.gmra.mxu0 %vm3077_vm11, %v3034_v33  ;;  %v2954_v57 = vsel %vm2925_vm8, %v2921_v3, %v8638_v6  ;;  %v2955_v42 = vsel %vm2925_vm8, %v2922_v27, %v8639_v48  ;;  %v2985_v13 = vsel %vm2958_vm9, %v2952_v46, %v8713_v12  ;;  %v8564_v26 = vunpack.i.h.bf16 %v17458_v32  ;;  %v9551_v6 = vld [vmem:[%s9761_s22 + $0x8] sm:$0xff]  ;;  %v9552_v12 = vld [vmem:[%s9761_s22] sm:$0xff]  ;;  %v17473_v46 = vld [vmem:[#allocation112_spill] sm:$0xff] }
 0x27b   : > { %7533 = vmatprep.mubr.msk.bf16.mxu1 %vm3077_vm11, %v3035_v43  ;;  %7571 = vmatprep.mubr.msk.bf16.mxu0 %vm3077_vm11, %v3035_v43  ;;  %v2986_v38 = vsel %vm2958_vm9, %v2953_v47, %v8714_v0  ;;  %v2987_v34 = vsel %vm2958_vm9, %v2954_v57, %v8718_v18  ;;  %v2988_v36 = vsel %vm2958_vm9, %v2955_v42, %v8719_v59  ;;  %v8563_v41 = vunpack.i.l.bf16 %v17458_v32  ;;  %v17474_v42 = vld [vmem:[#allocation19_spill] sm:$0xff] }
 0x27c   : > { %v3017_v15 = vsel %vm1529_vm10, %v2985_v13, %v8793_v29  ;;  %v3018_v20 = vsel %vm1529_vm10, %v2986_v38, %v8794_v22  ;;  %v3019_v25 = vsel %vm1529_vm10, %v2987_v34, %v8798_v62  ;;  %v3020_v9 = vsel %vm1529_vm10, %v2988_v36, %v8799_v45  ;;  %v17470_v22 = vld [vmem:[#allocation65_spill] sm:$0xff]  ;;  %v17472_v62 = vld [vmem:[#allocation82_spill] sm:$0xff]  ;;  %v17475_v13 = vld [vmem:[#allocation20_spill] sm:$0xff] }
 0x27d   : > { %v17460_v35 = vunpack.i.l.bf16 %v17459_v1  ;;  %v17462_v39 = vunpack.i.h.bf16 %v17459_v1  ;;  %v8644_v50 = vunpack.i.h.bf16 %v17464_v56  ;;  %v8643_v53 = vunpack.i.l.bf16 %v17464_v56  ;;  %v17476_v34 = vld [vmem:[#allocation105_spill] sm:$0xff] }
 0x27e   : > { %v8724_v19 = vunpack.i.h.bf16 %v17465_v61  ;;  %v8723_v44 = vunpack.i.l.bf16 %v17465_v61  ;;  %v3036_v54 = vpack.c.bf16 %v3018_v20, %v3017_v15  ;;  %v8804_v49 = vunpack.i.h.bf16 %v8802_v55 }
 0x27f   : > { %v2858_v5 = vsel %vm2827_vm5, %v17461_v8, %v17460_v35  ;;  %v2859_v14 = vsel %vm2827_vm5, %v17463_v21, %v17462_v39  ;;  %v8803_v17 = vunpack.i.l.bf16 %v8802_v55  ;;  %v3037_v2 = vpack.c.bf16 %v3020_v9, %v3019_v25  ;;  %v17478_v8 = vld [vmem:[#allocation35_spill] sm:$0xff] }
 0x280   : > { %v2890_v24 = vsel %vm1496_vm6, %v2858_v5, %v8483_v51  ;;  %v2891_v10 = vsel %vm1496_vm6, %v2859_v14, %v8484_v58  ;;  %v7688_v40 = vunpack.i.l.bf16 %v17466_v23  ;;  %v7689_v31 = vunpack.i.h.bf16 %v17466_v23 }
 0x281   : > { %v2923_v28 = vsel %vm2892_vm7, %v2890_v24, %v8563_v41  ;;  %v2924_v37 = vsel %vm2892_vm7, %v2891_v10, %v8564_v26  ;;  %v17468_v11 = vunpack.i.h.bf16 %v17467_v4  ;;  %v17469_v16 = vunpack.i.l.bf16 %v17467_v4  ;;  %v17477_v41 = vld [vmem:[#allocation140_spill] sm:$0xff] }
 0x282   : > { %7534 = vmatmul.mubr.msk.bf16.gmra.mxu1 %vm3077_vm11, %v3036_v54  ;;  %7572 = vmatmul.mubr.msk.bf16.gmra.mxu0 %vm3077_vm11, %v3036_v54  ;;  %v2956_v58 = vsel %vm2925_vm8, %v2923_v28, %v8643_v53  ;;  %v2957_v48 = vsel %vm2925_vm8, %v2924_v37, %v8644_v50  ;;  %v7769_v29 = vunpack.i.h.bf16 %v17470_v22  ;;  %v7768_v43 = vunpack.i.l.bf16 %v17470_v22  ;;  %v17479_v53 = vld [vmem:[#allocation64_spill] sm:$0xff]  ;;  %v9553_v54 = vld [vmem:[%s9761_s22 + $0x20] sm:$0xff]  ;;  %v17481_v37 = vld [vmem:[#allocation111_spill] sm:$0xff] }
 0x283   : > { %7537 = vmatprep.mubr.msk.bf16.mxu1 %vm3077_vm11, %v3037_v2  ;;  %7575 = vmatprep.mubr.msk.bf16.mxu0 %vm3077_vm11, %v3037_v2  ;;  %v1498_v0 = vsel %vm1496_vm6, %v9551_v6, %v17468_v11  ;;  %v1497_v59 = vsel %vm1496_vm6, %v9552_v12, %v17469_v16  ;;  %v2989_v33 = vsel %vm2958_vm9, %v2956_v58, %v8723_v44  ;;  %v7614_v3 = vunpack.i.h.bf16 %v17471_v63  ;;  %v17480_v2 = vld [vmem:[#allocation81_spill] sm:$0xff]  ;;  %v17483_v6 = vld [vmem:[#allocation18_spill] sm:$0xff]  ;;  %v17485_v22 = vld [vmem:[#allocation139_spill] sm:$0xff] }
 0x284   : > { %v2990_v18 = vsel %vm2958_vm9, %v2957_v48, %v8724_v19  ;;  %v3021_v30 = vsel %vm1529_vm10, %v2989_v33, %v8803_v17  ;;  %v1530_v45 = vsel %vm1529_vm10, %v1497_v59, %v7688_v40  ;;  %v7849_v51 = vunpack.i.h.bf16 %v17472_v62  ;;  %v17482_v48 = vld [vmem:[#allocation17_spill] sm:$0xff] }
 0x285   : > { %v3022_v60 = vsel %vm1529_vm10, %v2990_v18, %v8804_v49  ;;  %v7848_v7 = vunpack.i.l.bf16 %v17472_v62  ;;  %v1531_v27 = vsel %vm1529_vm10, %v1498_v0, %v7689_v31  ;;  %v7929_v47 = vunpack.i.h.bf16 %v17473_v46  ;;  %v9554_v49 = vld [vmem:[%s9761_s22 + $0x18] sm:$0xff]  ;;  %v17484_v0 = vld [vmem:[#allocation102_spill] sm:$0xff]  ;;  %v17487_v62 = vld [vmem:[#allocation51_spill] sm:$0xff] }
 0x286   : > { %v7928_v57 = vunpack.i.l.bf16 %v17473_v46  ;;  %v1728_v38 = vpack.c.bf16 %v17475_v13, %v17474_v42  ;;  %v8009_v36 = vunpack.i.h.bf16 %v17476_v34  ;;  %v8008_v15 = vunpack.i.l.bf16 %v17476_v34  ;;  %v17488_v42 = vld [vmem:[#allocation67_spill] sm:$0xff] }
 0x287   : > { %v3038_v20 = vpack.c.bf16 %v3022_v60, %v3021_v30  ;;  %v1563_v32 = vsel %vm1562_vm12, %v1530_v45, %v7768_v43  ;;  %v1564_v26 = vsel %vm1562_vm12, %v1531_v27, %v7769_v29  ;;  %v8089_v55 = vunpack.i.h.bf16 %v17477_v41  ;;  %v17486_v30 = vld [vmem:[#allocation2_spill] sm:$0xff] }
 0x288   : > { %v8088_v25 = vunpack.i.l.bf16 %v17477_v41  ;;  %v7613_v9 = vunpack.i.l.bf16 %v17471_v63  ;;  %v1596_v1 = vsel %vm1595_vm13, %v1563_v32, %v7848_v7  ;;  %v1597_v35 = vsel %vm1595_vm13, %v1564_v26, %v7849_v51  ;;  %v9556_v32 = vld [vmem:[%s9761_s22 + $0x30] sm:$0xff] }
 0x289   : > { %v7693_v5 = vunpack.i.l.bf16 %v17478_v8  ;;  %v1629_v39 = vsel %vm1628_vm14, %v1596_v1, %v7928_v57  ;;  %v1630_v21 = vsel %vm1628_vm14, %v1597_v35, %v7929_v47  ;;  %v7694_v14 = vunpack.i.h.bf16 %v17478_v8  ;;  %v17489_v41 = vld [vmem:[#allocation84_spill] sm:$0xff]  ;;  %v17490_v1 = vld [vmem:[#allocation114_spill] sm:$0xff] }
 0x28a   : > { %7538 = vmatmul.mubr.msk.bf16.gmra.mxu1 %vm3077_vm11, %v3038_v20  ;;  %7576 = vmatmul.mubr.msk.bf16.gmra.mxu0 %vm3077_vm11, %v3038_v20  ;;  %v1662_v56 = vsel %vm1661_vm15, %v1629_v39, %v8008_v15  ;;  %v1663_v50 = vsel %vm1661_vm15, %v1630_v21, %v8009_v36  ;;  %v7774_v24 = vunpack.i.h.bf16 %v17479_v53  ;;  %v7773_v61 = vunpack.i.l.bf16 %v17479_v53  ;;  %v9555_v15 = vld [vmem:[%s9761_s22 + $0x38] sm:$0xff]  ;;  %v17492_v39 = vld [vmem:[#allocation24_spill] sm:$0xff] }
 0x28b   : > { %7366 = vmatprep.mubr.msk.bf16.mxu1 %vm1496_vm6, %v1728_v38  ;;  %v1695_v19 = vsel %vm1694_vm2, %v1662_v56, %v8088_v25  ;;  %v1696_v44 = vsel %vm1694_vm2, %v1663_v50, %v8089_v55  ;;  %v1500_v10 = vsel %vm1496_vm6, %v9553_v54, %v7614_v3  ;;  %v1499_v17 = vsel %vm1496_vm6, %v9554_v49, %v7613_v9  ;;  %v17493_v56 = vld [vmem:[#allocation127_spill] sm:$0xff]  ;;  %v17495_v49 = vld [vmem:[#allocation6_spill] sm:$0xff] }
 0x28c   : > { %v7854_v23 = vunpack.i.h.bf16 %v17480_v2  ;;  %v7853_v40 = vunpack.i.l.bf16 %v17480_v2  ;;  %v1532_v28 = vsel %vm1529_vm10, %v1499_v17, %v7693_v5  ;;  %v7934_v31 = vunpack.i.h.bf16 %v17481_v37  ;;  %v17491_v5 = vld [vmem:[#allocation23_spill] sm:$0xff] }
 0x28d   : > { %v7933_v58 = vunpack.i.l.bf16 %v17481_v37  ;;  %v1730_v4 = vpack.c.bf16 %v17483_v6, %v17482_v48  ;;  %v1533_v11 = vsel %vm1529_vm10, %v1500_v10, %v7694_v14  ;;  %v8014_v12 = vunpack.i.h.bf16 %v17484_v0 }
 0x28e   : > { %v8013_v16 = vunpack.i.l.bf16 %v17484_v0  ;;  %v1727_v59 = vpack.c.bf16 %v1696_v44, %v1695_v19  ;;  %v1565_v33 = vsel %vm1562_vm12, %v1532_v28, %v7773_v61  ;;  %v1566_v18 = vsel %vm1562_vm12, %v1533_v11, %v7774_v24  ;;  %v17494_v44 = vld [vmem:[#allocation142_spill] sm:$0xff]  ;;  %v17496_v28 = vld [vmem:[#allocation39_spill] sm:$0xff] }
 0x28f   : > { %v8094_v29 = vunpack.i.h.bf16 %v17485_v22  ;;  %v8093_v43 = vunpack.i.l.bf16 %v17485_v22  ;;  %v7619_v60 = vunpack.i.h.bf16 %v17486_v30  ;;  %v7618_v63 = vunpack.i.l.bf16 %v17486_v30  ;;  %v17497_v11 = vld [vmem:[#allocation66_spill] sm:$0xff]  ;;  %v9558_v22 = vld [vmem:[%s9761_s22 + $0x48] sm:$0xff] }
 0x290   : > { %v1598_v3 = vsel %vm1595_vm13, %v1565_v33, %v7853_v40  ;;  %v1599_v45 = vsel %vm1595_vm13, %v1566_v18, %v7854_v23  ;;  %v7699_v51 = vunpack.i.h.bf16 %v17487_v62  ;;  %v7698_v46 = vunpack.i.l.bf16 %v17487_v62  ;;  %v9557_v33 = vld [vmem:[%s9761_s22 + $0x50] sm:$0xff] }
 0x291   : > { %v1631_v7 = vsel %vm1628_vm14, %v1598_v3, %v7933_v58  ;;  %v1632_v27 = vsel %vm1628_vm14, %v1599_v45, %v7934_v31  ;;  %v7779_v13 = vunpack.i.h.bf16 %v17488_v42  ;;  %v7778_v38 = vunpack.i.l.bf16 %v17488_v42  ;;  %v17499_v3 = vld [vmem:[#allocation113_spill] sm:$0xff] }
 0x292   : > { %3426 = vmatmul.mubr.bf16.vlgmr.msra.gmra.mxu1 %v1727_v59  ;;  %v1664_v47 = vsel %vm1661_vm15, %v1631_v7, %v8013_v16  ;;  %v1665_v57 = vsel %vm1661_vm15, %v1632_v27, %v8014_v12  ;;  %v1502_v20 = vsel %vm1496_vm6, %v9555_v15, %v7619_v60  ;;  %v1501_v26 = vsel %vm1496_vm6, %v9556_v32, %v7618_v63  ;;  %v17501_v7 = vld [vmem:[#allocation22_spill] sm:$0xff]  ;;  %v17504_v32 = vld [vmem:[#allocation5_spill] sm:$0xff] }
 0x293   : > { %7367 = vmatprep.mubr.msk.bf16.mxu1 %vm1496_vm6, %v1730_v4  ;;  %v1697_v34 = vsel %vm1694_vm2, %v1664_v47, %v8093_v43  ;;  %v1698_v36 = vsel %vm1694_vm2, %v1665_v57, %v8094_v29  ;;  %v7859_v55 = vunpack.i.h.bf16 %v17489_v41  ;;  %v7858_v25 = vunpack.i.l.bf16 %v17489_v41  ;;  %v17498_v43 = vld [vmem:[#allocation83_spill] sm:$0xff]  ;;  %v17502_v47 = vld [vmem:[#allocation108_spill] sm:$0xff] }
 0x294   : > { %v1535_v9 = vsel %vm1529_vm10, %v1502_v20, %v7699_v51  ;;  %v7939_v35 = vunpack.i.h.bf16 %v17490_v1  ;;  %v7938_v8 = vunpack.i.l.bf16 %v17490_v1  ;;  %v1732_v21 = vpack.c.bf16 %v17492_v39, %v17491_v5  ;;  %v17500_v51 = vld [vmem:[#allocation21_spill] sm:$0xff] }
 0x295   : > { %v1534_v14 = vsel %vm1529_vm10, %v1501_v26, %v7698_v46  ;;  %v8019_v50 = vunpack.i.h.bf16 %v17493_v56  ;;  %v8018_v53 = vunpack.i.l.bf16 %v17493_v56  ;;  %v1729_v24 = vpack.c.bf16 %v1698_v36, %v1697_v34  ;;  %v17503_v36 = vld [vmem:[#allocation141_spill] sm:$0xff] }
 0x296   : > { %v1567_v61 = vsel %vm1562_vm12, %v1534_v14, %v7778_v38  ;;  %v1568_v19 = vsel %vm1562_vm12, %v1535_v9, %v7779_v13  ;;  %v8099_v54 = vunpack.i.h.bf16 %v17494_v44  ;;  %v8098_v10 = vunpack.i.l.bf16 %v17494_v44  ;;  %v17505_v9 = vld [vmem:[#allocation53_spill] sm:$0xff]  ;;  %v9560_v44 = vld [vmem:[%s9761_s22 + $0x60] sm:$0xff] }
 0x297   : > { %v7624_v17 = vunpack.i.h.bf16 %v17495_v49  ;;  %v7623_v2 = vunpack.i.l.bf16 %v17495_v49  ;;  %v1600_v23 = vsel %vm1595_vm13, %v1567_v61, %v7858_v25  ;;  %v1601_v40 = vsel %vm1595_vm13, %v1568_v19, %v7859_v55  ;;  %v17506_v14 = vld [vmem:[#allocation69_spill] sm:$0xff]  ;;  %v9559_v61 = vld [vmem:[%s9761_s22 + $0x68] sm:$0xff] }
 0x298   : > { %v7704_v37 = vunpack.i.h.bf16 %v17496_v28  ;;  %v1633_v31 = vsel %vm1628_vm14, %v1600_v23, %v7938_v8  ;;  %v1634_v58 = vsel %vm1628_vm14, %v1601_v40, %v7939_v35  ;;  %v7703_v48 = vunpack.i.l.bf16 %v17496_v28  ;;  %v17508_v23 = vld [vmem:[#allocation116_spill] sm:$0xff] }
 0x299   : > { %v1666_v6 = vsel %vm1661_vm15, %v1633_v31, %v8018_v53  ;;  %v1667_v4 = vsel %vm1661_vm15, %v1634_v58, %v8019_v50  ;;  %v7784_v0 = vunpack.i.h.bf16 %v17497_v11  ;;  %v7783_v12 = vunpack.i.l.bf16 %v17497_v11  ;;  %v17510_v31 = vld [vmem:[#allocation29_spill] sm:$0xff] }
 0x29a   : > { %3434 = vmatmul.mubr.bf16.gmra.mxu1 %v1729_v24  ;;  %v1699_v16 = vsel %vm1694_vm2, %v1666_v6, %v8098_v10  ;;  %v1700_v59 = vsel %vm1694_vm2, %v1667_v4, %v8099_v54  ;;  %v1504_v18 = vsel %vm1496_vm6, %v9557_v33, %v7624_v17  ;;  %v1503_v29 = vsel %vm1496_vm6, %v9558_v22, %v7623_v2  ;;  %v17507_v10 = vld [vmem:[#allocation86_spill] sm:$0xff]  ;;  %v17511_v6 = vld [vmem:[#allocation129_spill] sm:$0xff] }
 0x29b   : > { %7368 = vmatprep.mubr.msk.bf16.mxu1 %vm1496_vm6, %v1732_v21  ;;  %v7864_v30 = vunpack.i.h.bf16 %v17498_v43  ;;  %v7863_v60 = vunpack.i.l.bf16 %v17498_v43  ;;  %v1537_v63 = vsel %vm1529_vm10, %v1504_v18, %v7704_v37  ;;  %v7944_v45 = vunpack.i.h.bf16 %v17499_v3  ;;  %v17509_v37 = vld [vmem:[#allocation28_spill] sm:$0xff]  ;;  %v17513_v22 = vld [vmem:[#allocation10_spill] sm:$0xff] }
 0x29c   : > { %v7943_v62 = vunpack.i.l.bf16 %v17499_v3  ;;  %v1734_v27 = vpack.c.bf16 %v17501_v7, %v17500_v51  ;;  %v1536_v46 = vsel %vm1529_vm10, %v1503_v29, %v7703_v48  ;;  %v8024_v57 = vunpack.i.h.bf16 %v17502_v47 }
 0x29d   : > { %v8023_v42 = vunpack.i.l.bf16 %v17502_v47  ;;  %v1731_v13 = vpack.c.bf16 %v1700_v59, %v1699_v16  ;;  %v1569_v38 = vsel %vm1562_vm12, %v1536_v46, %v7783_v12  ;;  %v1570_v34 = vsel %vm1562_vm12, %v1537_v63, %v7784_v0  ;;  %v17512_v59 = vld [vmem:[#allocation144_spill] sm:$0xff] }
 0x29e   : > { %v8104_v15 = vunpack.i.h.bf16 %v17503_v36  ;;  %v8103_v20 = vunpack.i.l.bf16 %v17503_v36  ;;  %v7629_v26 = vunpack.i.h.bf16 %v17504_v32  ;;  %v7628_v41 = vunpack.i.l.bf16 %v17504_v32  ;;  %v17514_v63 = vld [vmem:[#allocation52_spill] sm:$0xff]  ;;  %v9562_v36 = vld [vmem:[%s9761_s22 + $0x78] sm:$0xff] }
 0x29f   : > { %v1602_v55 = vsel %vm1595_vm13, %v1569_v38, %v7863_v60  ;;  %v1603_v25 = vsel %vm1595_vm13, %v1570_v34, %v7864_v30  ;;  %v7708_v1 = vunpack.i.l.bf16 %v17505_v9  ;;  %v7709_v5 = vunpack.i.h.bf16 %v17505_v9  ;;  %v17515_v46 = vld [vmem:[#allocation68_spill] sm:$0xff]  ;;  %v9561_v38 = vld [vmem:[%s9761_s22 + $0x80] sm:$0xff] }
 0x2a0   : > { %v1635_v35 = vsel %vm1628_vm14, %v1602_v55, %v7943_v62  ;;  %v1636_v8 = vsel %vm1628_vm14, %v1603_v25, %v7944_v45  ;;  %v7789_v56 = vunpack.i.h.bf16 %v17506_v14  ;;  %v7788_v50 = vunpack.i.l.bf16 %v17506_v14  ;;  %v17517_v55 = vld [vmem:[#allocation115_spill] sm:$0xff] }
 0x2a1   : > { %v1668_v39 = vsel %vm1661_vm15, %v1635_v35, %v8023_v42  ;;  %v1669_v21 = vsel %vm1661_vm15, %v1636_v8, %v8024_v57  ;;  %v1506_v19 = vsel %vm1496_vm6, %v9559_v61, %v7629_v26  ;;  %v1505_v54 = vsel %vm1496_vm6, %v9560_v44, %v7628_v41  ;;  %v17519_v35 = vld [vmem:[#allocation27_spill] sm:$0xff] }
 0x2a2   : > { %3442 = vmatmul.mubr.bf16.gmra.mxu1 %v1731_v13  ;;  %v1701_v53 = vsel %vm1694_vm2, %v1668_v39, %v8103_v20  ;;  %v1702_v24 = vsel %vm1694_vm2, %v1669_v21, %v8104_v15  ;;  %v7869_v49 = vunpack.i.h.bf16 %v17507_v10  ;;  %v7868_v17 = vunpack.i.l.bf16 %v17507_v10  ;;  %v17516_v20 = vld [vmem:[#allocation85_spill] sm:$0xff]  ;;  %v17520_v39 = vld [vmem:[#allocation128_spill] sm:$0xff]  ;;  %v17522_v44 = vld [vmem:[#allocation7_spill] sm:$0xff] }
 0x2a3   : > { %7369 = vmatprep.mubr.msk.bf16.mxu1 %vm1496_vm6, %v1734_v27  ;;  %v1538_v2 = vsel %vm1529_vm10, %v1505_v54, %v7708_v1  ;;  %v7949_v40 = vunpack.i.h.bf16 %v17508_v23  ;;  %v7948_v28 = vunpack.i.l.bf16 %v17508_v23  ;;  %v1736_v58 = vpack.c.bf16 %v17510_v31, %v17509_v37  ;;  %v17518_v1 = vld [vmem:[#allocation26_spill] sm:$0xff] }
 0x2a4   : > { %v1539_v48 = vsel %vm1529_vm10, %v1506_v19, %v7709_v5  ;;  %v8029_v4 = vunpack.i.h.bf16 %v17511_v6  ;;  %v8028_v11 = vunpack.i.l.bf16 %v17511_v6  ;;  %v1733_v0 = vpack.c.bf16 %v1702_v24, %v1701_v53  ;;  %v17521_v24 = vld [vmem:[#allocation143_spill] sm:$0xff] }
 0x2a5   : > { %v1571_v12 = vsel %vm1562_vm12, %v1538_v2, %v7788_v50  ;;  %v1572_v16 = vsel %vm1562_vm12, %v1539_v48, %v7789_v56  ;;  %v8109_v33 = vunpack.i.h.bf16 %v17512_v59  ;;  %v8108_v18 = vunpack.i.l.bf16 %v17512_v59  ;;  %v17523_v2 = vld [vmem:[#allocation55_spill] sm:$0xff]  ;;  %v9564_v59 = vld [vmem:[%s9761_s22 + $0x90] sm:$0xff] }
 0x2a6   : > { %v7634_v29 = vunpack.i.h.bf16 %v17513_v22  ;;  %v7633_v43 = vunpack.i.l.bf16 %v17513_v22  ;;  %v1604_v30 = vsel %vm1595_vm13, %v1571_v12, %v7868_v17  ;;  %v1605_v60 = vsel %vm1595_vm13, %v1572_v16, %v7869_v49  ;;  %v17524_v48 = vld [vmem:[#allocation71_spill] sm:$0xff]  ;;  %v9563_v12 = vld [vmem:[%s9761_s22 + $0x98] sm:$0xff] }
 0x2a7   : > { %v7714_v3 = vunpack.i.h.bf16 %v17514_v63  ;;  %v1637_v45 = vsel %vm1628_vm14, %v1604_v30, %v7948_v28  ;;  %v1638_v62 = vsel %vm1628_vm14, %v1605_v60, %v7949_v40  ;;  %v7713_v51 = vunpack.i.l.bf16 %v17514_v63  ;;  %v17526_v30 = vld [vmem:[#allocation118_spill] sm:$0xff] }
 0x2a8   : > { %v1670_v7 = vsel %vm1661_vm15, %v1637_v45, %v8028_v11  ;;  %v1671_v27 = vsel %vm1661_vm15, %v1638_v62, %v8029_v4  ;;  %v7794_v47 = vunpack.i.h.bf16 %v17515_v46  ;;  %v7793_v57 = vunpack.i.l.bf16 %v17515_v46  ;;  %v17528_v45 = vld [vmem:[#allocation32_spill] sm:$0xff] }
 0x2a9   : > { %v1703_v42 = vsel %vm1694_vm2, %v1670_v7, %v8108_v18  ;;  %v1704_v13 = vsel %vm1694_vm2, %v1671_v27, %v8109_v33  ;;  %v1508_v34 = vsel %vm1496_vm6, %v9561_v38, %v7634_v29  ;;  %v1507_v15 = vsel %vm1496_vm6, %v9562_v36, %v7633_v43  ;;  %v17525_v18 = vld [vmem:[#allocation89_spill] sm:$0xff]  ;;  %v17529_v7 = vld [vmem:[#allocation80_spill] sm:$0xff]  ;;  %v17531_v36 = vld [vmem:[#allocation15_spill] sm:$0xff] }
 0x2aa   : > { %3450 = vmatmul.mubr.bf16.gmra.mxu1 %v1733_v0  ;;  %v7874_v32 = vunpack.i.h.bf16 %v17516_v20  ;;  %v7873_v26 = vunpack.i.l.bf16 %v17516_v20  ;;  %v1541_v41 = vsel %vm1529_vm10, %v1508_v34, %v7714_v3  ;;  %v7954_v25 = vunpack.i.h.bf16 %v17517_v55  ;;  %v17527_v3 = vld [vmem:[#allocation31_spill] sm:$0xff] }
 0x2ab   : > { %7370 = vmatprep.mubr.msk.bf16.mxu1 %vm1496_vm6, %v1736_v58  ;;  %v7953_v9 = vunpack.i.l.bf16 %v17517_v55  ;;  %v1738_v8 = vpack.c.bf16 %v17519_v35, %v17518_v1  ;;  %v1540_v5 = vsel %vm1529_vm10, %v1507_v15, %v7713_v51  ;;  %v8034_v21 = vunpack.i.h.bf16 %v17520_v39 }
 0x2ac   : > { %v8033_v14 = vunpack.i.l.bf16 %v17520_v39  ;;  %v1735_v56 = vpack.c.bf16 %v1704_v13, %v1703_v42  ;;  %v1573_v50 = vsel %vm1562_vm12, %v1540_v5, %v7793_v57  ;;  %v1574_v53 = vsel %vm1562_vm12, %v1541_v41, %v7794_v47  ;;  %v17530_v13 = vld [vmem:[#allocation146_spill] sm:$0xff] }
 0x2ad   : > { %v8114_v61 = vunpack.i.h.bf16 %v17521_v24  ;;  %v8113_v19 = vunpack.i.l.bf16 %v17521_v24  ;;  %v7639_v54 = vunpack.i.h.bf16 %v17522_v44  ;;  %v7638_v10 = vunpack.i.l.bf16 %v17522_v44  ;;  %v17532_v41 = vld [vmem:[#allocation54_spill] sm:$0xff]  ;;  %v9566_v24 = vld [vmem:[%s9761_s22 + $0xa8] sm:$0xff] }
 0x2ae   : > { %v1606_v49 = vsel %vm1595_vm13, %v1573_v50, %v7873_v26  ;;  %v1607_v17 = vsel %vm1595_vm13, %v1574_v53, %v7874_v32  ;;  %v7718_v23 = vunpack.i.l.bf16 %v17523_v2  ;;  %v7719_v37 = vunpack.i.h.bf16 %v17523_v2  ;;  %v17533_v5 = vld [vmem:[#allocation70_spill] sm:$0xff]  ;;  %v9565_v50 = vld [vmem:[%s9761_s22 + $0xb0] sm:$0xff] }
 0x2af   : > { %v1639_v40 = vsel %vm1628_vm14, %v1606_v49, %v7953_v9  ;;  %v1640_v28 = vsel %vm1628_vm14, %v1607_v17, %v7954_v25  ;;  %v7799_v6 = vunpack.i.h.bf16 %v17524_v48  ;;  %v7798_v4 = vunpack.i.l.bf16 %v17524_v48  ;;  %v17535_v49 = vld [vmem:[#allocation117_spill] sm:$0xff] }
 0x2b0   : > { %v1672_v31 = vsel %vm1661_vm15, %v1639_v40, %v8033_v14  ;;  %v1673_v58 = vsel %vm1661_vm15, %v1640_v28, %v8034_v21  ;;  %v1510_v16 = vsel %vm1496_vm6, %v9563_v12, %v7639_v54  ;;  %v1509_v33 = vsel %vm1496_vm6, %v9564_v59, %v7638_v10  ;;  %v17537_v40 = vld [vmem:[#allocation9_spill] sm:$0xff]  ;;  %v17540_v59 = vld [vmem:[#allocation16_spill] sm:$0xff] }
 0x2b1   : > { %v1705_v11 = vsel %vm1694_vm2, %v1672_v31, %v8113_v19  ;;  %v1706_v0 = vsel %vm1694_vm2, %v1673_v58, %v8114_v61  ;;  %v7879_v22 = vunpack.i.h.bf16 %v17525_v18  ;;  %v7878_v29 = vunpack.i.l.bf16 %v17525_v18  ;;  %v17534_v19 = vld [vmem:[#allocation88_spill] sm:$0xff]  ;;  %v17538_v31 = vld [vmem:[#allocation130_spill] sm:$0xff] }
 0x2b2   : > { %3458 = vmatmul.mubr.bf16.gmra.mxu1 %v1735_v56  ;;  %v1542_v43 = vsel %vm1529_vm10, %v1509_v33, %v7718_v23  ;;  %v7959_v60 = vunpack.i.h.bf16 %v17526_v30  ;;  %v7958_v63 = vunpack.i.l.bf16 %v17526_v30  ;;  %v1740_v62 = vpack.c.bf16 %v17528_v45, %v17527_v3  ;;  %v17536_v23 = vld [vmem:[#allocation8_spill] sm:$0xff] }
 0x2b3   : > { %7371 = vmatprep.mubr.msk.bf16.mxu1 %vm1496_vm6, %v1738_v8  ;;  %v1543_v51 = vsel %vm1529_vm10, %v1510_v16, %v7719_v37  ;;  %v8039_v27 = vunpack.i.h.bf16 %v17529_v7  ;;  %v8038_v46 = vunpack.i.l.bf16 %v17529_v7  ;;  %v1737_v47 = vpack.c.bf16 %v1706_v0, %v1705_v11  ;;  %v17539_v0 = vld [vmem:[#allocation145_spill] sm:$0xff] }
 0x2b4   : > { %v1575_v57 = vsel %vm1562_vm12, %v1542_v43, %v7798_v4  ;;  %v1576_v42 = vsel %vm1562_vm12, %v1543_v51, %v7799_v6  ;;  %v8119_v38 = vunpack.i.h.bf16 %v17530_v13  ;;  %v8118_v34 = vunpack.i.l.bf16 %v17530_v13  ;;  %v17541_v43 = vld [vmem:[#allocation57_spill] sm:$0xff]  ;;  %v9568_v13 = vld [vmem:[%s9761_s22 + $0xc0] sm:$0xff] }
 0x2b5   : > { %v7644_v15 = vunpack.i.h.bf16 %v17531_v36  ;;  %v7643_v20 = vunpack.i.l.bf16 %v17531_v36  ;;  %v1608_v32 = vsel %vm1595_vm13, %v1575_v57, %v7878_v29  ;;  %v1609_v26 = vsel %vm1595_vm13, %v1576_v42, %v7879_v22  ;;  %v17542_v51 = vld [vmem:[#allocation73_spill] sm:$0xff]  ;;  %v9567_v57 = vld [vmem:[%s9761_s22 + $0xc8] sm:$0xff] }
 0x2b6   : > { %v7724_v55 = vunpack.i.h.bf16 %v17532_v41  ;;  %v1641_v25 = vsel %vm1628_vm14, %v1608_v32, %v7958_v63  ;;  %v1642_v9 = vsel %vm1628_vm14, %v1609_v26, %v7959_v60  ;;  %v7723_v1 = vunpack.i.l.bf16 %v17532_v41  ;;  %v17544_v32 = vld [vmem:[#allocation120_spill] sm:$0xff] }
 0x2b7   : > { %v1674_v35 = vsel %vm1661_vm15, %v1641_v25, %v8038_v46  ;;  %v1675_v8 = vsel %vm1661_vm15, %v1642_v9, %v8039_v27  ;;  %v7804_v39 = vunpack.i.h.bf16 %v17533_v5  ;;  %v7803_v21 = vunpack.i.l.bf16 %v17533_v5  ;;  %v17546_v25 = vld [vmem:[#allocation37_spill] sm:$0xff] }
 0x2b8   : > { %v1707_v14 = vsel %vm1694_vm2, %v1674_v35, %v8118_v34  ;;  %v1708_v56 = vsel %vm1694_vm2, %v1675_v8, %v8119_v38  ;;  %v1512_v53 = vsel %vm1496_vm6, %v9565_v50, %v7644_v15  ;;  %v1511_v61 = vsel %vm1496_vm6, %v9566_v24, %v7643_v20  ;;  %v17543_v34 = vld [vmem:[#allocation93_spill] sm:$0xff]  ;;  %v17547_v35 = vld [vmem:[#allocation132_spill] sm:$0xff]  ;;  %v17549_v24 = vld [vmem:[#allocation14_spill] sm:$0xff] }
 0x2b9   : > { %v7884_v44 = vunpack.i.h.bf16 %v17534_v19  ;;  %v7883_v54 = vunpack.i.l.bf16 %v17534_v19  ;;  %v1545_v10 = vsel %vm1529_vm10, %v1512_v53, %v7724_v55  ;;  %v7964_v17 = vunpack.i.h.bf16 %v17535_v49  ;;  %v17545_v55 = vld [vmem:[#allocation36_spill] sm:$0xff] }
 0x2ba   : > { %3466 = vmatmul.mubr.bf16.gmra.mxu1 %v1737_v47  ;;  %v7963_v2 = vunpack.i.l.bf16 %v17535_v49  ;;  %v1742_v28 = vpack.c.bf16 %v17537_v40, %v17536_v23  ;;  %v1544_v37 = vsel %vm1529_vm10, %v1511_v61, %v7723_v1  ;;  %v8044_v58 = vunpack.i.h.bf16 %v17538_v31 }
 0x2bb   : > { %7372 = vmatprep.mubr.msk.bf16.mxu1 %vm1496_vm6, %v1740_v62  ;;  %v8043_v48 = vunpack.i.l.bf16 %v17538_v31  ;;  %v1739_v6 = vpack.c.bf16 %v1708_v56, %v1707_v14  ;;  %v1577_v4 = vsel %vm1562_vm12, %v1544_v37, %v7803_v21  ;;  %v1578_v11 = vsel %vm1562_vm12, %v1545_v10, %v7804_v39  ;;  %v17548_v56 = vld [vmem:[#allocation87_spill] sm:$0xff]  ;;  %v17550_v10 = vld [vmem:[#allocation56_spill] sm:$0xff] }
 0x2bc   : > { %v8124_v12 = vunpack.i.h.bf16 %v17539_v0  ;;  %v8123_v16 = vunpack.i.l.bf16 %v17539_v0  ;;  %v7649_v33 = vunpack.i.h.bf16 %v17540_v59  ;;  %v7648_v18 = vunpack.i.l.bf16 %v17540_v59  ;;  %v17551_v37 = vld [vmem:[#allocation72_spill] sm:$0xff]  ;;  %v9570_v0 = vld [vmem:[%s9761_s22 + $0xd8] sm:$0xff] }
 0x2bd   : > { %v1610_v22 = vsel %vm1595_vm13, %v1577_v4, %v7883_v54  ;;  %v1611_v29 = vsel %vm1595_vm13, %v1578_v11, %v7884_v44  ;;  %v7728_v30 = vunpack.i.l.bf16 %v17541_v43  ;;  %v7729_v3 = vunpack.i.h.bf16 %v17541_v43  ;;  %v9569_v4 = vld [vmem:[%s9761_s22 + $0xe0] sm:$0xff] }
 0x2be   : > { %v1643_v60 = vsel %vm1628_vm14, %v1610_v22, %v7963_v2  ;;  %v1644_v63 = vsel %vm1628_vm14, %v1611_v29, %v7964_v17  ;;  %v7809_v7 = vunpack.i.h.bf16 %v17542_v51  ;;  %v7808_v27 = vunpack.i.l.bf16 %v17542_v51  ;;  %v17553_v22 = vld [vmem:[#allocation119_spill] sm:$0xff] }
 0x2bf   : > { %v1676_v45 = vsel %vm1661_vm15, %v1643_v60, %v8043_v48  ;;  %v1677_v62 = vsel %vm1661_vm15, %v1644_v63, %v8044_v58  ;;  %v1514_v42 = vsel %vm1496_vm6, %v9567_v57, %v7649_v33  ;;  %v1513_v38 = vsel %vm1496_vm6, %v9568_v13, %v7648_v18  ;;  %v17555_v60 = vld [vmem:[#allocation34_spill] sm:$0xff]  ;;  %v17558_v13 = vld [vmem:[#allocation48_spill] sm:$0xff] }
 0x2c0   : > { %v1709_v46 = vsel %vm1694_vm2, %v1676_v45, %v8123_v16  ;;  %v1710_v47 = vsel %vm1694_vm2, %v1677_v62, %v8124_v12  ;;  %v7889_v36 = vunpack.i.h.bf16 %v17543_v34  ;;  %v7888_v15 = vunpack.i.l.bf16 %v17543_v34  ;;  %v17552_v16 = vld [vmem:[#allocation91_spill] sm:$0xff] }
 0x2c1   : > { %v1546_v20 = vsel %vm1529_vm10, %v1513_v38, %v7728_v30  ;;  %v7969_v26 = vunpack.i.h.bf16 %v17544_v32  ;;  %v7968_v41 = vunpack.i.l.bf16 %v17544_v32  ;;  %v1744_v9 = vpack.c.bf16 %v17546_v25, %v17545_v55  ;;  %v17554_v30 = vld [vmem:[#allocation33_spill] sm:$0xff]  ;;  %v17556_v45 = vld [vmem:[#allocation131_spill] sm:$0xff] }
 0x2c2   : > { %3474 = vmatmul.mubr.bf16.gmra.mxu1 %v1739_v6  ;;  %v1547_v1 = vsel %vm1529_vm10, %v1514_v42, %v7729_v3  ;;  %v8049_v8 = vunpack.i.h.bf16 %v17547_v35  ;;  %v8048_v5 = vunpack.i.l.bf16 %v17547_v35  ;;  %v1741_v39 = vpack.c.bf16 %v1710_v47, %v1709_v46  ;;  %v17557_v47 = vld [vmem:[#allocation92_spill] sm:$0xff] }
 0x2c3   : > { %7373 = vmatprep.mubr.msk.bf16.mxu1 %vm1496_vm6, %v1742_v28  ;;  %v1579_v21 = vsel %vm1562_vm12, %v1546_v20, %v7808_v27  ;;  %v1580_v14 = vsel %vm1562_vm12, %v1547_v1, %v7809_v7  ;;  %v8129_v50 = vunpack.i.h.bf16 %v17548_v56  ;;  %v8128_v53 = vunpack.i.l.bf16 %v17548_v56  ;;  %v17559_v20 = vld [vmem:[#allocation59_spill] sm:$0xff]  ;;  %v9572_v56 = vld [vmem:[%s9761_s22 + $0xf0] sm:$0xff] }
 0x2c4   : > { %v7654_v61 = vunpack.i.h.bf16 %v17549_v24  ;;  %v7653_v19 = vunpack.i.l.bf16 %v17549_v24  ;;  %v1612_v44 = vsel %vm1595_vm13, %v1579_v21, %v7888_v15  ;;  %v1613_v54 = vsel %vm1595_vm13, %v1580_v14, %v7889_v36  ;;  %v17560_v1 = vld [vmem:[#allocation75_spill] sm:$0xff]  ;;  %v9571_v21 = vld [vmem:[%s9761_s22 + $0xf8] sm:$0xff] }
 0x2c5   : > { %v7734_v49 = vunpack.i.h.bf16 %v17550_v10  ;;  %v1645_v17 = vsel %vm1628_vm14, %v1612_v44, %v7968_v41  ;;  %v1646_v2 = vsel %vm1628_vm14, %v1613_v54, %v7969_v26  ;;  %v7733_v23 = vunpack.i.l.bf16 %v17550_v10  ;;  %v17562_v44 = vld [vmem:[#allocation122_spill] sm:$0xff] }
 0x2c6   : > { %v1678_v40 = vsel %vm1661_vm15, %v1645_v17, %v8048_v5  ;;  %v1679_v28 = vsel %vm1661_vm15, %v1646_v2, %v8049_v8  ;;  %v7814_v31 = vunpack.i.h.bf16 %v17551_v37  ;;  %v7813_v58 = vunpack.i.l.bf16 %v17551_v37  ;;  %v17564_v17 = vld [vmem:[#allocation40_spill] sm:$0xff] }
 0x2c7   : > { %v1711_v48 = vsel %vm1694_vm2, %v1678_v40, %v8128_v53  ;;  %v1712_v6 = vsel %vm1694_vm2, %v1679_v28, %v8129_v50  ;;  %v1516_v11 = vsel %vm1496_vm6, %v9569_v4, %v7654_v61  ;;  %v1515_v12 = vsel %vm1496_vm6, %v9570_v0, %v7653_v19  ;;  %v17561_v53 = vld [vmem:[#allocation97_spill] sm:$0xff]  ;;  %v17565_v40 = vld [vmem:[#allocation134_spill] sm:$0xff]  ;;  %v17567_v0 = vld [vmem:[#allocation47_spill] sm:$0xff] }
 0x2c8   : > { %v7894_v59 = vunpack.i.h.bf16 %v17552_v16  ;;  %v7893_v33 = vunpack.i.l.bf16 %v17552_v16  ;;  %v1549_v18 = vsel %vm1529_vm10, %v1516_v11, %v7734_v49  ;;  %v7974_v29 = vunpack.i.h.bf16 %v17553_v22  ;;  %v17563_v49 = vld [vmem:[#allocation13_spill] sm:$0xff] }
 0x2c9   : > { %v7973_v43 = vunpack.i.l.bf16 %v17553_v22  ;;  %v1746_v63 = vpack.c.bf16 %v17555_v60, %v17554_v30  ;;  %v1548_v3 = vsel %vm1529_vm10, %v1515_v12, %v7733_v23  ;;  %v8054_v62 = vunpack.i.h.bf16 %v17556_v45 }
 0x2ca   : > { %3482 = vmatmul.mubr.bf16.gmra.mxu1 %v1741_v39  ;;  %v8053_v51 = vunpack.i.l.bf16 %v17556_v45  ;;  %v1743_v7 = vpack.c.bf16 %v1712_v6, %v1711_v48  ;;  %v1581_v27 = vsel %vm1562_vm12, %v1548_v3, %v7813_v58  ;;  %v1582_v46 = vsel %vm1562_vm12, %v1549_v18, %v7814_v31  ;;  %v17566_v6 = vld [vmem:[#allocation90_spill] sm:$0xff] }
 0x2cb   : > { %7374 = vmatprep.mubr.msk.bf16.mxu1 %vm1496_vm6, %v1744_v9  ;;  %v8134_v57 = vunpack.i.h.bf16 %v17557_v47  ;;  %v8133_v42 = vunpack.i.l.bf16 %v17557_v47  ;;  %v7659_v38 = vunpack.i.h.bf16 %v17558_v13  ;;  %v7658_v34 = vunpack.i.l.bf16 %v17558_v13  ;;  %v17568_v18 = vld [vmem:[#allocation58_spill] sm:$0xff]  ;;  %v9574_v47 = vld [vmem:[%s9761_s22 + $0x108] sm:$0xff] }
 0x2cc   : > { %v1614_v36 = vsel %vm1595_vm13, %v1581_v27, %v7893_v33  ;;  %v1615_v15 = vsel %vm1595_vm13, %v1582_v46, %v7894_v59  ;;  %v7738_v32 = vunpack.i.l.bf16 %v17559_v20  ;;  %v7739_v55 = vunpack.i.h.bf16 %v17559_v20  ;;  %v17569_v3 = vld [vmem:[#allocation74_spill] sm:$0xff]  ;;  %v9573_v27 = vld [vmem:[%s9761_s22 + $0x110] sm:$0xff] }
 0x2cd   : > { %v1647_v26 = vsel %vm1628_vm14, %v1614_v36, %v7973_v43  ;;  %v1648_v41 = vsel %vm1628_vm14, %v1615_v15, %v7974_v29  ;;  %v7819_v35 = vunpack.i.h.bf16 %v17560_v1  ;;  %v7818_v8 = vunpack.i.l.bf16 %v17560_v1  ;;  %v17571_v36 = vld [vmem:[#allocation121_spill] sm:$0xff] }
 0x2ce   : > { %v1680_v25 = vsel %vm1661_vm15, %v1647_v26, %v8053_v51  ;;  %v1681_v9 = vsel %vm1661_vm15, %v1648_v41, %v8054_v62  ;;  %v1518_v14 = vsel %vm1496_vm6, %v9571_v21, %v7659_v38  ;;  %v1517_v50 = vsel %vm1496_vm6, %v9572_v56, %v7658_v34  ;;  %v17573_v26 = vld [vmem:[#allocation12_spill] sm:$0xff]  ;;  %v17576_v56 = vld [vmem:[#allocation49_spill] sm:$0xff] }
 0x2cf   : > { %v1713_v5 = vsel %vm1694_vm2, %v1680_v25, %v8133_v42  ;;  %v1714_v39 = vsel %vm1694_vm2, %v1681_v9, %v8134_v57  ;;  %v7899_v24 = vunpack.i.h.bf16 %v17561_v53  ;;  %v7898_v61 = vunpack.i.l.bf16 %v17561_v53  ;;  %v17570_v42 = vld [vmem:[#allocation95_spill] sm:$0xff]  ;;  %v17574_v25 = vld [vmem:[#allocation133_spill] sm:$0xff] }
 0x2d0   : > { %v1550_v19 = vsel %vm1529_vm10, %v1517_v50, %v7738_v32  ;;  %v7979_v54 = vunpack.i.h.bf16 %v17562_v44  ;;  %v7978_v10 = vunpack.i.l.bf16 %v17562_v44  ;;  %v1748_v2 = vpack.c.bf16 %v17564_v17, %v17563_v49  ;;  %v17572_v32 = vld [vmem:[#allocation11_spill] sm:$0xff] }
 0x2d1   : > { %v1551_v23 = vsel %vm1529_vm10, %v1518_v14, %v7739_v55  ;;  %v8059_v28 = vunpack.i.h.bf16 %v17565_v40  ;;  %v8058_v37 = vunpack.i.l.bf16 %v17565_v40  ;;  %v1745_v31 = vpack.c.bf16 %v1714_v39, %v1713_v5  ;;  %v17575_v39 = vld [vmem:[#allocation96_spill] sm:$0xff] }
 0x2d2   : > { %3490 = vmatmul.mubr.bf16.gmra.mxu1 %v1743_v7  ;;  %v1583_v58 = vsel %vm1562_vm12, %v1550_v19, %v7818_v8  ;;  %v1584_v48 = vsel %vm1562_vm12, %v1551_v23, %v7819_v35  ;;  %v8139_v4 = vunpack.i.h.bf16 %v17566_v6  ;;  %v8138_v11 = vunpack.i.l.bf16 %v17566_v6  ;;  %v17577_v19 = vld [vmem:[#allocation61_spill] sm:$0xff]  ;;  %v9576_v6 = vld [vmem:[%s9761_s22 + $0x120] sm:$0xff] }
 0x2d3   : > { %7375 = vmatprep.mubr.msk.bf16.mxu1 %vm1496_vm6, %v1746_v63  ;;  %v7664_v12 = vunpack.i.h.bf16 %v17567_v0  ;;  %v7663_v16 = vunpack.i.l.bf16 %v17567_v0  ;;  %v1616_v59 = vsel %vm1595_vm13, %v1583_v58, %v7898_v61  ;;  %v1617_v33 = vsel %vm1595_vm13, %v1584_v48, %v7899_v24  ;;  %v17578_v23 = vld [vmem:[#allocation77_spill] sm:$0xff]  ;;  %v9575_v58 = vld [vmem:[%s9761_s22 + $0x128] sm:$0xff] }
 0x2d4   : > { %v7744_v22 = vunpack.i.h.bf16 %v17568_v18  ;;  %v1649_v29 = vsel %vm1628_vm14, %v1616_v59, %v7978_v10  ;;  %v1650_v43 = vsel %vm1628_vm14, %v1617_v33, %v7979_v54  ;;  %v7743_v30 = vunpack.i.l.bf16 %v17568_v18  ;;  %v17580_v59 = vld [vmem:[#allocation125_spill] sm:$0xff] }
 0x2d5   : > { %v1682_v60 = vsel %vm1661_vm15, %v1649_v29, %v8058_v37  ;;  %v1683_v63 = vsel %vm1661_vm15, %v1650_v43, %v8059_v28  ;;  %v7824_v45 = vunpack.i.h.bf16 %v17569_v3  ;;  %v7823_v62 = vunpack.i.l.bf16 %v17569_v3  ;;  %v17582_v29 = vld [vmem:[#allocation44_spill] sm:$0xff] }
 0x2d6   : > { %v1715_v51 = vsel %vm1694_vm2, %v1682_v60, %v8138_v11  ;;  %v1716_v7 = vsel %vm1694_vm2, %v1683_v63, %v8139_v4  ;;  %v1520_v46 = vsel %vm1496_vm6, %v9573_v27, %v7664_v12  ;;  %v1519_v57 = vsel %vm1496_vm6, %v9574_v47, %v7663_v16  ;;  %v17579_v11 = vld [vmem:[#allocation103_spill] sm:$0xff]  ;;  %v17583_v60 = vld [vmem:[#allocation136_spill] sm:$0xff]  ;;  %v17585_v47 = vld [vmem:[#allocation25_spill] sm:$0xff] }
 0x2d7   : > { %v7904_v13 = vunpack.i.h.bf16 %v17570_v42  ;;  %v7903_v38 = vunpack.i.l.bf16 %v17570_v42  ;;  %v1553_v34 = vsel %vm1529_vm10, %v1520_v46, %v7744_v22  ;;  %v7984_v15 = vunpack.i.h.bf16 %v17571_v36  ;;  %v17581_v22 = vld [vmem:[#allocation43_spill] sm:$0xff] }
 0x2d8   : > { %v7983_v20 = vunpack.i.l.bf16 %v17571_v36  ;;  %v1750_v41 = vpack.c.bf16 %v17573_v26, %v17572_v32  ;;  %v1552_v55 = vsel %vm1529_vm10, %v1519_v57, %v7743_v30  ;;  %v8064_v9 = vunpack.i.h.bf16 %v17574_v25 }
 0x2d9   : > { %v8063_v1 = vunpack.i.l.bf16 %v17574_v25  ;;  %v1747_v35 = vpack.c.bf16 %v1716_v7, %v1715_v51  ;;  %v1585_v8 = vsel %vm1562_vm12, %v1552_v55, %v7823_v62  ;;  %v1586_v5 = vsel %vm1562_vm12, %v1553_v34, %v7824_v45  ;;  %v17584_v7 = vld [vmem:[#allocation94_spill] sm:$0xff]  ;;  %v17586_v34 = vld [vmem:[#allocation60_spill] sm:$0xff] }
 0x2da   : > { %3498 = vmatmul.mubr.bf16.gmra.mxu1 %v1745_v31  ;;  %v8144_v21 = vunpack.i.h.bf16 %v17575_v39  ;;  %v8143_v14 = vunpack.i.l.bf16 %v17575_v39  ;;  %v7669_v50 = vunpack.i.h.bf16 %v17576_v56  ;;  %v7668_v53 = vunpack.i.l.bf16 %v17576_v56  ;;  %v17587_v55 = vld [vmem:[#allocation76_spill] sm:$0xff]  ;;  %v9578_v39 = vld [vmem:[%s9761_s22 + $0x138] sm:$0xff] }
 0x2db   : > { %7376 = vmatprep.mubr.msk.bf16.mxu1 %vm1496_vm6, %v1748_v2  ;;  %v1618_v24 = vsel %vm1595_vm13, %v1585_v8, %v7903_v38  ;;  %v1619_v61 = vsel %vm1595_vm13, %v1586_v5, %v7904_v13  ;;  %v7748_v44 = vunpack.i.l.bf16 %v17577_v19  ;;  %v7749_v49 = vunpack.i.h.bf16 %v17577_v19  ;;  %v9577_v8 = vld [vmem:[%s9761_s22 + $0x140] sm:$0xff] }
 0x2dc   : > { %v1651_v54 = vsel %vm1628_vm14, %v1618_v24, %v7983_v20  ;;  %v1652_v10 = vsel %vm1628_vm14, %v1619_v61, %v7984_v15  ;;  %v7829_v40 = vunpack.i.h.bf16 %v17578_v23  ;;  %v7828_v28 = vunpack.i.l.bf16 %v17578_v23  ;;  %v17589_v24 = vld [vmem:[#allocation124_spill] sm:$0xff] }
 0x2dd   : > { %v1684_v17 = vsel %vm1661_vm15, %v1651_v54, %v8063_v1  ;;  %v1685_v2 = vsel %vm1661_vm15, %v1652_v10, %v8064_v9  ;;  %v1522_v48 = vsel %vm1496_vm6, %v9575_v58, %v7669_v50  ;;  %v1521_v4 = vsel %vm1496_vm6, %v9576_v6, %v7668_v53  ;;  %v17591_v54 = vld [vmem:[#allocation42_spill] sm:$0xff] }
 0x2de   : > { %v1717_v37 = vsel %vm1694_vm2, %v1684_v17, %v8143_v14  ;;  %v1718_v31 = vsel %vm1694_vm2, %v1685_v2, %v8144_v21  ;;  %v7909_v0 = vunpack.i.h.bf16 %v17579_v11  ;;  %v7908_v12 = vunpack.i.l.bf16 %v17579_v11  ;;  %v17588_v14 = vld [vmem:[#allocation99_spill] sm:$0xff]  ;;  %v17594_v6 = vld [vmem:[#allocation30_spill] sm:$0xff] }
 0x2df   : > { %v1554_v16 = vsel %vm1529_vm10, %v1521_v4, %v7748_v44  ;;  %v7989_v33 = vunpack.i.h.bf16 %v17580_v59  ;;  %v7988_v18 = vunpack.i.l.bf16 %v17580_v59  ;;  %v1752_v43 = vpack.c.bf16 %v17582_v29, %v17581_v22  ;;  %v17590_v44 = vld [vmem:[#allocation41_spill] sm:$0xff]  ;;  %v17592_v17 = vld [vmem:[#allocation135_spill] sm:$0xff]  ;;  %v9579_v29 = vld [vmem:[%s9761_s22 + $0x1a0] sm:$0xff] }
 0x2e0   : > { %v1555_v30 = vsel %vm1529_vm10, %v1522_v48, %v7749_v49  ;;  %v8069_v63 = vunpack.i.h.bf16 %v17583_v60  ;;  %v8068_v3 = vunpack.i.l.bf16 %v17583_v60  ;;  %v1749_v45 = vpack.c.bf16 %v1718_v31, %v1717_v37  ;;  %v17593_v31 = vld [vmem:[#allocation100_spill] sm:$0xff] }
 0x2e1   : > { %v1587_v62 = vsel %vm1562_vm12, %v1554_v16, %v7828_v28  ;;  %v1588_v51 = vsel %vm1562_vm12, %v1555_v30, %v7829_v40  ;;  %v8149_v27 = vunpack.i.h.bf16 %v17584_v7  ;;  %v8148_v46 = vunpack.i.l.bf16 %v17584_v7  ;;  %v17595_v16 = vld [vmem:[#allocation63_spill] sm:$0xff]  ;;  %v9580_v30 = vld [vmem:[%s9761_s22 + $0x198] sm:$0xff] }
 0x2e2   : > { %3506 = vmatmul.mubr.bf16.gmra.mxu1 %v1747_v35  ;;  %v7674_v57 = vunpack.i.h.bf16 %v17585_v47  ;;  %v7673_v42 = vunpack.i.l.bf16 %v17585_v47  ;;  %v1620_v13 = vsel %vm1595_vm13, %v1587_v62, %v7908_v12  ;;  %v1621_v38 = vsel %vm1595_vm13, %v1588_v51, %v7909_v0 }
 0x2e3   : > { %7377 = vmatprep.mubr.msk.bf16.mxu1 %vm1496_vm6, %v1750_v41  ;;  %v7754_v36 = vunpack.i.h.bf16 %v17586_v34  ;;  %v1653_v15 = vsel %vm1628_vm14, %v1620_v13, %v7988_v18  ;;  %v1654_v20 = vsel %vm1628_vm14, %v1621_v38, %v7989_v33  ;;  %v7753_v32 = vunpack.i.l.bf16 %v17586_v34  ;;  %v17597_v13 = vld [vmem:[#allocation109_spill] sm:$0xff] }
 0x2e4   : > { %v1686_v26 = vsel %vm1661_vm15, %v1653_v15, %v8068_v3  ;;  %v1687_v41 = vsel %vm1661_vm15, %v1654_v20, %v8069_v63  ;;  %v7834_v25 = vunpack.i.h.bf16 %v17587_v55  ;;  %v7833_v9 = vunpack.i.l.bf16 %v17587_v55  ;;  %v17598_v20 = vld [vmem:[#allocation101_spill] sm:$0xff] }
 0x2e5   : > { %v1719_v1 = vsel %vm1694_vm2, %v1686_v26, %v8148_v46  ;;  %v1720_v35 = vsel %vm1694_vm2, %v1687_v41, %v8149_v27  ;;  %v1524_v5 = vsel %vm1496_vm6, %v9577_v8, %v7674_v57  ;;  %v1523_v21 = vsel %vm1496_vm6, %v9578_v39, %v7673_v42  ;;  %v9581_v46 = vld [vmem:[%s9761_s22 + $0x158] sm:$0xff]  ;;  %v9582_v57 = vld [vmem:[%s9761_s22 + $0x150] sm:$0xff]  ;;  %v17599_v41 = vld [vmem:[#allocation138_spill] sm:$0xff] }
 0x2e6   : > { %v7914_v56 = vunpack.i.h.bf16 %v17588_v14  ;;  %v7913_v50 = vunpack.i.l.bf16 %v17588_v14  ;;  %v1557_v53 = vsel %vm1529_vm10, %v1524_v5, %v7754_v36  ;;  %v7994_v61 = vunpack.i.h.bf16 %v17589_v24  ;;  %v17600_v39 = vld [vmem:[#allocation98_spill] sm:$0xff] }
 0x2e7   : > { %v7993_v19 = vunpack.i.l.bf16 %v17589_v24  ;;  %v1754_v10 = vpack.c.bf16 %v17591_v54, %v17590_v44  ;;  %v1556_v49 = vsel %vm1529_vm10, %v1523_v21, %v7753_v32  ;;  %v8074_v2 = vunpack.i.h.bf16 %v17592_v17 }
 0x2e8   : > { %v8073_v23 = vunpack.i.l.bf16 %v17592_v17  ;;  %v1751_v40 = vpack.c.bf16 %v1720_v35, %v1719_v1  ;;  %v1589_v28 = vsel %vm1562_vm12, %v1556_v49, %v7833_v9  ;;  %v1590_v37 = vsel %vm1562_vm12, %v1557_v53, %v7834_v25  ;;  %v9583_v1 = vld [vmem:[%s9761_s22 + $0x1a8] sm:$0x3]  ;;  %v17603_v17 = vld [vmem:[#allocation46_spill] sm:$0xff] }
 0x2e9   : > { %v8154_v58 = vunpack.i.h.bf16 %v17593_v31  ;;  %v8153_v48 = vunpack.i.l.bf16 %v17593_v31  ;;  %v7679_v4 = vunpack.i.h.bf16 %v17594_v6  ;;  %v7678_v11 = vunpack.i.l.bf16 %v17594_v6 }
 0x2ea   : > { %3514 = vmatmul.mubr.bf16.gmra.mxu1 %v1749_v45  ;;  %v1622_v0 = vsel %vm1595_vm13, %v1589_v28, %v7913_v50  ;;  %v1623_v12 = vsel %vm1595_vm13, %v1590_v37, %v7914_v56  ;;  %v7759_v59 = vunpack.i.h.bf16 %v17595_v16  ;;  %v7758_v33 = vunpack.i.l.bf16 %v17595_v16  ;;  %v17596_v45 = vld [vmem:[#allocation79_spill] sm:$0xff]  ;;  %v17601_v56 = vld [vmem:[#allocation38_spill] sm:$0xff] }
 0x2eb   : > { %7378 = vmatprep.mubr.msk.bf16.mxu1 %vm1496_vm6, %v1752_v43  ;;  %v1655_v18 = vsel %vm1628_vm14, %v1622_v0, %v7993_v19  ;;  %v1656_v22 = vsel %vm1628_vm14, %v1623_v12, %v7994_v61  ;;  %v788_v43 = vrot.slane %v9579_v29, 2  ;;  %v787_v60 = vrot.slane %v9580_v30, 2  ;;  %v17602_v19 = vld [vmem:[#allocation62_spill] sm:$0xff]  ;;  %v9584_v0 = vld [vmem:[%s9761_s22 + $0x170] sm:$0xff]  ;;  %v9585_v16 = vld [vmem:[%s9761_s22 + $0x168] sm:$0xff] }
 0x2ec   : > { %v1688_v63 = vsel %vm1661_vm15, %v1655_v18, %v8073_v23  ;;  %v1689_v3 = vsel %vm1661_vm15, %v1656_v22, %v8074_v2  ;;  %v7839_v62 = vunpack.i.h.bf16 %v17596_v45  ;;  %v7838_v51 = vunpack.i.l.bf16 %v17596_v45  ;;  %v17604_v2 = vld [vmem:[#allocation45_spill] sm:$0xff] }
 0x2ed   : > { %v1721_v7 = vsel %vm1694_vm2, %v1688_v63, %v8153_v48  ;;  %v1722_v27 = vsel %vm1694_vm2, %v1689_v3, %v8154_v58  ;;  %v1526_v47 = vsel %vm1496_vm6, %v9581_v46, %v7679_v4  ;;  %v1525_v42 = vsel %vm1496_vm6, %v9582_v57, %v7678_v11  ;;  %v17606_v58 = vld [vmem:[#allocation78_spill] sm:$0xff]  ;;  %v17609_v45 = vld [vmem:[#allocation137_spill] sm:$0xff] }
 0x2ee   : > { %v7919_v38 = vunpack.i.h.bf16 %v17597_v13  ;;  %v7918_v34 = vunpack.i.l.bf16 %v17597_v13  ;;  %v1558_v36 = vsel %vm1529_vm10, %v1525_v42, %v7758_v33  ;;  %v1559_v15 = vsel %vm1529_vm10, %v1526_v47, %v7759_v59  ;;  %v17607_v33 = vld [vmem:[#allocation106_spill] sm:$0xff]  ;;  %v17610_v47 = vld [vmem:[#allocation107_spill] sm:$0xff] }
 0x2ef   : > { %v7999_v32 = vunpack.i.h.bf16 %v17598_v20  ;;  %v7998_v26 = vunpack.i.l.bf16 %v17598_v20  ;;  %v8079_v55 = vunpack.i.h.bf16 %v17599_v41  ;;  %v8078_v25 = vunpack.i.l.bf16 %v17599_v41 }
 0x2f0   : > { %v1753_v9 = vpack.c.bf16 %v1722_v27, %v1721_v7  ;;  %v790_v35 = vrot.slane %v9583_v1, 2  ;;  %v1591_v8 = vsel %vm1562_vm12, %v1558_v36, %v7838_v51  ;;  %v1592_v5 = vsel %vm1562_vm12, %v1559_v15, %v7839_v62 }
 0x2f1   : > { %v8159_v21 = vunpack.i.h.bf16 %v17600_v39  ;;  %v8158_v14 = vunpack.i.l.bf16 %v17600_v39  ;;  %v7684_v50 = vunpack.i.h.bf16 %v17601_v56  ;;  %v7683_v53 = vunpack.i.l.bf16 %v17601_v56 }
 0x2f2   : > { %3522 = vmatmul.mubr.bf16.gmra.mxu1 %v1751_v40  ;;  %v1624_v24 = vsel %vm1595_vm13, %v1591_v8, %v7918_v34  ;;  %v1625_v61 = vsel %vm1595_vm13, %v1592_v5, %v7919_v38  ;;  %v7764_v44 = vunpack.i.h.bf16 %v17602_v19  ;;  %v7763_v54 = vunpack.i.l.bf16 %v17602_v19 }
 0x2f3   : > { %7379 = vmatprep.mubr.msk.bf16.mxu1 %vm1496_vm6, %v1754_v10  ;;  %v1657_v10 = vsel %vm1628_vm14, %v1624_v24, %v7998_v26  ;;  %v1658_v49 = vsel %vm1628_vm14, %v1625_v61, %v7999_v32  ;;  %v17605_v23 = vpack.c.bf16 %v17603_v17, %v17604_v2  ;;  %v789_v37 = vsel %vm685_vm1, %v787_v60, %v788_v43 }
 0x2f4   : > { %v1690_v40 = vsel %vm1661_vm15, %v1657_v10, %v8078_v25  ;;  %v1691_v28 = vsel %vm1661_vm15, %v1658_v49, %v8079_v55  ;;  %v791_v31 = vsel %vm685_vm1, %v788_v43, %v790_v35  ;;  %v7844_v48 = vunpack.i.h.bf16 %v17606_v58  ;;  %v17608_v43 = vld [vmem:[#allocation126_spill] sm:$0xff] }
 0x2f5   : > { %v7843_v6 = vunpack.i.l.bf16 %v17606_v58  ;;  %v1723_v4 = vsel %vm1694_vm2, %v1690_v40, %v8158_v14  ;;  %v1724_v11 = vsel %vm1694_vm2, %v1691_v28, %v8159_v21  ;;  %v1528_v12 = vsel %vm1496_vm6, %v9584_v0, %v7684_v50 }
 0x2f6   : > { %v1527_v59 = vsel %vm1496_vm6, %v9585_v16, %v7683_v53  ;;  %v7924_v18 = vunpack.i.h.bf16 %v17607_v33  ;;  %v7923_v22 = vunpack.i.l.bf16 %v17607_v33  ;;  %v1561_v29 = vsel %vm1529_vm10, %v1528_v12, %v7764_v44  ;;  %v13285_v12 = vld [vmem:[%s16545_s7] ss:$0 sm:$0xff] }
 0x2f7   : > { %v8004_v30 = vunpack.i.h.bf16 %v17608_v43  ;;  %v8003_v60 = vunpack.i.l.bf16 %v17608_v43  ;;  %v1758_v63 = vpack.c.bf16 %v791_v31, %v789_v37  ;;  %v1560_v3 = vsel %vm1529_vm10, %v1527_v59, %v7763_v54 }
 0x2f8   : > { %v8084_v62 = vunpack.i.h.bf16 %v17609_v45  ;;  %v8083_v51 = vunpack.i.l.bf16 %v17609_v45  ;;  %v1755_v7 = vpack.c.bf16 %v1724_v11, %v1723_v4  ;;  %v1593_v27 = vsel %vm1562_vm12, %v1560_v3, %v7843_v6 }
 0x2f9   : > { %v1594_v46 = vsel %vm1562_vm12, %v1561_v29, %v7844_v48  ;;  %v8164_v57 = vunpack.i.h.bf16 %v17610_v47  ;;  %v8163_v42 = vunpack.i.l.bf16 %v17610_v47  ;;  %v1626_v13 = vsel %vm1595_vm13, %v1593_v27, %v7923_v22 }
 0x2fa   : > { %3530 = vmatmul.mubr.bf16.gmra.mxu1 %v1753_v9  ;;  %v1627_v38 = vsel %vm1595_vm13, %v1594_v46, %v7924_v18  ;;  %v1659_v34 = vsel %vm1628_vm14, %v1626_v13, %v8003_v60 }
 0x2fb   : > { %7380 = vmatprep.mubr.msk.bf16.mxu1 %vm1496_vm6, %v17605_v23  ;;  %v1660_v36 = vsel %vm1628_vm14, %v1627_v38, %v8004_v30  ;;  %v1692_v15 = vsel %vm1661_vm15, %v1659_v34, %v8083_v51 }
 0x2fc   : > { %v1693_v20 = vsel %vm1661_vm15, %v1660_v36, %v8084_v62  ;;  %v1725_v32 = vsel %vm1694_vm2, %v1692_v15, %v8163_v42 }
 0x2fd   : > { %v1726_v26 = vsel %vm1694_vm2, %v1693_v20, %v8164_v57 }
 0x2fe   : > { %v1757_v41 = vpack.c.bf16 %v1726_v26, %v1725_v32 }
 0x302   : > { %3538 = vmatmul.mubr.bf16.gmra.mxu1 %v1755_v7 }
 0x303   : > { %7381 = vmatprep.mubr.msk.bf16.mxu1 %vm1496_vm6, %v1758_v63 }
 0x30a   : > { %3546 = vmatmul.mubr.bf16.gmra.mxu1 %v1757_v41 }
 0x312   : > { %v7511_v55 = vpop.f32.mrf.mxu1 }
 0x314   : > { %v3164_v25 = vpop.f32.mrf.mxu1 }
 0x316   : > { %v7512_v9 = vpop.f32.mrf.mxu1 }
 0x318   : > { %v3167_v1 = vpop.f32.mrf.mxu1 }
 0x31a   : > { %v13230_v35 = vpop.f32.mrf.mxu1 }
 0x31c   : > { %v3180_v8 = vpop.f32.mrf.mxu1 }
 0x31e   : > { %v13232_v5 = vpop.f32.mrf.mxu1 }
 0x320   : > { %v3183_v39 = vpop.f32.mrf.mxu1 }
 0x322   : > { %v13234_v21 = vpop.f32.mrf.mxu1 }
 0x324   : > { %v13236_v14 = vpop.f32.mrf.mxu1 }
 0x326   : > { %v13238_v56 = vpop.f32.mrf.mxu1 }
 0x328   : > { %v13240_v50 = vpop.f32.mrf.mxu1 }
 0x32a   : > { %v13242_v53 = vpop.f32.mrf.mxu1 }
 0x32c   : > { %v13244_v24 = vpop.f32.mrf.mxu1 }
 0x32e   : > { %v13246_v61 = vpop.f32.mrf.mxu1 }
 0x330   : > { %v13248_v19 = vpop.f32.mrf.mxu1 }
 0x332   : > { %v13250_v44 = vpop.f32.mrf.mxu1 }
 0x334   : > { %v13252_v54 = vpop.f32.mrf.mxu1 }
 0x336   : > { %v13254_v10 = vpop.f32.mrf.mxu1 }
 0x338   : > { %v13256_v49 = vpop.f32.mrf.mxu1 }
 0x33a   : > { %v13258_v17 = vpop.f32.mrf.mxu1 }
 0x33c   : > { %v13260_v2 = vpop.f32.mrf.mxu1 }
 0x33e   : > { %v13262_v23 = vpop.f32.mrf.mxu1 }
 0x340   : > { %v13264_v40 = vpop.f32.mrf.mxu1 }
 0x342   : > { %v13266_v28 = vpop.f32.mrf.mxu1 }
 0x344   : > { %v13268_v37 = vpop.f32.mrf.mxu1 }
 0x346   : > { %v13270_v31 = vpop.f32.mrf.mxu1 }
 0x348   : > { %v13272_v58 = vpop.f32.mrf.mxu1 }
 0x34a   : > { %v13274_v48 = vpop.f32.mrf.mxu1 }
 0x34c   : > { %v13276_v6 = vpop.f32.mrf.mxu1 }
 0x34e   : > { %v13278_v4 = vpop.f32.mrf.mxu1 }
 0x350   : > { %v13280_v11 = vpop.f32.mrf.mxu1 }
 0x352   : > { %v3427_v0 = vpop.f32.mrf.mxu1 }
 0x353   : > { %v3428_v16 = vadd.f32 %v3427_v0, %v3164_v25 }
 0x354   : > { %v3429_v59 = vpop.f32.mrf.mxu1 }
 0x355   : > { %v3561_v33 = vadd.f32 %v13285_v12, %v3428_v16 }
 0x356   : > { %v3430_v18 = vpop.f32.mrf.mxu1 }
 0x357   : > { %v7383_v22 = vmul.f32 -1.442695, %v3561_v33  ;;  %v3431_v29 = vadd.f32 %v3430_v18, %v3167_v1 }
 0x358   : > { %v3432_v43 = vpop.f32.mrf.mxu1 }
 0x359   : > { %9391 = vpow2.f32 %v7383_v22  ;;  %v3562_v30 = vadd.f32 %v13285_v12, %v3431_v29 }
 0x35a   : > { %v3435_v60 = vpop.f32.mrf.mxu1 }
 0x35b   : > { %v7384_v63 = vmul.f32 -1.442695, %v3562_v30  ;;  %v3436_v3 = vadd.f32 %v7511_v55, %v3435_v60 }
 0x35c   : > { %v3437_v45 = vpop.f32.mrf.mxu1 }
 0x35d   : > { %9393 = vpow2.f32 %v7384_v63  ;;  %v3563_v62 = vadd.f32 %v13285_v12, %v3436_v3 }
 0x35e   : > { %v3438_v51 = vpop.f32.mrf.mxu1 }
 0x35f   : > { %v7385_v7 = vmul.f32 -1.442695, %v3563_v62  ;;  %v3439_v27 = vadd.f32 %v7512_v9, %v3438_v51 }
 0x360   : > { %v3440_v46 = vpop.f32.mrf.mxu1 }
 0x361   : > { %9395 = vpow2.f32 %v7385_v7  ;;  %v3564_v47 = vadd.f32 %v13285_v12, %v3439_v27 }
 0x362   : > { %v3443_v57 = vpop.f32.mrf.mxu1 }
 0x363   : > { %v7386_v42 = vmul.f32 -1.442695, %v3564_v47  ;;  %v3444_v13 = vadd.f32 %v3443_v57, %v3180_v8 }
 0x364   : > { %v3445_v38 = vpop.f32.mrf.mxu1 }
 0x365   : > { %9397 = vpow2.f32 %v7386_v42  ;;  %v3565_v34 = vadd.f32 %v13285_v12, %v3444_v13 }
 0x366   : > { %v9392_v36 = vpop.eup %9391  ;;  %v3446_v15 = vpop.f32.mrf.mxu1 }
 0x367   : > { %v3689_v20 = vadd.f32 1.0, %v9392_v36  ;;  %v7387_v32 = vmul.f32 -1.442695, %v3565_v34  ;;  %v3447_v26 = vadd.f32 %v3446_v15, %v3183_v39 }
 0x368   : > { %v3448_v41 = vpop.f32.mrf.mxu1 }
 0x369   : > { %v3566_v55 = vadd.f32 %v13285_v12, %v3447_v26  ;;  %9399 = vpow2.f32 %v7387_v32 }
 0x36a   : > { %v9394_v25 = vpop.eup %9393  ;;  %v3451_v9 = vpop.f32.mrf.mxu1  ;;  %9401 = vrcp.f32 %v3689_v20 }
 0x36b   : > { %v3690_v1 = vadd.f32 1.0, %v9394_v25  ;;  %v7388_v0 = vmul.f32 -1.442695, %v3566_v55  ;;  %v3452_v8 = vadd.f32 %v13230_v35, %v3451_v9 }
 0x36c   : > { %v3453_v16 = vpop.f32.mrf.mxu1 }
 0x36d   : > { %9403 = vrcp.f32 %v3690_v1  ;;  %v3567_v59 = vadd.f32 %v13285_v12, %v3452_v8 }
 0x36e   : > { %v9396_v33 = vpop.eup %9395  ;;  %9405 = vpow2.f32 %v7388_v0  ;;  %v3454_v18 = vpop.f32.mrf.mxu1 }
 0x36f   : > { %v3691_v22 = vadd.f32 1.0, %v9396_v33  ;;  %v7389_v39 = vmul.f32 -1.442695, %v3567_v59  ;;  %v3455_v29 = vadd.f32 %v13232_v5, %v3454_v18 }
 0x370   : > { %v3456_v43 = vpop.f32.mrf.mxu1 }
 0x371   : > { %9407 = vrcp.f32 %v3691_v22  ;;  %v3568_v30 = vadd.f32 %v13285_v12, %v3455_v29 }
 0x372   : > { %v9398_v60 = vpop.eup %9397  ;;  %9409 = vpow2.f32 %v7389_v39  ;;  %v3459_v63 = vpop.f32.mrf.mxu1 }
 0x373   : > { %v3692_v3 = vadd.f32 1.0, %v9398_v60  ;;  %v7390_v35 = vmul.f32 -1.442695, %v3568_v30  ;;  %v3460_v45 = vadd.f32 %v3459_v63, %v13236_v14 }
 0x374   : > { %v3461_v62 = vpop.f32.mrf.mxu1 }
 0x375   : > { %9411 = vrcp.f32 %v3692_v3  ;;  %v3569_v51 = vadd.f32 %v13285_v12, %v3460_v45 }
 0x376   : > { %9413 = vpow2.f32 %v7390_v35  ;;  %v3462_v7 = vpop.f32.mrf.mxu1  ;;  %v9400_v27 = vpop.eup %9399 }
 0x377   : > { %v7391_v46 = vmul.f32 -1.442695, %v3569_v51  ;;  %v3463_v5 = vadd.f32 %v3462_v7, %v13240_v50  ;;  %v13300_v47 = vpop.eup %9401  ;;  %v3693_v57 = vadd.f32 1.0, %v9400_v27 }
 0x378   : > { %17611 = vst [vmem:[#allocation167_spill] sm:$0xff] %v13300_v47  ;;  %v3464_v42 = vpop.f32.mrf.mxu1  ;;  %v3853_v20 = vrot.slane %v13300_v47, 7  ;;  %v3802_v45 = vrot.slane %v13300_v47, 1 }
 0x379   : > { %9415 = vpow2.f32 %v7391_v46  ;;  %v3570_v13 = vadd.f32 %v13285_v12, %v3463_v5 }
 0x37a   : > { %v13303_v38 = vpop.eup %9403  ;;  %9417 = vrcp.f32 %v3693_v57  ;;  %v3467_v14 = vpop.f32.mrf.mxu1 }
 0x37b   : > { %17612 = vst [vmem:[#allocation168_spill] sm:$0xff] %v13303_v38  ;;  %v9406_v34 = vpop.eup %9405  ;;  %v7392_v36 = vmul.f32 -1.442695, %v3570_v13  ;;  %v3468_v15 = vadd.f32 %v13234_v21, %v3467_v14  ;;  %v3854_v32 = vrot.slane %v13303_v38, 7  ;;  %v13346_v14 = vsel %vm3849_vm3, %v3802_v45, %v3853_v20 }
 0x37c   : > { %v3694_v50 = vadd.f32 1.0, %v9406_v34  ;;  %v3469_v26 = vpop.f32.mrf.mxu1  ;;  %v3947_v34 = vrot.slane %v13303_v38, 5  ;;  %v9591_v38 = vld [vmem:[%s9761_s22 + $0x40] sm:$0x3] }
 0x37d   : > { %9419 = vpow2.f32 %v7392_v36  ;;  %v3571_v41 = vadd.f32 %v13285_v12, %v3468_v15  ;;  %v13312_v55 = vsel %vm3849_vm3, %v3853_v20, %v3854_v32 }
 0x37e   : > { %v13314_v25 = vpop.eup %9407  ;;  %9421 = vrcp.f32 %v3694_v50  ;;  %v3470_v9 = vpop.f32.mrf.mxu1 }
 0x37f   : > { %17613 = vst [vmem:[#allocation169_spill] sm:$0xff] %v13314_v25  ;;  %v9410_v21 = vpop.eup %9409  ;;  %v7393_v1 = vmul.f32 -1.442695, %v3571_v41  ;;  %v3471_v0 = vadd.f32 %v13238_v56, %v3470_v9  ;;  %v3801_v8 = vrot.slane %v13314_v25, 1  ;;  %v3850_v16 = vrot.slane %v13314_v25, 7 }
 0x380   : > { %v3695_v59 = vadd.f32 1.0, %v9410_v21  ;;  %v3472_v33 = vpop.f32.mrf.mxu1  ;;  %v9590_v25 = vld [vmem:[%s9761_s22 + $0x10] sm:$0x3] }
 0x381   : > { %9423 = vpow2.f32 %v7393_v1  ;;  %v3572_v18 = vadd.f32 %v13285_v12, %v3471_v0  ;;  %v13321_v22 = vsel %vm3849_vm3, %v3801_v8, %v3850_v16  ;;  %v13368_v33 = vsel %vm3849_vm3, %v3854_v32, %v3947_v34 }
 0x382   : > { %v13323_v39 = vpop.eup %9411  ;;  %9425 = vrcp.f32 %v3695_v59  ;;  %v3475_v29 = vpop.f32.mrf.mxu1  ;;  %4042 = vrot.lane.b32.xlu0 %v13321_v22, %s9684_s14 }
 0x383   : > { %17614 = vst [vmem:[#allocation170_spill] sm:$0xff] %v13323_v39  ;;  %v9414_v56 = vpop.eup %9413  ;;  %v7394_v43 = vmul.f32 -1.442695, %v3572_v18  ;;  %v3476_v30 = vadd.f32 %v3475_v29, %v13244_v24  ;;  %v3851_v60 = vrot.slane %v13323_v39, 7  ;;  %v3946_v63 = vrot.slane %v13323_v39, 5 }
 0x384   : > { %v3696_v3 = vadd.f32 1.0, %v9414_v56  ;;  %v3477_v35 = vpop.f32.mrf.mxu1 }
 0x385   : > { %9427 = vpow2.f32 %v7394_v43  ;;  %v3573_v62 = vadd.f32 %v13285_v12, %v3476_v30  ;;  %v13333_v51 = vsel %vm3849_vm3, %v3850_v16, %v3851_v60  ;;  %v13336_v7 = vsel %vm3849_vm3, %v3851_v60, %v3946_v63 }
 0x386   : > { %v9416_v27 = vpop.eup %9415  ;;  %9429 = vrcp.f32 %v3696_v3  ;;  %v3478_v24 = vpop.f32.mrf.mxu1  ;;  %4044 = vrot.lane.b32.xlu1 %v13333_v51, %s9684_s14  ;;  %4046 = vrot.lane.b32.xlu0 %v13336_v7, %s9684_s14 }
 0x387   : > { %v13342_v46 = vpop.eup %9417  ;;  %v3697_v5 = vadd.f32 1.0, %v9416_v27  ;;  %v7395_v57 = vmul.f32 -1.442695, %v3573_v62  ;;  %v3479_v42 = vadd.f32 %v3478_v24, %v13248_v19 }
 0x388   : > { %17615 = vst [vmem:[#allocation171_spill] sm:$0xff] %v13342_v46  ;;  %v3480_v13 = vpop.f32.mrf.mxu1  ;;  %v3803_v15 = vrot.slane %v13342_v46, 1  ;;  %v3856_v50 = vrot.slane %v13342_v46, 7  ;;  %v9589_v46 = vld [vmem:[%s9761_s22 + $0x38] sm:$0xff] }
 0x389   : > { %9431 = vrcp.f32 %v3697_v5  ;;  %v3574_v36 = vadd.f32 %v13285_v12, %v3479_v42 }
 0x38a   : > { %v9420_v26 = vpop.eup %9419  ;;  %9433 = vpow2.f32 %v7395_v57  ;;  %v3483_v41 = vpop.f32.mrf.mxu1  ;;  %4050 = vrot.lane.b32.xlu0 %v13312_v55, %s9684_s14  ;;  %4048 = vrot.lane.b32.xlu1 %v13346_v14, %s9684_s14  ;;  %v13363_v59 = vsel %vm3849_vm3, %v3803_v15, %v3856_v50 }
 0x38b   : > { %v13356_v19 = vpop.eup %9421  ;;  %v3698_v20 = vadd.f32 1.0, %v9420_v26  ;;  %v7396_v9 = vmul.f32 -1.442695, %v3574_v36  ;;  %v3484_v21 = vadd.f32 %v13242_v53, %v3483_v41 }
 0x38c   : > { %17616 = vst [vmem:[#allocation172_spill] sm:$0xff] %v13356_v19  ;;  %v3485_v1 = vpop.f32.mrf.mxu1  ;;  %v3857_v0 = vrot.slane %v13356_v19, 7  ;;  %v3948_v8 = vrot.slane %v13356_v19, 5 }
 0x38d   : > { %9435 = vrcp.f32 %v3698_v20  ;;  %v3575_v16 = vadd.f32 %v13285_v12, %v3484_v21 }
 0x38e   : > { %v9424_v18 = vpop.eup %9423  ;;  %9437 = vpow2.f32 %v7396_v9  ;;  %v3486_v29 = vpop.f32.mrf.mxu1  ;;  %4054 = vrot.lane.b32.xlu0 %v13363_v59, %s9684_s14  ;;  %4052 = vrot.lane.b32.xlu1 %v13368_v33, %s9684_s14  ;;  %v13378_v63 = vsel %vm3849_vm3, %v3857_v0, %v3948_v8  ;;  %v13381_v32 = vsel %vm3849_vm3, %v3856_v50, %v3857_v0 }
 0x38f   : > { %v13374_v53 = vpop.eup %9425  ;;  %v3699_v56 = vadd.f32 1.0, %v9424_v18  ;;  %v7397_v43 = vmul.f32 -1.442695, %v3575_v16  ;;  %v3487_v30 = vadd.f32 %v13246_v61, %v3486_v29 }
 0x390   : > { %17617 = vst [vmem:[#allocation173_spill] sm:$0xff] %v13374_v53  ;;  %v3488_v60 = vpop.f32.mrf.mxu1  ;;  %v3859_v35 = vrot.slane %v13374_v53, 7  ;;  %v3804_v45 = vrot.slane %v13374_v53, 1 }
 0x391   : > { %9439 = vrcp.f32 %v3699_v56  ;;  %v3576_v3 = vadd.f32 %v13285_v12, %v3487_v30 }
 0x392   : > { %v9428_v62 = vpop.eup %9427  ;;  %9441 = vpow2.f32 %v7397_v43  ;;  %v3491_v27 = vpop.f32.mrf.mxu1  ;;  %4058 = vrot.lane.b32.xlu0 %v13378_v63, %s9684_s14  ;;  %4056 = vrot.lane.b32.xlu1 %v13381_v32, %s9684_s14  ;;  %v13396_v36 = vsel %vm3849_vm3, %v3804_v45, %v3859_v35 }
 0x393   : > { %v13390_v61 = vpop.eup %9429  ;;  %v3700_v24 = vadd.f32 1.0, %v9428_v62  ;;  %v7398_v5 = vmul.f32 -1.442695, %v3576_v3  ;;  %v3492_v57 = vadd.f32 %v3491_v27, %v13252_v54 }
 0x394   : > { %17618 = vst [vmem:[#allocation174_spill] sm:$0xff] %v13390_v61  ;;  %v3493_v42 = vpop.f32.mrf.mxu1  ;;  %v3860_v13 = vrot.slane %v13390_v61, 7  ;;  %v3949_v15 = vrot.slane %v13390_v61, 5 }
 0x395   : > { %9443 = vrcp.f32 %v3700_v24  ;;  %v3577_v34 = vadd.f32 %v13285_v12, %v3492_v57 }
 0x396   : > { %v13399_v50 = vpop.eup %9431  ;;  %9445 = vpow2.f32 %v7398_v5  ;;  %v3494_v26 = vpop.f32.mrf.mxu1  ;;  %v13402_v41 = vsel %vm3849_vm3, %v3859_v35, %v3860_v13  ;;  %4060 = vrot.lane.b32.xlu1 %v13396_v36, %s9684_s14  ;;  %v13416_v29 = vsel %vm3849_vm3, %v3860_v13, %v3949_v15 }
 0x397   : > { %17619 = vst [vmem:[#allocation175_spill] sm:$0xff] %v13399_v50  ;;  %v9434_v54 = vpop.eup %9433  ;;  %v7399_v20 = vmul.f32 -1.442695, %v3577_v34  ;;  %v3495_v9 = vadd.f32 %v3494_v26, %v13256_v49  ;;  %4062 = vrot.lane.b32.xlu0 %v13402_v41, %s9684_s14  ;;  %v3805_v21 = vrot.slane %v13399_v50, 1  ;;  %v3862_v1 = vrot.slane %v13399_v50, 7  ;;  %v9586_v50 = vld [vmem:[%s9761_s22 + $0x30] sm:$0xff] }
 0x398   : > { %v3701_v0 = vadd.f32 1.0, %v9434_v54  ;;  %v3496_v8 = vpop.f32.mrf.mxu1 }
 0x399   : > { %9447 = vpow2.f32 %v7399_v20  ;;  %v3578_v16 = vadd.f32 %v13285_v12, %v3495_v9  ;;  %v13413_v18 = vsel %vm3849_vm3, %v3805_v21, %v3862_v1 }
 0x39a   : > { %v13418_v56 = vpop.eup %9435  ;;  %9449 = vrcp.f32 %v3701_v0  ;;  %v3499_v49 = vpop.f32.mrf.mxu1  ;;  %4064 = vrot.lane.b32.xlu1 %v13416_v29, %s9684_s14 }
 0x39b   : > { %17620 = vst [vmem:[#allocation176_spill] sm:$0xff] %v13418_v56  ;;  %v9438_v43 = vpop.eup %9437  ;;  %v7400_v30 = vmul.f32 -1.442695, %v3578_v16  ;;  %v3500_v60 = vadd.f32 %v13250_v44, %v3499_v49  ;;  %4066 = vrot.lane.b32.xlu0 %v13413_v18, %s9684_s14  ;;  %v3863_v3 = vrot.slane %v13418_v56, 7  ;;  %v3950_v35 = vrot.slane %v13418_v56, 5 }
 0x39c   : > { %v3702_v45 = vadd.f32 1.0, %v9438_v43  ;;  %v3501_v62 = vpop.f32.mrf.mxu1 }
 0x39d   : > { %9451 = vpow2.f32 %v7400_v30  ;;  %v3579_v27 = vadd.f32 %v13285_v12, %v3500_v60  ;;  %v13429_v24 = vsel %vm3849_vm3, %v3863_v3, %v3950_v35  ;;  %v13432_v5 = vsel %vm3849_vm3, %v3862_v1, %v3863_v3 }
 0x39e   : > { %v13434_v57 = vpop.eup %9439  ;;  %9453 = vrcp.f32 %v3702_v45  ;;  %v3502_v44 = vpop.f32.mrf.mxu1  ;;  %4068 = vrot.lane.b32.xlu1 %v13432_v5, %s9684_s14 }
 0x39f   : > { %17621 = vst [vmem:[#allocation177_spill] sm:$0xff] %v13434_v57  ;;  %v9442_v42 = vpop.eup %9441  ;;  %v7401_v13 = vmul.f32 -1.442695, %v3579_v27  ;;  %v3503_v34 = vadd.f32 %v13254_v10, %v3502_v44  ;;  %4070 = vrot.lane.b32.xlu0 %v13429_v24, %s9684_s14  ;;  %v3806_v15 = vrot.slane %v13434_v57, 1  ;;  %v3865_v26 = vrot.slane %v13434_v57, 7 }
 0x3a0   : > { %v3703_v54 = vadd.f32 1.0, %v9442_v42  ;;  %v3504_v20 = vpop.f32.mrf.mxu1 }
 0x3a1   : > { %9455 = vpow2.f32 %v7401_v13  ;;  %v3580_v9 = vadd.f32 %v13285_v12, %v3503_v34  ;;  %v13445_v21 = vsel %vm3849_vm3, %v3806_v15, %v3865_v26 }
 0x3a2   : > { %v13447_v1 = vpop.eup %9443  ;;  %9457 = vrcp.f32 %v3703_v54  ;;  %v3507_v0 = vpop.f32.mrf.mxu1  ;;  %4072 = vrot.lane.b32.xlu1 %v13445_v21, %s9684_s14 }
 0x3a3   : > { %17622 = vst [vmem:[#allocation178_spill] sm:$0xff] %v13447_v1  ;;  %v9446_v10 = vpop.eup %9445  ;;  %v7402_v8 = vmul.f32 -1.442695, %v3580_v9  ;;  %v3508_v16 = vadd.f32 %v3507_v0, %v13260_v2  ;;  %v3866_v49 = vrot.slane %v13447_v1, 7  ;;  %v3951_v43 = vrot.slane %v13447_v1, 5 }
 0x3a4   : > { %v3704_v30 = vadd.f32 1.0, %v9446_v10  ;;  %v3509_v60 = vpop.f32.mrf.mxu1 }
 0x3a5   : > { %9459 = vpow2.f32 %v7402_v8  ;;  %v3581_v3 = vadd.f32 %v13285_v12, %v3508_v16  ;;  %v13456_v35 = vsel %vm3849_vm3, %v3865_v26, %v3866_v49  ;;  %v13459_v45 = vsel %vm3849_vm3, %v3866_v49, %v3951_v43 }
 0x3a6   : > { %v9448_v62 = vpop.eup %9447  ;;  %9461 = vrcp.f32 %v3704_v30  ;;  %v3510_v27 = vpop.f32.mrf.mxu1  ;;  %4074 = vrot.lane.b32.xlu0 %v13456_v35, %s9684_s14  ;;  %4076 = vrot.lane.b32.xlu1 %v13459_v45, %s9684_s14 }
 0x3a7   : > { %v13465_v2 = vpop.eup %9449  ;;  %v3705_v44 = vadd.f32 1.0, %v9448_v62  ;;  %v7403_v42 = vmul.f32 -1.442695, %v3581_v3  ;;  %v3511_v13 = vadd.f32 %v3510_v27, %v13264_v40 }
 0x3a8   : > { %17623 = vst [vmem:[#allocation180_spill] sm:$0xff] %v13465_v2  ;;  %v3512_v34 = vpop.f32.mrf.mxu1  ;;  %v3807_v15 = vrot.slane %v13465_v2, 1  ;;  %v3868_v26 = vrot.slane %v13465_v2, 7 }
 0x3a9   : > { %9463 = vrcp.f32 %v3705_v44  ;;  %v3582_v54 = vadd.f32 %v13285_v12, %v3511_v13 }
 0x3aa   : > { %v9452_v20 = vpop.eup %9451  ;;  %9465 = vpow2.f32 %v7403_v42  ;;  %v3515_v9 = vpop.f32.mrf.mxu1  ;;  %v13472_v0 = vsel %vm3849_vm3, %v3807_v15, %v3868_v26 }
 0x3ab   : > { %v13474_v10 = vpop.eup %9453  ;;  %v3706_v8 = vadd.f32 1.0, %v9452_v20  ;;  %v7404_v16 = vmul.f32 -1.442695, %v3582_v54  ;;  %v3516_v40 = vadd.f32 %v13258_v17, %v3515_v9  ;;  %4078 = vrot.lane.b32.xlu0 %v13472_v0, %s9684_s14 }
 0x3ac   : > { %17624 = vst [vmem:[#allocation181_spill] sm:$0xff] %v13474_v10  ;;  %v3517_v49 = vpop.f32.mrf.mxu1  ;;  %v3869_v43 = vrot.slane %v13474_v10, 7  ;;  %v3952_v30 = vrot.slane %v13474_v10, 5 }
 0x3ad   : > { %9467 = vrcp.f32 %v3706_v8  ;;  %v3583_v60 = vadd.f32 %v13285_v12, %v3516_v40 }
 0x3ae   : > { %v9456_v3 = vpop.eup %9455  ;;  %9469 = vpow2.f32 %v7404_v16  ;;  %v3518_v62 = vpop.f32.mrf.mxu1  ;;  %v13483_v27 = vsel %vm3849_vm3, %v3869_v43, %v3952_v30  ;;  %v13486_v44 = vsel %vm3849_vm3, %v3868_v26, %v3869_v43 }
 0x3af   : > { %v13488_v17 = vpop.eup %9457  ;;  %v3707_v42 = vadd.f32 1.0, %v9456_v3  ;;  %v7405_v13 = vmul.f32 -1.442695, %v3583_v60  ;;  %v3519_v34 = vadd.f32 %v13262_v23, %v3518_v62  ;;  %4082 = vrot.lane.b32.xlu0 %v13483_v27, %s9684_s14  ;;  %4080 = vrot.lane.b32.xlu1 %v13486_v44, %s9684_s14 }
 0x3b0   : > { %17625 = vst [vmem:[#allocation182_spill] sm:$0xff] %v13488_v17  ;;  %v3520_v15 = vpop.f32.mrf.mxu1  ;;  %v3808_v54 = vrot.slane %v13488_v17, 1  ;;  %v3871_v20 = vrot.slane %v13488_v17, 7 }
 0x3b1   : > { %9471 = vrcp.f32 %v3707_v42  ;;  %v3584_v26 = vadd.f32 %v13285_v12, %v3519_v34 }
 0x3b2   : > { %v9460_v9 = vpop.eup %9459  ;;  %9473 = vpow2.f32 %v7405_v13  ;;  %v3523_v8 = vpop.f32.mrf.mxu1  ;;  %v13499_v16 = vsel %vm3849_vm3, %v3808_v54, %v3871_v20 }
 0x3b3   : > { %v13501_v23 = vpop.eup %9461  ;;  %v3708_v40 = vadd.f32 1.0, %v9460_v9  ;;  %v7406_v49 = vmul.f32 -1.442695, %v3584_v26  ;;  %v3524_v43 = vadd.f32 %v3523_v8, %v13268_v37  ;;  %4084 = vrot.lane.b32.xlu1 %v13499_v16, %s9684_s14 }
 0x3b4   : > { %17626 = vst [vmem:[#allocation183_spill] sm:$0xff] %v13501_v23  ;;  %v3525_v30 = vpop.f32.mrf.mxu1  ;;  %v3872_v60 = vrot.slane %v13501_v23, 7  ;;  %v3953_v3 = vrot.slane %v13501_v23, 5 }
 0x3b5   : > { %9475 = vrcp.f32 %v3708_v40  ;;  %v3585_v62 = vadd.f32 %v13285_v12, %v3524_v43 }
 0x3b6   : > { %v13509_v42 = vpop.eup %9463  ;;  %9477 = vpow2.f32 %v7406_v49  ;;  %v3526_v13 = vpop.f32.mrf.mxu1  ;;  %v13512_v34 = vsel %vm3849_vm3, %v3871_v20, %v3872_v60  ;;  %v13515_v37 = vsel %vm3849_vm3, %v3872_v60, %v3953_v3 }
 0x3b7   : > { %17627 = vst [vmem:[#allocation184_spill] sm:$0xff] %v13509_v42  ;;  %v9466_v15 = vpop.eup %9465  ;;  %v7407_v54 = vmul.f32 -1.442695, %v3585_v62  ;;  %v3527_v26 = vadd.f32 %v3526_v13, %v13272_v58  ;;  %4086 = vrot.lane.b32.xlu0 %v13512_v34, %s9684_s14  ;;  %4088 = vrot.lane.b32.xlu1 %v13515_v37, %s9684_s14  ;;  %v3809_v9 = vrot.slane %v13509_v42, 1  ;;  %v3874_v8 = vrot.slane %v13509_v42, 7 }
 0x3b8   : > { %v3709_v40 = vadd.f32 1.0, %v9466_v15  ;;  %v3528_v20 = vpop.f32.mrf.mxu1 }
 0x3b9   : > { %9479 = vpow2.f32 %v7407_v54  ;;  %v3586_v49 = vadd.f32 %v13285_v12, %v3527_v26  ;;  %v13526_v43 = vsel %vm3849_vm3, %v3809_v9, %v3874_v8 }
 0x3ba   : > { %v13528_v30 = vpop.eup %9467  ;;  %9481 = vrcp.f32 %v3709_v40  ;;  %v3531_v58 = vpop.f32.mrf.mxu1 }
 0x3bb   : > { %17628 = vst [vmem:[#allocation185_spill] sm:$0xff] %v13528_v30  ;;  %v9470_v60 = vpop.eup %9469  ;;  %v7408_v3 = vmul.f32 -1.442695, %v3586_v49  ;;  %v3532_v62 = vadd.f32 %v13266_v28, %v3531_v58  ;;  %4090 = vrot.lane.b32.xlu0 %v13526_v43, %s9684_s14  ;;  %v3875_v13 = vrot.slane %v13528_v30, 7  ;;  %v3954_v15 = vrot.slane %v13528_v30, 5 }
 0x3bc   : > { %v3710_v54 = vadd.f32 1.0, %v9470_v60  ;;  %v3533_v26 = vpop.f32.mrf.mxu1 }
 0x3bd   : > { %9483 = vpow2.f32 %v7408_v3  ;;  %v3587_v9 = vadd.f32 %v13285_v12, %v3532_v62  ;;  %v13537_v20 = vsel %vm3849_vm3, %v3875_v13, %v3954_v15  ;;  %v13540_v40 = vsel %vm3849_vm3, %v3874_v8, %v3875_v13 }
 0x3be   : > { %v13542_v49 = vpop.eup %9471  ;;  %9485 = vrcp.f32 %v3710_v54  ;;  %v3534_v28 = vpop.f32.mrf.mxu1  ;;  %4092 = vrot.lane.b32.xlu1 %v13540_v40, %s9684_s14 }
 0x3bf   : > { %17629 = vst [vmem:[#allocation186_spill] sm:$0xff] %v13542_v49  ;;  %v9474_v58 = vpop.eup %9473  ;;  %v7409_v30 = vmul.f32 -1.442695, %v3587_v9  ;;  %v3535_v60 = vadd.f32 %v13270_v31, %v3534_v28  ;;  %4094 = vrot.lane.b32.xlu0 %v13537_v20, %s9684_s14  ;;  %v3810_v3 = vrot.slane %v13542_v49, 1  ;;  %v3877_v62 = vrot.slane %v13542_v49, 7 }
 0x3c0   : > { %v3711_v8 = vadd.f32 1.0, %v9474_v58  ;;  %v3536_v13 = vpop.f32.mrf.mxu1 }
 0x3c1   : > { %9487 = vpow2.f32 %v7409_v30  ;;  %v3588_v15 = vadd.f32 %v13285_v12, %v3535_v60  ;;  %v13553_v54 = vsel %vm3849_vm3, %v3810_v3, %v3877_v62 }
 0x3c2   : > { %v13555_v26 = vpop.eup %9475  ;;  %9489 = vrcp.f32 %v3711_v8  ;;  %v3539_v9 = vpop.f32.mrf.mxu1  ;;  %4096 = vrot.lane.b32.xlu1 %v13553_v54, %s9684_s14 }
 0x3c3   : > { %17630 = vst [vmem:[#allocation187_spill] sm:$0xff] %v13555_v26  ;;  %v9478_v31 = vpop.eup %9477  ;;  %v7410_v28 = vmul.f32 -1.442695, %v3588_v15  ;;  %v3540_v42 = vadd.f32 %v3539_v9, %v13276_v6  ;;  %v3878_v58 = vrot.slane %v13555_v26, 7  ;;  %v3955_v30 = vrot.slane %v13555_v26, 5 }
 0x3c4   : > { %v3712_v13 = vadd.f32 1.0, %v9478_v31  ;;  %v3541_v60 = vpop.f32.mrf.mxu1 }
 0x3c5   : > { %9491 = vpow2.f32 %v7410_v28  ;;  %v3589_v3 = vadd.f32 %v13285_v12, %v3540_v42  ;;  %v13564_v49 = vsel %vm3849_vm3, %v3877_v62, %v3878_v58  ;;  %v13567_v8 = vsel %vm3849_vm3, %v3878_v58, %v3955_v30 }
 0x3c6   : > { %v9480_v23 = vpop.eup %9479  ;;  %9493 = vrcp.f32 %v3712_v13  ;;  %v3542_v15 = vpop.f32.mrf.mxu1  ;;  %4098 = vrot.lane.b32.xlu0 %v13564_v49, %s9684_s14  ;;  %4100 = vrot.lane.b32.xlu1 %v13567_v8, %s9684_s14 }
 0x3c7   : > { %v13573_v6 = vpop.eup %9481  ;;  %v3713_v9 = vadd.f32 1.0, %v9480_v23  ;;  %v7411_v31 = vmul.f32 -1.442695, %v3589_v3  ;;  %v3543_v42 = vadd.f32 %v3542_v15, %v13280_v11 }
 0x3c8   : > { %17631 = vst [vmem:[#allocation188_spill] sm:$0xff] %v13573_v6  ;;  %v3544_v62 = vpop.f32.mrf.mxu1  ;;  %v3811_v28 = vrot.slane %v13573_v6, 1  ;;  %v3880_v58 = vrot.slane %v13573_v6, 7 }
 0x3c9   : > { %9495 = vrcp.f32 %v3713_v9  ;;  %v3590_v30 = vadd.f32 %v13285_v12, %v3543_v42 }
 0x3ca   : > { %v9484_v13 = vpop.eup %9483  ;;  %9497 = vpow2.f32 %v7411_v31  ;;  %v3547_v60 = vpop.f32.mrf.mxu1  ;;  %v13580_v26 = vsel %vm3849_vm3, %v3811_v28, %v3880_v58 }
 0x3cb   : > { %v13582_v17 = vpop.eup %9485  ;;  %v3714_v23 = vadd.f32 1.0, %v9484_v13  ;;  %v7412_v3 = vmul.f32 -1.442695, %v3590_v30  ;;  %v3548_v11 = vadd.f32 %v13274_v48, %v3547_v60  ;;  %4102 = vrot.lane.b32.xlu0 %v13580_v26, %s9684_s14 }
 0x3cc   : > { %17632 = vst [vmem:[#allocation104_spill] sm:$0xff] %v13582_v17  ;;  %v3549_v15 = vpop.f32.mrf.mxu1  ;;  %v3881_v9 = vrot.slane %v13582_v17, 7  ;;  %v3956_v42 = vrot.slane %v13582_v17, 5 }
 0x3cd   : > { %9499 = vrcp.f32 %v3714_v23  ;;  %v3591_v31 = vadd.f32 %v13285_v12, %v3548_v11 }
 0x3ce   : > { %v9488_v62 = vpop.eup %9487  ;;  %9501 = vpow2.f32 %v7412_v3  ;;  %v3550_v28 = vpop.f32.mrf.mxu1  ;;  %v13591_v6 = vsel %vm3849_vm3, %v3881_v9, %v3956_v42  ;;  %v13594_v30 = vsel %vm3849_vm3, %v3880_v58, %v3881_v9 }
 0x3cf   : > { %v13596_v48 = vpop.eup %9489  ;;  %v3715_v13 = vadd.f32 1.0, %v9488_v62  ;;  %v7413_v60 = vmul.f32 -1.442695, %v3591_v31  ;;  %v3551_v15 = vadd.f32 %v13278_v4, %v3550_v28  ;;  %4106 = vrot.lane.b32.xlu0 %v13591_v6, %s9684_s14  ;;  %4104 = vrot.lane.b32.xlu1 %v13594_v30, %s9684_s14 }
 0x3d0   : > { %17633 = vst [vmem:[#allocation110_spill] sm:$0xff] %v13596_v48  ;;  %v3552_v23 = vpop.f32.mrf.mxu1  ;;  %v3812_v3 = vrot.slane %v13596_v48, 1  ;;  %v3883_v11 = vrot.slane %v13596_v48, 7 }
 0x3d1   : > { %9503 = vrcp.f32 %v3715_v13  ;;  %v3592_v58 = vadd.f32 %v13285_v12, %v3551_v15 }
 0x3d2   : > { %v9492_v9 = vpop.eup %9491  ;;  %9505 = vpow2.f32 %v7413_v60  ;;  %v13607_v42 = vsel %vm3849_vm3, %v3812_v3, %v3883_v11 }
 0x3d3   : > { %v13609_v4 = vpop.eup %9493  ;;  %v3716_v31 = vadd.f32 1.0, %v9492_v9  ;;  %v7414_v62 = vmul.f32 -1.442695, %v3592_v58  ;;  %4108 = vrot.lane.b32.xlu1 %v13607_v42, %s9684_s14 }
 0x3d4   : > { %17634 = vst [vmem:[#allocation147_spill] sm:$0xff] %v13609_v4  ;;  %v3884_v28 = vrot.slane %v13609_v4, 7  ;;  %v3957_v23 = vrot.slane %v13609_v4, 5 }
 0x3d5   : > { %9507 = vrcp.f32 %v3716_v31 }
 0x3d6   : > { %v13615_v13 = vpop.eup %9495  ;;  %9509 = vpow2.f32 %v7414_v62  ;;  %v13618_v12 = vsel %vm3849_vm3, %v3883_v11, %v3884_v28  ;;  %v13621_v60 = vsel %vm3849_vm3, %v3884_v28, %v3957_v23 }
 0x3d7   : > { %17635 = vst [vmem:[#allocation148_spill] sm:$0xff] %v13615_v13  ;;  %v9498_v15 = vpop.eup %9497  ;;  %4110 = vrot.lane.b32.xlu0 %v13618_v12, %s9684_s14  ;;  %4112 = vrot.lane.b32.xlu1 %v13621_v60, %s9684_s14  ;;  %v3813_v3 = vrot.slane %v13615_v13, 1  ;;  %v3886_v58 = vrot.slane %v13615_v13, 7 }
 0x3d8   : > { %v3717_v9 = vadd.f32 1.0, %v9498_v15 }
 0x3d9   : > { %v13630_v31 = vsel %vm3849_vm3, %v3813_v3, %v3886_v58 }
 0x3da   : > { %v13632_v11 = vpop.eup %9499  ;;  %9511 = vrcp.f32 %v3717_v9 }
 0x3db   : > { %17636 = vst [vmem:[#allocation179_spill] sm:$0xff] %v13632_v11  ;;  %v9502_v62 = vpop.eup %9501  ;;  %4114 = vrot.lane.b32.xlu0 %v13630_v31, %s9684_s14  ;;  %v3887_v28 = vrot.slane %v13632_v11, 7  ;;  %v3958_v23 = vrot.slane %v13632_v11, 5 }
 0x3dc   : > { %v3718_v4 = vadd.f32 1.0, %v9502_v62 }
 0x3dd   : > { %v13639_v48 = vsel %vm3849_vm3, %v3887_v28, %v3958_v23  ;;  %v13642_v15 = vsel %vm3849_vm3, %v3886_v58, %v3887_v28 }
 0x3de   : > { %v13644_v3 = vpop.eup %9503  ;;  %9513 = vrcp.f32 %v3718_v4  ;;  %4116 = vrot.lane.b32.xlu1 %v13642_v15, %s9684_s14 }
 0x3df   : > { %17637 = vst [vmem:[#allocation189_spill] sm:$0xff] %v13644_v3  ;;  %v9506_v9 = vpop.eup %9505  ;;  %4118 = vrot.lane.b32.xlu0 %v13639_v48, %s9684_s14  ;;  %v3814_v13 = vrot.slane %v13644_v3, 1  ;;  %v3889_v62 = vrot.slane %v13644_v3, 7 }
 0x3e0   : > { %v3719_v11 = vadd.f32 1.0, %v9506_v9 }
 0x3e1   : > { %v13653_v23 = vsel %vm3849_vm3, %v3814_v13, %v3889_v62 }
 0x3e2   : > { %17638 = vst [vmem:[#allocation190_spill] sm:$0xff] %v13653_v23  ;;  %v13655_v58 = vpop.eup %9507  ;;  %9515 = vrcp.f32 %v3719_v11  ;;  %4120 = vrot.lane.b32.xlu1 %v13653_v23, %s9684_s14 }
 0x3e3   : > { %17639 = vst [vmem:[#allocation191_spill] sm:$0xff] %v13655_v58  ;;  %v9510_v4 = vpop.eup %9509  ;;  %v3890_v28 = vrot.slane %v13655_v58, 7  ;;  %v3959_v17 = vrot.slane %v13655_v58, 5 }
 0x3e4   : > { %v3720_v10 = vadd.f32 1.0, %v9510_v4 }
 0x3e5   : > { %v13662_v2 = vsel %vm3849_vm3, %v3889_v62, %v3890_v28  ;;  %v13665_v9 = vsel %vm3849_vm3, %v3890_v28, %v3959_v17 }
 0x3e6   : > { %17640 = vst [vmem:[#allocation192_spill] sm:$0xff] %v13662_v2  ;;  %17641 = vst [vmem:[#allocation155_spill] sm:$0xff] %v13665_v9  ;;  %9517 = vrcp.f32 %v3720_v10  ;;  %4122 = vrot.lane.b32.xlu0 %v13662_v2, %s9684_s14  ;;  %4124 = vrot.lane.b32.xlu1 %v13665_v9, %s9684_s14 }
 0x3e7   : > { %v13671_v13 = vpop.eup %9511 }
 0x3e8   : > { %17642 = vst [vmem:[#allocation193_spill] sm:$0xff] %v13671_v13  ;;  %v3815_v11 = vrot.slane %v13671_v13, 1  ;;  %v3892_v58 = vrot.slane %v13671_v13, 7 }
 0x3ea   : > { %v13676_v4 = vsel %vm3849_vm3, %v3815_v11, %v3892_v58 }
 0x3eb   : > { %17643 = vst [vmem:[#allocation194_spill] sm:$0xff] %v13676_v4  ;;  %v13678_v62 = vpop.eup %9513  ;;  %4126 = vrot.lane.b32.xlu0 %v13676_v4, %s9684_s14 }
 0x3ec   : > { %17644 = vst [vmem:[#allocation123_spill] sm:$0xff] %v13678_v62  ;;  %v3893_v10 = vrot.slane %v13678_v62, 7  ;;  %v3960_v17 = vrot.slane %v13678_v62, 5 }
 0x3ee   : > { %v13685_v28 = vsel %vm3849_vm3, %v3893_v10, %v3960_v17  ;;  %v13688_v3 = vsel %vm3849_vm3, %v3892_v58, %v3893_v10 }
 0x3ef   : > { %17645 = vst [vmem:[#allocation152_spill] sm:$0xff] %v13685_v28  ;;  %17646 = vst [vmem:[#allocation164_spill] sm:$0xff] %v13688_v3  ;;  %v13690_v1 = vpop.eup %9515  ;;  %4130 = vrot.lane.b32.xlu0 %v13685_v28, %s9684_s14  ;;  %4128 = vrot.lane.b32.xlu1 %v13688_v3, %s9684_s14  ;;  %v9593_v3 = vld [vmem:[%s9761_s22 + $0x18] sm:$0xff] }
 0x3f0   : > { %17647 = vst [vmem:[#allocation156_spill] sm:$0xff] %v13690_v1  ;;  %v3816_v11 = vrot.slane %v13690_v1, 1  ;;  %v3895_v13 = vrot.slane %v13690_v1, 7 }
 0x3f2   : > { %v13699_v17 = vsel %vm3849_vm3, %v3816_v11, %v3895_v13 }
 0x3f3   : > { %17648 = vst [vmem:[#allocation158_spill] sm:$0xff] %v13699_v17  ;;  %v13701_v62 = vpop.eup %9517  ;;  %4132 = vrot.lane.b32.xlu1 %v13699_v17, %s9684_s14 }
 0x3f4   : > { %17649 = vst [vmem:[#allocation159_spill] sm:$0xff] %v13701_v62  ;;  %v4043_v58 = vpop.permute.xlu0 %4042  ;;  %v3896_v10 = vrot.slane %v13701_v62, 7  ;;  %v3961_v57 = vrot.slane %v13701_v62, 5 }
 0x3f5   : > { %v4186_v56 = vsel %vm2794_vm4, %v4043_v58, %v13321_v22  ;;  %v9587_v22 = vld [vmem:[%s9761_s22] sm:$0xff] }
 0x3f6   : > { %v13710_v1 = vsel %vm3849_vm3, %v3895_v13, %v3896_v10  ;;  %v13713_v11 = vsel %vm3849_vm3, %v3896_v10, %v3961_v57  ;;  %v13720_v62 = vmul.f32 %v9586_v50, %v4186_v56  ;;  %v13723_v58 = vmul.f32 %v9587_v22, %v4186_v56  ;;  %v9588_v10 = vld [vmem:[%s9761_s22 + $0x8] sm:$0xff] }
 0x3f7   : > { %17650 = vst [vmem:[#allocation196_spill] sm:$0xff] %v13710_v1  ;;  %17651 = vst [vmem:[#allocation151_spill] sm:$0xff] %v13713_v11  ;;  %4134 = vrot.lane.b32.xlu0 %v13710_v1, %s9684_s14  ;;  %4136 = vrot.lane.b32.xlu1 %v13713_v11, %s9684_s14  ;;  %v9592_v1 = vld [vmem:[%s9761_s22 + $0x20] sm:$0xff] }
 0x3f8   : > { %17652 = vst [vmem:[#allocation154_spill] sm:$0xff] %v13720_v62  ;;  %v4045_v61 = vpop.permute.xlu1 %4044  ;;  %v4047_v53 = vpop.permute.xlu0 %4046  ;;  %17653 = vst [vmem:[#allocation162_spill] sm:$0xff] %v13723_v58  ;;  %v4416_v2 = vrot.slane %v13723_v58, 2 }
 0x3f9   : > { %v4187_v13 = vsel %vm2794_vm4, %v4045_v61, %v13333_v51  ;;  %v4188_v57 = vsel %vm2794_vm4, %v4047_v53, %v13336_v7  ;;  %v4426_v7 = vrot.slane %v13720_v62, 2  ;;  %v4336_v53 = vrot.slane %v13723_v58, 1 }
 0x3fa   : > { %v13730_v19 = vmul.f32 %v9588_v10, %v4187_v13  ;;  %v13733_v39 = vmul.f32 %v9589_v46, %v4187_v13  ;;  %v13736_v50 = vmul.f32 %v9590_v25, %v4188_v57  ;;  %v4242_v47 = vmul.f32 %v9591_v38, %v4188_v57 }
 0x3fc   : > { %17654 = vst [vmem:[#allocation166_spill] sm:$0xff] %v13730_v19  ;;  %17655 = vst [vmem:[#allocation157_spill] sm:$0xff] %v13733_v39  ;;  %v4337_v56 = vrot.slane %v13730_v19, 1  ;;  %v4427_v51 = vrot.slane %v13733_v39, 2  ;;  %v4051_v61 = vpop.permute.xlu0 %4050  ;;  %v4049_v22 = vpop.permute.xlu1 %4048  ;;  %v4347_v46 = vrot.slane %v13733_v39, 1  ;;  %v4339_v13 = vrot.slane %v13736_v50, 1 }
 0x3fd   : > { %v4429_v25 = vrot.slane %v4242_v47, 2  ;;  %v4349_v10 = vrot.slane %v4242_v47, 1  ;;  %v4190_v38 = vsel %vm2794_vm4, %v4051_v61, %v13312_v55  ;;  %v4189_v57 = vsel %vm2794_vm4, %v4049_v22, %v13346_v14 }
 0x3fe   : > { %v13750_v52 = vsel %vm685_vm1, %v4426_v7, %v4427_v51  ;;  %v13756_v17 = vmul.f32 %v9592_v1, %v4190_v38  ;;  %v13759_v28 = vmul.f32 %v9593_v3, %v4189_v57  ;;  %v4338_v47 = vsel %vm604_vm0, %v4336_v53, %v4337_v56  ;;  %v9594_v57 = vld [vmem:[%s9761_s22 + $0x48] sm:$0xff] }
 0x3ff   : > { %v13753_v11 = vsel %vm685_vm1, %v4427_v51, %v4429_v25  ;;  %v4340_v22 = vsel %vm604_vm0, %v4337_v56, %v4339_v13  ;;  %v4346_v7 = vrot.slane %v13720_v62, 1  ;;  %v4350_v38 = vsel %vm604_vm0, %v4347_v46, %v4349_v10  ;;  %v9595_v13 = vld [vmem:[%s9761_s22 + $0x28] sm:$0x3] }
 0x400   : > { %17656 = vst [vmem:[#allocation160_spill] sm:$0xff] %v13756_v17  ;;  %17657 = vst [vmem:[#allocation161_spill] sm:$0xff] %v13759_v28  ;;  %v4055_v55 = vpop.permute.xlu0 %4054  ;;  %v4053_v61 = vpop.permute.xlu1 %4052  ;;  %v5451_v14 = vpack.c.bf16 %v13753_v11, %v13750_v52  ;;  %v4342_v51 = vrot.slane %v13756_v17, 1  ;;  %v4341_v1 = vrot.slane %v13759_v28, 1  ;;  %v8805_v53 = vpack.i.bf16 %v4340_v22, %v4338_v47 }
 0x401   : > { %v4192_v3 = vsel %vm2794_vm4, %v4055_v55, %v13363_v59  ;;  %v4191_v25 = vsel %vm2794_vm4, %v4053_v61, %v13368_v33  ;;  %v4348_v9 = vsel %vm604_vm0, %v4346_v7, %v4347_v46  ;;  %v4417_v59 = vrot.slane %v13730_v19, 2  ;;  %v9596_v46 = vld [vmem:[%s9761_s22 + $0x58] sm:$0x3] }
 0x402   : > { %7443 = vmatprep.mubr.msk.bf16.mxu0 %vm1496_vm6, %v5451_v14  ;;  %v13775_v56 = vmul.f32 %v9594_v57, %v4192_v3  ;;  %v4239_v4 = vmul.f32 %v9595_v13, %v4191_v25  ;;  %v4422_v33 = vrot.slane %v13756_v17, 2  ;;  %8806 = vrot.lane.b32.xlu0 %v8805_v53, %s9670_s23  ;;  %v4421_v10 = vrot.slane %v13759_v28, 2  ;;  %v9597_v3 = vld [vmem:[%s9761_s22 + $0x50] sm:$0xff] }
 0x403   : > { %v13792_v57 = vpack.i.bf16 %v4350_v38, %v4348_v9  ;;  %v4343_v53 = vsel %vm604_vm0, %v4341_v1, %v4342_v51  ;;  %v4419_v38 = vrot.slane %v13736_v50, 2 }
 0x404   : > { %17658 = vst [vmem:[#allocation195_spill] sm:$0xff] %v13775_v56  ;;  %v4059_v47 = vpop.permute.xlu0 %4058  ;;  %v4057_v55 = vpop.permute.xlu1 %4056  ;;  %v4344_v61 = vrot.slane %v4239_v4, 1  ;;  %v4424_v13 = vrot.slane %v4239_v4, 2  ;;  %v4351_v19 = vrot.slane %v13775_v56, 1 }
 0x405   : > { %v4194_v14 = vsel %vm2794_vm4, %v4059_v47, %v13378_v63  ;;  %v4193_v22 = vsel %vm2794_vm4, %v4057_v55, %v13381_v32 }
 0x406   : > { %v4245_v7 = vmul.f32 %v9596_v46, %v4194_v14  ;;  %v13790_v25 = vmul.f32 %v9597_v3, %v4193_v22  ;;  %v4345_v58 = vsel %vm604_vm0, %v4342_v51, %v4344_v61  ;;  %8816 = vrot.lane.b32.xlu0 %v13792_v57, %s9670_s23  ;;  %v4431_v51 = vrot.slane %v13775_v56, 2  ;;  %v9598_v14 = vld [vmem:[%s9761_s22 + $0x60] sm:$0xff]  ;;  %v9599_v46 = vld [vmem:[%s9761_s22 + $0x68] sm:$0xff] }
 0x407   : > { %v13799_v47 = vpack.i.bf16 %v4345_v58, %v4343_v53  ;;  %v4423_v3 = vsel %vm685_vm1, %v4421_v10, %v4422_v33 }
 0x408   : > { %17659 = vst [vmem:[#allocation163_spill] sm:$0xff] %v13790_v25  ;;  %v4354_v23 = vrot.slane %v4245_v7, 1  ;;  %v4434_v63 = vrot.slane %v4245_v7, 2  ;;  %v4061_v32 = vpop.permute.xlu1 %4060  ;;  %v4352_v9 = vrot.slane %v13790_v25, 1  ;;  %v4432_v55 = vrot.slane %v13790_v25, 2 }
 0x409   : > { %v4063_v1 = vpop.permute.xlu0 %4062  ;;  %v4195_v4 = vsel %vm2794_vm4, %v4061_v32, %v13396_v36  ;;  %8811 = vrot.lane.b32.xlu1 %v13799_v47, %s9670_s23 }
 0x40a   : > { %v4196_v61 = vsel %vm2794_vm4, %v4063_v1, %v13402_v41  ;;  %v13810_v22 = vmul.f32 %v9598_v14, %v4195_v4  ;;  %v4353_v58 = vsel %vm604_vm0, %v4351_v19, %v4352_v9  ;;  %v4355_v50 = vsel %vm604_vm0, %v4352_v9, %v4354_v23 }
 0x40b   : > { %v13817_v36 = vmul.f32 %v9599_v46, %v4196_v61  ;;  %v13819_v7 = vpack.i.bf16 %v4355_v50, %v4353_v58  ;;  %v4425_v41 = vsel %vm685_vm1, %v4422_v33, %v4424_v13  ;;  %v13825_v1 = vsel %vm685_vm1, %v4431_v51, %v4432_v55  ;;  %v9600_v13 = vld [vmem:[%s9761_s22 + $0x70] sm:$0x3]  ;;  %v9601_v51 = vld [vmem:[%s9761_s22 + $0x78] sm:$0xff] }
 0x40c   : > { %17660 = vst [vmem:[#allocation149_spill] sm:$0xff] %v13810_v22  ;;  %v4065_v53 = vpop.permute.xlu1 %4064  ;;  %v4356_v32 = vrot.slane %v13810_v22, 1  ;;  %17662 = vst [vmem:[#allocation153_spill] sm:$0xff] %v13825_v1  ;;  %v13828_v19 = vsel %vm685_vm1, %v4432_v55, %v4434_v63  ;;  %v4436_v61 = vrot.slane %v13810_v22, 2  ;;  %v13840_v63 = vpack.i.bf16 %v4425_v41, %v4423_v3 }
 0x40d   : > { %17661 = vst [vmem:[#allocation150_spill] sm:$0xff] %v13817_v36  ;;  %17663 = vst [vmem:[#allocation165_spill] sm:$0xff] %v13828_v19  ;;  %v4067_v23 = vpop.permute.xlu0 %4066  ;;  %v4357_v9 = vrot.slane %v13817_v36, 1  ;;  %v4437_v4 = vrot.slane %v13817_v36, 2  ;;  %v4197_v10 = vsel %vm2794_vm4, %v4065_v53, %v13416_v29  ;;  %8821 = vrot.lane.b32.xlu1 %v13819_v7, %s9670_s23  ;;  %v4418_v58 = vsel %vm685_vm1, %v4416_v2, %v4417_v59 }
 0x40e   : > { %v4198_v33 = vsel %vm2794_vm4, %v4067_v23, %v13413_v18  ;;  %v4248_v14 = vmul.f32 %v9600_v13, %v4197_v10  ;;  %v4420_v29 = vsel %vm685_vm1, %v4417_v59, %v4419_v38  ;;  %v13849_v50 = vpack.i.bf16 %v13753_v11, %v13750_v52  ;;  %v9602_v10 = vld [vmem:[%s9761_s22 + $0x80] sm:$0xff] }
 0x40f   : > { %v13843_v55 = vmul.f32 %v9601_v51, %v4198_v33  ;;  %v13853_v3 = vpack.i.bf16 %v13828_v19, %v13825_v1  ;;  %v4358_v2 = vsel %vm604_vm0, %v4356_v32, %v4357_v9  ;;  %v13859_v59 = vsel %vm685_vm1, %v4436_v61, %v4437_v4 }
 0x410   : > { %v4359_v18 = vrot.slane %v4248_v14, 1  ;;  %v4439_v46 = vrot.slane %v4248_v14, 2  ;;  %v4069_v53 = vpop.permute.xlu1 %4068  ;;  %17665 = vst [vmem:[#allocation4_spill] sm:$0xff] %v13859_v59 }
 0x411   : > { %17664 = vst [vmem:[#allocation50_spill] sm:$0xff] %v13843_v55  ;;  %v4071_v41 = vpop.permute.xlu0 %4070  ;;  %v4199_v23 = vsel %vm2794_vm4, %v4069_v53, %v13432_v5  ;;  %8836 = vrot.lane.b32.xlu1 %v13840_v63, %s9671_s24  ;;  %v9603_v5 = vld [vmem:[%s9761_s22 + $0x88] sm:$0x3]  ;;  %v4361_v61 = vrot.slane %v13843_v55, 1  ;;  %v4441_v14 = vrot.slane %v13843_v55, 2 }
 0x412   : > { %v4360_v38 = vsel %vm604_vm0, %v4357_v9, %v4359_v18  ;;  %v13863_v52 = vsel %vm685_vm1, %v4437_v4, %v4439_v46  ;;  %v4200_v11 = vsel %vm2794_vm4, %v4071_v41, %v13429_v24  ;;  %v13868_v33 = vmul.f32 %v9602_v10, %v4199_v23 }
 0x413   : > { %17666 = vst [vmem:[#allocation65_spill] sm:$0xff] %v13863_v52  ;;  %v4251_v32 = vmul.f32 %v9603_v5, %v4200_v11  ;;  %v13873_v13 = vpack.i.bf16 %v4360_v38, %v4358_v2  ;;  %v13881_v51 = vpack.i.bf16 %v13863_v52, %v13859_v59  ;;  %v8830_v41 = vpack.i.bf16 %v4420_v29, %v4418_v58  ;;  %v9604_v38 = vld [vmem:[%s9761_s22 + $0x90] sm:$0xff] }
 0x414   : > { %17667 = vst [vmem:[#allocation3_spill] sm:$0xff] %v13868_v33  ;;  %v4073_v9 = vpop.permute.xlu1 %4072  ;;  %v4362_v4 = vrot.slane %v13868_v33, 1  ;;  %v4442_v24 = vrot.slane %v13868_v33, 2 }
 0x415   : > { %v4364_v18 = vrot.slane %v4251_v32, 1  ;;  %v4444_v46 = vrot.slane %v4251_v32, 2  ;;  %v4201_v53 = vsel %vm2794_vm4, %v4073_v9, %v13445_v21  ;;  %8826 = vrot.lane.b32.xlu0 %v13873_v13, %s9670_s23 }
 0x416   : > { %v4363_v23 = vsel %vm604_vm0, %v4361_v61, %v4362_v4  ;;  %v13889_v2 = vsel %vm685_vm1, %v4441_v14, %v4442_v24  ;;  %v13892_v11 = vmul.f32 %v9604_v38, %v4201_v53 }
 0x417   : > { %17668 = vst [vmem:[#allocation82_spill] sm:$0xff] %v13889_v2  ;;  %v4365_v10 = vsel %vm604_vm0, %v4362_v4, %v4364_v18  ;;  %v13896_v5 = vsel %vm685_vm1, %v4442_v24, %v4444_v46  ;;  %v9605_v4 = vld [vmem:[%s9761_s22 + $0x98] sm:$0xff]  ;;  %v9606_v24 = vld [vmem:[%s9761_s22 + $0xa0] sm:$0x3] }
 0x418   : > { %17669 = vst [vmem:[#allocation112_spill] sm:$0xff] %v13892_v11  ;;  %17670 = vst [vmem:[#allocation19_spill] sm:$0xff] %v13896_v5  ;;  %v4075_v21 = vpop.permute.xlu0 %4074  ;;  %v4077_v32 = vpop.permute.xlu1 %4076  ;;  %v13898_v9 = vpack.i.bf16 %v4365_v10, %v4363_v23  ;;  %v13907_v61 = vpack.i.bf16 %v13896_v5, %v13889_v2  ;;  %v4366_v46 = vrot.slane %v13892_v11, 1 }
 0x419   : > { %v4202_v58 = vsel %vm2794_vm4, %v4075_v21, %v13456_v35  ;;  %v4203_v29 = vsel %vm2794_vm4, %v4077_v32, %v13459_v45  ;;  %8831 = vrot.lane.b32.xlu0 %v8830_v41, %s9671_s24  ;;  %v4446_v32 = vrot.slane %v13892_v11, 2  ;;  %v9607_v45 = vld [vmem:[%s9761_s22 + $0xa8] sm:$0xff] }
 0x41a   : > { %v13910_v14 = vmul.f32 %v9605_v4, %v4202_v58  ;;  %v4254_v18 = vmul.f32 %v9606_v24, %v4203_v29  ;;  %8846 = vrot.lane.b32.xlu1 %v13898_v9, %s9670_s23 }
 0x41c   : > { %17671 = vst [vmem:[#allocation20_spill] sm:$0xff] %v13910_v14  ;;  %v4367_v41 = vrot.slane %v13910_v14, 1  ;;  %v4447_v23 = vrot.slane %v13910_v14, 2  ;;  %v4369_v38 = vrot.slane %v4254_v18, 1  ;;  %v4449_v10 = vrot.slane %v4254_v18, 2 }
 0x41d   : > { %v4079_v21 = vpop.permute.xlu0 %4078  ;;  %8841 = vrot.lane.b32.xlu0 %v13849_v50, %s9671_s24 }
 0x41e   : > { %v4370_v58 = vsel %vm604_vm0, %v4367_v41, %v4369_v38  ;;  %v13929_v29 = vsel %vm685_vm1, %v4447_v23, %v4449_v10  ;;  %v4204_v4 = vsel %vm2794_vm4, %v4079_v21, %v13472_v0  ;;  %8851 = vrot.lane.b32.xlu1 %v13853_v3, %s9671_s24  ;;  %v4368_v24 = vsel %vm604_vm0, %v4366_v46, %v4367_v41  ;;  %v9608_v41 = vld [vmem:[%s9761_s22 + $0xb8] sm:$0x3] }
 0x41f   : > { %17672 = vst [vmem:[#allocation105_spill] sm:$0xff] %v13929_v29  ;;  %v13936_v18 = vpack.i.bf16 %v4370_v58, %v4368_v24  ;;  %v13939_v53 = vsel %vm685_vm1, %v4446_v32, %v4447_v23  ;;  %v13942_v38 = vmul.f32 %v9607_v45, %v4204_v4  ;;  %v9609_v32 = vld [vmem:[%s9761_s22 + $0xb0] sm:$0xff] }
 0x420   : > { %17673 = vst [vmem:[#allocation140_spill] sm:$0xff] %v13939_v53  ;;  %v13946_v10 = vpack.i.bf16 %v13929_v29, %v13939_v53 }
 0x421   : > { %17674 = vst [vmem:[#allocation35_spill] sm:$0xff] %v13942_v38  ;;  %v4083_v21 = vpop.permute.xlu0 %4082  ;;  %v4081_v35 = vpop.permute.xlu1 %4080  ;;  %8856 = vrot.lane.b32.xlu0 %v13936_v18, %s9670_s23  ;;  %v4371_v4 = vrot.slane %v13942_v38, 1  ;;  %v4451_v24 = vrot.slane %v13942_v38, 2 }
 0x422   : > { %v4206_v46 = vsel %vm2794_vm4, %v4083_v21, %v13483_v27  ;;  %v4205_v45 = vsel %vm2794_vm4, %v4081_v35, %v13486_v44  ;;  %8866 = vrot.lane.b32.xlu1 %v13907_v61, %s9671_s24  ;;  %v9610_v21 = vld [vmem:[%s9761_s22 + $0xc0] sm:$0xff] }
 0x423   : > { %v4257_v23 = vmul.f32 %v9608_v41, %v4206_v46  ;;  %v13960_v58 = vmul.f32 %v9609_v32, %v4205_v45 }
 0x425   : > { %17675 = vst [vmem:[#allocation64_spill] sm:$0xff] %v13960_v58  ;;  %v4374_v0 = vrot.slane %v4257_v23, 1  ;;  %v4454_v53 = vrot.slane %v4257_v23, 2  ;;  %v4085_v29 = vpop.permute.xlu1 %4084  ;;  %8861 = vrot.lane.b32.xlu0 %v13881_v51, %s9671_s24  ;;  %v4372_v27 = vrot.slane %v13960_v58, 1  ;;  %v4452_v44 = vrot.slane %v13960_v58, 2 }
 0x426   : > { %v4207_v35 = vsel %vm2794_vm4, %v4085_v29, %v13499_v16 }
 0x427   : > { %v13971_v46 = vmul.f32 %v9610_v21, %v4207_v35  ;;  %v4373_v45 = vsel %vm604_vm0, %v4371_v4, %v4372_v27  ;;  %v4375_v41 = vsel %vm604_vm0, %v4372_v27, %v4374_v0  ;;  %v13976_v23 = vsel %vm685_vm1, %v4451_v24, %v4452_v44  ;;  %v9611_v4 = vld [vmem:[%s9761_s22 + $0xc8] sm:$0xff]  ;;  %v9612_v27 = vld [vmem:[%s9761_s22 + $0xd0] sm:$0x3] }
 0x428   : > { %17677 = vst [vmem:[#allocation111_spill] sm:$0xff] %v13976_v23  ;;  %v13978_v32 = vpack.i.bf16 %v4375_v41, %v4373_v45  ;;  %v13981_v2 = vsel %vm685_vm1, %v4452_v44, %v4454_v53  ;;  %v14010_v41 = vpack.i.bf16 %v13733_v39, %v13720_v62  ;;  %v9637_v62 = vld [vmem:[%s9761_s22 + $0x180] sm:$0xff] }
 0x429   : > { %17676 = vst [vmem:[#allocation81_spill] sm:$0xff] %v13971_v46  ;;  %17678 = vst [vmem:[#allocation17_spill] sm:$0xff] %v13981_v2  ;;  %v4087_v5 = vpop.permute.xlu0 %4086  ;;  %v4089_v59 = vpop.permute.xlu1 %4088  ;;  %8871 = vrot.lane.b32.xlu0 %v13946_v10, %s9671_s24  ;;  %v13987_v16 = vpack.i.bf16 %v13981_v2, %v13976_v23  ;;  %v4376_v35 = vrot.slane %v13971_v46, 1 }
 0x42a   : > { %v4208_v29 = vsel %vm2794_vm4, %v4087_v5, %v13512_v34  ;;  %v4209_v0 = vsel %vm2794_vm4, %v4089_v59, %v13515_v37  ;;  %8876 = vrot.lane.b32.xlu1 %v13978_v32, %s9670_s23 }
 0x42b   : > { %v13998_v24 = vmul.f32 %v9611_v4, %v4208_v29  ;;  %v4260_v44 = vmul.f32 %v9612_v27, %v4209_v0  ;;  %v4456_v29 = vrot.slane %v13971_v46, 2  ;;  %v9613_v27 = vld [vmem:[%s9761_s22 + $0xd8] sm:$0xff] }
 0x42d   : > { %17679 = vst [vmem:[#allocation18_spill] sm:$0xff] %v13998_v24  ;;  %v4377_v21 = vrot.slane %v13998_v24, 1  ;;  %v4457_v34 = vrot.slane %v13998_v24, 2  ;;  %v4379_v5 = vrot.slane %v4260_v44, 1  ;;  %v4459_v37 = vrot.slane %v4260_v44, 2  ;;  %v4091_v59 = vpop.permute.xlu0 %4090 }
 0x42e   : > { %v4210_v45 = vsel %vm2794_vm4, %v4091_v59, %v13526_v43  ;;  %8881 = vrot.lane.b32.xlu1 %v13987_v16, %s9671_s24 }
 0x42f   : > { %v4380_v0 = vsel %vm604_vm0, %v4377_v21, %v4379_v5  ;;  %v14015_v4 = vsel %vm685_vm1, %v4457_v34, %v4459_v37  ;;  %v14018_v44 = vmul.f32 %v9613_v27, %v4210_v45  ;;  %v4378_v43 = vsel %vm604_vm0, %v4376_v35, %v4377_v21  ;;  %v9614_v37 = vld [vmem:[%s9761_s22 + $0xe0] sm:$0xff]  ;;  %v9615_v21 = vld [vmem:[%s9761_s22 + $0xe8] sm:$0x3] }
 0x430   : > { %17680 = vst [vmem:[#allocation102_spill] sm:$0xff] %v14015_v4  ;;  %v4093_v59 = vpop.permute.xlu1 %4092  ;;  %v14021_v53 = vpack.i.bf16 %v4380_v0, %v4378_v43  ;;  %v14024_v23 = vsel %vm685_vm1, %v4456_v29, %v4457_v34 }
 0x431   : > { %17681 = vst [vmem:[#allocation139_spill] sm:$0xff] %v14018_v44  ;;  %17682 = vst [vmem:[#allocation2_spill] sm:$0xff] %v14024_v23  ;;  %v4095_v2 = vpop.permute.xlu0 %4094  ;;  %v4211_v52 = vsel %vm2794_vm4, %v4093_v59, %v13540_v40  ;;  %v14039_v35 = vpack.i.bf16 %v14015_v4, %v14024_v23  ;;  %v14044_v40 = vpack.i.bf16 %v13817_v36, %v13810_v22  ;;  %v4461_v29 = vrot.slane %v14018_v44, 2 }
 0x432   : > { %v4212_v5 = vsel %vm2794_vm4, %v4095_v2, %v13537_v20  ;;  %v14031_v1 = vmul.f32 %v9614_v37, %v4211_v52  ;;  %8901 = vrot.lane.b32.xlu1 %v14010_v41, %s9672_s25  ;;  %8886 = vrot.lane.b32.xlu0 %v14021_v53, %s9670_s23  ;;  %v4381_v2 = vrot.slane %v14018_v44, 1  ;;  %v9616_v20 = vld [vmem:[%s9761_s22 + $0xf0] sm:$0xff]  ;;  %v8895_v4 = vpack.i.bf16 %v13756_v17, %v13759_v28 }
 0x433   : > { %v4263_v34 = vmul.f32 %v9615_v21, %v4212_v5 }
 0x434   : > { %17683 = vst [vmem:[#allocation51_spill] sm:$0xff] %v14031_v1  ;;  %v4097_v52 = vpop.permute.xlu1 %4096  ;;  %v4382_v45 = vrot.slane %v14031_v1, 1  ;;  %v4462_v0 = vrot.slane %v14031_v1, 2 }
 0x435   : > { %v4384_v27 = vrot.slane %v4263_v34, 1  ;;  %v4464_v43 = vrot.slane %v4263_v34, 2  ;;  %v4213_v59 = vsel %vm2794_vm4, %v4097_v52, %v13553_v54 }
 0x436   : > { %8911 = vrot.lane.b32.xlu1 %v14044_v40, %s9672_s25  ;;  %8891 = vrot.lane.b32.xlu0 %v14039_v35, %s9671_s24  ;;  %v4383_v5 = vsel %vm604_vm0, %v4381_v2, %v4382_v45  ;;  %v14060_v37 = vsel %vm685_vm1, %v4461_v29, %v4462_v0  ;;  %v14067_v54 = vmul.f32 %v9616_v20, %v4213_v59 }
 0x437   : > { %17684 = vst [vmem:[#allocation67_spill] sm:$0xff] %v14060_v37  ;;  %v4385_v21 = vsel %vm604_vm0, %v4382_v45, %v4384_v27  ;;  %v14064_v34 = vsel %vm685_vm1, %v4462_v0, %v4464_v43  ;;  %v9617_v0 = vld [vmem:[%s9761_s22 + $0xf8] sm:$0xff]  ;;  %v9618_v27 = vld [vmem:[%s9761_s22 + $0x100] sm:$0x3] }
 0x438   : > { %17685 = vst [vmem:[#allocation84_spill] sm:$0xff] %v14064_v34  ;;  %17686 = vst [vmem:[#allocation114_spill] sm:$0xff] %v14067_v54  ;;  %v4099_v52 = vpop.permute.xlu0 %4098  ;;  %v4101_v23 = vpop.permute.xlu1 %4100  ;;  %v14071_v22 = vpack.i.bf16 %v4385_v21, %v4383_v5  ;;  %v14079_v45 = vpack.i.bf16 %v14064_v34, %v14060_v37 }
 0x439   : > { %v4214_v2 = vsel %vm2794_vm4, %v4099_v52, %v13564_v49  ;;  %v4215_v29 = vsel %vm2794_vm4, %v4101_v23, %v13567_v8  ;;  %v14090_v49 = vpack.i.bf16 %v13790_v25, %v13775_v56  ;;  %v9619_v8 = vld [vmem:[%s9761_s22 + $0x108] sm:$0xff]  ;;  %v9636_v25 = vld [vmem:[%s9761_s22 + $0x170] sm:$0xff] }
 0x43a   : > { %v14082_v20 = vmul.f32 %v9617_v0, %v4214_v2  ;;  %v4266_v43 = vmul.f32 %v9618_v27, %v4215_v29  ;;  %8896 = vrot.lane.b32.xlu0 %v8895_v4, %s9672_s25  ;;  %8916 = vrot.lane.b32.xlu1 %v14071_v22, %s9670_s23  ;;  %v4386_v4 = vrot.slane %v14067_v54, 1  ;;  %v4466_v2 = vrot.slane %v14067_v54, 2 }
 0x43c   : > { %17687 = vst [vmem:[#allocation23_spill] sm:$0xff] %v14082_v20  ;;  %v4387_v23 = vrot.slane %v14082_v20, 1  ;;  %v4467_v59 = vrot.slane %v14082_v20, 2  ;;  %v4389_v5 = vrot.slane %v4266_v43, 1  ;;  %v4469_v21 = vrot.slane %v4266_v43, 2 }
 0x43d   : > { %v4103_v52 = vpop.permute.xlu0 %4102  ;;  %v14110_v43 = vpack.i.bf16 %v13910_v14, %v13892_v11 }
 0x43e   : > { %v4390_v29 = vsel %vm604_vm0, %v4387_v23, %v4389_v5  ;;  %v14100_v0 = vsel %vm685_vm1, %v4467_v59, %v4469_v21  ;;  %v4216_v27 = vsel %vm2794_vm4, %v4103_v52, %v13580_v26  ;;  %8906 = vrot.lane.b32.xlu0 %v14090_v49, %s9672_s25  ;;  %8921 = vrot.lane.b32.xlu1 %v14079_v45, %s9671_s24 }
 0x43f   : > { %17688 = vst [vmem:[#allocation24_spill] sm:$0xff] %v14100_v0  ;;  %v4388_v5 = vsel %vm604_vm0, %v4386_v4, %v4387_v23  ;;  %v14114_v21 = vsel %vm685_vm1, %v4466_v2, %v4467_v59  ;;  %v14117_v37 = vmul.f32 %v9619_v8, %v4216_v27  ;;  %v9620_v8 = vld [vmem:[%s9761_s22 + $0x118] sm:$0x3]  ;;  %v9621_v2 = vld [vmem:[%s9761_s22 + $0x110] sm:$0xff]  ;;  %v14141_v27 = vpack.i.bf16 %v13998_v24, %v13971_v46 }
 0x440   : > { %17689 = vst [vmem:[#allocation127_spill] sm:$0xff] %v14114_v21  ;;  %v14119_v26 = vpack.i.bf16 %v4390_v29, %v4388_v5  ;;  %v14123_v52 = vpack.i.bf16 %v14100_v0, %v14114_v21 }
 0x441   : > { %17690 = vst [vmem:[#allocation142_spill] sm:$0xff] %v14117_v37  ;;  %v4107_v34 = vpop.permute.xlu0 %4106  ;;  %v4105_v36 = vpop.permute.xlu1 %4104 }
 0x442   : > { %v4218_v23 = vsel %vm2794_vm4, %v4107_v34, %v13591_v6  ;;  %v4217_v59 = vsel %vm2794_vm4, %v4105_v36, %v13594_v30  ;;  %8941 = vrot.lane.b32.xlu1 %v14110_v43, %s9672_s25  ;;  %8926 = vrot.lane.b32.xlu0 %v14119_v26, %s9670_s23  ;;  %v4391_v6 = vrot.slane %v14117_v37, 1  ;;  %v4471_v30 = vrot.slane %v14117_v37, 2 }
 0x443   : > { %v4269_v4 = vmul.f32 %v9620_v8, %v4218_v23  ;;  %v14137_v29 = vmul.f32 %v9621_v2, %v4217_v59  ;;  %v14155_v59 = vpack.i.bf16 %v13868_v33, %v13843_v55  ;;  %v17706_v55 = vld [vmem:[#allocation155_spill] sm:$0xff] }
 0x445   : > { %17691 = vst [vmem:[#allocation6_spill] sm:$0xff] %v14137_v29  ;;  %v4394_v36 = vrot.slane %v4269_v4, 1  ;;  %v4474_v34 = vrot.slane %v4269_v4, 2  ;;  %v4109_v5 = vpop.permute.xlu1 %4108  ;;  %v4392_v11 = vrot.slane %v14137_v29, 1  ;;  %v4472_v21 = vrot.slane %v14137_v29, 2 }
 0x446   : > { %v4219_v23 = vsel %vm2794_vm4, %v4109_v5, %v13607_v42  ;;  %8951 = vrot.lane.b32.xlu1 %v14141_v27, %s9672_s25  ;;  %8931 = vrot.lane.b32.xlu0 %v14123_v52, %s9671_s24  ;;  %v9622_v42 = vld [vmem:[%s9761_s22 + $0x120] sm:$0xff] }
 0x447   : > { %v4393_v8 = vsel %vm604_vm0, %v4391_v6, %v4392_v11  ;;  %v4395_v4 = vsel %vm604_vm0, %v4392_v11, %v4394_v36  ;;  %v14160_v2 = vsel %vm685_vm1, %v4471_v30, %v4472_v21  ;;  %v14163_v5 = vmul.f32 %v9622_v42, %v4219_v23  ;;  %v9623_v30 = vld [vmem:[%s9761_s22 + $0x128] sm:$0xff] }
 0x448   : > { %17692 = vst [vmem:[#allocation39_spill] sm:$0xff] %v14160_v2  ;;  %v14165_v0 = vpack.i.bf16 %v4395_v4, %v4393_v8  ;;  %v14168_v46 = vsel %vm685_vm1, %v4472_v21, %v4474_v34  ;;  %v9624_v34 = vld [vmem:[%s9761_s22 + $0x130] sm:$0x3] }
 0x449   : > { %17693 = vst [vmem:[#allocation66_spill] sm:$0xff] %v14163_v5  ;;  %17694 = vst [vmem:[#allocation83_spill] sm:$0xff] %v14168_v46  ;;  %v4111_v24 = vpop.permute.xlu0 %4110  ;;  %v4113_v14 = vpop.permute.xlu1 %4112  ;;  %v14172_v33 = vpack.i.bf16 %v14168_v46, %v14160_v2 }
 0x44a   : > { %v4220_v11 = vsel %vm2794_vm4, %v4111_v24, %v13618_v12  ;;  %v4221_v6 = vsel %vm2794_vm4, %v4113_v14, %v13621_v60  ;;  %8936 = vrot.lane.b32.xlu0 %v14155_v59, %s9672_s25  ;;  %8956 = vrot.lane.b32.xlu1 %v14165_v0, %s9670_s23  ;;  %v14190_v12 = vpack.i.bf16 %v13960_v58, %v13942_v38  ;;  %v4396_v60 = vrot.slane %v14163_v5, 1 }
 0x44b   : > { %v14185_v36 = vmul.f32 %v9623_v30, %v4220_v11  ;;  %v4272_v23 = vmul.f32 %v9624_v34, %v4221_v6  ;;  %v4476_v6 = vrot.slane %v14163_v5, 2 }
 0x44d   : > { %17695 = vst [vmem:[#allocation113_spill] sm:$0xff] %v14185_v36  ;;  %v4397_v14 = vrot.slane %v14185_v36, 1  ;;  %v4477_v24 = vrot.slane %v14185_v36, 2  ;;  %v4399_v8 = vrot.slane %v4272_v23, 1  ;;  %v4479_v4 = vrot.slane %v4272_v23, 2  ;;  %v4115_v42 = vpop.permute.xlu0 %4114 }
 0x44e   : > { %v4222_v11 = vsel %vm2794_vm4, %v4115_v42, %v13630_v31  ;;  %8946 = vrot.lane.b32.xlu0 %v14190_v12, %s9672_s25  ;;  %8961 = vrot.lane.b32.xlu1 %v14172_v33, %s9671_s24  ;;  %v14208_v23 = vpack.i.bf16 %v14082_v20, %v14067_v54  ;;  %v9625_v42 = vld [vmem:[%s9761_s22 + $0x138] sm:$0xff]  ;;  %v9626_v54 = vld [vmem:[%s9761_s22 + $0x140] sm:$0xff] }
 0x44f   : > { %v4400_v30 = vsel %vm604_vm0, %v4397_v14, %v4399_v8  ;;  %v14204_v34 = vsel %vm685_vm1, %v4477_v24, %v4479_v4  ;;  %v4398_v31 = vsel %vm604_vm0, %v4396_v60, %v4397_v14  ;;  %v14212_v21 = vmul.f32 %v9625_v42, %v4222_v11  ;;  %v9627_v14 = vld [vmem:[%s9761_s22 + $0x148] sm:$0x3] }
 0x450   : > { %17696 = vst [vmem:[#allocation21_spill] sm:$0xff] %v14204_v34  ;;  %v4117_v2 = vpop.permute.xlu1 %4116  ;;  %v14214_v46 = vpack.i.bf16 %v4400_v30, %v4398_v31  ;;  %v14217_v38 = vsel %vm685_vm1, %v4476_v6, %v4477_v24 }
 0x451   : > { %17697 = vst [vmem:[#allocation22_spill] sm:$0xff] %v14212_v21  ;;  %17698 = vst [vmem:[#allocation108_spill] sm:$0xff] %v14217_v38  ;;  %v4119_v8 = vpop.permute.xlu0 %4118  ;;  %v4223_v4 = vsel %vm2794_vm4, %v4117_v2, %v13642_v15  ;;  %v14232_v60 = vpack.i.bf16 %v14204_v34, %v14217_v38  ;;  %v14237_v15 = vpack.i.bf16 %v14185_v36, %v14163_v5  ;;  %v4401_v2 = vrot.slane %v14212_v21, 1  ;;  %v9628_v38 = vld [vmem:[%s9761_s22 + $0x150] sm:$0xff] }
 0x452   : > { %v4224_v58 = vsel %vm2794_vm4, %v4119_v8, %v13639_v48  ;;  %v14224_v20 = vmul.f32 %v9626_v54, %v4223_v4  ;;  %8981 = vrot.lane.b32.xlu1 %v14208_v23, %s9672_s25  ;;  %8966 = vrot.lane.b32.xlu0 %v14214_v46, %s9670_s23  ;;  %v4481_v6 = vrot.slane %v14212_v21, 2 }
 0x453   : > { %v4275_v24 = vmul.f32 %v9627_v14, %v4224_v58  ;;  %17700 = vst [vmem:[#allocation5_spill] sm:$0xff] %v14237_v15  ;;  %v17701_v58 = vld [vmem:[#allocation190_spill] sm:$0xff] }
 0x454   : > { %17699 = vst [vmem:[#allocation141_spill] sm:$0xff] %v14224_v20  ;;  %v4121_v54 = vpop.permute.xlu1 %4120  ;;  %v4402_v11 = vrot.slane %v14224_v20, 1  ;;  %v4482_v30 = vrot.slane %v14224_v20, 2 }
 0x455   : > { %v4404_v31 = vrot.slane %v4275_v24, 1  ;;  %v4484_v42 = vrot.slane %v4275_v24, 2  ;;  %v4225_v8 = vsel %vm2794_vm4, %v4121_v54, %v17701_v58  ;;  %v14261_v58 = vpack.i.bf16 %v14031_v1, %v14018_v44  ;;  %v9630_v44 = vld [vmem:[%s9761_s22 + $0x160] sm:$0x3] }
 0x456   : > { %8991 = vrot.lane.b32.xlu1 %v14237_v15, %s9672_s25  ;;  %8971 = vrot.lane.b32.xlu0 %v14232_v60, %s9671_s24  ;;  %v4403_v4 = vsel %vm604_vm0, %v4401_v2, %v4402_v11  ;;  %v14253_v14 = vsel %vm685_vm1, %v4481_v6, %v4482_v30  ;;  %v14266_v34 = vmul.f32 %v9628_v38, %v4225_v8  ;;  %v17705_v2 = vld [vmem:[#allocation192_spill] sm:$0xff] }
 0x457   : > { %17702 = vst [vmem:[#allocation53_spill] sm:$0xff] %v14253_v14  ;;  %v4405_v48 = vsel %vm604_vm0, %v4402_v11, %v4404_v31  ;;  %v14257_v24 = vsel %vm685_vm1, %v4482_v30, %v4484_v42  ;;  %v9629_v31 = vld [vmem:[%s9761_s22 + $0x158] sm:$0xff]  ;;  %v14286_v38 = vpack.i.bf16 %v14137_v29, %v14117_v37  ;;  %v17715_v37 = vld [vmem:[#allocation152_spill] sm:$0xff]  ;;  %v9634_v29 = vld [vmem:[%s9761_s22 + $0x1a8] sm:$0x3] }
 0x458   : > { %17703 = vst [vmem:[#allocation69_spill] sm:$0xff] %v14257_v24  ;;  %v4123_v5 = vpop.permute.xlu0 %4122  ;;  %v4125_v54 = vpop.permute.xlu1 %4124  ;;  %v14263_v36 = vpack.i.bf16 %v4405_v48, %v4403_v4  ;;  %17704 = vst [vmem:[#allocation86_spill] sm:$0xff] %v14266_v34  ;;  %v14274_v30 = vpack.i.bf16 %v14257_v24, %v14253_v14 }
 0x459   : > { %v4226_v6 = vsel %vm2794_vm4, %v4123_v5, %v17705_v2  ;;  %v4227_v11 = vsel %vm2794_vm4, %v4125_v54, %v17706_v55  ;;  %17708 = vst [vmem:[#allocation28_spill] sm:$0xff] %v14286_v38  ;;  %v4406_v54 = vrot.slane %v14266_v34, 1  ;;  %v4486_v2 = vrot.slane %v14266_v34, 2 }
 0x45a   : > { %v14277_v42 = vmul.f32 %v9629_v31, %v4226_v6  ;;  %v4278_v1 = vmul.f32 %v9630_v44, %v4227_v11  ;;  %8976 = vrot.lane.b32.xlu0 %v14261_v58, %s9672_s25  ;;  %8996 = vrot.lane.b32.xlu1 %v14263_v36, %s9670_s23  ;;  %v17710_v31 = vld [vmem:[#allocation194_spill] sm:$0xff] }
 0x45c   : > { %17707 = vst [vmem:[#allocation116_spill] sm:$0xff] %v14277_v42  ;;  %v4407_v5 = vrot.slane %v14277_v42, 1  ;;  %v4487_v48 = vrot.slane %v14277_v42, 2  ;;  %v4409_v8 = vrot.slane %v4278_v1, 1  ;;  %v4489_v44 = vrot.slane %v4278_v1, 2 }
 0x45d   : > { %v4127_v4 = vpop.permute.xlu0 %4126 }
 0x45e   : > { %v4410_v6 = vsel %vm604_vm0, %v4407_v5, %v4409_v8  ;;  %v14296_v11 = vsel %vm685_vm1, %v4487_v48, %v4489_v44  ;;  %v4228_v55 = vsel %vm2794_vm4, %v4127_v4, %v17710_v31  ;;  %8986 = vrot.lane.b32.xlu0 %v14286_v38, %s9672_s25  ;;  %9001 = vrot.lane.b32.xlu1 %v14274_v30, %s9671_s24  ;;  %v9631_v31 = vld [vmem:[%s9761_s22 + $0x168] sm:$0xff] }
 0x45f   : > { %17709 = vst [vmem:[#allocation29_spill] sm:$0xff] %v14296_v11  ;;  %v4408_v1 = vsel %vm604_vm0, %v4406_v54, %v4407_v5  ;;  %v14306_v14 = vsel %vm685_vm1, %v4486_v2, %v4487_v48  ;;  %v14310_v8 = vpack.i.bf16 %v14277_v42, %v14266_v34  ;;  %v14319_v24 = vmul.f32 %v9631_v31, %v4228_v55  ;;  %v9632_v5 = vld [vmem:[%s9761_s22 + $0x198] sm:$0xff]  ;;  %v17716_v42 = vld [vmem:[#allocation164_spill] sm:$0xff] }
 0x460   : > { %17711 = vst [vmem:[#allocation129_spill] sm:$0xff] %v14306_v14  ;;  %v14312_v44 = vpack.i.bf16 %v4410_v6, %v4408_v1  ;;  %v14316_v4 = vpack.i.bf16 %v14296_v11, %v14306_v14  ;;  %v14322_v54 = vmul.f32 %v9632_v5, %v4228_v55  ;;  %v9633_v1 = vld [vmem:[%s9761_s22 + $0x178] sm:$0x3]  ;;  %v9635_v55 = vld [vmem:[%s9761_s22 + $0x1a0] sm:$0xff] }
 0x461   : > { %17712 = vst [vmem:[#allocation144_spill] sm:$0xff] %v14310_v8  ;;  %17713 = vst [vmem:[#allocation10_spill] sm:$0xff] %v14319_v24  ;;  %v4131_v48 = vpop.permute.xlu0 %4130  ;;  %v4129_v2 = vpop.permute.xlu1 %4128  ;;  %v4411_v14 = vrot.slane %v14319_v24, 1  ;;  %v4491_v15 = vrot.slane %v14319_v24, 2 }
 0x462   : > { %17714 = vst [vmem:[#allocation52_spill] sm:$0xff] %v14322_v54  ;;  %v4230_v34 = vsel %vm2794_vm4, %v4131_v48, %v17715_v37  ;;  %v4229_v6 = vsel %vm2794_vm4, %v4129_v2, %v17716_v42  ;;  %9021 = vrot.lane.b32.xlu1 %v14310_v8, %s9672_s25  ;;  %9006 = vrot.lane.b32.xlu0 %v14312_v44, %s9670_s23  ;;  %v4512_v48 = vrot.slane %v14322_v54, 1  ;;  %v4517_v2 = vrot.slane %v14322_v54, 2 }
 0x463   : > { %v4281_v31 = vmul.f32 %v9633_v1, %v4230_v34  ;;  %v4287_v56 = vmul.f32 %v9634_v29, %v4230_v34  ;;  %v14335_v5 = vmul.f32 %v9635_v55, %v4229_v6  ;;  %v14338_v19 = vmul.f32 %v9636_v25, %v4229_v6 }
 0x464   : > { %v14342_v37 = vpack.i.bf16 %v14224_v20, %v14212_v21  ;;  %v17719_v21 = vld [vmem:[#allocation158_spill] sm:$0xff] }
 0x465   : > { %17717 = vst [vmem:[#allocation68_spill] sm:$0xff] %v14335_v5  ;;  %17718 = vst [vmem:[#allocation85_spill] sm:$0xff] %v14338_v19  ;;  %v4414_v1 = vrot.slane %v4281_v31, 1  ;;  %v4515_v29 = vrot.slane %v4287_v56, 1  ;;  %v4133_v34 = vpop.permute.xlu1 %4132  ;;  %v4513_v25 = vrot.slane %v14335_v5, 1  ;;  %v4518_v6 = vrot.slane %v14335_v5, 2 }
 0x466   : > { %v4231_v20 = vsel %vm2794_vm4, %v4133_v34, %v17719_v21  ;;  %9036 = vrot.lane.b32.xlu1 %v13792_v57, %s9673_s26  ;;  %9011 = vrot.lane.b32.xlu0 %v14316_v4, %s9671_s24  ;;  %v4494_v42 = vrot.slane %v4281_v31, 2  ;;  %v4412_v11 = vrot.slane %v14338_v19, 1  ;;  %v4492_v55 = vrot.slane %v14338_v19, 2 }
 0x467   : > { %v4282_v39 = vmul.f32 %v9637_v62, %v4231_v20  ;;  %v14363_v28 = vsel %vm604_vm0, %v4512_v48, %v4513_v25  ;;  %v14366_v21 = vsel %vm604_vm0, %v4513_v25, %v4515_v29  ;;  %v14369_v34 = vsel %vm685_vm1, %v4517_v2, %v4518_v6  ;;  %v17721_v62 = vld [vmem:[#allocation196_spill] sm:$0xff]  ;;  %v17722_v48 = vld [vmem:[#allocation151_spill] sm:$0xff] }
 0x468   : > { %17720 = vst [vmem:[#allocation115_spill] sm:$0xff] %v14369_v34  ;;  %v4520_v31 = vrot.slane %v4287_v56, 2  ;;  %v4413_v5 = vsel %vm604_vm0, %v4411_v14, %v4412_v11  ;;  %v4415_v8 = vsel %vm604_vm0, %v4412_v11, %v4414_v1  ;;  %v14384_v56 = vpack.i.bf16 %v14338_v19, %v14319_v24  ;;  %v9638_v14 = vld [vmem:[%s9761_s22 + $0x188] sm:$0xff]  ;;  %v9639_v11 = vld [vmem:[%s9761_s22 + $0x190] sm:$0x3]  ;;  %v17752_v34 = vld [vmem:[#allocation5_spill] sm:$0xff] }
 0x469   : > { %v4135_v17 = vpop.permute.xlu0 %4134  ;;  %v4137_v54 = vpop.permute.xlu1 %4136  ;;  %v14380_v2 = vpack.i.bf16 %v4415_v8, %v4413_v5  ;;  %v14389_v25 = vsel %vm685_vm1, %v4491_v15, %v4492_v55  ;;  %v9382_v15 = vld [vmem:[%s16546_s8 + $0x38] sm:$0xff]  }
 0x46a   : > { %v4232_v20 = vsel %vm2794_vm4, %v4135_v17, %v17721_v62  ;;  %v4233_v38 = vsel %vm2794_vm4, %v4137_v54, %v17722_v48  ;;  %9016 = vrot.lane.b32.xlu0 %v14342_v37, %s9672_s25  ;;  %17723 = vst [vmem:[#allocation26_spill] sm:$0xff] %v14389_v25  ;;  %v14392_v17 = vsel %vm685_vm1, %v4492_v55, %v4494_v42  ;;  %v4499_v54 = vrot.slane %v4282_v39, 1 }
 0x46b   : > { %v4283_v29 = vmul.f32 %v9638_v14, %v4232_v20  ;;  %v4284_v1 = vmul.f32 %v9639_v11, %v4233_v38  ;;  %17724 = vst [vmem:[#allocation27_spill] sm:$0xff] %v14392_v17  ;;  %v4504_v62 = vrot.slane %v4282_v39, 2  ;;  %9046 = vrot.lane.b32.xlu1 %v14380_v2, %s9670_s23  ;;  %v14405_v38 = vpack.i.bf16 %v14392_v17, %v14389_v25  ;;  %v14753_v17 = vld [vmem:[%s16542_s4 + $0x38] sm:$0xff] }
 0x46c   : > { %v14412_v14 = vsel %vm685_vm1, %v4518_v6, %v4520_v31  ;;  %5787 = vmatpush1.bf16.msra.mxu0 %v9382_v15  ;;  %v9383_v31 = vld [vmem:[%s16546_s8 + $0x30] sm:$0xff]  }
 0x46d   : > { %v4500_v5 = vrot.slane %v4283_v29, 1  ;;  %v4505_v48 = vrot.slane %v4283_v29, 2  ;;  %v4502_v24 = vrot.slane %v4284_v1, 1  ;;  %v4507_v20 = vrot.slane %v4284_v1, 2  ;;  %17725 = vst [vmem:[#allocation128_spill] sm:$0xff] %v14412_v14  ;;  %v17757_v14 = vld [vmem:[#allocation144_spill] sm:$0xff] }
 0x46e   : > { %9026 = vrot.lane.b32.xlu0 %v14384_v56, %s9672_s25  ;;  %v14407_v42 = vpack.i.bf16 %v4283_v29, %v4282_v39  ;;  %v17728_v29 = vmov 0  }
 0x46f   : > { %v4501_v11 = vsel %vm604_vm0, %v4499_v54, %v4500_v5  ;;  %v4503_v1 = vsel %vm604_vm0, %v4500_v5, %v4502_v24  ;;  %v14417_v8 = vsel %vm685_vm1, %v4504_v62, %v4505_v48  ;;  %v14420_v19 = vsel %vm685_vm1, %v4505_v48, %v4507_v20  ;;  %9051 = vrot.lane.b32.xlu1 %v14405_v38, %s9671_s24  ;;  %v9384_v62 = vld [vmem:[%s16546_s8 + $0x28] sm:$0xff]   ;;  %v9385_v20 = vld [vmem:[%s16546_s8 + $0x20] sm:$0xff]   ;;  %v9387_v24 = vld [vmem:[%s16546_s8 + $0x10] sm:$0xff]  }
 0x470   : > { %17726 = vst [vmem:[#allocation143_spill] sm:$0xff] %v14417_v8  ;;  %17727 = vst [vmem:[#allocation7_spill] sm:$0xff] %v14420_v19  ;;  %v14424_v39 = vpack.i.bf16 %v4503_v1, %v4501_v11  ;;  %5788 = vmatprep.subr.bf16.mxu0 %v17728_v29  ;;  %v9386_v1 = vld [vmem:[%s16546_s8 + $0x18] sm:$0xff]  }
 0x471   : > { %5789 = vmatpush1.bf16.msra.mxu0 %v9383_v31 }
 0x472   : > { %9031 = vrot.lane.b32.xlu0 %v13799_v47, %s9673_s26  ;;  %5790 = vmatprep.subr.bf16.mxu0 %v17728_v29 }
 0x473   : > { %9056 = vrot.lane.b32.xlu1 %v14407_v42, %s9672_s25 }
 0x474   : > { %v14449_v54 = vpop.permute.xlu0 %8806 }
 0x475   : > { %5791 = vmatpush1.bf16.msra.mxu0 %v9384_v62 }
 0x476   : > { %9041 = vrot.lane.b32.xlu0 %v13819_v7, %s9673_s26  ;;  %5792 = vmatprep.subr.bf16.mxu0 %v17728_v29 }
 0x477   : > { %9061 = vrot.lane.b32.xlu1 %v13873_v13, %s9673_s26 }
 0x478   : > { %v14463_v48 = vpop.permute.xlu0 %8816 }
 0x479   : > { %5793 = vmatpush1.bf16.msra.mxu0 %v9385_v20 }
 0x47a   : > { %9066 = vrot.lane.b32.xlu0 %v13898_v9, %s9673_s26  ;;  %5794 = vmatprep.subr.bf16.mxu0 %v17728_v29 }
 0x47b   : > { %9071 = vrot.lane.b32.xlu1 %v13936_v18, %s9673_s26  ;;  %v14447_v47 = vpop.permute.xlu1 %8811 }
 0x47d   : > { %5795 = vmatpush1.bf16.msra.mxu0 %v9386_v1 }
 0x47e   : > { %9076 = vrot.lane.b32.xlu0 %v13978_v32, %s9673_s26  ;;  %5796 = vmatprep.subr.bf16.mxu0 %v17728_v29 }
 0x47f   : > { %9081 = vrot.lane.b32.xlu1 %v14021_v53, %s9673_s26  ;;  %v14459_v5 = vpop.permute.xlu1 %8821 }
 0x481   : > { %5797 = vmatpush1.bf16.msra.mxu0 %v9387_v24 }
 0x482   : > { %9086 = vrot.lane.b32.xlu0 %v14071_v22, %s9673_s26  ;;  %5798 = vmatprep.subr.bf16.mxu0 %v17728_v29 }
 0x483   : > { %9091 = vrot.lane.b32.xlu1 %v14119_v26, %s9673_s26  ;;  %v14474_v11 = vpop.permute.xlu1 %8836 }
 0x486   : > { %9096 = vrot.lane.b32.xlu0 %v14165_v0, %s9673_s26 }
 0x487   : > { %v14472_v15 = vpop.permute.xlu0 %8826  ;;  %9101 = vrot.lane.b32.xlu1 %v14214_v46, %s9673_s26 }
 0x48a   : > { %9106 = vrot.lane.b32.xlu0 %v14263_v36, %s9673_s26 }
 0x48b   : > { %v14484_v31 = vpop.permute.xlu0 %8831  ;;  %9111 = vrot.lane.b32.xlu1 %v14312_v44, %s9673_s26 }
 0x48c   : > { %v14488_v62 = vpop.permute.xlu1 %8846 }
 0x48e   : > { %9116 = vrot.lane.b32.xlu0 %v14380_v2, %s9673_s26 }
 0x48f   : > { %v14493_v20 = vpop.permute.xlu0 %8841  ;;  %9121 = vrot.lane.b32.xlu1 %v14424_v39, %s9673_s26 }
 0x490   : > { %v14500_v1 = vpop.permute.xlu1 %8851 }
 0x492   : > { %9126 = vrot.lane.b32.xlu0 %v13840_v63, %s9674_s27  ;;  %v9388_v63 = vld [vmem:[%s16546_s8 + $0x8] sm:$0xff]  }
 0x493   : > { %9131 = vrot.lane.b32.xlu1 %v13849_v50, %s9674_s27  ;;  %v14506_v6 = vpop.permute.xlu0 %8856  ;;  %5799 = vmatpush1.bf16.msra.mxu0 %v9388_v63 }
 0x494   : > { %v14511_v55 = vpop.permute.xlu1 %8866  ;;  %5800 = vmatprep.subr.bf16.mxu0 %v17728_v29 }
 0x496   : > { %9136 = vrot.lane.b32.xlu0 %v13853_v3, %s9674_s27 }
 0x497   : > { %9141 = vrot.lane.b32.xlu1 %v13881_v51, %s9674_s27  ;;  %v14518_v24 = vpop.permute.xlu0 %8861 }
 0x49a   : > { %9146 = vrot.lane.b32.xlu0 %v13907_v61, %s9674_s27  ;;  %v9389_v61 = vld [vmem:[%s16546_s8] sm:$0xff]  }
 0x49b   : > { %9151 = vrot.lane.b32.xlu1 %v13946_v10, %s9674_s27  ;;  %v14529_v3 = vpop.permute.xlu0 %8871  ;;  %5801 = vmatpush1.bf16.msra.mxu0 %v9389_v61 }
 0x49c   : > { %v14524_v50 = vpop.permute.xlu1 %8876  ;;  %5816 = vmatprep.subr.bf16.mxu0 %v17728_v29 }
 0x49d   : > { %17729 = vst [vmem:[#allocation55_spill] sm:$0xff] %v14524_v50 }
 0x49e   : > { %9156 = vrot.lane.b32.xlu0 %v13987_v16, %s9674_s27 }
 0x49f   : > { %9161 = vrot.lane.b32.xlu1 %v14039_v35, %s9674_s27  ;;  %v9390_v35 = vld [vmem:[%s16546_s8 + $0x40] sm:$0xff]  }
 0x4a0   : > { %v14533_v51 = vpop.permute.xlu1 %8881  ;;  %5817 = vmatpush2.bf16.msra.mxu0 %v9390_v35 }
 0x4a1   : > { %17730 = vst [vmem:[#allocation71_spill] sm:$0xff] %v14533_v51 }
 0x4a2   : > { %9166 = vrot.lane.b32.xlu0 %v14079_v45, %s9674_s27 }
 0x4a3   : > { %9171 = vrot.lane.b32.xlu1 %v14123_v52, %s9674_s27 }
 0x4a4   : > { %v14542_v10 = vpop.permute.xlu0 %8886  ;;  %v14544_v16 = vpop.permute.xlu1 %8901 }
 0x4a5   : > { %17731 = vst [vmem:[#allocation89_spill] sm:$0xff] %v14542_v10  ;;  %v17780_v10 = vld [vmem:[#allocation166_spill] sm:$0xff] }
 0x4a6   : > { %9176 = vrot.lane.b32.xlu0 %v14172_v33, %s9674_s27  ;;  %v9200_v33 = vpack.i.bf16 %v14420_v19, %v14417_v8  ;;  %v17759_v8 = vld [vmem:[#allocation68_spill] sm:$0xff] }
 0x4a7   : > { %9181 = vrot.lane.b32.xlu1 %v14232_v60, %s9674_s27 }
 0x4a8   : > { %v14554_v45 = vpop.permute.xlu0 %8891  ;;  %v14556_v52 = vpop.permute.xlu1 %8911 }
 0x4a9   : > { %17732 = vst [vmem:[#allocation118_spill] sm:$0xff] %v14554_v45 }
 0x4aa   : > { %9186 = vrot.lane.b32.xlu0 %v14274_v30, %s9674_s27 }
 0x4ab   : > { %9191 = vrot.lane.b32.xlu1 %v14316_v4, %s9674_s27 }
 0x4ac   : > { %v14562_v29 = vpop.permute.xlu0 %8896  ;;  %v14564_v63 = vpop.permute.xlu1 %8916 }
 0x4ad   : > { %17733 = vst [vmem:[#allocation31_spill] sm:$0xff] %v14564_v63 }
 0x4ae   : > { %9196 = vrot.lane.b32.xlu0 %v14405_v38, %s9674_s27 }
 0x4af   : > { %9201 = vrot.lane.b32.xlu1 %v9200_v33, %s9674_s27  ;;  %v17750_v33 = vld [vmem:[#allocation28_spill] sm:$0xff] }
 0x4b0   : > { %v14571_v60 = vpop.permute.xlu0 %8906  ;;  %v14573_v61 = vpop.permute.xlu1 %8921 }
 0x4b1   : > { %17734 = vst [vmem:[#allocation32_spill] sm:$0xff] %v14573_v61 }
 0x4b2   : > { %9206 = vrot.lane.b32.xlu0 %v14010_v41, %s9675_s28 }
 0x4b3   : > { %9211 = vrot.lane.b32.xlu1 %v13792_v57, %s9676_s29 }
 0x4b4   : > { %v14579_v30 = vpop.permute.xlu0 %8926  ;;  %v14581_v4 = vpop.permute.xlu1 %8941 }
 0x4b5   : > { %17735 = vst [vmem:[#allocation80_spill] sm:$0xff] %v14579_v30 }
 0x4b6   : > { %9216 = vrot.lane.b32.xlu0 %v14090_v49, %s9675_s28 }
 0x4b7   : > { %9221 = vrot.lane.b32.xlu1 %v13819_v7, %s9676_s29 }
 0x4b8   : > { %v14587_v38 = vpop.permute.xlu0 %8931  ;;  %v14589_v35 = vpop.permute.xlu1 %8951 }
 0x4b9   : > { %17736 = vst [vmem:[#allocation146_spill] sm:$0xff] %v14587_v38  ;;  %17737 = vst [vmem:[#allocation15_spill] sm:$0xff] %v14589_v35  ;;  %v6450_v38 = vld [vmem:[%s16542_s4 + $0x80] sm:$0xff]  ;;  %v8819_v35 = vunpack.i.h.bf16 %v14463_v48 }
 0x4ba   : > { %9226 = vrot.lane.b32.xlu0 %v14044_v40, %s9675_s28 }
 0x4bb   : > { %9231 = vrot.lane.b32.xlu1 %v13873_v13, %s9676_s29 }
 0x4bc   : > { %v14595_v57 = vpop.permute.xlu0 %8936  ;;  %v14597_v41 = vpop.permute.xlu1 %8956 }
 0x4bd   : > { %17738 = vst [vmem:[#allocation54_spill] sm:$0xff] %v14597_v41  ;;  %v6448_v41 = vld [vmem:[%s16542_s4 + $0x70] sm:$0xff] }
 0x4be   : > { %9236 = vrot.lane.b32.xlu0 %v14155_v59, %s9675_s28 }
 0x4bf   : > { %9241 = vrot.lane.b32.xlu1 %v13898_v9, %s9676_s29 }
 0x4c0   : > { %v14603_v7 = vpop.permute.xlu0 %8946  ;;  %v14605_v49 = vpop.permute.xlu1 %8961 }
 0x4c1   : > { %17739 = vst [vmem:[#allocation70_spill] sm:$0xff] %v14605_v49 }
 0x4c2   : > { %9246 = vrot.lane.b32.xlu0 %v14110_v43, %s9675_s28 }
 0x4c3   : > { %9251 = vrot.lane.b32.xlu1 %v13936_v18, %s9676_s29 }
 0x4c4   : > { %v14611_v13 = vpop.permute.xlu0 %8966  ;;  %v14613_v40 = vpop.permute.xlu1 %8981 }
 0x4c5   : > { %17740 = vst [vmem:[#allocation88_spill] sm:$0xff] %v14611_v13  ;;  %17741 = vst [vmem:[#allocation117_spill] sm:$0xff] %v14613_v40 }
 0x4c6   : > { %9256 = vrot.lane.b32.xlu0 %v14190_v12, %s9675_s28 }
 0x4c7   : > { %9261 = vrot.lane.b32.xlu1 %v13978_v32, %s9676_s29 }
 0x4c8   : > { %v14619_v9 = vpop.permute.xlu0 %8971  ;;  %v14621_v59 = vpop.permute.xlu1 %8991 }
 0x4c9   : > { %17742 = vst [vmem:[#allocation8_spill] sm:$0xff] %v14619_v9  ;;  %17743 = vst [vmem:[#allocation9_spill] sm:$0xff] %v14621_v59 }
 0x4ca   : > { %9266 = vrot.lane.b32.xlu0 %v14141_v27, %s9675_s28 }
 0x4cb   : > { %9271 = vrot.lane.b32.xlu1 %v14021_v53, %s9676_s29 }
 0x4cc   : > { %v14627_v18 = vpop.permute.xlu0 %8976  ;;  %v14629_v43 = vpop.permute.xlu1 %8996 }
 0x4cd   : > { %17744 = vst [vmem:[#allocation130_spill] sm:$0xff] %v14627_v18  ;;  %17745 = vst [vmem:[#allocation145_spill] sm:$0xff] %v14629_v43  ;;  %v14777_v43 = vld [vmem:[%s16542_s4 + $0x40] sm:$0xff]  ;;  %v8838_v18 = vunpack.i.l.bf16 %v14474_v11 }
 0x4ce   : > { %9276 = vrot.lane.b32.xlu0 %v14261_v58, %s9675_s28 }
 0x4cf   : > { %9281 = vrot.lane.b32.xlu1 %v14071_v22, %s9676_s29 }
 0x4d0   : > { %v14635_v32 = vpop.permute.xlu0 %8986  ;;  %v14637_v12 = vpop.permute.xlu1 %9001 }
 0x4d1   : > { %17746 = vst [vmem:[#allocation16_spill] sm:$0xff] %v14635_v32  ;;  %17747 = vst [vmem:[#allocation57_spill] sm:$0xff] %v14637_v12  ;;  %v6451_v32 = vld [vmem:[%s16542_s4 + $0x88] sm:$0xff] }
 0x4d2   : > { %9286 = vrot.lane.b32.xlu0 %v14208_v23, %s9675_s28 }
 0x4d3   : > { %9291 = vrot.lane.b32.xlu1 %v14119_v26, %s9676_s29 }
 0x4d4   : > { %v14643_v53 = vpop.permute.xlu0 %9006  ;;  %v14645_v27 = vpop.permute.xlu1 %9021 }
 0x4d5   : > { %17748 = vst [vmem:[#allocation73_spill] sm:$0xff] %v14643_v53  ;;  %17749 = vst [vmem:[#allocation93_spill] sm:$0xff] %v14645_v27  ;;  %v14769_v27 = vld [vmem:[%s16542_s4 + $0x48] sm:$0xff] }
 0x4d6   : > { %9296 = vrot.lane.b32.xlu0 %v17750_v33, %s9675_s28 }
 0x4d7   : > { %9301 = vrot.lane.b32.xlu1 %v14165_v0, %s9676_s29 }
 0x4d8   : > { %v14651_v22 = vpop.permute.xlu0 %9011  ;;  %v14653_v58 = vpop.permute.xlu1 %9036 }
 0x4d9   : > { %17751 = vst [vmem:[#allocation120_spill] sm:$0xff] %v14651_v22  ;;  %v14761_v22 = vld [vmem:[%s16542_s4 + $0x30] sm:$0xff] }
 0x4da   : > { %9306 = vrot.lane.b32.xlu0 %v17752_v34, %s9675_s28 }
 0x4db   : > { %9311 = vrot.lane.b32.xlu1 %v14214_v46, %s9676_s29 }
 0x4dc   : > { %v14659_v26 = vpop.permute.xlu0 %9016 }
 0x4dd   : > { %17753 = vst [vmem:[#allocation36_spill] sm:$0xff] %v14659_v26  ;;  %v14661_v23 = vpop.permute.xlu1 %9046 }
 0x4de   : > { %17754 = vst [vmem:[#allocation37_spill] sm:$0xff] %v14661_v23  ;;  %9316 = vrot.lane.b32.xlu0 %v14342_v37, %s9675_s28  ;;  %v14745_v23 = vld [vmem:[%s16542_s4 + $0x20] sm:$0xff] }
 0x4df   : > { %9321 = vrot.lane.b32.xlu1 %v14263_v36, %s9676_s29 }
 0x4e0   : > { %v14667_v0 = vpop.permute.xlu0 %9026 }
 0x4e1   : > { %17755 = vst [vmem:[#allocation132_spill] sm:$0xff] %v14667_v0  ;;  %v14669_v33 = vpop.permute.xlu1 %9051 }
 0x4e2   : > { %17756 = vst [vmem:[#allocation87_spill] sm:$0xff] %v14669_v33  ;;  %9326 = vrot.lane.b32.xlu0 %v17757_v14, %s9675_s28 }
 0x4e3   : > { %9331 = vrot.lane.b32.xlu1 %v14312_v44, %s9676_s29 }
 0x4e4   : > { %v14675_v46 = vpop.permute.xlu0 %9031 }
 0x4e5   : > { %v14677_v34 = vpop.permute.xlu1 %9056  ;;  %v9034_v50 = vunpack.i.h.bf16 %v14675_v46 }
 0x4e6   : > { %17758 = vst [vmem:[#allocation14_spill] sm:$0xff] %v14677_v34  ;;  %9336 = vrot.lane.b32.xlu0 %v14384_v56, %s9675_s28  ;;  %v17760_v56 = vld [vmem:[#allocation52_spill] sm:$0xff]  ;;  %v14713_v34 = vld [vmem:[%s16542_s4 + $0x8] sm:$0xff] }
 0x4e7   : > { %9341 = vrot.lane.b32.xlu1 %v14380_v2, %s9676_s29  ;;  %v17761_v19 = vpack.i.bf16 %v17759_v8, %v17760_v56  ;;  %v14702_v2 = vld [vmem:[%s16542_s4] sm:$0xff]  ;;  %v14737_v56 = vld [vmem:[%s16542_s4 + $0x28] sm:$0xff] }
 0x4e8   : > { %v14683_v36 = vpop.permute.xlu0 %9041 }
 0x4e9   : > { %v14685_v37 = vpop.permute.xlu1 %9061 }
 0x4ea   : > { %9346 = vrot.lane.b32.xlu0 %v14407_v42, %s9675_s28  ;;  %v17762_v42 = vpack.i.bf16 %v14366_v21, %v14363_v28  ;;  %v14729_v28 = vld [vmem:[%s16542_s4 + $0x10] sm:$0xff] }
 0x4eb   : > { %9351 = vrot.lane.b32.xlu1 %v14424_v39, %s9676_s29 }
 0x4ec   : > { %v14691_v44 = vpop.permute.xlu0 %9066 }
 0x4ed   : > { %v14693_v14 = vpop.permute.xlu1 %9071 }
 0x4ee   : > { %9356 = vrot.lane.b32.xlu0 %v17761_v19, %s9675_s28  ;;  %v14721_v19 = vld [vmem:[%s16542_s4 + $0x18] sm:$0xff]  ;;  %s15510_s28 = sshll.u32 %s18141_s18, 8 }
 0x4ef   : > { %9361 = vrot.lane.b32.xlu1 %v17762_v42, %s9676_s29  ;;  %s15520_s12 = scalar_lea.vmem %s16540_s2, %s15510_s28  ;;  %s15961_s30 = scalar_lea.vmem %s16541_s3, %s15510_s28 }
 0x4f0   : > { %v14708_v39 = vpop.permute.xlu0 %9076  ;;  %s16391_s23 = scalar_lea.vmem %s16549_s11, %s15510_s28 }
 0x4f1   : > { %v14715_v33 = vpop.permute.xlu1 %9081 }
 0x4f2   : > { %17763 = vst [vmem:[#allocation56_spill] sm:$0xff] %v14715_v33  ;;  %6500 = vperm.xlu0 %9365, %v14702_v2  }
 0x4f3   : > { %6505 = vperm.xlu1 %9366, %v14713_v34  }
 0x4f4   : > { %v14723_v8 = vpop.permute.xlu0 %9086 }
 0x4f5   : > { %17764 = vst [vmem:[#allocation72_spill] sm:$0xff] %v14723_v8  ;;  %v14731_v21 = vpop.permute.xlu1 %9091 }
 0x4f6   : > { %17765 = vst [vmem:[#allocation91_spill] sm:$0xff] %v14731_v21  ;;  %6515 = vperm.xlu0 %9365, %v14721_v19   ;;  %v6453_v21 = vld [vmem:[%s16542_s4 + $0x98] sm:$0xff] }
 0x4f7   : > { %6510 = vperm.xlu1 %9366, %v14729_v28  }
 0x4f8   : > { %v14739_v42 = vpop.permute.xlu0 %9096 }
 0x4f9   : > { %17766 = vst [vmem:[#allocation119_spill] sm:$0xff] %v14739_v42  ;;  %v14747_v25 = vpop.permute.xlu1 %9101 }
 0x4fa   : > { %17767 = vst [vmem:[#allocation33_spill] sm:$0xff] %v14747_v25  ;;  %6525 = vperm.xlu0 %9365, %v14737_v56   ;;  %v14804_v25 = vld [vmem:[%s16542_s4 + $0x60] sm:$0xff] }
 0x4fb   : > { %6520 = vperm.xlu1 %9366, %v14745_v23  }
 0x4fc   : > { %v14755_v0 = vpop.permute.xlu0 %9106 }
 0x4fd   : > { %17768 = vst [vmem:[#allocation34_spill] sm:$0xff] %v14755_v0  ;;  %v14763_v53 = vpop.permute.xlu1 %9111 }
 0x4fe   : > { %17769 = vst [vmem:[#allocation131_spill] sm:$0xff] %v14763_v53  ;;  %6535 = vperm.xlu0 %9365, %v14753_v17   ;;  %v6445_v53 = vld [vmem:[%s16542_s4 + $0x58] sm:$0xff] }
 0x4ff   : > { %6530 = vperm.xlu1 %9366, %v14761_v22  }
 0x500   : > { %v14771_v12 = vpop.permute.xlu0 %9116 }
 0x501   : > { %17770 = vst [vmem:[#allocation92_spill] sm:$0xff] %v14771_v12  ;;  %v14779_v0 = vpop.permute.xlu1 %9121  ;;  %v14791_v12 = vld [vmem:[%s16542_s4 + $0x50] sm:$0xff] }
 0x502   : > { %17771 = vst [vmem:[#allocation48_spill] sm:$0xff] %v14779_v0  ;;  %6545 = vperm.xlu0 %9365, %v14769_v27   ;;  %v6447_v0 = vld [vmem:[%s16542_s4 + $0x68] sm:$0xff] }
 0x503   : > { %6540 = vperm.xlu1 %9366, %v14777_v43  }
 0x504   : > { %v14785_v26 = vpop.permute.xlu0 %9126 }
 0x505   : > { %v14793_v9 = vpop.permute.xlu1 %9131 }
 0x506   : > { %6555 = vperm.xlu0 %9365, %v6445_v53   ;;  %v6449_v53 = vld [vmem:[%s16542_s4 + $0x78] sm:$0xff] }
 0x507   : > { %6550 = vperm.xlu1 %9366, %v14791_v12  }
 0x508   : > { %v14798_v13 = vpop.permute.xlu0 %9136 }
 0x509   : > { %v14806_v59 = vpop.permute.xlu1 %9141 }
 0x50a   : > { %6565 = vperm.xlu0 %9365, %v6447_v0  }
 0x50b   : > { %6560 = vperm.xlu1 %9366, %v14804_v25  }
 0x50c   : > { %v14811_v49 = vpop.permute.xlu0 %9146 }
 0x50d   : > { %v14817_v42 = vpop.permute.xlu1 %9151 }
 0x50e   : > { %6575 = vperm.xlu0 %9365, %v6449_v53   ;;  %v6452_v53 = vld [vmem:[%s16542_s4 + $0x90] sm:$0xff] }
 0x50f   : > { %6570 = vperm.xlu1 %9366, %v6448_v41   ;;  %v6455_v41 = vld [vmem:[%s16542_s4 + $0xa8] sm:$0xff] }
 0x510   : > { %v14822_v0 = vpop.permute.xlu0 %9156 }
 0x511   : > { %17772 = vst [vmem:[#allocation59_spill] sm:$0xff] %v14822_v0  ;;  %v14827_v30 = vpop.permute.xlu1 %9161  ;;  %v9033_v0 = vunpack.i.l.bf16 %v14675_v46  ;;  %v8904_v46 = vunpack.i.h.bf16 %v14544_v16 }
 0x512   : > { %17773 = vst [vmem:[#allocation75_spill] sm:$0xff] %v14827_v30  ;;  %6585 = vperm.xlu0 %9365, %v6451_v32   ;;  %v6454_v32 = vld [vmem:[%s16542_s4 + $0xa0] sm:$0xff] }
 0x513   : > { %6580 = vperm.xlu1 %9366, %v6450_v38   ;;  %v8809_v38 = vunpack.i.h.bf16 %v14449_v54  ;;  %v17781_v30 = vld [vmem:[#allocation162_spill] sm:$0xff] }
 0x514   : > { %v14832_v40 = vpop.permute.xlu0 %9166 }
 0x515   : > { %17774 = vst [vmem:[#allocation97_spill] sm:$0xff] %v14832_v40  ;;  %v14837_v61 = vpop.permute.xlu1 %9171 }
 0x516   : > { %17775 = vst [vmem:[#allocation122_spill] sm:$0xff] %v14837_v61  ;;  %6595 = vperm.xlu0 %9365, %v6453_v21   ;;  %v6457_v21 = vld [vmem:[%s16542_s4 + $0xb8] sm:$0xff]  ;;  %v8808_v61 = vunpack.i.l.bf16 %v14449_v54  ;;  %v5227_v54 = vsel %vm1496_vm6, %v17780_v10, %v8809_v38  ;;  %v17783_v10 = vld [vmem:[#allocation160_spill] sm:$0xff] }
 0x517   : > { %6590 = vperm.xlu1 %9366, %v6452_v53   ;;  %v8814_v53 = vunpack.i.h.bf16 %v14447_v47 }
 0x518   : > { %v14842_v63 = vpop.permute.xlu0 %9176  ;;  %v5226_v33 = vsel %vm1496_vm6, %v17781_v30, %v8808_v61  ;;  %v6458_v61 = vld [vmem:[%s16542_s4 + $0xc0] sm:$0xff] }
 0x519   : > { %17776 = vst [vmem:[#allocation13_spill] sm:$0xff] %v14842_v63  ;;  %v14847_v40 = vpop.permute.xlu1 %9181  ;;  %v8813_v63 = vunpack.i.l.bf16 %v14447_v47  ;;  %v6459_v47 = vld [vmem:[%s16542_s4 + $0xc8] sm:$0xff]  ;;  %v5229_v38 = vsel %vm1496_vm6, %v17783_v10, %v8814_v53 }
 0x51a   : > { %17777 = vst [vmem:[#allocation40_spill] sm:$0xff] %v14847_v40  ;;  %6605 = vperm.xlu0 %9365, %v6455_v41   ;;  %v6456_v40 = vld [vmem:[%s16542_s4 + $0xb0] sm:$0xff]  ;;  %v8839_v41 = vunpack.i.h.bf16 %v14474_v11  ;;  %v8899_v11 = vunpack.i.h.bf16 %v14562_v29 }
 0x51b   : > { %6600 = vperm.xlu1 %9366, %v6454_v32   ;;  %v8834_v32 = vunpack.i.h.bf16 %v14484_v31 }
 0x51c   : > { %v14854_v8 = vpop.permute.xlu0 %9186 }
 0x51d   : > { %17778 = vst [vmem:[#allocation134_spill] sm:$0xff] %v14854_v8  ;;  %v14863_v45 = vpop.permute.xlu1 %9191  ;;  %v8833_v8 = vunpack.i.l.bf16 %v14484_v31  ;;  %v17784_v31 = vld [vmem:[#allocation161_spill] sm:$0xff] }
 0x51e   : > { %17779 = vst [vmem:[#allocation90_spill] sm:$0xff] %v14863_v45  ;;  %6615 = vperm.xlu0 %9365, %v6457_v21   ;;  %v8898_v21 = vunpack.i.l.bf16 %v14562_v29  ;;  %v5228_v51 = vsel %vm1496_vm6, %v17784_v31, %v8813_v63  ;;  %v5261_v29 = vsel %vm1529_vm10, %v5229_v38, %v8839_v41  ;;  %v5259_v63 = vsel %vm1529_vm10, %v5227_v54, %v8834_v32  ;;  %v6460_v32 = vld [vmem:[%s16542_s4 + $0xd0] sm:$0xff] }
 0x51f   : > { %6610 = vperm.xlu1 %9366, %v6456_v40   ;;  %v5260_v30 = vsel %vm1529_vm10, %v5228_v51, %v8838_v18  ;;  %v9129_v40 = vunpack.i.h.bf16 %v14785_v26  ;;  %v5258_v10 = vsel %vm1529_vm10, %v5226_v33, %v8833_v8  ;;  %v8903_v31 = vunpack.i.l.bf16 %v14544_v16  ;;  %v6461_v51 = vld [vmem:[%s16542_s4 + $0xd8] sm:$0xff] }
 0x520   : > { %v14877_v45 = vpop.permute.xlu0 %9196  ;;  %v5291_v18 = vsel %vm1562_vm12, %v5259_v63, %v8899_v11  ;;  %v5290_v41 = vsel %vm1562_vm12, %v5258_v10, %v8898_v21  ;;  %v9134_v63 = vunpack.i.h.bf16 %v14793_v9 }
 0x521   : > { %17782 = vst [vmem:[#allocation47_spill] sm:$0xff] %v14877_v45  ;;  %v9128_v45 = vunpack.i.l.bf16 %v14785_v26  ;;  %v14892_v53 = vpop.permute.xlu1 %9201  ;;  %v9039_v26 = vunpack.i.h.bf16 %v14653_v58  ;;  %v5323_v33 = vsel %vm1595_vm13, %v5291_v18, %v9034_v50  ;;  %v5322_v8 = vsel %vm1595_vm13, %v5290_v41, %v9033_v0  ;;  %v6463_v41 = vld [vmem:[%s16542_s4 + $0xe8] sm:$0xff] }
 0x522   : > { %6625 = vperm.xlu0 %9365, %v6459_v47   ;;  %v9038_v47 = vunpack.i.l.bf16 %v14653_v58  ;;  %v5355_v11 = vsel %vm1628_vm14, %v5323_v33, %v9129_v40  ;;  %v9133_v58 = vunpack.i.l.bf16 %v14793_v9  ;;  %v5292_v33 = vsel %vm1562_vm12, %v5260_v30, %v8903_v31 }
 0x523   : > { %6620 = vperm.xlu1 %9366, %v6458_v61   ;;  %v5354_v21 = vsel %vm1628_vm14, %v5322_v8, %v9128_v45  ;;  %v8818_v45 = vunpack.i.l.bf16 %v14463_v48  ;;  %v5293_v9 = vsel %vm1562_vm12, %v5261_v29, %v8904_v46 }
 0x524   : > { %v9207_v38 = vpop.permute.xlu0 %9206  ;;  %v5324_v48 = vsel %vm1595_vm13, %v5292_v33, %v9038_v47  ;;  %v5325_v30 = vsel %vm1595_vm13, %v5293_v9, %v9039_v26  ;;  %v8843_v47 = vunpack.i.l.bf16 %v14493_v20  ;;  %v8908_v33 = vunpack.i.l.bf16 %v14571_v60 }
 0x525   : > { %v9209_v54 = vunpack.i.h.bf16 %v9207_v38  ;;  %v9208_v16 = vunpack.i.l.bf16 %v9207_v38  ;;  %v9212_v10 = vpop.permute.xlu1 %9211  ;;  %v17785_v38 = vld [vmem:[#allocation157_spill] sm:$0xff]  ;;  %v5356_v46 = vsel %vm1628_vm14, %v5324_v48, %v9133_v58  ;;  %v8824_v58 = vunpack.i.h.bf16 %v14459_v5 }
 0x526   : > { %6635 = vperm.xlu0 %9365, %v6461_v51   ;;  %v9214_v61 = vunpack.i.h.bf16 %v9212_v10  ;;  %v9213_v18 = vunpack.i.l.bf16 %v9212_v10  ;;  %v5231_v40 = vsel %vm1496_vm6, %v17785_v38, %v8819_v35  ;;  %v8844_v35 = vunpack.i.h.bf16 %v14493_v20  ;;  %v6464_v20 = vld [vmem:[%s16542_s4 + $0xf0] sm:$0xff] }
 0x527   : > { %v5386_v50 = vsel %vm1661_vm15, %v5354_v21, %v9208_v16  ;;  %v5387_v0 = vsel %vm1661_vm15, %v5355_v11, %v9209_v54  ;;  %6630 = vperm.xlu1 %9366, %v6460_v32   ;;  %v6462_v21 = vld [vmem:[%s16542_s4 + $0xe0] sm:$0xff]  ;;  %v5357_v32 = vsel %vm1628_vm14, %v5325_v30, %v9134_v63  ;;  %v8823_v63 = vunpack.i.l.bf16 %v14459_v5 }
 0x528   : > { %v9217_v51 = vpop.permute.xlu0 %9216  ;;  %v5419_v8 = vsel %vm1694_vm2, %v5387_v0, %v9214_v61  ;;  %v5418_v54 = vsel %vm1694_vm2, %v5386_v50, %v9213_v18  ;;  %v6465_v0 = vld [vmem:[%s16542_s4 + $0xf8] sm:$0xff]  ;;  %v17786_v61 = vld [vmem:[#allocation154_spill] sm:$0xff]  ;;  %v8909_v38 = vunpack.i.h.bf16 %v14571_v60  ;;  %v9043_v5 = vunpack.i.l.bf16 %v14683_v36 }
 0x529   : > { %v9219_v16 = vunpack.i.h.bf16 %v9217_v51  ;;  %v9218_v11 = vunpack.i.l.bf16 %v9217_v51  ;;  %v5450_v31 = vpack.c.bf16 %v5419_v8, %v5418_v54  ;;  %v9222_v29 = vpop.permute.xlu1 %9221  ;;  %v5230_v18 = vsel %vm1496_vm6, %v17786_v61, %v8818_v45  ;;  %v17787_v51 = vld [vmem:[#allocation165_spill] sm:$0xff] }
 0x52a   : > { %6645 = vperm.xlu0 %9365, %v6463_v41   ;;  %v9224_v10 = vunpack.i.h.bf16 %v9222_v29  ;;  %v9223_v50 = vunpack.i.l.bf16 %v9222_v29  ;;  %v17788_v8 = vld [vmem:[#allocation153_spill] sm:$0xff]  ;;  %v5263_v54 = vsel %vm1529_vm10, %v5231_v40, %v8844_v35  ;;  %v9139_v60 = vunpack.i.h.bf16 %v14798_v13 }
 0x52b   : > { %5819 = vmatmul.mubr.bf16.vlgmr.msra.gmra.mxu0 %v5450_v31  ;;  %v5388_v26 = vsel %vm1661_vm15, %v5356_v46, %v9218_v11  ;;  %v5389_v41 = vsel %vm1661_vm15, %v5357_v32, %v9219_v16  ;;  %6640 = vperm.xlu1 %9366, %v6462_v21   ;;  %v17789_v45 = vpack.c.bf16 %v17787_v51, %v17788_v8  ;;  %v9044_v16 = vunpack.i.h.bf16 %v14683_v36  ;;  %v17790_v36 = vld [vmem:[#allocation163_spill] sm:$0xff] }
 0x52c   : > { %v9227_v9 = vpop.permute.xlu0 %9226  ;;  %v6467_v11 = vsub.f32 1.0, %v14713_v34  ;;  %v9138_v21 = vunpack.i.l.bf16 %v14798_v13  ;;  %v5420_v48 = vsel %vm1694_vm2, %v5388_v26, %v9223_v50  ;;  %v5421_v30 = vsel %vm1694_vm2, %v5389_v41, %v9224_v10  ;;  %v17791_v51 = vld [vmem:[#allocation195_spill] sm:$0xff] }
 0x52d   : > { %7444 = vmatprep.mubr.msk.bf16.mxu0 %vm1496_vm6, %v17789_v45  ;;  %v5262_v31 = vsel %vm1529_vm10, %v5230_v18, %v8843_v47  ;;  %v9229_v29 = vunpack.i.h.bf16 %v9227_v9  ;;  %v9228_v46 = vunpack.i.l.bf16 %v9227_v9  ;;  %v9232_v40 = vpop.permute.xlu1 %9231  ;;  %v6466_v35 = vsub.f32 1.0, %v14702_v2 }
 0x52e   : > { %6655 = vperm.xlu0 %9365, %v6465_v0   ;;  %v5233_v34 = vsel %vm1496_vm6, %v17790_v36, %v8824_v58  ;;  %v8853_v32 = vunpack.i.l.bf16 %v14500_v1  ;;  %v5295_v0 = vsel %vm1562_vm12, %v5263_v54, %v8909_v38  ;;  %v5294_v13 = vsel %vm1562_vm12, %v5262_v31, %v8908_v33 }
 0x52f   : > { %6650 = vperm.xlu1 %9366, %v6464_v20   ;;  %v5327_v50 = vsel %vm1595_vm13, %v5295_v0, %v9044_v16  ;;  %v5326_v10 = vsel %vm1595_vm13, %v5294_v13, %v9043_v5  ;;  %v5452_v61 = vpack.c.bf16 %v5421_v30, %v5420_v48  ;;  %v6469_v18 = vsub.f32 1.0, %v14721_v19  ;;  %v17792_v16 = vld [vmem:[#allocation65_spill] sm:$0xff] }
 0x530   : > { %v5359_v2 = vsel %vm1628_vm14, %v5327_v50, %v9139_v60  ;;  %v5358_v47 = vsel %vm1628_vm14, %v5326_v10, %v9138_v21  ;;  %v9234_v26 = vunpack.i.h.bf16 %v9232_v40  ;;  %v9233_v41 = vunpack.i.l.bf16 %v9232_v40  ;;  %v9237_v54 = vpop.permute.xlu0 %9236 }
 0x531   : > { %v8854_v58 = vunpack.i.h.bf16 %v14500_v1  ;;  %v5390_v38 = vsel %vm1661_vm15, %v5358_v47, %v9228_v46  ;;  %v5391_v33 = vsel %vm1661_vm15, %v5359_v2, %v9229_v29  ;;  %v6468_v9 = vsub.f32 1.0, %v14729_v28  ;;  %v17793_v1 = vld [vmem:[#allocation4_spill] sm:$0xff]  ;;  %v9242_v40 = vpop.permute.xlu1 %9241 }
 0x532   : > { %6697 = vperm.xlu0 %9365, %v6467_v11   ;;  %v5232_v19 = vsel %vm1496_vm6, %v17791_v51, %v8823_v63  ;;  %v8829_v8 = vunpack.i.h.bf16 %v14472_v15  ;;  %v8914_v45 = vunpack.i.h.bf16 %v14556_v52  ;;  %v8913_v20 = vunpack.i.l.bf16 %v14556_v52  ;;  %v17798_v51 = vld [vmem:[#allocation82_spill] sm:$0xff] }
 0x533   : > { %5827 = vmatmul.mubr.bf16.gmra.mxu0 %v5452_v61  ;;  %6692 = vperm.xlu1 %9366, %v6466_v35   ;;  %v17794_v5 = vpack.c.bf16 %v17792_v16, %v17793_v1  ;;  %v5264_v11 = vsel %vm1529_vm10, %v5232_v19, %v8853_v32  ;;  %v9064_v28 = vunpack.i.h.bf16 %v14685_v37  ;;  %v9063_v60 = vunpack.i.l.bf16 %v14685_v37 }
 0x534   : > { %v6471_v63 = vsub.f32 1.0, %v14737_v56  ;;  %v9144_v21 = vunpack.i.h.bf16 %v14806_v59  ;;  %v9143_v48 = vunpack.i.l.bf16 %v14806_v59  ;;  %v5422_v52 = vsel %vm1694_vm2, %v5390_v38, %v9233_v41  ;;  %v17796_v41 = vld [vmem:[#allocation149_spill] sm:$0xff] }
 0x535   : > { %7445 = vmatprep.mubr.msk.bf16.mxu0 %vm1496_vm6, %v17794_v5  ;;  %v5423_v30 = vsel %vm1694_vm2, %v5391_v33, %v9234_v26  ;;  %v5265_v31 = vsel %vm1529_vm10, %v5233_v34, %v8854_v58  ;;  %v9239_v29 = vunpack.i.h.bf16 %v9237_v54  ;;  %v9238_v46 = vunpack.i.l.bf16 %v9237_v54  ;;  %v17795_v26 = vld [vmem:[#allocation150_spill] sm:$0xff] }
 0x536   : > { %6707 = vperm.xlu0 %9365, %v6469_v18   ;;  %v6470_v35 = vsub.f32 1.0, %v14745_v23  ;;  %v8828_v37 = vunpack.i.l.bf16 %v14472_v15  ;;  %v8864_v56 = vunpack.i.h.bf16 %v14518_v24  ;;  %v5296_v36 = vsel %vm1562_vm12, %v5264_v11, %v8913_v20 }
 0x537   : > { %6702 = vperm.xlu1 %9366, %v6468_v9   ;;  %v5297_v59 = vsel %vm1562_vm12, %v5265_v31, %v8914_v45  ;;  %v5328_v32 = vsel %vm1595_vm13, %v5296_v36, %v9063_v60  ;;  %v5454_v13 = vpack.c.bf16 %v5423_v30, %v5422_v52  ;;  %v6473_v34 = vsub.f32 1.0, %v14753_v17  ;;  %v9247_v9 = vpop.permute.xlu0 %9246  ;;  %v9252_v60 = vpop.permute.xlu1 %9251  ;;  %v17800_v36 = vld [vmem:[#allocation50_spill] sm:$0xff] }
 0x538   : > { %v5329_v0 = vsel %vm1595_vm13, %v5297_v59, %v9064_v28  ;;  %v5360_v50 = vsel %vm1628_vm14, %v5328_v32, %v9143_v48  ;;  %v9244_v10 = vunpack.i.h.bf16 %v9242_v40  ;;  %v9243_v15 = vunpack.i.l.bf16 %v9242_v40 }
 0x539   : > { %v5361_v23 = vsel %vm1628_vm14, %v5329_v0, %v9144_v21  ;;  %v8863_v61 = vunpack.i.l.bf16 %v14518_v24  ;;  %v5392_v18 = vsel %vm1661_vm15, %v5360_v50, %v9238_v46  ;;  %v6472_v47 = vsub.f32 1.0, %v14761_v22  ;;  %v17797_v24 = vld [vmem:[#allocation19_spill] sm:$0xff]  ;;  %v17802_v50 = vld [vmem:[#allocation140_spill] sm:$0xff] }
 0x53a   : > { %6717 = vperm.xlu0 %9365, %v6471_v63   ;;  %v5393_v2 = vsel %vm1661_vm15, %v5361_v23, %v9239_v29  ;;  %v5235_v17 = vsel %vm1496_vm6, %v17795_v26, %v8829_v8  ;;  %v5234_v58 = vsel %vm1496_vm6, %v17796_v41, %v8828_v37  ;;  %v8939_v38 = vunpack.i.h.bf16 %v14595_v57 }
 0x53b   : > { %5835 = vmatmul.mubr.bf16.gmra.mxu0 %v5454_v13  ;;  %6712 = vperm.xlu1 %9366, %v6470_v35   ;;  %v8938_v33 = vunpack.i.l.bf16 %v14595_v57  ;;  %v17799_v19 = vpack.c.bf16 %v17797_v24, %v17798_v51  ;;  %v5267_v45 = vsel %vm1529_vm10, %v5235_v17, %v8864_v56  ;;  %v9069_v22 = vunpack.i.h.bf16 %v14691_v44  ;;  %v9257_v13 = vpop.permute.xlu0 %9256 }
 0x53c   : > { %v9068_v20 = vunpack.i.l.bf16 %v14691_v44  ;;  %v6475_v8 = vsub.f32 1.0, %v14769_v27  ;;  %v9149_v54 = vunpack.i.h.bf16 %v14811_v49  ;;  %v9148_v16 = vunpack.i.l.bf16 %v14811_v49 }
 0x53d   : > { %7446 = vmatprep.mubr.msk.bf16.mxu0 %vm1496_vm6, %v17799_v19  ;;  %v5424_v57 = vsel %vm1694_vm2, %v5392_v18, %v9243_v15  ;;  %v5425_v1 = vsel %vm1694_vm2, %v5393_v2, %v9244_v10  ;;  %v5266_v5 = vsel %vm1529_vm10, %v5234_v58, %v8863_v61  ;;  %v9249_v11 = vunpack.i.h.bf16 %v9247_v9  ;;  %v9262_v58 = vpop.permute.xlu1 %9261 }
 0x53e   : > { %6727 = vperm.xlu0 %9365, %v6473_v34   ;;  %v9248_v28 = vunpack.i.l.bf16 %v9247_v9  ;;  %v6474_v63 = vsub.f32 1.0, %v14777_v43  ;;  %v8849_v44 = vunpack.i.h.bf16 %v14488_v62  ;;  %v8848_v27 = vunpack.i.l.bf16 %v14488_v62  ;;  %v17801_v34 = vld [vmem:[#allocation105_spill] sm:$0xff] }
 0x53f   : > { %6722 = vperm.xlu1 %9366, %v6472_v47   ;;  %v5299_v21 = vsel %vm1562_vm12, %v5267_v45, %v8939_v38  ;;  %v5298_v49 = vsel %vm1562_vm12, %v5266_v5, %v8938_v33  ;;  %v8868_v48 = vunpack.i.l.bf16 %v14511_v55  ;;  %v5456_v31 = vpack.c.bf16 %v5425_v1, %v5424_v57  ;;  %v9267_v5 = vpop.permute.xlu0 %9266 }
 0x540   : > { %v5331_v52 = vsel %vm1595_vm13, %v5299_v21, %v9069_v22  ;;  %v5330_v30 = vsel %vm1595_vm13, %v5298_v49, %v9068_v20  ;;  %v9254_v46 = vunpack.i.h.bf16 %v9252_v60  ;;  %v9253_v40 = vunpack.i.l.bf16 %v9252_v60 }
 0x541   : > { %v5363_v29 = vsel %vm1628_vm14, %v5331_v52, %v9149_v54  ;;  %v5362_v43 = vsel %vm1628_vm14, %v5330_v30, %v9148_v16  ;;  %v8869_v62 = vunpack.i.h.bf16 %v14511_v55  ;;  %v6476_v56 = vsub.f32 1.0, %v14791_v12  ;;  %v17804_v55 = vld [vmem:[#allocation3_spill] sm:$0xff] }
 0x542   : > { %6737 = vperm.xlu0 %9365, %v6475_v8   ;;  %v5394_v35 = vsel %vm1661_vm15, %v5362_v43, %v9248_v28  ;;  %v5395_v37 = vsel %vm1661_vm15, %v5363_v29, %v9249_v11  ;;  %v5236_v59 = vsel %vm1496_vm6, %v17800_v36, %v8848_v27  ;;  %v8944_v32 = vunpack.i.h.bf16 %v14581_v4  ;;  %v17805_v11 = vld [vmem:[#allocation17_spill] sm:$0xff]  ;;  %v17806_v28 = vld [vmem:[#allocation111_spill] sm:$0xff] }
 0x543   : > { %5843 = vmatmul.mubr.bf16.gmra.mxu0 %v5456_v31  ;;  %6732 = vperm.xlu1 %9366, %v6474_v63   ;;  %v8943_v0 = vunpack.i.l.bf16 %v14581_v4  ;;  %v17803_v23 = vpack.c.bf16 %v17801_v34, %v17802_v50  ;;  %v5237_v10 = vsel %vm1496_vm6, %v17804_v55, %v8849_v44  ;;  %v5268_v15 = vsel %vm1529_vm10, %v5236_v59, %v8868_v48  ;;  %v17808_v63 = vld [vmem:[#allocation20_spill] sm:$0xff]  ;;  %v17810_v48 = vld [vmem:[#allocation59_spill] sm:$0xff] }
 0x544   : > { %v9074_v12 = vunpack.i.h.bf16 %v14693_v14  ;;  %v9073_v61 = vunpack.i.l.bf16 %v14693_v14  ;;  %v9154_v18 = vunpack.i.h.bf16 %v14817_v42  ;;  %v9153_v2 = vunpack.i.l.bf16 %v14817_v42  ;;  %v17812_v55 = vld [vmem:[#allocation71_spill] sm:$0xff] }
 0x545   : > { %7447 = vmatprep.mubr.msk.bf16.mxu0 %vm1496_vm6, %v17803_v23  ;;  %v5426_v4 = vsel %vm1694_vm2, %v5394_v35, %v9253_v40  ;;  %v5427_v47 = vsel %vm1694_vm2, %v5395_v37, %v9254_v46  ;;  %v5269_v26 = vsel %vm1529_vm10, %v5237_v10, %v8869_v62  ;;  %v9259_v17 = vunpack.i.h.bf16 %v9257_v13  ;;  %v9272_v62 = vpop.permute.xlu1 %9271  ;;  %v17811_v35 = vld [vmem:[#allocation55_spill] sm:$0xff] }
 0x546   : > { %v9258_v41 = vunpack.i.l.bf16 %v9257_v13  ;;  %v6478_v38 = vsub.f32 1.0, %v14804_v25  ;;  %v8859_v33 = vunpack.i.h.bf16 %v14506_v6  ;;  %v5300_v14 = vsel %vm1562_vm12, %v5268_v15, %v8943_v0 }
 0x547   : > { %6742 = vperm.xlu1 %9366, %v6476_v56   ;;  %v5301_v9 = vsel %vm1562_vm12, %v5269_v26, %v8944_v32  ;;  %v8858_v42 = vunpack.i.l.bf16 %v14506_v6  ;;  %v5332_v24 = vsel %vm1595_vm13, %v5300_v14, %v9073_v61  ;;  %v5458_v19 = vpack.c.bf16 %v5427_v47, %v5426_v4  ;;  %v9277_v47 = vpop.permute.xlu0 %9276  ;;  %v17814_v26 = vld [vmem:[#allocation102_spill] sm:$0xff] }
 0x548   : > { %v5333_v51 = vsel %vm1595_vm13, %v5301_v9, %v9074_v12  ;;  %v5364_v45 = vsel %vm1628_vm14, %v5332_v24, %v9153_v2  ;;  %v9264_v20 = vunpack.i.h.bf16 %v9262_v58  ;;  %v9263_v25 = vunpack.i.l.bf16 %v9262_v58  ;;  %v17817_v58 = vld [vmem:[#allocation64_spill] sm:$0xff] }
 0x549   : > { %v5365_v22 = vsel %vm1628_vm14, %v5333_v51, %v9154_v18  ;;  %v8874_v8 = vunpack.i.h.bf16 %v14529_v3  ;;  %v8873_v54 = vunpack.i.l.bf16 %v14529_v3  ;;  %v5396_v16 = vsel %vm1661_vm15, %v5364_v45, %v9258_v41  ;;  %v17809_v3 = vld [vmem:[#allocation112_spill] sm:$0xff]  ;;  %v17813_v18 = vld [vmem:[#allocation15_spill] sm:$0xff] }
 0x54a   : > { %v5397_v6 = vsel %vm1661_vm15, %v5365_v22, %v9259_v17  ;;  %v8949_v57 = vunpack.i.h.bf16 %v14603_v7  ;;  %v8948_v1 = vunpack.i.l.bf16 %v14603_v7  ;;  %v17807_v60 = vpack.c.bf16 %v17805_v11, %v17806_v28  ;;  %v17815_v17 = vld [vmem:[#allocation2_spill] sm:$0xff]  ;;  %v17819_v9 = vld [vmem:[#allocation56_spill] sm:$0xff]  ;;  %v17820_v51 = vld [vmem:[#allocation75_spill] sm:$0xff] }
 0x54b   : > { %5851 = vmatmul.mubr.bf16.gmra.mxu0 %v5458_v19  ;;  %6752 = vperm.xlu1 %9366, %v6478_v38   ;;  %v5239_v44 = vsel %vm1496_vm6, %v17808_v63, %v8859_v33  ;;  %v5238_v27 = vsel %vm1496_vm6, %v17809_v3, %v8858_v42  ;;  %v9079_v21 = vunpack.i.h.bf16 %v14708_v39  ;;  %v9078_v49 = vunpack.i.l.bf16 %v14708_v39  ;;  %v17818_v33 = vld [vmem:[#allocation35_spill] sm:$0xff] }
 0x54c   : > { %7448 = vmatprep.mubr.msk.bf16.mxu0 %vm1496_vm6, %v17807_v60  ;;  %v9159_v52 = vunpack.i.h.bf16 %v17810_v48  ;;  %v9158_v7 = vunpack.i.l.bf16 %v17810_v48  ;;  %v5428_v30 = vsel %vm1694_vm2, %v5396_v16, %v9263_v25  ;;  %v5429_v31 = vsel %vm1694_vm2, %v5397_v6, %v9264_v20  ;;  %v9282_v6 = vpop.permute.xlu1 %9281  ;;  %v17822_v48 = vld [vmem:[#allocation118_spill] sm:$0xff] }
 0x54d   : > { %v5270_v29 = vsel %vm1529_vm10, %v5238_v27, %v8873_v54  ;;  %v5271_v43 = vsel %vm1529_vm10, %v5239_v44, %v8874_v8  ;;  %v9269_v46 = vunpack.i.h.bf16 %v9267_v5  ;;  %v9268_v40 = vunpack.i.l.bf16 %v9267_v5 }
 0x54e   : > { %v8879_v37 = vunpack.i.h.bf16 %v17811_v35  ;;  %v5303_v56 = vsel %vm1562_vm12, %v5271_v43, %v8949_v57  ;;  %v5302_v39 = vsel %vm1562_vm12, %v5270_v29, %v8948_v1  ;;  %v8878_v36 = vunpack.i.l.bf16 %v17811_v35  ;;  %v17821_v57 = vld [vmem:[#allocation89_spill] sm:$0xff]  ;;  %v17823_v29 = vld [vmem:[#allocation130_spill] sm:$0xff]  ;;  %v17825_v35 = vld [vmem:[#allocation67_spill] sm:$0xff] }
 0x54f   : > { %v5335_v59 = vsel %vm1595_vm13, %v5303_v56, %v9079_v21  ;;  %v5334_v32 = vsel %vm1595_vm13, %v5302_v39, %v9078_v49  ;;  %v5460_v0 = vpack.c.bf16 %v5429_v31, %v5428_v30  ;;  %v9274_v50 = vunpack.i.h.bf16 %v9272_v62  ;;  %v17827_v56 = vld [vmem:[#allocation18_spill] sm:$0xff] }
 0x550   : > { %v5367_v13 = vsel %vm1628_vm14, %v5335_v59, %v9159_v52  ;;  %v5366_v34 = vsel %vm1628_vm14, %v5334_v32, %v9158_v7  ;;  %v9273_v23 = vunpack.i.l.bf16 %v9272_v62  ;;  %v8884_v10 = vunpack.i.h.bf16 %v17812_v55  ;;  %v17824_v62 = vld [vmem:[#allocation84_spill] sm:$0xff] }
 0x551   : > { %v8883_v15 = vunpack.i.l.bf16 %v17812_v55  ;;  %v5398_v12 = vsel %vm1661_vm15, %v5366_v34, %v9268_v40  ;;  %v5399_v61 = vsel %vm1661_vm15, %v5367_v13, %v9269_v46  ;;  %v8954_v2 = vunpack.i.h.bf16 %v17813_v18  ;;  %v9287_v40 = vpop.permute.xlu0 %9286  ;;  %v17829_v32 = vld [vmem:[#allocation72_spill] sm:$0xff]  ;;  %v17830_v34 = vld [vmem:[#allocation97_spill] sm:$0xff] }
 0x552   : > { %v8953_v4 = vunpack.i.l.bf16 %v17813_v18  ;;  %v17816_v41 = vpack.c.bf16 %v17814_v26, %v17815_v17  ;;  %v5241_v38 = vsel %vm1496_vm6, %v17817_v58, %v8879_v37  ;;  %v5240_v14 = vsel %vm1496_vm6, %v17818_v33, %v8878_v36  ;;  %v17828_v36 = vld [vmem:[#allocation81_spill] sm:$0xff] }
 0x553   : > { %5859 = vmatmul.mubr.bf16.gmra.mxu0 %v5460_v0  ;;  %v9084_v42 = vunpack.i.h.bf16 %v17819_v9  ;;  %v9083_v24 = vunpack.i.l.bf16 %v17819_v9  ;;  %v9164_v19 = vunpack.i.h.bf16 %v17820_v51  ;;  %v9163_v45 = vunpack.i.l.bf16 %v17820_v51  ;;  %v17832_v51 = vld [vmem:[#allocation32_spill] sm:$0xff] }
 0x554   : > { %7449 = vmatprep.mubr.msk.bf16.mxu0 %vm1496_vm6, %v17816_v41  ;;  %v5430_v22 = vsel %vm1694_vm2, %v5398_v12, %v9273_v23  ;;  %v5431_v20 = vsel %vm1694_vm2, %v5399_v61, %v9274_v50  ;;  %v5272_v25 = vsel %vm1529_vm10, %v5240_v14, %v8883_v15  ;;  %v5273_v8 = vsel %vm1529_vm10, %v5241_v38, %v8884_v10 }
 0x555   : > { %v9279_v54 = vunpack.i.h.bf16 %v9277_v47  ;;  %v9278_v16 = vunpack.i.l.bf16 %v9277_v47  ;;  %v8889_v1 = vunpack.i.h.bf16 %v17821_v57  ;;  %v5304_v5 = vsel %vm1562_vm12, %v5272_v25, %v8953_v4  ;;  %v17831_v4 = vld [vmem:[#allocation31_spill] sm:$0xff]  ;;  %v17833_v25 = vld [vmem:[#allocation117_spill] sm:$0xff] }
 0x556   : > { %v5305_v11 = vsel %vm1562_vm12, %v5273_v8, %v8954_v2  ;;  %v8888_v28 = vunpack.i.l.bf16 %v17821_v57  ;;  %v5336_v60 = vsel %vm1595_vm13, %v5304_v5, %v9083_v24  ;;  %v5462_v44 = vpack.c.bf16 %v5431_v20, %v5430_v22  ;;  %v9292_v2 = vpop.permute.xlu1 %9291  ;;  %v17835_v57 = vld [vmem:[#allocation127_spill] sm:$0xff] }
 0x557   : > { %v5337_v63 = vsel %vm1595_vm13, %v5305_v11, %v9084_v42  ;;  %v5368_v3 = vsel %vm1628_vm14, %v5336_v60, %v9163_v45  ;;  %v9284_v21 = vunpack.i.h.bf16 %v9282_v6  ;;  %v9283_v49 = vunpack.i.l.bf16 %v9282_v6  ;;  %v17834_v6 = vld [vmem:[#allocation24_spill] sm:$0xff]  ;;  %v17837_v5 = vld [vmem:[#allocation51_spill] sm:$0xff] }
 0x558   : > { %v5369_v27 = vsel %vm1628_vm14, %v5337_v63, %v9164_v19  ;;  %v8894_v52 = vunpack.i.h.bf16 %v17822_v48  ;;  %v8893_v7 = vunpack.i.l.bf16 %v17822_v48  ;;  %v5400_v30 = vsel %vm1661_vm15, %v5368_v3, %v9278_v16  ;;  %v9297_v16 = vpop.permute.xlu0 %9296  ;;  %v17839_v63 = vld [vmem:[#allocation91_spill] sm:$0xff] }
 0x559   : > { %v5401_v31 = vsel %vm1661_vm15, %v5369_v27, %v9279_v54  ;;  %v8979_v43 = vunpack.i.h.bf16 %v17823_v29  ;;  %v8978_v46 = vunpack.i.l.bf16 %v17823_v29  ;;  %v17826_v37 = vpack.c.bf16 %v17824_v62, %v17825_v35  ;;  %v17840_v27 = vld [vmem:[#allocation122_spill] sm:$0xff] }
 0x55a   : > { %v5243_v39 = vsel %vm1496_vm6, %v17827_v56, %v8889_v1  ;;  %v5242_v59 = vsel %vm1496_vm6, %v17828_v36, %v8888_v28  ;;  %v9089_v0 = vunpack.i.h.bf16 %v17829_v32  ;;  %v9088_v13 = vunpack.i.l.bf16 %v17829_v32  ;;  %v17838_v28 = vld [vmem:[#allocation139_spill] sm:$0xff] }
 0x55b   : > { %5867 = vmatmul.mubr.bf16.gmra.mxu0 %v5462_v44  ;;  %v9169_v50 = vunpack.i.h.bf16 %v17830_v34  ;;  %v9168_v23 = vunpack.i.l.bf16 %v17830_v34  ;;  %v5432_v55 = vsel %vm1694_vm2, %v5400_v30, %v9283_v49  ;;  %v5433_v10 = vsel %vm1694_vm2, %v5401_v31, %v9284_v21  ;;  %v17842_v34 = vld [vmem:[#allocation146_spill] sm:$0xff] }
 0x55c   : > { %7450 = vmatprep.mubr.msk.bf16.mxu0 %vm1496_vm6, %v17826_v37  ;;  %v5274_v15 = vsel %vm1529_vm10, %v5242_v59, %v8893_v7  ;;  %v5275_v12 = vsel %vm1529_vm10, %v5243_v39, %v8894_v52  ;;  %v9289_v61 = vunpack.i.h.bf16 %v9287_v40  ;;  %v9288_v18 = vunpack.i.l.bf16 %v9287_v40 }
 0x55d   : > { %v8919_v47 = vunpack.i.h.bf16 %v17831_v4  ;;  %v5307_v26 = vsel %vm1562_vm12, %v5275_v12, %v8979_v43  ;;  %v5306_v17 = vsel %vm1562_vm12, %v5274_v15, %v8978_v46  ;;  %v8918_v41 = vunpack.i.l.bf16 %v17831_v4  ;;  %v9302_v43 = vpop.permute.xlu1 %9301  ;;  %v17841_v46 = vld [vmem:[#allocation80_spill] sm:$0xff]  ;;  %v17845_v4 = vld [vmem:[#allocation39_spill] sm:$0xff] }
 0x55e   : > { %v5339_v58 = vsel %vm1595_vm13, %v5307_v26, %v9089_v0  ;;  %v5338_v38 = vsel %vm1595_vm13, %v5306_v17, %v9088_v13  ;;  %v5464_v33 = vpack.c.bf16 %v5433_v10, %v5432_v55  ;;  %v9294_v42 = vunpack.i.h.bf16 %v9292_v2  ;;  %v17843_v15 = vld [vmem:[#allocation16_spill] sm:$0xff]  ;;  %v15199_v26 = vpop.f32.mrf.mxu0  ;;  %v17847_v17 = vld [vmem:[#allocation23_spill] sm:$0xff] }
 0x55f   : > { %v5371_v14 = vsel %vm1628_vm14, %v5339_v58, %v9169_v50  ;;  %v5370_v9 = vsel %vm1628_vm14, %v5338_v38, %v9168_v23  ;;  %v9293_v24 = vunpack.i.l.bf16 %v9292_v2  ;;  %v8924_v19 = vunpack.i.h.bf16 %v17832_v51  ;;  %v17844_v2 = vld [vmem:[#allocation83_spill] sm:$0xff]  ;;  %v17848_v58 = vld [vmem:[#allocation114_spill] sm:$0xff] }
 0x560   : > { %v8923_v45 = vunpack.i.l.bf16 %v17832_v51  ;;  %v5402_v22 = vsel %vm1661_vm15, %v5370_v9, %v9288_v18  ;;  %v5403_v20 = vsel %vm1661_vm15, %v5371_v14, %v9289_v61  ;;  %v8984_v8 = vunpack.i.h.bf16 %v17833_v25  ;;  %v9307_v18 = vpop.permute.xlu0 %9306 }
 0x561   : > { %v8983_v54 = vunpack.i.l.bf16 %v17833_v25  ;;  %v17836_v1 = vpack.c.bf16 %v17834_v6, %v17835_v57  ;;  %v5245_v11 = vsel %vm1496_vm6, %v17837_v5, %v8919_v47  ;;  %v5244_v60 = vsel %vm1496_vm6, %v17838_v28, %v8918_v41  ;;  %v15216_v5 = vpop.f32.mrf.mxu0 }
 0x562   : > { %v9094_v44 = vunpack.i.h.bf16 %v17839_v63  ;;  %v9093_v3 = vunpack.i.l.bf16 %v17839_v63  ;;  %v9174_v21 = vunpack.i.h.bf16 %v17840_v27  ;;  %v9173_v49 = vunpack.i.l.bf16 %v17840_v27 }
 0x563   : > { %5875 = vmatmul.mubr.bf16.gmra.mxu0 %v5464_v33  ;;  %v5434_v48 = vsel %vm1694_vm2, %v5402_v22, %v9293_v24  ;;  %v5435_v52 = vsel %vm1694_vm2, %v5403_v20, %v9294_v42  ;;  %v5276_v7 = vsel %vm1529_vm10, %v5244_v60, %v8923_v45  ;;  %v5277_v30 = vsel %vm1529_vm10, %v5245_v11, %v8924_v19  ;;  %v17849_v33 = vld [vmem:[#allocation119_spill] sm:$0xff]  ;;  %v9312_v42 = vpop.permute.xlu1 %9311  ;;  %v17850_v24 = vld [vmem:[#allocation13_spill] sm:$0xff] }
 0x564   : > { %7451 = vmatprep.mubr.msk.bf16.mxu0 %vm1496_vm6, %v17836_v1  ;;  %v9299_v31 = vunpack.i.h.bf16 %v9297_v16  ;;  %v9298_v29 = vunpack.i.l.bf16 %v9297_v16  ;;  %v8929_v40 = vunpack.i.h.bf16 %v17841_v46  ;;  %v5308_v62 = vsel %vm1562_vm12, %v5276_v7, %v8983_v54  ;;  %v17851_v16 = vld [vmem:[#allocation54_spill] sm:$0xff] }
 0x565   : > { %v5309_v35 = vsel %vm1562_vm12, %v5277_v30, %v8984_v8  ;;  %v8928_v37 = vunpack.i.l.bf16 %v17841_v46  ;;  %v5340_v56 = vsel %vm1595_vm13, %v5308_v62, %v9093_v3  ;;  %v5466_v36 = vpack.c.bf16 %v5435_v52, %v5434_v48  ;;  %v17854_v62 = vld [vmem:[#allocation21_spill] sm:$0xff] }
 0x566   : > { %v5341_v39 = vsel %vm1595_vm13, %v5309_v35, %v9094_v44  ;;  %v5372_v59 = vsel %vm1628_vm14, %v5340_v56, %v9173_v49  ;;  %v9304_v0 = vunpack.i.h.bf16 %v9302_v43  ;;  %v9303_v13 = vunpack.i.l.bf16 %v9302_v43  ;;  %v17852_v49 = vld [vmem:[#allocation70_spill] sm:$0xff]  ;;  %v17855_v35 = vld [vmem:[#allocation108_spill] sm:$0xff]  ;;  %v15233_v56 = vpop.f32.mrf.mxu0 }
 0x567   : > { %v5373_v32 = vsel %vm1628_vm14, %v5341_v39, %v9174_v21  ;;  %v8934_v50 = vunpack.i.h.bf16 %v17842_v34  ;;  %v8933_v23 = vunpack.i.l.bf16 %v17842_v34  ;;  %v5404_v55 = vsel %vm1661_vm15, %v5372_v59, %v9298_v29  ;;  %v9322_v7 = vpop.permute.xlu1 %9321  ;;  %v17853_v29 = vld [vmem:[#allocation9_spill] sm:$0xff]  ;;  %v17857_v39 = vld [vmem:[#allocation6_spill] sm:$0xff] }
 0x568   : > { %v5405_v10 = vsel %vm1661_vm15, %v5373_v32, %v9299_v31  ;;  %v8989_v12 = vunpack.i.h.bf16 %v17843_v15  ;;  %v8988_v61 = vunpack.i.l.bf16 %v17843_v15  ;;  %v17846_v47 = vpack.c.bf16 %v17844_v2, %v17845_v4  ;;  %v17858_v59 = vld [vmem:[#allocation142_spill] sm:$0xff]  ;;  %v17861_v4 = vld [vmem:[#allocation88_spill] sm:$0xff] }
 0x569   : > { %v5247_v41 = vsel %vm1496_vm6, %v17847_v17, %v8929_v40  ;;  %v5246_v38 = vsel %vm1496_vm6, %v17848_v58, %v8928_v37  ;;  %v9099_v14 = vunpack.i.h.bf16 %v17849_v33  ;;  %v9098_v9 = vunpack.i.l.bf16 %v17849_v33  ;;  %v9317_v40 = vpop.permute.xlu0 %9316  ;;  %v15250_v58 = vpop.f32.mrf.mxu0 }
 0x56a   : > { %v9179_v51 = vunpack.i.h.bf16 %v17850_v24  ;;  %v9178_v19 = vunpack.i.l.bf16 %v17850_v24  ;;  %v5436_v45 = vsel %vm1694_vm2, %v5404_v55, %v9303_v13  ;;  %v5437_v22 = vsel %vm1694_vm2, %v5405_v10, %v9304_v0  ;;  %v17859_v0 = vld [vmem:[#allocation33_spill] sm:$0xff] }
 0x56b   : > { %5883 = vmatmul.mubr.bf16.gmra.mxu0 %v5466_v36  ;;  %v5278_v20 = vsel %vm1529_vm10, %v5246_v38, %v8933_v23  ;;  %v5279_v25 = vsel %vm1529_vm10, %v5247_v41, %v8934_v50  ;;  %v9309_v8 = vunpack.i.h.bf16 %v9307_v18  ;;  %v9308_v54 = vunpack.i.l.bf16 %v9307_v18  ;;  %v17860_v50 = vld [vmem:[#allocation40_spill] sm:$0xff] }
 0x56c   : > { %7452 = vmatprep.mubr.msk.bf16.mxu0 %vm1496_vm6, %v17846_v47  ;;  %v8959_v6 = vunpack.i.h.bf16 %v17851_v16  ;;  %v5311_v57 = vsel %vm1562_vm12, %v5279_v25, %v8989_v12  ;;  %v5310_v1 = vsel %vm1562_vm12, %v5278_v20, %v8988_v61  ;;  %v8958_v11 = vunpack.i.l.bf16 %v17851_v16  ;;  %v17863_v16 = vld [vmem:[#allocation36_spill] sm:$0xff] }
 0x56d   : > { %v5343_v28 = vsel %vm1595_vm13, %v5311_v57, %v9099_v14  ;;  %v5342_v60 = vsel %vm1595_vm13, %v5310_v1, %v9098_v9  ;;  %v5468_v63 = vpack.c.bf16 %v5437_v22, %v5436_v45  ;;  %v9314_v27 = vunpack.i.h.bf16 %v9312_v42  ;;  %v9332_v9 = vpop.permute.xlu1 %9331  ;;  %v17862_v22 = vld [vmem:[#allocation8_spill] sm:$0xff]  ;;  %v9327_v1 = vpop.permute.xlu0 %9326 }
 0x56e   : > { %v5375_v44 = vsel %vm1628_vm14, %v5343_v28, %v9179_v51  ;;  %v5374_v3 = vsel %vm1628_vm14, %v5342_v60, %v9178_v19  ;;  %v9313_v21 = vunpack.i.l.bf16 %v9312_v42  ;;  %v8964_v48 = vunpack.i.h.bf16 %v17852_v49  ;;  %v17865_v28 = vld [vmem:[#allocation53_spill] sm:$0xff] }
 0x56f   : > { %v8963_v52 = vunpack.i.l.bf16 %v17852_v49  ;;  %v5406_v30 = vsel %vm1661_vm15, %v5374_v3, %v9308_v54  ;;  %v5407_v31 = vsel %vm1661_vm15, %v5375_v44, %v9309_v8  ;;  %v8994_v43 = vunpack.i.h.bf16 %v17853_v29  ;;  %v17867_v44 = vld [vmem:[#allocation113_spill] sm:$0xff]  ;;  %v17869_v49 = vld [vmem:[#allocation34_spill] sm:$0xff] }
 0x570   : > { %v8993_v46 = vunpack.i.l.bf16 %v17853_v29  ;;  %v17856_v37 = vpack.c.bf16 %v17854_v62, %v17855_v35  ;;  %v5249_v36 = vsel %vm1496_vm6, %v17857_v39, %v8959_v6  ;;  %v5248_v32 = vsel %vm1496_vm6, %v17858_v59, %v8958_v11  ;;  %v17864_v11 = vld [vmem:[#allocation69_spill] sm:$0xff] }
 0x571   : > { %v9104_v13 = vunpack.i.h.bf16 %v17859_v0  ;;  %v9103_v34 = vunpack.i.l.bf16 %v17859_v0  ;;  %v9184_v23 = vunpack.i.h.bf16 %v17860_v50  ;;  %v9183_v55 = vunpack.i.l.bf16 %v17860_v50  ;;  %v17871_v39 = vld [vmem:[#allocation145_spill] sm:$0xff] }
 0x572   : > { %v5438_v10 = vsel %vm1694_vm2, %v5406_v30, %v9313_v21  ;;  %v5439_v15 = vsel %vm1694_vm2, %v5407_v31, %v9314_v27  ;;  %v5280_v12 = vsel %vm1529_vm10, %v5248_v32, %v8963_v52  ;;  %v5281_v61 = vsel %vm1529_vm10, %v5249_v36, %v8964_v48  ;;  %v17868_v27 = vld [vmem:[#allocation66_spill] sm:$0xff] }
 0x573   : > { %5891 = vmatmul.mubr.bf16.gmra.mxu0 %v5468_v63  ;;  %v9319_v18 = vunpack.i.h.bf16 %v9317_v40  ;;  %v9318_v2 = vunpack.i.l.bf16 %v9317_v40  ;;  %v8969_v47 = vunpack.i.h.bf16 %v17861_v4  ;;  %v5312_v17 = vsel %vm1562_vm12, %v5280_v12, %v8993_v46  ;;  %v15267_v63 = vpop.f32.mrf.mxu0 }
 0x574   : > { %7453 = vmatprep.mubr.msk.bf16.mxu0 %vm1496_vm6, %v17856_v37  ;;  %v5313_v41 = vsel %vm1562_vm12, %v5281_v61, %v8994_v43  ;;  %v8968_v38 = vunpack.i.l.bf16 %v17861_v4  ;;  %v5344_v33 = vsel %vm1595_vm13, %v5312_v17, %v9103_v34  ;;  %v5470_v42 = vpack.c.bf16 %v5439_v15, %v5438_v10  ;;  %v15281_v37 = vpop.permute.xlu1 %9341  ;;  %v9337_v61 = vpop.permute.xlu0 %9336 }
 0x575   : > { %v5345_v14 = vsel %vm1595_vm13, %v5313_v41, %v9104_v13  ;;  %v5376_v24 = vsel %vm1628_vm14, %v5344_v33, %v9183_v55  ;;  %v9324_v19 = vunpack.i.h.bf16 %v9322_v7  ;;  %v9323_v45 = vunpack.i.l.bf16 %v9322_v7  ;;  %v17870_v7 = vld [vmem:[#allocation134_spill] sm:$0xff]  ;;  %v15286_v0 = vpop.f32.mrf.mxu0  ;;  %v17873_v41 = vld [vmem:[#allocation93_spill] sm:$0xff] }
 0x576   : > { %v5377_v51 = vsel %vm1628_vm14, %v5345_v14, %v9184_v23  ;;  %v8974_v20 = vunpack.i.h.bf16 %v17862_v22  ;;  %v8973_v25 = vunpack.i.l.bf16 %v17862_v22  ;;  %v5408_v8 = vsel %vm1661_vm15, %v5376_v24, %v9318_v2  ;;  %v17874_v14 = vld [vmem:[#allocation29_spill] sm:$0xff] }
 0x577   : > { %v5409_v54 = vsel %vm1661_vm15, %v5377_v51, %v9319_v18  ;;  %v9019_v6 = vunpack.i.h.bf16 %v17863_v16  ;;  %v9018_v57 = vunpack.i.l.bf16 %v17863_v16  ;;  %v17866_v60 = vpack.c.bf16 %v17864_v11, %v17865_v28  ;;  %v17872_v18 = vld [vmem:[#allocation57_spill] sm:$0xff]  ;;  %v17880_v16 = vld [vmem:[#allocation90_spill] sm:$0xff] }
 0x578   : > { %v5251_v3 = vsel %vm1496_vm6, %v17867_v44, %v8969_v47  ;;  %v5250_v21 = vsel %vm1496_vm6, %v17868_v27, %v8968_v38  ;;  %v9109_v48 = vunpack.i.h.bf16 %v17869_v49  ;;  %v9108_v52 = vunpack.i.l.bf16 %v17869_v49  ;;  %v17877_v51 = vld [vmem:[#allocation141_spill] sm:$0xff] }
 0x579   : > { %v9189_v30 = vunpack.i.h.bf16 %v17870_v7  ;;  %v9188_v31 = vunpack.i.l.bf16 %v17870_v7  ;;  %v5440_v29 = vsel %vm1694_vm2, %v5408_v8, %v9323_v45  ;;  %v5441_v43 = vsel %vm1694_vm2, %v5409_v54, %v9324_v19  ;;  %v17878_v45 = vld [vmem:[#allocation22_spill] sm:$0xff]  ;;  %v15311_v54 = vpop.permute.xlu1 %9351  ;;  %v17881_v27 = vld [vmem:[#allocation73_spill] sm:$0xff] }
 0x57a   : > { %v5282_v46 = vsel %vm1529_vm10, %v5250_v21, %v8973_v25  ;;  %v5283_v40 = vsel %vm1529_vm10, %v5251_v3, %v8974_v20  ;;  %v9329_v62 = vunpack.i.h.bf16 %v9327_v1  ;;  %v9328_v35 = vunpack.i.l.bf16 %v9327_v1  ;;  %v17879_v20 = vld [vmem:[#allocation131_spill] sm:$0xff] }
 0x57b   : > { %5899 = vmatmul.mubr.bf16.gmra.mxu0 %v5470_v42  ;;  %v8999_v36 = vunpack.i.h.bf16 %v17871_v39  ;;  %v5315_v59 = vsel %vm1562_vm12, %v5283_v40, %v9019_v6  ;;  %v5314_v32 = vsel %vm1562_vm12, %v5282_v46, %v9018_v57  ;;  %v8998_v13 = vunpack.i.l.bf16 %v17871_v39  ;;  %v17875_v42 = vld [vmem:[#allocation129_spill] sm:$0xff]  ;;  %v17882_v39 = vld [vmem:[#allocation120_spill] sm:$0xff] }
 0x57c   : > { %7454 = vmatprep.mubr.msk.bf16.mxu0 %vm1496_vm6, %v17866_v60  ;;  %v5347_v34 = vsel %vm1595_vm13, %v5315_v59, %v9109_v48  ;;  %v5346_v50 = vsel %vm1595_vm13, %v5314_v32, %v9108_v52  ;;  %v5472_v23 = vpack.c.bf16 %v5441_v43, %v5440_v29  ;;  %v9334_v15 = vunpack.i.h.bf16 %v9332_v9  ;;  %v9347_v52 = vpop.permute.xlu0 %9346 }
 0x57d   : > { %v5379_v55 = vsel %vm1628_vm14, %v5347_v34, %v9189_v30  ;;  %v5378_v10 = vsel %vm1628_vm14, %v5346_v50, %v9188_v31  ;;  %v9333_v12 = vunpack.i.l.bf16 %v9332_v9  ;;  %v9004_v2 = vunpack.i.h.bf16 %v17872_v18  ;;  %v15303_v9 = vpop.f32.mrf.mxu0  ;;  %v15333_v32 = vpop.permute.xlu1 %9361  ;;  %v17883_v50 = vld [vmem:[#allocation132_spill] sm:$0xff] }
 0x57e   : > { %v9003_v4 = vunpack.i.l.bf16 %v17872_v18  ;;  %v5410_v47 = vsel %vm1661_vm15, %v5378_v10, %v9328_v35  ;;  %v5411_v17 = vsel %vm1661_vm15, %v5379_v55, %v9329_v62  ;;  %v9024_v38 = vunpack.i.h.bf16 %v17873_v41  ;;  %v17884_v10 = vld [vmem:[#allocation27_spill] sm:$0xff] }
 0x57f   : > { %v9023_v33 = vunpack.i.l.bf16 %v17873_v41  ;;  %v17876_v24 = vpack.c.bf16 %v17874_v14, %v17875_v42  ;;  %v5253_v19 = vsel %vm1496_vm6, %v17877_v51, %v8999_v36  ;;  %v5252_v22 = vsel %vm1496_vm6, %v17878_v45, %v8998_v13  ;;  %v15322_v7 = vpop.f32.mrf.mxu0 }
 0x580   : > { %v9114_v25 = vunpack.i.h.bf16 %v17879_v20  ;;  %v9113_v8 = vunpack.i.l.bf16 %v17879_v20  ;;  %v9194_v6 = vunpack.i.h.bf16 %v17880_v16  ;;  %v9193_v57 = vunpack.i.l.bf16 %v17880_v16  ;;  %v9357_v42 = vpop.permute.xlu0 %9356 }
 0x581   : > { %v5442_v1 = vsel %vm1694_vm2, %v5410_v47, %v9333_v12  ;;  %v5443_v11 = vsel %vm1694_vm2, %v5411_v17, %v9334_v15  ;;  %v5284_v28 = vsel %vm1529_vm10, %v5252_v22, %v9003_v4  ;;  %v5285_v60 = vsel %vm1529_vm10, %v5253_v19, %v9004_v2  ;;  %v17885_v15 = vld [vmem:[#allocation26_spill] sm:$0xff]  ;;  %v17889_v47 = vld [vmem:[#allocation92_spill] sm:$0xff] }
 0x582   : > { %v9339_v44 = vunpack.i.h.bf16 %v9337_v61  ;;  %v9338_v3 = vunpack.i.l.bf16 %v9337_v61  ;;  %v9009_v21 = vunpack.i.h.bf16 %v17881_v27  ;;  %v5316_v49 = vsel %vm1562_vm12, %v5284_v28, %v9023_v33  ;;  %v17887_v61 = vld [vmem:[#allocation116_spill] sm:$0xff]  ;;  %v17888_v2 = vld [vmem:[#allocation86_spill] sm:$0xff] }
 0x583   : > { %5907 = vmatmul.mubr.bf16.gmra.mxu0 %v5472_v23  ;;  %v5317_v48 = vsel %vm1562_vm12, %v5285_v60, %v9024_v38  ;;  %v9008_v30 = vunpack.i.l.bf16 %v17881_v27  ;;  %v5348_v31 = vsel %vm1595_vm13, %v5316_v49, %v9113_v8  ;;  %v5474_v43 = vpack.c.bf16 %v5443_v11, %v5442_v1  ;;  %v17890_v38 = vld [vmem:[#allocation47_spill] sm:$0xff]  ;;  %v17891_v8 = vld [vmem:[#allocation37_spill] sm:$0xff] }
 0x584   : > { %7455 = vmatprep.mubr.msk.bf16.mxu0 %vm1496_vm6, %v17876_v24  ;;  %v5349_v29 = vsel %vm1595_vm13, %v5317_v48, %v9114_v25  ;;  %v5380_v46 = vsel %vm1628_vm14, %v5348_v31, %v9193_v57  ;;  %v9344_v62 = vunpack.i.h.bf16 %v15281_v37  ;;  %v9343_v35 = vunpack.i.l.bf16 %v15281_v37  ;;  %v15343_v37 = vpop.f32.mrf.mxu0  ;;  %v15357_v25 = vpop.permute.xlu1 %6505 }
 0x585   : > { %v5381_v40 = vsel %vm1628_vm14, %v5349_v29, %v9194_v6  ;;  %v9014_v36 = vunpack.i.h.bf16 %v17882_v39  ;;  %v9013_v59 = vunpack.i.l.bf16 %v17882_v39  ;;  %v5412_v13 = vsel %vm1661_vm15, %v5380_v46, %v9338_v3  ;;  %v15371_v48 = vpop.permute.xlu0 %6500  ;;  %v17894_v46 = vld [vmem:[#allocation14_spill] sm:$0xff]  ;;  %v17896_v39 = vld [vmem:[#allocation143_spill] sm:$0xff] }
 0x586   : > { %v5413_v34 = vsel %vm1661_vm15, %v5381_v40, %v9339_v44  ;;  %v9029_v23 = vunpack.i.h.bf16 %v17883_v50  ;;  %v9028_v55 = vunpack.i.l.bf16 %v17883_v50  ;;  %v17886_v12 = vpack.c.bf16 %v17884_v10, %v17885_v15  ;;  %v15362_v1 = vpop.f32.mrf.mxu0  ;;  %17892 = vst [vmem:[#allocation58_spill] sm:$0xff] %v15371_v48 }
 0x587   : > { %v5255_v18 = vsel %vm1496_vm6, %v17887_v61, %v9009_v21  ;;  %v5254_v4 = vsel %vm1496_vm6, %v17888_v2, %v9008_v30  ;;  %v9119_v17 = vunpack.i.h.bf16 %v17889_v47  ;;  %v9118_v41 = vunpack.i.l.bf16 %v17889_v47 }
 0x588   : > { %v9199_v33 = vunpack.i.h.bf16 %v17890_v38  ;;  %v9198_v14 = vunpack.i.l.bf16 %v17890_v38  ;;  %v5444_v24 = vsel %vm1694_vm2, %v5412_v13, %v9343_v35  ;;  %v5445_v51 = vsel %vm1694_vm2, %v5413_v34, %v9344_v62  ;;  %v17895_v35 = vld [vmem:[#allocation7_spill] sm:$0xff]  ;;  %v17899_v34 = vld [vmem:[#allocation10_spill] sm:$0xff]  ;;  %v15391_v15 = vpop.permute.xlu1 %6510 }
 0x589   : > { %v5286_v19 = vsel %vm1529_vm10, %v5254_v4, %v9013_v59  ;;  %v5287_v45 = vsel %vm1529_vm10, %v5255_v18, %v9014_v36  ;;  %v9349_v22 = vunpack.i.h.bf16 %v9347_v52  ;;  %v9348_v20 = vunpack.i.l.bf16 %v9347_v52  ;;  %v17893_v52 = vld [vmem:[#allocation87_spill] sm:$0xff]  ;;  %v17898_v59 = vld [vmem:[#allocation85_spill] sm:$0xff] }
 0x58a   : > { %v9049_v16 = vunpack.i.h.bf16 %v17891_v8  ;;  %v5319_v6 = vsel %vm1562_vm12, %v5287_v45, %v9029_v23  ;;  %v5318_v57 = vsel %vm1562_vm12, %v5286_v19, %v9028_v55  ;;  %v9048_v11 = vunpack.i.l.bf16 %v17891_v8  ;;  %v17900_v23 = vld [vmem:[#allocation48_spill] sm:$0xff] }
 0x58b   : > { %5915 = vmatmul.mubr.bf16.gmra.mxu0 %v5474_v43  ;;  %v5351_v28 = vsel %vm1595_vm13, %v5319_v6, %v9119_v17  ;;  %v5350_v60 = vsel %vm1595_vm13, %v5318_v57, %v9118_v41  ;;  %v5476_v44 = vpack.c.bf16 %v5445_v51, %v5444_v24  ;;  %v9354_v21 = vunpack.i.h.bf16 %v15311_v54  ;;  %v17901_v57 = vld [vmem:[#allocation128_spill] sm:$0xff] }
 0x58c   : > { %7456 = vmatprep.mubr.msk.bf16.mxu0 %vm1496_vm6, %v17886_v12  ;;  %v5382_v3 = vsel %vm1628_vm14, %v5350_v60, %v9198_v14  ;;  %v5383_v27 = vsel %vm1628_vm14, %v5351_v28, %v9199_v33  ;;  %v9353_v49 = vunpack.i.l.bf16 %v15311_v54  ;;  %v9054_v30 = vunpack.i.h.bf16 %v17893_v52  ;;  %v15383_v54 = vpop.f32.mrf.mxu0  ;;  %v15401_v14 = vpop.permute.xlu0 %6515 }
 0x58d   : > { %v9053_v31 = vunpack.i.l.bf16 %v17893_v52  ;;  %v5414_v29 = vsel %vm1661_vm15, %v5382_v3, %v9348_v20  ;;  %v5415_v43 = vsel %vm1661_vm15, %v5383_v27, %v9349_v22  ;;  %v9059_v40 = vunpack.i.h.bf16 %v17894_v46  ;;  %v15413_v6 = vpop.permute.xlu1 %6520 }
 0x58e   : > { %v9058_v62 = vunpack.i.l.bf16 %v17894_v46  ;;  %v17897_v36 = vpack.c.bf16 %v17895_v35, %v17896_v39  ;;  %v5257_v13 = vsel %vm1496_vm6, %v17898_v59, %v9049_v16  ;;  %v5256_v50 = vsel %vm1496_vm6, %v17899_v34, %v9048_v11  ;;  %v15403_v24 = vpop.f32.mrf.mxu0  ;;  %v17902_v11 = vld [vmem:[#allocation115_spill] sm:$0xff] }
 0x58f   : > { %v9124_v55 = vunpack.i.h.bf16 %v17900_v23  ;;  %v9123_v10 = vunpack.i.l.bf16 %v17900_v23  ;;  %v9204_v12 = vunpack.i.h.bf16 %v14892_v53  ;;  %v9203_v61 = vunpack.i.l.bf16 %v14892_v53 }
 0x590   : > { %v5446_v18 = vsel %vm1694_vm2, %v5414_v29, %v9353_v49  ;;  %v5447_v2 = vsel %vm1694_vm2, %v5415_v43, %v9354_v21  ;;  %v5288_v4 = vsel %vm1529_vm10, %v5256_v50, %v9053_v31  ;;  %v5289_v47 = vsel %vm1529_vm10, %v5257_v13, %v9054_v30  ;;  %v15419_v60 = vpop.f32.mrf.mxu0  ;;  %v15423_v27 = vpop.permute.xlu0 %6525 }
 0x591   : > { %v9359_v17 = vunpack.i.h.bf16 %v9357_v42  ;;  %v9358_v41 = vunpack.i.l.bf16 %v9357_v42  ;;  %v5320_v38 = vsel %vm1562_vm12, %v5288_v4, %v9058_v62  ;;  %v5321_v33 = vsel %vm1562_vm12, %v5289_v47, %v9059_v40  ;;  %v15427_v49 = vpop.permute.xlu1 %6530 }
 0x592   : > { %v5352_v53 = vsel %vm1595_vm13, %v5320_v38, %v9123_v10  ;;  %v5353_v51 = vsel %vm1595_vm13, %v5321_v33, %v9124_v55  ;;  %v5478_v19 = vpack.c.bf16 %v5447_v2, %v5446_v18  ;;  %v9364_v20 = vunpack.i.h.bf16 %v15333_v32 }
 0x593   : > { %5923 = vmatmul.mubr.bf16.gmra.mxu0 %v5476_v44  ;;  %v5384_v45 = vsel %vm1628_vm14, %v5352_v53, %v9203_v61  ;;  %v5385_v22 = vsel %vm1628_vm14, %v5353_v51, %v9204_v12  ;;  %v9363_v42 = vunpack.i.l.bf16 %v15333_v32  ;;  %v17903_v28 = vpack.c.bf16 %v17901_v57, %v17902_v11  ;;  %v15425_v32 = vpop.f32.mrf.mxu0 }
 0x594   : > { %7457 = vmatprep.mubr.msk.bf16.mxu0 %vm1496_vm6, %v17897_v36  ;;  %v5416_v8 = vsel %vm1661_vm15, %v5384_v45, %v9358_v41  ;;  %v5417_v16 = vsel %vm1661_vm15, %v5385_v22, %v9359_v17  ;;  %v15429_v52 = vpop.permute.xlu0 %6535 }
 0x595   : > { %v5448_v44 = vsel %vm1694_vm2, %v5416_v8, %v9363_v42  ;;  %v5449_v3 = vsel %vm1694_vm2, %v5417_v16, %v9364_v20  ;;  %v15431_v30 = vpop.f32.mrf.mxu0  ;;  %v15433_v31 = vpop.permute.xlu1 %6540 }
 0x596   : > { %v5480_v21 = vpack.c.bf16 %v5449_v3, %v5448_v44 }
 0x597   : > { %v15435_v29 = vpop.f32.mrf.mxu0 }
 0x598   : > { %v15437_v43 = vpop.permute.xlu0 %6545 }
 0x599   : > { %17904 = vst [vmem:[#allocation74_spill] sm:$0xff] %v15437_v43  ;;  %v15439_v46 = vpop.f32.mrf.mxu0  ;;  %v15441_v40 = vpop.permute.xlu1 %6550 }
 0x59a   : > { %17905 = vst [vmem:[#allocation95_spill] sm:$0xff] %v15441_v40 }
 0x59b   : > { %5931 = vmatmul.mubr.bf16.gmra.mxu0 %v5478_v19  ;;  %v15445_v35 = vpop.f32.mrf.mxu0 }
 0x59c   : > { %7458 = vmatprep.mubr.msk.bf16.mxu0 %vm1496_vm6, %v17903_v28  ;;  %v15443_v62 = vpop.permute.xlu0 %6555 }
 0x59d   : > { %17906 = vst [vmem:[#allocation121_spill] sm:$0xff] %v15443_v62  ;;  %v15447_v39 = vpop.permute.xlu1 %6560  ;;  %v15449_v36 = vpop.f32.mrf.mxu0  ;;  %v6021_v62 = vld [vmem:[%s15520_s12 + $0x18] sm:$0xff] }
 0x59e   : > { %17907 = vst [vmem:[#allocation11_spill] sm:$0xff] %v15447_v39  ;;  %v17927_v39 = vld [vmem:[#allocation167_spill] sm:$0xff] }
 0x59f   : > { %v15453_v13 = vpop.f32.mrf.mxu0 }
 0x5a0   : > { %v15451_v59 = vpop.permute.xlu0 %6565 }
 0x5a1   : > { %17908 = vst [vmem:[#allocation12_spill] sm:$0xff] %v15451_v59  ;;  %v15455_v34 = vpop.permute.xlu1 %6570  ;;  %v15459_v23 = vpop.f32.mrf.mxu0 }
 0x5a2   : > { %17909 = vst [vmem:[#allocation133_spill] sm:$0xff] %v15455_v34 }
 0x5a3   : > { %5939 = vmatmul.mubr.bf16.gmra.mxu0 %v5480_v21  ;;  %v15463_v10 = vpop.f32.mrf.mxu0 }
 0x5a4   : > { %v15457_v50 = vpop.permute.xlu0 %6575 }
 0x5a5   : > { %17910 = vst [vmem:[#allocation96_spill] sm:$0xff] %v15457_v50  ;;  %v15461_v55 = vpop.permute.xlu1 %6580  ;;  %v15467_v61 = vpop.f32.mrf.mxu0 }
 0x5a6   : > { %17911 = vst [vmem:[#allocation49_spill] sm:$0xff] %v15461_v55 }
 0x5a7   : > { %v15473_v4 = vpop.f32.mrf.mxu0 }
 0x5a8   : > { %v15465_v12 = vpop.permute.xlu0 %6585 }
 0x5a9   : > { %17912 = vst [vmem:[#allocation61_spill] sm:$0xff] %v15465_v12  ;;  %v15469_v18 = vpop.permute.xlu1 %6590  ;;  %v15477_v17 = vpop.f32.mrf.mxu0 }
 0x5aa   : > { %17913 = vst [vmem:[#allocation77_spill] sm:$0xff] %v15469_v18 }
 0x5ab   : > { %v15481_v38 = vpop.f32.mrf.mxu0 }
 0x5ac   : > { %v15471_v2 = vpop.permute.xlu0 %6595 }
 0x5ad   : > { %17914 = vst [vmem:[#allocation103_spill] sm:$0xff] %v15471_v2  ;;  %v15475_v47 = vpop.permute.xlu1 %6600  ;;  %v15487_v51 = vpop.f32.mrf.mxu0 }
 0x5ae   : > { %17915 = vst [vmem:[#allocation125_spill] sm:$0xff] %v15475_v47  ;;  %v6019_v47 = vld [vmem:[%s15520_s12 + $0x8] sm:$0xff] }
 0x5af   : > { %v15491_v45 = vpop.f32.mrf.mxu0 }
 0x5b0   : > { %v15479_v41 = vpop.permute.xlu0 %6605 }
 0x5b1   : > { %17916 = vst [vmem:[#allocation43_spill] sm:$0xff] %v15479_v41  ;;  %v15483_v33 = vpop.permute.xlu1 %6610  ;;  %v15495_v20 = vpop.f32.mrf.mxu0 }
 0x5b2   : > { %17917 = vst [vmem:[#allocation44_spill] sm:$0xff] %v15483_v33 }
 0x5b3   : > { %v15501_v16 = vpop.f32.mrf.mxu0 }
 0x5b4   : > { %v15485_v53 = vpop.permute.xlu0 %6615 }
 0x5b5   : > { %17918 = vst [vmem:[#allocation136_spill] sm:$0xff] %v15485_v53  ;;  %v15489_v19 = vpop.permute.xlu1 %6620  ;;  %v15505_v11 = vpop.f32.mrf.mxu0  ;;  %v17029_v53 = vsub.f32 1.0, %v17927_v39 }
 0x5b6   : > { %17919 = vst [vmem:[#allocation94_spill] sm:$0xff] %v15489_v19 }
 0x5b7   : > { %v15512_v44 = vpop.f32.mrf.mxu0 }
 0x5b8   : > { %v15493_v22 = vpop.permute.xlu0 %6625 }
 0x5b9   : > { %17920 = vst [vmem:[#allocation25_spill] sm:$0xff] %v15493_v22  ;;  %v15497_v42 = vpop.permute.xlu1 %6630 }
 0x5ba   : > { %17921 = vst [vmem:[#allocation60_spill] sm:$0xff] %v15497_v42  ;;  %v6018_v42 = vld [vmem:[%s15520_s12] sm:$0xff] }
 0x5bb   : > { %v6146_v2 = vmul.f32 %v17927_v39, %v6018_v42 }
 0x5bc   : > { %v15499_v8 = vpop.permute.xlu0 %6635 }
 0x5bd   : > { %17922 = vst [vmem:[#allocation76_spill] sm:$0xff] %v15499_v8  ;;  %v15503_v57 = vpop.permute.xlu1 %6640  ;;  %v15525_v8 = vld [vmem:[%s16548_s10] ss:$0 sm:$0xff] }
 0x5be   : > { %17923 = vst [vmem:[#allocation99_spill] sm:$0xff] %v15503_v57 }
 0x5c0   : > { %v15507_v28 = vpop.permute.xlu0 %6645 }
 0x5c1   : > { %17924 = vst [vmem:[#allocation124_spill] sm:$0xff] %v15507_v28  ;;  %v15514_v3 = vpop.permute.xlu1 %6650 }
 0x5c2   : > { %17925 = vst [vmem:[#allocation41_spill] sm:$0xff] %v15514_v3 }
 0x5c4   : > { %v15528_v57 = vpop.permute.xlu0 %6655 }
 0x5c5   : > { %17926 = vst [vmem:[#allocation42_spill] sm:$0xff] %v15528_v57  ;;  %v15533_v41 = vpop.permute.xlu1 %6692  ;;  %v6020_v57 = vld [vmem:[%s15520_s12 + $0x10] sm:$0xff] }
 0x5c6   : > { %17928 = vst [vmem:[#allocation135_spill] sm:$0xff] %v15533_v41 }
 0x5eb   : > { %v5820_v21 = vpop.f32.mrf.mxu0 }
 0x5ec   : > { %v5821_v28 = vadd.f32 %v5820_v21, %v15216_v5 }
 0x5ed   : > { %v5822_v22 = vpop.f32.mrf.mxu0 }
 0x5ee   : > { %v5954_v3 = vadd.f32 %v15525_v8, %v5821_v28  ;;  %v17929_v22 = vld [vmem:[#allocation168_spill] sm:$0xff]  ;;  %v9640_v28 = vld [vmem:[%s16542_s4 + $0x58] sm:$0xff] }
 0x5ef   : > { %v5823_v19 = vpop.f32.mrf.mxu0  ;;  %v6477_v12 = vsub.f32 1.0, %v9640_v28  ;;  %v17931_v59 = vsub.f32 1.0, %v17929_v22 }
 0x5f0   : > { %v5986_v33 = vand.u32 2147483647, %v5954_v3  ;;  %v5824_v43 = vadd.f32 %v5823_v19, %v15250_v58  ;;  %v6114_v5 = vmul.f32 %v17029_v53, %v5954_v3  ;;  %v6850_v58 = vmul.f32 %v15533_v41, %v6018_v42  ;;  %v15547_v19 = vpop.permute.xlu0 %6697  ;;  %v17932_v42 = vld [vmem:[#allocation169_spill] sm:$0xff] }
 0x5f1   : > { %v5825_v21 = vpop.f32.mrf.mxu0  ;;  %17930 = vst [vmem:[#allocation100_spill] sm:$0xff] %v15547_v19  ;;  %v6147_v3 = vmul.f32 %v17929_v22, %v6019_v47 }
 0x5f2   : > { %v5955_v18 = vadd.f32 %v15525_v8, %v5824_v43  ;;  %6242 = vrot.lane.b32.xlu0 %v5986_v33, %s9684_s14  ;;  %v6178_v50 = vadd.f32 %v6146_v2, %v6114_v5  ;;  %v6851_v33 = vmul.f32 %v15547_v19, %v6019_v47  ;;  %v9641_v2 = vld [vmem:[%s16542_s4 + $0x70] sm:$0xff]  ;;  %v17935_v19 = vsub.f32 1.0, %v17932_v42 }
 0x5f3   : > { %v5828_v55 = vpop.f32.mrf.mxu0  ;;  %v6480_v5 = vsub.f32 1.0, %v9641_v2 }
 0x5f4   : > { %v5987_v21 = vand.u32 2147483647, %v5955_v18  ;;  %v5829_v53 = vadd.f32 %v15199_v26, %v5828_v55  ;;  %v6115_v34 = vmul.f32 %v17931_v59, %v5955_v18  ;;  %v6658_v28 = vmul.f32 %v15371_v48, %v6178_v50  ;;  %v15562_v26 = vpop.permute.xlu1 %6702  ;;  %v17936_v48 = vld [vmem:[#allocation170_spill] sm:$0xff] }
 0x5f5   : > { %v5830_v43 = vpop.f32.mrf.mxu0  ;;  %17933 = vst [vmem:[#allocation30_spill] sm:$0xff] %v15562_v26  ;;  %v6148_v18 = vmul.f32 %v17932_v42, %v6020_v57 }
 0x5f6   : > { %v5956_v41 = vadd.f32 %v15525_v8, %v5829_v53  ;;  %6244 = vrot.lane.b32.xlu1 %v5987_v21, %s9684_s14  ;;  %6747 = vperm.xlu0 %9365, %v6477_v12   ;;  %v6179_v59 = vadd.f32 %v6147_v3, %v6115_v34  ;;  %v15564_v50 = vadd.f32 %v6850_v58, %v6658_v28  ;;  %v9642_v58 = vld [vmem:[%s16542_s4 + $0x68] sm:$0xff]  ;;  %v6022_v34 = vld [vmem:[%s15520_s12 + $0x20] sm:$0xff] }
 0x5f7   : > { %v5831_v55 = vpop.f32.mrf.mxu0  ;;  %v6852_v12 = vmul.f32 %v15562_v26, %v6020_v57  ;;  %v6479_v3 = vsub.f32 1.0, %v9642_v58  ;;  %v6149_v57 = vmul.f32 %v17936_v48, %v6021_v62  ;;  %v17940_v26 = vld [vmem:[#allocation171_spill] sm:$0xff] }
 0x5f8   : > { %17934 = vst [vmem:[#allocation63_spill] sm:$0xff] %v15564_v50  ;;  %v5988_v47 = vand.u32 2147483647, %v5956_v41  ;;  %v5832_v43 = vadd.f32 %v15233_v56, %v5831_v55  ;;  %v6116_v2 = vmul.f32 %v17935_v19, %v5956_v41  ;;  %v6659_v53 = vmul.f32 %v15357_v25, %v6179_v59  ;;  %v15579_v56 = vpop.permute.xlu0 %6707 }
 0x5f9   : > { %v5833_v21 = vpop.f32.mrf.mxu0  ;;  %17937 = vst [vmem:[#allocation79_spill] sm:$0xff] %v15579_v56  ;;  %v17939_v50 = vsub.f32 1.0, %v17936_v48 }
 0x5fa   : > { %v5957_v28 = vadd.f32 %v15525_v8, %v5832_v43  ;;  %6762 = vperm.xlu1 %9366, %v6480_v5   ;;  %6246 = vrot.lane.b32.xlu0 %v5988_v47, %s9684_s14  ;;  %v6180_v41 = vadd.f32 %v6148_v18, %v6116_v2  ;;  %v15581_v19 = vadd.f32 %v6851_v33, %v6659_v53  ;;  %v9643_v33 = vld [vmem:[%s16542_s4 + $0x80] sm:$0xff]  ;;  %v6023_v18 = vld [vmem:[%s15520_s12 + $0x28] sm:$0xff] }
 0x5fb   : > { %v5836_v59 = vpop.f32.mrf.mxu0  ;;  %v6853_v47 = vmul.f32 %v15579_v56, %v6021_v62  ;;  %v6482_v2 = vsub.f32 1.0, %v9643_v33  ;;  %v6150_v62 = vmul.f32 %v17940_v26, %v6022_v34  ;;  %v17944_v56 = vld [vmem:[#allocation172_spill] sm:$0xff] }
 0x5fc   : > { %17938 = vst [vmem:[#allocation109_spill] sm:$0xff] %v15581_v19  ;;  %v5989_v55 = vand.u32 2147483647, %v5957_v28  ;;  %v5837_v21 = vadd.f32 %v5836_v59, %v15286_v0  ;;  %v6117_v58 = vmul.f32 %v17939_v50, %v5957_v28  ;;  %v6660_v43 = vmul.f32 %v15391_v15, %v6180_v41  ;;  %v15596_v0 = vpop.permute.xlu1 %6712 }
 0x5fd   : > { %v5838_v5 = vpop.f32.mrf.mxu0  ;;  %17941 = vst [vmem:[#allocation101_spill] sm:$0xff] %v15596_v0  ;;  %v17943_v19 = vsub.f32 1.0, %v17940_v26 }
 0x5fe   : > { %v5958_v53 = vadd.f32 %v15525_v8, %v5837_v21  ;;  %6248 = vrot.lane.b32.xlu1 %v5989_v55, %s9684_s14  ;;  %6757 = vperm.xlu0 %9365, %v6479_v3   ;;  %v6181_v50 = vadd.f32 %v6149_v57, %v6117_v58  ;;  %v15598_v28 = vadd.f32 %v6852_v12, %v6660_v43  ;;  %v9644_v12 = vld [vmem:[%s16542_s4 + $0x78] sm:$0xff]  ;;  %v6024_v57 = vld [vmem:[%s15520_s12 + $0x30] sm:$0xff] }
 0x5ff   : > { %v5839_v41 = vpop.f32.mrf.mxu0  ;;  %v6854_v3 = vmul.f32 %v15596_v0, %v6022_v34  ;;  %v6481_v58 = vsub.f32 1.0, %v9644_v12  ;;  %v6151_v34 = vmul.f32 %v17944_v56, %v6023_v18  ;;  %v17948_v0 = vld [vmem:[#allocation173_spill] sm:$0xff] }
 0x600   : > { %17942 = vst [vmem:[#allocation138_spill] sm:$0xff] %v15598_v28  ;;  %v5990_v59 = vand.u32 2147483647, %v5958_v53  ;;  %v5840_v5 = vadd.f32 %v5839_v41, %v15322_v7  ;;  %v6118_v33 = vmul.f32 %v17943_v19, %v5958_v53  ;;  %v6661_v21 = vmul.f32 %v15401_v14, %v6181_v50  ;;  %v15613_v7 = vpop.permute.xlu0 %6717 }
 0x601   : > { %v5841_v55 = vpop.f32.mrf.mxu0  ;;  %17945 = vst [vmem:[#allocation98_spill] sm:$0xff] %v15613_v7  ;;  %v17947_v28 = vsub.f32 1.0, %v17944_v56 }
 0x602   : > { %v5959_v43 = vadd.f32 %v15525_v8, %v5840_v5  ;;  %6772 = vperm.xlu1 %9366, %v6482_v2   ;;  %6250 = vrot.lane.b32.xlu0 %v5990_v59, %s9684_s14  ;;  %v6182_v19 = vadd.f32 %v6150_v62, %v6118_v33  ;;  %v15615_v53 = vadd.f32 %v6853_v47, %v6661_v21  ;;  %v9645_v47 = vld [vmem:[%s16542_s4 + $0x90] sm:$0xff]  ;;  %v6025_v62 = vld [vmem:[%s15520_s12 + $0x38] sm:$0xff] }
 0x603   : > { %v5844_v50 = vpop.f32.mrf.mxu0  ;;  %v6855_v59 = vmul.f32 %v15613_v7, %v6023_v18  ;;  %v6484_v33 = vsub.f32 1.0, %v9645_v47  ;;  %v6152_v18 = vmul.f32 %v17948_v0, %v6024_v57  ;;  %v17952_v7 = vld [vmem:[#allocation174_spill] sm:$0xff] }
 0x604   : > { %17946 = vst [vmem:[#allocation38_spill] sm:$0xff] %v15615_v53  ;;  %v5991_v41 = vand.u32 2147483647, %v5959_v43  ;;  %v5845_v55 = vadd.f32 %v15267_v63, %v5844_v50  ;;  %v6119_v12 = vmul.f32 %v17947_v28, %v5959_v43  ;;  %v6662_v5 = vmul.f32 %v15413_v6, %v6182_v19  ;;  %v15630_v63 = vpop.permute.xlu1 %6722 }
 0x605   : > { %v5846_v2 = vpop.f32.mrf.mxu0  ;;  %17949 = vst [vmem:[#allocation62_spill] sm:$0xff] %v15630_v63  ;;  %v17951_v53 = vsub.f32 1.0, %v17948_v0 }
 0x606   : > { %v5960_v21 = vadd.f32 %v15525_v8, %v5845_v55  ;;  %6252 = vrot.lane.b32.xlu1 %v5991_v41, %s9684_s14  ;;  %6767 = vperm.xlu0 %9365, %v6481_v58   ;;  %v6183_v28 = vadd.f32 %v6151_v34, %v6119_v12  ;;  %v15632_v43 = vadd.f32 %v6854_v3, %v6662_v5  ;;  %v9646_v3 = vld [vmem:[%s16542_s4 + $0x88] sm:$0xff]  ;;  %v6026_v34 = vld [vmem:[%s15520_s12 + $0x40] sm:$0xff] }
 0x607   : > { %v5847_v19 = vpop.f32.mrf.mxu0  ;;  %v6856_v58 = vmul.f32 %v15630_v63, %v6024_v57  ;;  %v6483_v12 = vsub.f32 1.0, %v9646_v3  ;;  %v6153_v57 = vmul.f32 %v17952_v7, %v6025_v62  ;;  %v17956_v63 = vld [vmem:[#allocation175_spill] sm:$0xff] }
 0x608   : > { %17950 = vst [vmem:[#allocation46_spill] sm:$0xff] %v15632_v43  ;;  %v5992_v50 = vand.u32 2147483647, %v5960_v21  ;;  %v5848_v2 = vadd.f32 %v15303_v9, %v5847_v19  ;;  %v6120_v47 = vmul.f32 %v17951_v53, %v5960_v21  ;;  %v6663_v55 = vmul.f32 %v15423_v27, %v6183_v28  ;;  %v15647_v9 = vpop.permute.xlu0 %6727 }
 0x609   : > { %v5849_v41 = vpop.f32.mrf.mxu0  ;;  %17953 = vst [vmem:[#allocation45_spill] sm:$0xff] %v15647_v9  ;;  %v17955_v43 = vsub.f32 1.0, %v17952_v7 }
 0x60a   : > { %v5961_v5 = vadd.f32 %v15525_v8, %v5848_v2  ;;  %6782 = vperm.xlu1 %9366, %v6484_v33   ;;  %6254 = vrot.lane.b32.xlu0 %v5992_v50, %s9684_s14  ;;  %v6184_v53 = vadd.f32 %v6152_v18, %v6120_v47  ;;  %v15649_v21 = vadd.f32 %v6855_v59, %v6663_v55  ;;  %v9647_v59 = vld [vmem:[%s16542_s4 + $0xa0] sm:$0xff]  ;;  %v6027_v18 = vld [vmem:[%s15520_s12 + $0x48] sm:$0xff] }
 0x60b   : > { %v5852_v28 = vpop.f32.mrf.mxu0  ;;  %v6857_v50 = vmul.f32 %v15647_v9, %v6025_v62  ;;  %v6486_v47 = vsub.f32 1.0, %v9647_v59  ;;  %v6154_v62 = vmul.f32 %v17956_v63, %v6026_v34 }
 0x60c   : > { %17954 = vst [vmem:[#allocation78_spill] sm:$0xff] %v15649_v21  ;;  %v5993_v19 = vand.u32 2147483647, %v5961_v5  ;;  %v5853_v41 = vadd.f32 %v5852_v28, %v15362_v1  ;;  %v6121_v3 = vmul.f32 %v17955_v43, %v5961_v5  ;;  %v6664_v2 = vmul.f32 %v15427_v49, %v6184_v53  ;;  %v15664_v1 = vpop.permute.xlu1 %6732 }
 0x60d   : > { %v5854_v33 = vpop.f32.mrf.mxu0  ;;  %17957 = vst [vmem:[#allocation106_spill] sm:$0xff] %v15664_v1  ;;  %v17959_v21 = vsub.f32 1.0, %v17956_v63 }
 0x60e   : > { %v5962_v55 = vadd.f32 %v15525_v8, %v5853_v41  ;;  %6256 = vrot.lane.b32.xlu1 %v5993_v19, %s9684_s14  ;;  %6777 = vperm.xlu0 %9365, %v6483_v12   ;;  %v6185_v43 = vadd.f32 %v6153_v57, %v6121_v3  ;;  %v15666_v5 = vadd.f32 %v6856_v58, %v6664_v2  ;;  %v17960_v19 = vld [vmem:[#allocation176_spill] sm:$0xff]  ;;  %v9648_v58 = vld [vmem:[%s16542_s4 + $0x98] sm:$0xff] }
 0x60f   : > { %v5855_v53 = vpop.f32.mrf.mxu0  ;;  %v6858_v12 = vmul.f32 %v15664_v1, %v6026_v34  ;;  %v17044_v57 = vsub.f32 1.0, %v17960_v19  ;;  %v6485_v3 = vsub.f32 1.0, %v9648_v58 }
 0x610   : > { %17958 = vst [vmem:[#allocation126_spill] sm:$0xff] %v15666_v5  ;;  %v5994_v28 = vand.u32 2147483647, %v5962_v55  ;;  %v5856_v33 = vadd.f32 %v5855_v53, %v15403_v24  ;;  %v6122_v59 = vmul.f32 %v17959_v21, %v5962_v55  ;;  %v6665_v41 = vmul.f32 %v15429_v52, %v6185_v43 }
 0x611   : > { %v5857_v9 = vpop.f32.mrf.mxu0 }
 0x612   : > { %v5963_v2 = vadd.f32 %v15525_v8, %v5856_v33  ;;  %6792 = vperm.xlu1 %9366, %v6486_v47   ;;  %6258 = vrot.lane.b32.xlu0 %v5994_v28, %s9684_s14  ;;  %v6186_v24 = vadd.f32 %v6154_v62, %v6122_v59  ;;  %v15681_v21 = vadd.f32 %v6857_v50, %v6665_v41  ;;  %v6028_v33 = vld [vmem:[%s15520_s12 + $0x50] sm:$0xff]  ;;  %v17962_v47 = vld [vmem:[#allocation177_spill] sm:$0xff]  ;;  %v15699_v41 = vpop.permute.xlu1 %6742 }
 0x613   : > { %v5860_v55 = vpop.f32.mrf.mxu0  ;;  %v6155_v9 = vmul.f32 %v17960_v19, %v6027_v18  ;;  %v17043_v1 = vsub.f32 1.0, %v17962_v47  ;;  %v9649_v50 = vld [vmem:[%s16542_s4 + $0xb0] sm:$0xff]  ;;  %17965 = vst [vmem:[#allocation192_spill] sm:$0xff] %v15699_v41 }
 0x614   : > { %17961 = vst [vmem:[#allocation137_spill] sm:$0xff] %v15681_v21  ;;  %v5995_v34 = vand.u32 2147483647, %v5963_v2  ;;  %v5861_v43 = vadd.f32 %v15343_v37, %v5860_v55  ;;  %v6123_v53 = vmul.f32 %v17044_v57, %v5963_v2  ;;  %v6666_v5 = vmul.f32 %v15433_v31, %v6186_v24  ;;  %v15737_v21 = vld [vmem:[%s15520_s12 + $0x68] sm:$0xff] }
 0x615   : > { %v5862_v58 = vpop.f32.mrf.mxu0  ;;  %v6488_v62 = vsub.f32 1.0, %v9649_v50  ;;  %v6156_v55 = vmul.f32 %v17962_v47, %v6028_v33 }
 0x616   : > { %v5964_v18 = vadd.f32 %v15525_v8, %v5861_v43  ;;  %6260 = vrot.lane.b32.xlu1 %v5995_v34, %s9684_s14  ;;  %6787 = vperm.xlu0 %9365, %v6485_v3   ;;  %v15695_v37 = vadd.f32 %v6155_v9, %v6123_v53  ;;  %v15697_v28 = vadd.f32 %v6858_v12, %v6666_v5  ;;  %v15704_v58 = vld [vmem:[%s15520_s12 + $0x58] sm:$0xff]  ;;  %v17966_v34 = vld [vmem:[#allocation178_spill] sm:$0xff]  ;;  %v9650_v5 = vld [vmem:[%s16542_s4 + $0xa8] sm:$0xff] }
 0x617   : > { %v5863_v59 = vpop.f32.mrf.mxu0  ;;  %v17045_v3 = vsub.f32 1.0, %v17966_v34  ;;  %v6487_v12 = vsub.f32 1.0, %v9650_v5 }
 0x618   : > { %17963 = vst [vmem:[#allocation107_spill] sm:$0xff] %v15695_v37  ;;  %17964 = vst [vmem:[#allocation190_spill] sm:$0xff] %v15697_v28  ;;  %v5996_v2 = vand.u32 2147483647, %v5964_v18  ;;  %v5864_v24 = vadd.f32 %v15383_v54, %v5863_v59  ;;  %v6124_v43 = vmul.f32 %v17043_v1, %v5964_v18  ;;  %v6860_v54 = vmul.f32 %v15699_v41, %v6028_v33  ;;  %v9651_v33 = vld [vmem:[%s16542_s4 + $0xc0] sm:$0xff] }
 0x619   : > { %v5865_v50 = vpop.f32.mrf.mxu0  ;;  %v6157_v18 = vmul.f32 %v17966_v34, %v15704_v58 }
 0x61a   : > { %v5965_v9 = vadd.f32 %v15525_v8, %v5864_v24  ;;  %6802 = vperm.xlu1 %9366, %v6488_v62   ;;  %6262 = vrot.lane.b32.xlu0 %v5996_v2, %s9684_s14  ;;  %v6188_v53 = vadd.f32 %v6156_v55, %v6124_v43  ;;  %v6030_v62 = vld [vmem:[%s15520_s12 + $0x60] sm:$0xff]  ;;  %v17967_v24 = vld [vmem:[#allocation180_spill] sm:$0xff]  ;;  %v6490_v55 = vsub.f32 1.0, %v9651_v33 }
 0x61b   : > { %v5868_v59 = vpop.f32.mrf.mxu0  ;;  %v17047_v2 = vsub.f32 1.0, %v17967_v24 }
 0x61c   : > { %v5997_v50 = vand.u32 2147483647, %v5965_v9  ;;  %v5869_v1 = vadd.f32 %v5868_v59, %v15425_v32  ;;  %v6125_v57 = vmul.f32 %v17045_v3, %v5965_v9  ;;  %v6668_v5 = vmul.f32 %v15441_v40, %v6188_v53  ;;  %v15846_v40 = vld [vmem:[%s15520_s12 + $0xa0] sm:$0xff] }
 0x61d   : > { %v5870_v28 = vpop.f32.mrf.mxu0  ;;  %v6158_v3 = vmul.f32 %v17967_v24, %v6030_v62 }
 0x61e   : > { %v5966_v43 = vadd.f32 %v15525_v8, %v5869_v1  ;;  %6264 = vrot.lane.b32.xlu1 %v5997_v50, %s9684_s14  ;;  %6797 = vperm.xlu0 %9365, %v6487_v12   ;;  %v15728_v32 = vadd.f32 %v6157_v18, %v6125_v57  ;;  %v15730_v9 = vadd.f32 %v6860_v54, %v6668_v5  ;;  %v9652_v1 = vld [vmem:[%s16542_s4 + $0xb8] sm:$0xff] }
 0x61f   : > { %v5871_v53 = vpop.f32.mrf.mxu0  ;;  %v6489_v57 = vsub.f32 1.0, %v9652_v1  ;;  %v17970_v54 = vld [vmem:[#allocation181_spill] sm:$0xff] }
 0x620   : > { %17968 = vst [vmem:[#allocation155_spill] sm:$0xff] %v15730_v9  ;;  %v5998_v28 = vand.u32 2147483647, %v5966_v43  ;;  %v5872_v59 = vadd.f32 %v5871_v53, %v15435_v29  ;;  %v6126_v37 = vmul.f32 %v17047_v2, %v5966_v43  ;;  %v17046_v18 = vsub.f32 1.0, %v17970_v54 }
 0x621   : > { %v5873_v33 = vpop.f32.mrf.mxu0  ;;  %v6159_v43 = vmul.f32 %v17970_v54, %v15737_v21 }
 0x622   : > { %v5967_v12 = vadd.f32 %v15525_v8, %v5872_v59  ;;  %6812 = vperm.xlu1 %9366, %v6490_v55   ;;  %6266 = vrot.lane.b32.xlu0 %v5998_v28, %s9684_s14  ;;  %v15744_v29 = vadd.f32 %v6158_v3, %v6126_v37  ;;  %v15753_v59 = vld [vmem:[%s15520_s12 + $0x70] sm:$0xff]  ;;  %v17971_v28 = vld [vmem:[#allocation182_spill] sm:$0xff] }
 0x623   : > { %v5876_v50 = vpop.f32.mrf.mxu0  ;;  %v9653_v37 = vld [vmem:[%s16542_s4 + $0xd0] sm:$0xff]  ;;  %v17048_v1 = vsub.f32 1.0, %v17971_v28 }
 0x624   : > { %17969 = vst [vmem:[#allocation194_spill] sm:$0xff] %v15744_v29  ;;  %v5999_v5 = vand.u32 2147483647, %v5967_v12  ;;  %v5877_v62 = vadd.f32 %v15419_v60, %v5876_v50  ;;  %v6127_v53 = vmul.f32 %v17046_v18, %v5967_v12  ;;  %v6492_v3 = vsub.f32 1.0, %v9653_v37 }
 0x625   : > { %v5878_v33 = vpop.f32.mrf.mxu0  ;;  %v6160_v18 = vmul.f32 %v17971_v28, %v15753_v59 }
 0x626   : > { %v5968_v55 = vadd.f32 %v15525_v8, %v5877_v62  ;;  %6268 = vrot.lane.b32.xlu1 %v5999_v5, %s9684_s14  ;;  %6807 = vperm.xlu0 %9365, %v6489_v57   ;;  %v15760_v60 = vadd.f32 %v6159_v43, %v6127_v53  ;;  %v15769_v62 = vld [vmem:[%s15520_s12 + $0x78] sm:$0xff]  ;;  %v9654_v57 = vld [vmem:[%s16542_s4 + $0xc8] sm:$0xff] }
 0x627   : > { %v5879_v50 = vpop.f32.mrf.mxu0  ;;  %v6491_v5 = vsub.f32 1.0, %v9654_v57  ;;  %v17972_v53 = vld [vmem:[#allocation183_spill] sm:$0xff] }
 0x628   : > { %v6000_v12 = vand.u32 2147483647, %v5968_v55  ;;  %v5880_v33 = vadd.f32 %v15431_v30, %v5879_v50  ;;  %v6128_v2 = vmul.f32 %v17048_v1, %v5968_v55  ;;  %v17050_v50 = vsub.f32 1.0, %v17972_v53 }
 0x629   : > { %v5881_v37 = vpop.f32.mrf.mxu0  ;;  %v6161_v1 = vmul.f32 %v17972_v53, %v15769_v62 }
 0x62a   : > { %v5969_v43 = vadd.f32 %v15525_v8, %v5880_v33  ;;  %6822 = vperm.xlu1 %9366, %v6492_v3   ;;  %6270 = vrot.lane.b32.xlu0 %v6000_v12, %s9684_s14  ;;  %v15776_v30 = vadd.f32 %v6160_v18, %v6128_v2  ;;  %v15785_v33 = vld [vmem:[%s15520_s12 + $0x80] sm:$0xff] }
 0x62b   : > { %v5884_v29 = vpop.f32.mrf.mxu0  ;;  %v9655_v2 = vld [vmem:[%s16542_s4 + $0xe0] sm:$0xff] }
 0x62c   : > { %v6001_v55 = vand.u32 2147483647, %v5969_v43  ;;  %v5885_v37 = vadd.f32 %v5884_v29, %v15445_v35  ;;  %v6129_v9 = vmul.f32 %v17050_v50, %v5969_v43  ;;  %v6494_v18 = vsub.f32 1.0, %v9655_v2  ;;  %v17973_v29 = vld [vmem:[#allocation184_spill] sm:$0xff] }
 0x62d   : > { %v5886_v57 = vpop.f32.mrf.mxu0  ;;  %v17053_v12 = vsub.f32 1.0, %v17973_v29  ;;  %v6162_v50 = vmul.f32 %v17973_v29, %v15785_v33 }
 0x62e   : > { %v5970_v3 = vadd.f32 %v15525_v8, %v5885_v37  ;;  %6272 = vrot.lane.b32.xlu1 %v6001_v55, %s9684_s14  ;;  %6817 = vperm.xlu0 %9365, %v6491_v5   ;;  %v15792_v35 = vadd.f32 %v6161_v1, %v6129_v9  ;;  %v15801_v37 = vld [vmem:[%s15520_s12 + $0x88] sm:$0xff]  ;;  %v9656_v9 = vld [vmem:[%s16542_s4 + $0xd8] sm:$0xff] }
 0x62f   : > { %v5887_v53 = vpop.f32.mrf.mxu0  ;;  %v6493_v1 = vsub.f32 1.0, %v9656_v9 }
 0x630   : > { %v6002_v43 = vand.u32 2147483647, %v5970_v3  ;;  %v5888_v57 = vadd.f32 %v5887_v53, %v15453_v13  ;;  %v6130_v28 = vmul.f32 %v17053_v12, %v5970_v3  ;;  %v17974_v53 = vld [vmem:[#allocation185_spill] sm:$0xff] }
 0x631   : > { %v5889_v2 = vpop.f32.mrf.mxu0  ;;  %v17057_v55 = vsub.f32 1.0, %v17974_v53  ;;  %v6163_v12 = vmul.f32 %v17974_v53, %v15801_v37 }
 0x632   : > { %v5971_v5 = vadd.f32 %v15525_v8, %v5888_v57  ;;  %6832 = vperm.xlu1 %9366, %v6494_v18   ;;  %6274 = vrot.lane.b32.xlu0 %v6002_v43, %s9684_s14  ;;  %v15808_v13 = vadd.f32 %v6162_v50, %v6130_v28  ;;  %v15817_v57 = vld [vmem:[%s15520_s12 + $0x90] sm:$0xff]  ;;  %v17975_v50 = vld [vmem:[#allocation186_spill] sm:$0xff] }
 0x633   : > { %v5892_v29 = vpop.f32.mrf.mxu0  ;;  %v17059_v43 = vsub.f32 1.0, %v17975_v50  ;;  %v6164_v53 = vmul.f32 %v17975_v50, %v15817_v57 }
 0x634   : > { %v6003_v3 = vand.u32 2147483647, %v5971_v5  ;;  %v5893_v2 = vadd.f32 %v15439_v46, %v5892_v29  ;;  %v6131_v9 = vmul.f32 %v17057_v55, %v5971_v5 }
 0x635   : > { %v5894_v54 = vpop.f32.mrf.mxu0 }
 0x636   : > { %v5972_v18 = vadd.f32 %v15525_v8, %v5893_v2  ;;  %6276 = vrot.lane.b32.xlu1 %v6003_v3, %s9684_s14  ;;  %6827 = vperm.xlu0 %9365, %v6493_v1   ;;  %v15821_v28 = vadd.f32 %v6163_v12, %v6131_v9  ;;  %v15830_v2 = vld [vmem:[%s15520_s12 + $0x98] sm:$0xff]  ;;  %v9657_v12 = vld [vmem:[%s16542_s4 + $0xe8] sm:$0xff] }
 0x637   : > { %v5895_v46 = vpop.f32.mrf.mxu0  ;;  %v6495_v1 = vsub.f32 1.0, %v9657_v12 }
 0x638   : > { %v6004_v29 = vand.u32 2147483647, %v5972_v18  ;;  %v5896_v24 = vadd.f32 %v15449_v36, %v5895_v46  ;;  %v6132_v54 = vmul.f32 %v17059_v43, %v5972_v18  ;;  %v17976_v36 = vld [vmem:[#allocation187_spill] sm:$0xff] }
 0x639   : > { %v5897_v5 = vpop.f32.mrf.mxu0  ;;  %v17062_v9 = vsub.f32 1.0, %v17976_v36 }
 0x63a   : > { %v5973_v3 = vadd.f32 %v15525_v8, %v5896_v24  ;;  %6278 = vrot.lane.b32.xlu0 %v6004_v29, %s9684_s14  ;;  %v15838_v46 = vadd.f32 %v6164_v53, %v6132_v54  ;;  %v6165_v5 = vmul.f32 %v17976_v36, %v15830_v2  ;;  %v17977_v29 = vld [vmem:[#allocation188_spill] sm:$0xff] }
 0x63b   : > { %v5900_v55 = vpop.f32.mrf.mxu0  ;;  %v17065_v54 = vsub.f32 1.0, %v17977_v29 }
 0x63c   : > { %v6005_v50 = vand.u32 2147483647, %v5973_v3  ;;  %v5901_v18 = vadd.f32 %v5900_v55, %v15463_v10  ;;  %v6133_v43 = vmul.f32 %v17062_v9, %v5973_v3  ;;  %v6166_v3 = vmul.f32 %v17977_v29, %v15846_v40 }
 0x63d   : > { %v5902_v12 = vpop.f32.mrf.mxu0 }
 0x63e   : > { %v5974_v24 = vadd.f32 %v15525_v8, %v5901_v18  ;;  %6280 = vrot.lane.b32.xlu1 %v6005_v50, %s9684_s14  ;;  %6837 = vperm.xlu0 %9365, %v6495_v1   ;;  %v15850_v53 = vadd.f32 %v6165_v5, %v6133_v43  ;;  %v15859_v18 = vld [vmem:[%s15520_s12 + $0xa8] sm:$0xff]  ;;  %v17979_v43 = vld [vmem:[#allocation104_spill] sm:$0xff] }
 0x63f   : > { %v5903_v10 = vpop.f32.mrf.mxu0  ;;  %17978 = vst [vmem:[#allocation152_spill] sm:$0xff] %v15859_v18  ;;  %v17068_v1 = vsub.f32 1.0, %v17979_v43 }
 0x640   : > { %v6006_v55 = vand.u32 2147483647, %v5974_v24  ;;  %v5904_v34 = vadd.f32 %v5903_v10, %v15473_v4  ;;  %v6134_v12 = vmul.f32 %v17065_v54, %v5974_v24  ;;  %v6167_v10 = vmul.f32 %v17979_v43, %v15859_v18  ;;  %v15872_v54 = vld [vmem:[%s15520_s12 + $0xb0] sm:$0xff] }
 0x641   : > { %v5905_v9 = vpop.f32.mrf.mxu0 }
 0x642   : > { %v5975_v50 = vadd.f32 %v15525_v8, %v5904_v34  ;;  %6282 = vrot.lane.b32.xlu0 %v6006_v55, %s9684_s14  ;;  %v15864_v5 = vadd.f32 %v6166_v3, %v6134_v12  ;;  %v17981_v3 = vld [vmem:[#allocation110_spill] sm:$0xff] }
 0x643   : > { %v5908_v36 = vpop.f32.mrf.mxu0  ;;  %v17071_v12 = vsub.f32 1.0, %v17981_v3 }
 0x644   : > { %v6007_v41 = vand.u32 2147483647, %v5975_v50  ;;  %v5909_v4 = vadd.f32 %v15459_v23, %v5908_v36  ;;  %v6135_v9 = vmul.f32 %v17068_v1, %v5975_v50  ;;  %v6168_v36 = vmul.f32 %v17981_v3, %v15872_v54  ;;  %v15885_v1 = vld [vmem:[%s15520_s12 + $0xb8] sm:$0xff] }
 0x645   : > { %v5910_v24 = vpop.f32.mrf.mxu0  ;;  %17982 = vst [vmem:[#allocation158_spill] sm:$0xff] %v15885_v1 }
 0x646   : > { %v5976_v34 = vadd.f32 %v15525_v8, %v5909_v4  ;;  %6284 = vrot.lane.b32.xlu1 %v6007_v41, %s9684_s14  ;;  %v15876_v55 = vadd.f32 %v6167_v10, %v6135_v9  ;;  %v17983_v4 = vld [vmem:[#allocation147_spill] sm:$0xff] }
 0x647   : > { %v5911_v29 = vpop.f32.mrf.mxu0  ;;  %v17073_v10 = vsub.f32 1.0, %v17983_v4 }
 0x648   : > { %17980 = vst [vmem:[#allocation164_spill] sm:$0xff] %v15876_v55  ;;  %v6008_v47 = vand.u32 2147483647, %v5976_v34  ;;  %v5912_v23 = vadd.f32 %v15467_v61, %v5911_v29  ;;  %v6136_v50 = vmul.f32 %v17071_v12, %v5976_v34  ;;  %v6169_v29 = vmul.f32 %v17983_v4, %v15885_v1  ;;  %v15898_v12 = vld [vmem:[%s15520_s12 + $0xc0] sm:$0xff] }
 0x649   : > { %v5913_v24 = vpop.f32.mrf.mxu0 }
 0x64a   : > { %v5977_v41 = vadd.f32 %v15525_v8, %v5912_v23  ;;  %6286 = vrot.lane.b32.xlu0 %v6008_v47, %s9684_s14  ;;  %v15890_v9 = vadd.f32 %v6168_v36, %v6136_v50  ;;  %v17985_v36 = vld [vmem:[#allocation148_spill] sm:$0xff] }
 0x64b   : > { %v5916_v43 = vpop.f32.mrf.mxu0  ;;  %v17075_v50 = vsub.f32 1.0, %v17985_v36 }
 0x64c   : > { %v6009_v18 = vand.u32 2147483647, %v5977_v41  ;;  %v5917_v61 = vadd.f32 %v5916_v43, %v15481_v38  ;;  %v6137_v34 = vmul.f32 %v17073_v10, %v5977_v41  ;;  %v6170_v43 = vmul.f32 %v17985_v36, %v15898_v12  ;;  %v15911_v10 = vld [vmem:[%s15520_s12 + $0xc8] sm:$0xff] }
 0x64d   : > { %v5918_v24 = vpop.f32.mrf.mxu0  ;;  %17986 = vst [vmem:[#allocation151_spill] sm:$0xff] %v15911_v10 }
 0x64e   : > { %v5978_v47 = vadd.f32 %v15525_v8, %v5917_v61  ;;  %6288 = vrot.lane.b32.xlu1 %v6009_v18, %s9684_s14  ;;  %v15902_v23 = vadd.f32 %v6169_v29, %v6137_v34  ;;  %v17987_v29 = vld [vmem:[#allocation179_spill] sm:$0xff] }
 0x64f   : > { %v5919_v3 = vpop.f32.mrf.mxu0  ;;  %v17078_v34 = vsub.f32 1.0, %v17987_v29 }
 0x650   : > { %17984 = vst [vmem:[#allocation196_spill] sm:$0xff] %v15902_v23  ;;  %v6010_v55 = vand.u32 2147483647, %v5978_v47  ;;  %v5920_v38 = vadd.f32 %v5919_v3, %v15491_v45  ;;  %v6138_v41 = vmul.f32 %v17075_v50, %v5978_v47  ;;  %v6171_v3 = vmul.f32 %v17987_v29, %v15911_v10  ;;  %v15924_v50 = vld [vmem:[%s15520_s12 + $0xd0] sm:$0xff] }
 0x651   : > { %v5921_v24 = vpop.f32.mrf.mxu0  ;;  %17988 = vst [vmem:[#allocation28_spill] sm:$0xff] %v15924_v50 }
 0x652   : > { %v5979_v18 = vadd.f32 %v15525_v8, %v5920_v38  ;;  %6290 = vrot.lane.b32.xlu0 %v6010_v55, %s9684_s14  ;;  %v15915_v61 = vadd.f32 %v6170_v43, %v6138_v41  ;;  %v17990_v43 = vld [vmem:[#allocation189_spill] sm:$0xff] }
 0x653   : > { %v5924_v4 = vpop.f32.mrf.mxu0  ;;  %v17081_v41 = vsub.f32 1.0, %v17990_v43 }
 0x654   : > { %v6011_v23 = vand.u32 2147483647, %v5979_v18  ;;  %v5925_v45 = vadd.f32 %v15477_v17, %v5924_v4  ;;  %v6139_v47 = vmul.f32 %v17078_v34, %v5979_v18  ;;  %v6172_v4 = vmul.f32 %v17990_v43, %v15924_v50  ;;  %v15937_v34 = vld [vmem:[%s15520_s12 + $0xd8] sm:$0xff] }
 0x655   : > { %v5926_v24 = vpop.f32.mrf.mxu0  ;;  %17991 = vst [vmem:[#allocation144_spill] sm:$0xff] %v15937_v34 }
 0x656   : > { %v5980_v55 = vadd.f32 %v15525_v8, %v5925_v45  ;;  %6292 = vrot.lane.b32.xlu1 %v6011_v23, %s9684_s14  ;;  %v15928_v38 = vadd.f32 %v6171_v3, %v6139_v47  ;;  %v17993_v3 = vld [vmem:[#allocation191_spill] sm:$0xff] }
 0x657   : > { %v5927_v36 = vpop.f32.mrf.mxu0  ;;  %v17083_v47 = vsub.f32 1.0, %v17993_v3  ;;  %v6173_v43 = vmul.f32 %v17993_v3, %v15937_v34  ;;  %v17999_v3 = vld [vmem:[#allocation123_spill] sm:$0xff]  ;;  %v15979_v34 = vpop.permute.xlu1 %6752 }
 0x658   : > { %17989 = vst [vmem:[#allocation5_spill] sm:$0xff] %v15928_v38  ;;  %v6012_v1 = vand.u32 2147483647, %v5980_v55  ;;  %v5928_v17 = vadd.f32 %v15487_v51, %v5927_v36  ;;  %v6140_v18 = vmul.f32 %v17081_v41, %v5980_v55  ;;  %v6051_v38 = vld [vmem:[%s15961_s30 + $0x8] sm:$0xff] }
 0x659   : > { %v5929_v24 = vpop.f32.mrf.mxu0 }
 0x65a   : > { %v5981_v23 = vadd.f32 %v15525_v8, %v5928_v17  ;;  %6294 = vrot.lane.b32.xlu0 %v6012_v1, %s9684_s14  ;;  %v15941_v45 = vadd.f32 %v6172_v4, %v6140_v18  ;;  %v15950_v17 = vld [vmem:[%s15520_s12 + $0xe0] sm:$0xff]  ;;  %v17996_v18 = vld [vmem:[#allocation193_spill] sm:$0xff] }
 0x65b   : > { %v5932_v29 = vpop.f32.mrf.mxu0  ;;  %17994 = vst [vmem:[#allocation52_spill] sm:$0xff] %v15950_v17  ;;  %v17088_v41 = vsub.f32 1.0, %v17996_v18 }
 0x65c   : > { %17992 = vst [vmem:[#allocation68_spill] sm:$0xff] %v15941_v45  ;;  %v6013_v51 = vand.u32 2147483647, %v5981_v23  ;;  %v5933_v36 = vadd.f32 %v5932_v29, %v15501_v16  ;;  %v6141_v55 = vmul.f32 %v17083_v47, %v5981_v23  ;;  %v15963_v16 = vpop.permute.xlu0 %6737 }
 0x65d   : > { %v5934_v24 = vpop.f32.mrf.mxu0 }
 0x65e   : > { %v5982_v1 = vadd.f32 %v15525_v8, %v5933_v36  ;;  %6296 = vrot.lane.b32.xlu1 %v6013_v51, %s9684_s14  ;;  %v15954_v4 = vadd.f32 %v6173_v43, %v6141_v55  ;;  %v6174_v36 = vmul.f32 %v17996_v18, %v15950_v17  ;;  %v15971_v55 = vld [vmem:[%s15520_s12 + $0xe8] sm:$0xff] }
 0x65f   : > { %v5935_v10 = vpop.f32.mrf.mxu0  ;;  %17997 = vst [vmem:[#allocation162_spill] sm:$0xff] %v15971_v55 }
 0x660   : > { %17995 = vst [vmem:[#allocation166_spill] sm:$0xff] %v15954_v4  ;;  %v6014_v29 = vand.u32 2147483647, %v5982_v1  ;;  %v5936_v23 = vadd.f32 %v5935_v10, %v15512_v44  ;;  %v6142_v43 = vmul.f32 %v17088_v41, %v5982_v1  ;;  %v17092_v4 = vsub.f32 1.0, %v17999_v3  ;;  %v6050_v44 = vld [vmem:[%s15961_s30] sm:$0xff]  ;;  %v15987_v41 = vld [vmem:[%s15520_s12 + $0xf0] sm:$0xff] }
 0x661   : > { %v5937_v51 = vpop.f32.mrf.mxu0  ;;  %18000 = vst [vmem:[#allocation161_spill] sm:$0xff] %v15987_v41 }
 0x662   : > { %v5983_v24 = vadd.f32 %v15525_v8, %v5936_v23  ;;  %6298 = vrot.lane.b32.xlu0 %v6014_v29, %s9684_s14  ;;  %v15975_v47 = vadd.f32 %v6174_v36, %v6142_v43  ;;  %v6175_v51 = vmul.f32 %v17999_v3, %v15971_v55  ;;  %v18001_v29 = vsub.f32 1.0, %v17927_v39 }
 0x663   : > { %v5940_v10 = vpop.f32.mrf.mxu0 }
 0x664   : > { %17998 = vst [vmem:[#allocation160_spill] sm:$0xff] %v15975_v47  ;;  %v6015_v17 = vand.u32 2147483647, %v5983_v24  ;;  %v5941_v18 = vadd.f32 %v15495_v20, %v5940_v10  ;;  %v6243_v1 = vpop.permute.xlu0 %6242  ;;  %v6143_v23 = vmul.f32 %v17092_v4, %v5983_v24  ;;  %v6370_v47 = vmul.f32 %v17927_v39, %v6050_v44  ;;  %v18003_v10 = vld [vmem:[#allocation156_spill] sm:$0xff] }
 0x665   : > { %v6338_v36 = vmul.f32 %v6243_v1, %v18001_v29  ;;  %v5942_v43 = vpop.f32.mrf.mxu0  ;;  %v17094_v55 = vsub.f32 1.0, %v18003_v10  ;;  %v6176_v24 = vmul.f32 %v18003_v10, %v15987_v41  ;;  %v9658_v41 = vld [vmem:[%s16542_s4 + $0xf8] sm:$0xff]  ;;  %v18007_v10 = vld [vmem:[#allocation100_spill] sm:$0xff] }
 0x666   : > { %v5984_v50 = vadd.f32 %v15525_v8, %v5941_v18  ;;  %6300 = vrot.lane.b32.xlu1 %v6015_v17, %s9684_s14  ;;  %v15995_v20 = vadd.f32 %v6175_v51, %v6143_v23  ;;  %v6371_v18 = vmul.f32 %v17929_v22, %v6051_v38  ;;  %v18004_v17 = vsub.f32 1.0, %v17929_v22  ;;  %v16007_v43 = vld [vmem:[%s15520_s12 + $0xf8] sm:$0xff] }
 0x667   : > { %v5943_v3 = vpop.f32.mrf.mxu0  ;;  %v6402_v45 = vadd.f32 %v6370_v47, %v6338_v36 }
 0x668   : > { %18002 = vst [vmem:[#allocation157_spill] sm:$0xff] %v15995_v20  ;;  %v6016_v4 = vand.u32 2147483647, %v5984_v50  ;;  %v5944_v1 = vadd.f32 %v15505_v11, %v5943_v3  ;;  %v6245_v29 = vpop.permute.xlu1 %6244  ;;  %v6144_v39 = vmul.f32 %v17094_v55, %v5984_v50  ;;  %v6497_v20 = vsub.f32 1.0, %v9658_v41  ;;  %v18005_v11 = vld [vmem:[#allocation159_spill] sm:$0xff]  ;;  %v18006_v55 = vld [vmem:[#allocation58_spill] sm:$0xff] }
 0x669   : > { %v6339_v51 = vmul.f32 %v6245_v29, %v18004_v17  ;;  %v5945_v23 = vpop.f32.mrf.mxu0  ;;  %v17096_v3 = vsub.f32 1.0, %v18005_v11  ;;  %v6914_v22 = vmul.f32 %v18006_v55, %v6402_v45  ;;  %v6947_v41 = vmul.f32 %v18007_v10, %v6051_v38  ;;  %v18009_v38 = vld [vmem:[#allocation121_spill] sm:$0xff] }
 0x66a   : > { %v5985_v47 = vadd.f32 %v15525_v8, %v5944_v1  ;;  %6302 = vrot.lane.b32.xlu0 %v6016_v4, %s9684_s14  ;;  %v16015_v50 = vadd.f32 %v6176_v24, %v6144_v39  ;;  %v6177_v23 = vmul.f32 %v18005_v11, %v16007_v43  ;;  %v9659_v4 = vld [vmem:[%s16542_s4 + $0xf0] sm:$0xff]  ;;  %v18008_v1 = vld [vmem:[#allocation135_spill] sm:$0xff]  ;;  %v6669_v10 = vmul.f32 %v18009_v38, %v15728_v32  ;;  %v18011_v32 = vld [vmem:[#allocation133_spill] sm:$0xff] }
 0x66b   : > { %v6403_v36 = vadd.f32 %v6371_v18, %v6339_v51  ;;  %v6496_v24 = vsub.f32 1.0, %v9659_v4  ;;  %v6946_v39 = vmul.f32 %v18008_v1, %v6050_v44  ;;  %v6672_v4 = vmul.f32 %v18011_v32, %v15776_v30  ;;  %v18014_v30 = vld [vmem:[#allocation12_spill] sm:$0xff] }
 0x66c   : > { %v6017_v29 = vand.u32 2147483647, %v5985_v47  ;;  %v6145_v17 = vmul.f32 %v17096_v3, %v5985_v47  ;;  %v18055_v3 = vld [vmem:[#allocation158_spill] sm:$0xff] }
 0x66d   : > { %v6915_v8 = vmul.f32 %v15357_v25, %v6403_v36  ;;  %v6978_v18 = vadd.f32 %v6946_v39, %v6914_v22  ;;  %v6052_v36 = vld [vmem:[%s15961_s30 + $0x10] sm:$0xff]  ;;  %v18012_v39 = vld [vmem:[#allocation30_spill] sm:$0xff] }
 0x66e   : > { %6304 = vrot.lane.b32.xlu1 %v6017_v29, %s9684_s14  ;;  %6847 = vperm.xlu0 %9365, %v6497_v20   ;;  %v16029_v45 = vadd.f32 %v6177_v23, %v6145_v17  ;;  %v6372_v22 = vmul.f32 %v17932_v42, %v6052_v36  ;;  %v6053_v23 = vld [vmem:[%s15961_s30 + $0x18] sm:$0xff] }
 0x66f   : > { %v6979_v55 = vadd.f32 %v6947_v41, %v6915_v8  ;;  %v7010_v44 = vand.u32 2147483647, %v6978_v18  ;;  %v18010_v41 = vsub.f32 1.0, %v17932_v42  ;;  %v6373_v18 = vmul.f32 %v17936_v48, %v6053_v23 }
 0x670   : > { %v18013_v42 = vsub.f32 1.0, %v17936_v48 }
 0x671   : > { %v7011_v51 = vand.u32 2147483647, %v6979_v55  ;;  %v16031_v47 = vpop.permute.xlu0 %6747  ;;  %v6948_v55 = vmul.f32 %v18012_v39, %v6052_v36 }
 0x672   : > { %v6861_v25 = vmul.f32 %v16031_v47, %v15704_v58  ;;  %6842 = vperm.xlu1 %9366, %v6496_v24  }
 0x673   : > { %7076 = vrot.lane.b32.xlu0 %v7011_v51, %s9678_s15 }
 0x674   : > { %v16039_v20 = vadd.f32 %v6861_v25, %v6669_v10 }
 0x675   : > { %v16041_v29 = vpop.permute.xlu1 %6762  ;;  %v6247_v17 = vpop.permute.xlu0 %6246 }
 0x676   : > { %v6864_v58 = vmul.f32 %v16041_v29, %v15753_v59  ;;  %v6340_v8 = vmul.f32 %v6247_v17, %v18010_v41  ;;  %7074 = vrot.lane.b32.xlu1 %v7010_v44, %s9678_s15  ;;  %v6671_v17 = vmul.f32 %v18014_v30, %v15760_v60  ;;  %v18016_v60 = vld [vmem:[#allocation49_spill] sm:$0xff] }
 0x678   : > { %v6404_v24 = vadd.f32 %v6372_v22, %v6340_v8  ;;  %v16052_v1 = vadd.f32 %v6864_v58, %v6672_v4  ;;  %v6054_v22 = vld [vmem:[%s15961_s30 + $0x20] sm:$0xff]  ;;  %v18015_v8 = vld [vmem:[#allocation79_spill] sm:$0xff] }
 0x679   : > { %v6249_v51 = vpop.permute.xlu1 %6248  ;;  %v16056_v25 = vpop.permute.xlu0 %6757  ;;  %v6949_v4 = vmul.f32 %v18015_v8, %v6053_v23 }
 0x67a   : > { %v6916_v59 = vmul.f32 %v15391_v15, %v6404_v24  ;;  %v6341_v10 = vmul.f32 %v6249_v51, %v18013_v42  ;;  %v6863_v44 = vmul.f32 %v16056_v25, %v15737_v21  ;;  %v6055_v24 = vld [vmem:[%s15961_s30 + $0x28] sm:$0xff]  ;;  %v6674_v42 = vmul.f32 %v18016_v60, %v15808_v13 }
 0x67b   : > { %v18018_v13 = vsub.f32 1.0, %v17944_v56 }
 0x67c   : > { %v6980_v58 = vadd.f32 %v6948_v55, %v6916_v59  ;;  %v6405_v41 = vadd.f32 %v6373_v18, %v6341_v10  ;;  %v16066_v36 = vadd.f32 %v6863_v44, %v6671_v17  ;;  %v6374_v55 = vmul.f32 %v17940_v26, %v6054_v22 }
 0x67d   : > { %v16069_v39 = vpop.permute.xlu1 %6772  ;;  %v6251_v15 = vpop.permute.xlu0 %6250  ;;  %v18017_v18 = vsub.f32 1.0, %v17940_v26  ;;  %v6375_v44 = vmul.f32 %v17944_v56, %v6055_v24 }
 0x67e   : > { %v7012_v48 = vand.u32 2147483647, %v6980_v58  ;;  %v6917_v51 = vmul.f32 %v15401_v14, %v6405_v41  ;;  %v6866_v21 = vmul.f32 %v16069_v39, %v15785_v33  ;;  %v6056_v33 = vld [vmem:[%s15961_s30 + $0x30] sm:$0xff] }
 0x67f   : > { %v6342_v59 = vmul.f32 %v6251_v15, %v18017_v18  ;;  %v18021_v18 = vld [vmem:[#allocation98_spill] sm:$0xff]  ;;  %v6376_v56 = vmul.f32 %v17948_v0, %v6056_v33 }
 0x680   : > { %v6981_v23 = vadd.f32 %v6949_v4, %v6917_v51  ;;  %7078 = vrot.lane.b32.xlu1 %v7012_v48, %s9678_s15  ;;  %v16081_v10 = vadd.f32 %v6866_v21, %v6674_v42  ;;  %v18019_v4 = vld [vmem:[#allocation96_spill] sm:$0xff]  ;;  %v18020_v48 = vld [vmem:[#allocation101_spill] sm:$0xff] }
 0x681   : > { %v6406_v17 = vadd.f32 %v6374_v55, %v6342_v59  ;;  %v6253_v14 = vpop.permute.xlu1 %6252  ;;  %v16084_v58 = vpop.permute.xlu0 %6767  ;;  %v6673_v15 = vmul.f32 %v18019_v4, %v15792_v35  ;;  %v6950_v51 = vmul.f32 %v18020_v48, %v6054_v22  ;;  %v6951_v59 = vmul.f32 %v18021_v18, %v6055_v24  ;;  %v18025_v48 = vld [vmem:[#allocation62_spill] sm:$0xff] }
 0x682   : > { %v7013_v41 = vand.u32 2147483647, %v6981_v23  ;;  %v6343_v8 = vmul.f32 %v6253_v14, %v18018_v13  ;;  %v6865_v26 = vmul.f32 %v16084_v58, %v15769_v62  ;;  %v6057_v13 = vld [vmem:[%s15961_s30 + $0x38] sm:$0xff] }
 0x683   : > { %v6918_v21 = vmul.f32 %v15413_v6, %v6406_v17  ;;  %v18022_v6 = vsub.f32 1.0, %v17948_v0  ;;  %v18023_v17 = vld [vmem:[#allocation77_spill] sm:$0xff] }
 0x684   : > { %v6407_v42 = vadd.f32 %v6375_v44, %v6343_v8  ;;  %7080 = vrot.lane.b32.xlu0 %v7013_v41, %s9678_s15  ;;  %v16096_v55 = vadd.f32 %v6865_v26, %v6673_v15  ;;  %v6676_v41 = vmul.f32 %v18023_v17, %v15838_v46  ;;  %v18026_v0 = vld [vmem:[#allocation61_spill] sm:$0xff] }
 0x685   : > { %v6982_v23 = vadd.f32 %v6950_v51, %v6918_v21  ;;  %v16100_v14 = vpop.permute.xlu1 %6782  ;;  %v6255_v62 = vpop.permute.xlu0 %6254  ;;  %v6952_v51 = vmul.f32 %v18025_v48, %v6056_v33  ;;  %v6377_v21 = vmul.f32 %v17952_v7, %v6057_v13 }
 0x686   : > { %v6919_v35 = vmul.f32 %v15423_v27, %v6407_v42  ;;  %v6868_v22 = vmul.f32 %v16100_v14, %v15817_v57  ;;  %v6344_v44 = vmul.f32 %v6255_v62, %v18022_v6  ;;  %v6675_v42 = vmul.f32 %v18026_v0, %v15821_v28  ;;  %v18028_v6 = vld [vmem:[#allocation45_spill] sm:$0xff] }
 0x687   : > { %v7014_v24 = vand.u32 2147483647, %v6982_v23  ;;  %v6058_v23 = vld [vmem:[%s15961_s30 + $0x40] sm:$0xff] }
 0x688   : > { %v6983_v8 = vadd.f32 %v6951_v59, %v6919_v35  ;;  %v6408_v26 = vadd.f32 %v6376_v56, %v6344_v44  ;;  %v16110_v15 = vadd.f32 %v6868_v22, %v6676_v41  ;;  %v18027_v59 = vsub.f32 1.0, %v17952_v7 }
 0x689   : > { %7082 = vrot.lane.b32.xlu1 %v7014_v24, %s9678_s15  ;;  %v6257_v27 = vpop.permute.xlu1 %6256  ;;  %v16115_v57 = vpop.permute.xlu0 %6777  ;;  %v6953_v44 = vmul.f32 %v18028_v6, %v6057_v13  ;;  %v6378_v48 = vmul.f32 %v17956_v63, %v6058_v23 }
 0x68a   : > { %18024 = vst [vmem:[#allocation154_spill] sm:$0xff] %v16110_v15  ;;  %v7015_v18 = vand.u32 2147483647, %v6983_v8  ;;  %v6920_v46 = vmul.f32 %v15427_v49, %v6408_v26  ;;  %v6345_v56 = vmul.f32 %v6257_v27, %v18027_v59  ;;  %v6867_v33 = vmul.f32 %v16115_v57, %v15801_v37  ;;  %v6059_v49 = vld [vmem:[%s15961_s30 + $0x48] sm:$0xff]  ;;  %v18029_v8 = vld [vmem:[#allocation125_spill] sm:$0xff] }
 0x68b   : > { %v6678_v26 = vmul.f32 %v18029_v8, %v15864_v5  ;;  %v18032_v5 = vsub.f32 1.0, %v17960_v19 }
 0x68c   : > { %v6984_v62 = vadd.f32 %v6952_v51, %v6920_v46  ;;  %v6409_v35 = vadd.f32 %v6377_v21, %v6345_v56  ;;  %7084 = vrot.lane.b32.xlu0 %v7015_v18, %s9678_s15  ;;  %v16126_v22 = vadd.f32 %v6867_v33, %v6675_v42  ;;  %v18030_v51 = vsub.f32 1.0, %v17956_v63  ;;  %v18033_v33 = vld [vmem:[#allocation103_spill] sm:$0xff] }
 0x68d   : > { %v16129_v41 = vpop.permute.xlu1 %6792  ;;  %v6259_v28 = vpop.permute.xlu0 %6258  ;;  %v6379_v42 = vmul.f32 %v17960_v19, %v6059_v49 }
 0x68e   : > { %v7016_v24 = vand.u32 2147483647, %v6984_v62  ;;  %v6921_v7 = vmul.f32 %v15429_v52, %v6409_v35  ;;  %v6870_v37 = vmul.f32 %v16129_v41, %v15846_v40  ;;  %v6346_v21 = vmul.f32 %v6259_v28, %v18030_v51  ;;  %v6060_v40 = vld [vmem:[%s15961_s30 + $0x50] sm:$0xff]  ;;  %v18034_v35 = vld [vmem:[#allocation106_spill] sm:$0xff]  ;;  %v6061_v51 = vld [vmem:[%s15961_s30 + $0x58] sm:$0xff] }
 0x68f   : > { %v6677_v62 = vmul.f32 %v18033_v33, %v15850_v53  ;;  %v6954_v6 = vmul.f32 %v18034_v35, %v6058_v23 }
 0x690   : > { %v6985_v13 = vadd.f32 %v6953_v44, %v6921_v7  ;;  %7086 = vrot.lane.b32.xlu1 %v7016_v24, %s9678_s15  ;;  %v16141_v27 = vadd.f32 %v6870_v37, %v6678_v26  ;;  %v6410_v18 = vadd.f32 %v6378_v48, %v6346_v21  ;;  %v6955_v7 = vmul.f32 %v15963_v16, %v6059_v49  ;;  %v18036_v37 = vld [vmem:[#allocation177_spill] sm:$0xff]  ;;  %v18037_v21 = vld [vmem:[#allocation74_spill] sm:$0xff] }
 0x691   : > { %v6261_v52 = vpop.permute.xlu1 %6260  ;;  %v16144_v46 = vpop.permute.xlu0 %6787  ;;  %v6380_v19 = vmul.f32 %v18036_v37, %v6060_v40 }
 0x692   : > { %18031 = vst [vmem:[#allocation165_spill] sm:$0xff] %v16141_v27  ;;  %v7017_v59 = vand.u32 2147483647, %v6985_v13  ;;  %v6347_v56 = vmul.f32 %v6261_v52, %v18032_v5  ;;  %v6869_v63 = vmul.f32 %v16144_v46, %v15830_v2  ;;  %v6922_v44 = vmul.f32 %v15433_v31, %v6410_v18  ;;  %v6065_v27 = vld [vmem:[%s15961_s30 + $0x78] sm:$0xff] }
 0x693   : > { %v18038_v31 = vsub.f32 1.0, %v18036_v37 }
 0x694   : > { %v6411_v28 = vadd.f32 %v6379_v42, %v6347_v56  ;;  %7088 = vrot.lane.b32.xlu0 %v7017_v59, %s9678_s15  ;;  %v16156_v24 = vadd.f32 %v6869_v63, %v6677_v62  ;;  %v6986_v26 = vadd.f32 %v6954_v6, %v6922_v44  ;;  %v18039_v42 = vld [vmem:[#allocation44_spill] sm:$0xff]  ;;  %v18042_v62 = vld [vmem:[#allocation178_spill] sm:$0xff] }
 0x695   : > { %v16160_v48 = vpop.permute.xlu1 %6802  ;;  %v6263_v2 = vpop.permute.xlu0 %6262  ;;  %v6680_v18 = vmul.f32 %v18039_v42, %v15890_v9  ;;  %v18041_v56 = vld [vmem:[#allocation192_spill] sm:$0xff]  ;;  %v6381_v35 = vmul.f32 %v18042_v62, %v6061_v51  ;;  %v18045_v9 = vld [vmem:[#allocation95_spill] sm:$0xff] }
 0x696   : > { %18035 = vst [vmem:[#allocation153_spill] sm:$0xff] %v16156_v24  ;;  %v6923_v53 = vmul.f32 %v18037_v21, %v6411_v28  ;;  %v6872_v23 = vmul.f32 %v16160_v48, %v15872_v54  ;;  %v6348_v13 = vmul.f32 %v6263_v2, %v18038_v31  ;;  %v7018_v49 = vand.u32 2147483647, %v6986_v26  ;;  %v18043_v44 = vld [vmem:[#allocation164_spill] sm:$0xff]  ;;  %v18044_v28 = vld [vmem:[#allocation43_spill] sm:$0xff] }
 0x697   : > { %v6956_v63 = vmul.f32 %v18041_v56, %v6060_v40  ;;  %v6679_v37 = vmul.f32 %v18044_v28, %v18043_v44 }
 0x698   : > { %v6987_v52 = vadd.f32 %v6955_v7, %v6923_v53  ;;  %v6412_v59 = vadd.f32 %v6380_v19, %v6348_v13  ;;  %v16170_v5 = vadd.f32 %v6872_v23, %v6680_v18  ;;  %7090 = vrot.lane.b32.xlu1 %v7018_v49, %s9678_s15  ;;  %v18046_v7 = vsub.f32 1.0, %v18042_v62  ;;  %v18047_v53 = vld [vmem:[#allocation152_spill] sm:$0xff]  ;;  %v6062_v23 = vld [vmem:[%s15961_s30 + $0x60] sm:$0xff] }
 0x699   : > { %v6265_v6 = vpop.permute.xlu1 %6264  ;;  %v16175_v54 = vpop.permute.xlu0 %6797  ;;  %v6957_v62 = vmul.f32 %v16031_v47, %v6061_v51 }
 0x69a   : > { %18040 = vst [vmem:[#allocation163_spill] sm:$0xff] %v16170_v5  ;;  %v7019_v2 = vand.u32 2147483647, %v6987_v52  ;;  %v6924_v26 = vmul.f32 %v18045_v9, %v6412_v59  ;;  %v6349_v19 = vmul.f32 %v6265_v6, %v18046_v7  ;;  %v6871_v40 = vmul.f32 %v16175_v54, %v18047_v53  ;;  %v18049_v52 = vld [vmem:[#allocation94_spill] sm:$0xff]  ;;  %v6063_v6 = vld [vmem:[%s15961_s30 + $0x68] sm:$0xff] }
 0x69b   : > { %v6682_v59 = vmul.f32 %v18049_v52, %v15915_v61  ;;  %v18053_v61 = vld [vmem:[#allocation181_spill] sm:$0xff] }
 0x69c   : > { %v6988_v31 = vadd.f32 %v6956_v63, %v6924_v26  ;;  %v6413_v13 = vadd.f32 %v6381_v35, %v6349_v19  ;;  %7092 = vrot.lane.b32.xlu0 %v7019_v2, %s9678_s15  ;;  %v16186_v18 = vadd.f32 %v6871_v40, %v6679_v37  ;;  %v18050_v35 = vld [vmem:[#allocation180_spill] sm:$0xff]  ;;  %v6383_v53 = vmul.f32 %v18053_v61, %v6063_v6 }
 0x69d   : > { %v16188_v49 = vpop.permute.xlu1 %6812  ;;  %v6267_v56 = vpop.permute.xlu0 %6266  ;;  %v6382_v2 = vmul.f32 %v18050_v35, %v6062_v23  ;;  %v18051_v37 = vsub.f32 1.0, %v18050_v35 }
 0x69e   : > { %18048 = vst [vmem:[#allocation195_spill] sm:$0xff] %v16186_v18  ;;  %v7020_v44 = vand.u32 2147483647, %v6988_v31  ;;  %v6925_v9 = vmul.f32 %v18009_v38, %v6413_v13  ;;  %v6874_v63 = vmul.f32 %v16188_v49, %v15898_v12  ;;  %v6064_v38 = vld [vmem:[%s15961_s30 + $0x70] sm:$0xff]  ;;  %v18054_v12 = vsub.f32 1.0, %v18053_v61 }
 0x69f   : > { %v6350_v26 = vmul.f32 %v6267_v56, %v18051_v37 }
 0x6a0   : > { %v6989_v7 = vadd.f32 %v6957_v62, %v6925_v9  ;;  %7094 = vrot.lane.b32.xlu1 %v7020_v44, %s9678_s15  ;;  %v16201_v19 = vadd.f32 %v6874_v63, %v6682_v59  ;;  %v18056_v62 = vld [vmem:[#allocation196_spill] sm:$0xff]  ;;  %v6958_v59 = vmul.f32 %v15979_v34, %v6062_v23  ;;  %v18058_v63 = vld [vmem:[#allocation11_spill] sm:$0xff] }
 0x6a1   : > { %v6414_v47 = vadd.f32 %v6382_v2, %v6350_v26  ;;  %v6269_v51 = vpop.permute.xlu1 %6268  ;;  %v16204_v40 = vpop.permute.xlu0 %6807  ;;  %v18057_v9 = vld [vmem:[#allocation136_spill] sm:$0xff]  ;;  %v18060_v26 = vld [vmem:[#allocation182_spill] sm:$0xff] }
 0x6a2   : > { %18052 = vst [vmem:[#allocation65_spill] sm:$0xff] %v16201_v19  ;;  %v7021_v31 = vand.u32 2147483647, %v6989_v7  ;;  %v6351_v13 = vmul.f32 %v6269_v51, %v18054_v12  ;;  %v6873_v56 = vmul.f32 %v16204_v40, %v18055_v3  ;;  %v6681_v44 = vmul.f32 %v18057_v9, %v18056_v62  ;;  %v18061_v12 = vld [vmem:[#allocation68_spill] sm:$0xff] }
 0x6a3   : > { %v6926_v35 = vmul.f32 %v18058_v63, %v6414_v47  ;;  %v6384_v7 = vmul.f32 %v18060_v26, %v6064_v38  ;;  %v18062_v3 = vld [vmem:[#allocation60_spill] sm:$0xff]  ;;  %v6959_v62 = vmul.f32 %v16056_v25, %v6063_v6  ;;  %v18067_v6 = vld [vmem:[#allocation5_spill] sm:$0xff] }
 0x6a4   : > { %v6415_v2 = vadd.f32 %v6383_v53, %v6351_v13  ;;  %7096 = vrot.lane.b32.xlu0 %v7021_v31, %s9678_s15  ;;  %v16216_v37 = vadd.f32 %v6873_v56, %v6681_v44  ;;  %v6684_v5 = vmul.f32 %v18062_v3, %v18061_v12  ;;  %v18063_v47 = vld [vmem:[#allocation28_spill] sm:$0xff]  ;;  %v18064_v31 = vsub.f32 1.0, %v18060_v26  ;;  %v18066_v12 = vld [vmem:[#allocation183_spill] sm:$0xff] }
 0x6a5   : > { %v6990_v19 = vadd.f32 %v6958_v59, %v6926_v35  ;;  %v16219_v61 = vpop.permute.xlu1 %6822  ;;  %v6271_v51 = vpop.permute.xlu0 %6270  ;;  %v6385_v18 = vmul.f32 %v18066_v12, %v6065_v27 }
 0x6a6   : > { %18059 = vst [vmem:[#allocation4_spill] sm:$0xff] %v16216_v37  ;;  %v6927_v23 = vmul.f32 %v18014_v30, %v6415_v2  ;;  %v6876_v53 = vmul.f32 %v16219_v61, %v18063_v47  ;;  %v6352_v13 = vmul.f32 %v6271_v51, %v18064_v31  ;;  %v6960_v37 = vmul.f32 %v16041_v29, %v6064_v38  ;;  %v18068_v2 = vld [vmem:[#allocation25_spill] sm:$0xff]  ;;  %v18070_v51 = vld [vmem:[#allocation151_spill] sm:$0xff]  ;;  %v6066_v38 = vld [vmem:[%s15961_s30 + $0x80] sm:$0xff] }
 0x6a7   : > { %v7022_v56 = vand.u32 2147483647, %v6990_v19  ;;  %v6683_v26 = vmul.f32 %v18068_v2, %v18067_v6 }
 0x6a8   : > { %v6991_v44 = vadd.f32 %v6959_v62, %v6927_v23  ;;  %v6416_v59 = vadd.f32 %v6384_v7, %v6352_v13  ;;  %v16230_v35 = vadd.f32 %v6876_v53, %v6684_v5  ;;  %v18069_v7 = vsub.f32 1.0, %v18066_v12  ;;  %v6067_v12 = vld [vmem:[%s15961_s30 + $0x88] sm:$0xff] }
 0x6a9   : > { %7098 = vrot.lane.b32.xlu1 %v7022_v56, %s9678_s15  ;;  %v6273_v25 = vpop.permute.xlu1 %6272  ;;  %v16235_v30 = vpop.permute.xlu0 %6817  ;;  %v18072_v56 = vld [vmem:[#allocation160_spill] sm:$0xff] }
 0x6aa   : > { %18065 = vst [vmem:[#allocation150_spill] sm:$0xff] %v16230_v35  ;;  %v7023_v47 = vand.u32 2147483647, %v6991_v44  ;;  %v6928_v19 = vmul.f32 %v18011_v32, %v6416_v59  ;;  %v6353_v5 = vmul.f32 %v6273_v25, %v18069_v7  ;;  %v6875_v29 = vmul.f32 %v16235_v30, %v18070_v51  ;;  %v18073_v44 = vld [vmem:[#allocation99_spill] sm:$0xff] }
 0x6ab   : > { %v6686_v32 = vmul.f32 %v18073_v44, %v18072_v56  ;;  %v6961_v59 = vmul.f32 %v16084_v58, %v6065_v27 }
 0x6ac   : > { %v6992_v62 = vadd.f32 %v6960_v37, %v6928_v19  ;;  %v6417_v23 = vadd.f32 %v6385_v18, %v6353_v5  ;;  %7100 = vrot.lane.b32.xlu0 %v7023_v47, %s9678_s15  ;;  %v16246_v53 = vadd.f32 %v6875_v29, %v6683_v26  ;;  %v18074_v37 = vld [vmem:[#allocation52_spill] sm:$0xff]  ;;  %v18078_v29 = vld [vmem:[#allocation185_spill] sm:$0xff] }
 0x6ad   : > { %v16248_v31 = vpop.permute.xlu1 %6832  ;;  %v6275_v13 = vpop.permute.xlu0 %6274  ;;  %v18075_v47 = vld [vmem:[#allocation184_spill] sm:$0xff]  ;;  %v6387_v56 = vmul.f32 %v18078_v29, %v6067_v12  ;;  %v18079_v35 = vsub.f32 1.0, %v18078_v29 }
 0x6ae   : > { %18071 = vst [vmem:[#allocation149_spill] sm:$0xff] %v16246_v53  ;;  %v7024_v25 = vand.u32 2147483647, %v6992_v62  ;;  %v6929_v6 = vmul.f32 %v18019_v4, %v6417_v23  ;;  %v6878_v18 = vmul.f32 %v16248_v31, %v18074_v37  ;;  %v6386_v26 = vmul.f32 %v18075_v47, %v6066_v38  ;;  %v6068_v4 = vld [vmem:[%s15961_s30 + $0x90] sm:$0xff]  ;;  %v6069_v23 = vld [vmem:[%s15961_s30 + $0x98] sm:$0xff] }
 0x6af   : > { %v18076_v19 = vsub.f32 1.0, %v18075_v47  ;;  %v18080_v47 = vld [vmem:[#allocation144_spill] sm:$0xff] }
 0x6b0   : > { %v6993_v5 = vadd.f32 %v6961_v59, %v6929_v6  ;;  %7102 = vrot.lane.b32.xlu1 %v7024_v25, %s9678_s15  ;;  %v16261_v51 = vadd.f32 %v6878_v18, %v6686_v32  ;;  %v18081_v59 = vld [vmem:[#allocation166_spill] sm:$0xff]  ;;  %v18082_v25 = vld [vmem:[#allocation76_spill] sm:$0xff]  ;;  %v6962_v6 = vmul.f32 %v16069_v39, %v6066_v38 }
 0x6b1   : > { %v6354_v7 = vmul.f32 %v6275_v13, %v18076_v19  ;;  %v6277_v27 = vpop.permute.xlu1 %6276  ;;  %v16264_v62 = vpop.permute.xlu0 %6827  ;;  %v6685_v32 = vmul.f32 %v18082_v25, %v18081_v59  ;;  %v6071_v59 = vld [vmem:[%s15961_s30 + $0xa8] sm:$0xff] }
 0x6b2   : > { %18077 = vst [vmem:[#allocation19_spill] sm:$0xff] %v16261_v51  ;;  %v7025_v37 = vand.u32 2147483647, %v6993_v5  ;;  %v6355_v53 = vmul.f32 %v6277_v27, %v18079_v35  ;;  %v6877_v13 = vmul.f32 %v16264_v62, %v18080_v47  ;;  %v18085_v51 = vld [vmem:[#allocation187_spill] sm:$0xff]  ;;  %v6963_v47 = vmul.f32 %v16115_v57, %v6067_v12  ;;  %v6070_v12 = vld [vmem:[%s15961_s30 + $0xa0] sm:$0xff] }
 0x6b3   : > { %v6418_v58 = vadd.f32 %v6386_v26, %v6354_v7  ;;  %v18084_v7 = vld [vmem:[#allocation186_spill] sm:$0xff]  ;;  %v6389_v29 = vmul.f32 %v18085_v51, %v6069_v23 }
 0x6b4   : > { %v6419_v26 = vadd.f32 %v6387_v56, %v6355_v53  ;;  %7104 = vrot.lane.b32.xlu0 %v7025_v37, %s9678_s15  ;;  %v16277_v19 = vadd.f32 %v6877_v13, %v6685_v32  ;;  %v6388_v5 = vmul.f32 %v18084_v7, %v6068_v4  ;;  %v18087_v53 = vsub.f32 1.0, %v18084_v7 }
 0x6b5   : > { %v6930_v18 = vmul.f32 %v18016_v60, %v6418_v58  ;;  %v6281_v27 = vpop.permute.xlu1 %6280  ;;  %v6279_v24 = vpop.permute.xlu0 %6278  ;;  %v18086_v60 = vsub.f32 1.0, %v18085_v51 }
 0x6b6   : > { %18083 = vst [vmem:[#allocation82_spill] sm:$0xff] %v16277_v19  ;;  %v6931_v39 = vmul.f32 %v18026_v0, %v6419_v26  ;;  %v6356_v56 = vmul.f32 %v6279_v24, %v18087_v53  ;;  %v18088_v19 = vld [vmem:[#allocation104_spill] sm:$0xff]  ;;  %v6073_v53 = vld [vmem:[%s15961_s30 + $0xb8] sm:$0xff] }
 0x6b7   : > { %v6994_v35 = vadd.f32 %v6962_v6, %v6930_v18  ;;  %v6357_v38 = vmul.f32 %v6281_v27, %v18086_v60  ;;  %v6964_v6 = vmul.f32 %v16100_v14, %v6068_v4  ;;  %v6965_v18 = vmul.f32 %v16144_v46, %v6069_v23  ;;  %v18090_v4 = vld [vmem:[#allocation162_spill] sm:$0xff]  ;;  %v18091_v23 = vld [vmem:[#allocation157_spill] sm:$0xff] }
 0x6b8   : > { %v6995_v37 = vadd.f32 %v6963_v47, %v6931_v39  ;;  %v6420_v32 = vadd.f32 %v6388_v5, %v6356_v56  ;;  %v6391_v15 = vmul.f32 %v18088_v19, %v6071_v59  ;;  %v18089_v7 = vsub.f32 1.0, %v18088_v19  ;;  %v18092_v5 = vld [vmem:[#allocation124_spill] sm:$0xff] }
 0x6b9   : > { %v7026_v58 = vand.u32 2147483647, %v6994_v35  ;;  %v6421_v13 = vadd.f32 %v6389_v29, %v6357_v38  ;;  %v6285_v57 = vpop.permute.xlu1 %6284  ;;  %v16292_v0 = vpop.permute.xlu0 %6837  ;;  %v6687_v29 = vmul.f32 %v18092_v5, %v18091_v23  ;;  %v18093_v39 = vld [vmem:[#allocation188_spill] sm:$0xff] }
 0x6ba   : > { %v7027_v51 = vand.u32 2147483647, %v6995_v37  ;;  %v6932_v26 = vmul.f32 %v18023_v17, %v6420_v32  ;;  %v6359_v14 = vmul.f32 %v6285_v57, %v18089_v7  ;;  %v6879_v46 = vmul.f32 %v16292_v0, %v18090_v4  ;;  %v6072_v19 = vld [vmem:[%s15961_s30 + $0xb0] sm:$0xff]  ;;  %v18096_v57 = vld [vmem:[#allocation147_spill] sm:$0xff] }
 0x6bb   : > { %7106 = vrot.lane.b32.xlu1 %v7026_v58, %s9678_s15  ;;  %v6933_v24 = vmul.f32 %v18033_v33, %v6421_v13  ;;  %v6390_v60 = vmul.f32 %v18093_v39, %v6070_v12  ;;  %v6967_v33 = vmul.f32 %v16175_v54, %v6071_v59  ;;  %v18094_v13 = vsub.f32 1.0, %v18093_v39  ;;  %v18095_v54 = vld [vmem:[#allocation110_spill] sm:$0xff]  ;;  %v18099_v39 = vld [vmem:[#allocation148_spill] sm:$0xff] }
 0x6bc   : > { %v6996_v27 = vadd.f32 %v6964_v6, %v6932_v26  ;;  %v6423_v47 = vadd.f32 %v6391_v15, %v6359_v14  ;;  %7108 = vrot.lane.b32.xlu0 %v7027_v51, %s9678_s15  ;;  %v16306_v17 = vadd.f32 %v6879_v46, %v6687_v29  ;;  %v6392_v59 = vmul.f32 %v18095_v54, %v6072_v19  ;;  %v6074_v14 = vld [vmem:[%s15961_s30 + $0xc0] sm:$0xff] }
 0x6bd   : > { %v6997_v35 = vadd.f32 %v6965_v18, %v6933_v24  ;;  %v6283_v38 = vpop.permute.xlu0 %6282  ;;  %v6393_v51 = vmul.f32 %v18096_v57, %v6073_v53  ;;  %v18097_v24 = vsub.f32 1.0, %v18096_v57  ;;  %v18098_v23 = vsub.f32 1.0, %v18095_v54 }
 0x6be   : > { %v7028_v58 = vand.u32 2147483647, %v6996_v27  ;;  %v6935_v37 = vmul.f32 %v18044_v28, %v6423_v47  ;;  %v6358_v32 = vmul.f32 %v6283_v38, %v18094_v13  ;;  %v6966_v28 = vmul.f32 %v16129_v41, %v6070_v12 }
 0x6bf   : > { %v7029_v56 = vand.u32 2147483647, %v6997_v35  ;;  %v6968_v12 = vmul.f32 %v16160_v48, %v6072_v19  ;;  %v6970_v19 = vmul.f32 %v16188_v49, %v6074_v14 }
 0x6c0   : > { %v6999_v15 = vadd.f32 %v6967_v33, %v6935_v37  ;;  %v6422_v6 = vadd.f32 %v6390_v60, %v6358_v32  ;;  %v6289_v18 = vpop.permute.xlu1 %6288  ;;  %7110 = vrot.lane.b32.xlu1 %v7028_v58, %s9678_s15  ;;  %v6394_v60 = vmul.f32 %v18099_v39, %v6074_v14  ;;  %v6969_v33 = vmul.f32 %v16204_v40, %v6073_v53  ;;  %v18101_v40 = vld [vmem:[#allocation179_spill] sm:$0xff] }
 0x6c1   : > { %7112 = vrot.lane.b32.xlu0 %v7029_v56, %s9678_s15  ;;  %v6361_v26 = vmul.f32 %v6289_v18, %v18097_v24  ;;  %v6287_v7 = vpop.permute.xlu0 %6286  ;;  %v6075_v56 = vld [vmem:[%s15961_s30 + $0xc8] sm:$0xff]  ;;  %v18100_v37 = vsub.f32 1.0, %v18099_v39  ;;  %v18102_v54 = vsub.f32 1.0, %v18101_v40 }
 0x6c2   : > { %v7031_v4 = vand.u32 2147483647, %v6999_v15  ;;  %v6934_v46 = vmul.f32 %v18029_v8, %v6422_v6  ;;  %v6360_v29 = vmul.f32 %v6287_v7, %v18098_v23  ;;  %v18103_v7 = vld [vmem:[#allocation189_spill] sm:$0xff] }
 0x6c3   : > { %v6425_v35 = vadd.f32 %v6393_v51, %v6361_v26  ;;  %v18104_v49 = vsub.f32 1.0, %v18103_v7 }
 0x6c4   : > { %v6998_v27 = vadd.f32 %v6966_v28, %v6934_v46  ;;  %v6424_v47 = vadd.f32 %v6392_v59, %v6360_v29  ;;  %v6076_v59 = vld [vmem:[%s15961_s30 + $0xd0] sm:$0xff]  ;;  %v6077_v46 = vld [vmem:[%s15961_s30 + $0xd8] sm:$0xff] }
 0x6c5   : > { %7116 = vrot.lane.b32.xlu0 %v7031_v4, %s9678_s15  ;;  %v6937_v38 = vmul.f32 %v18057_v9, %v6425_v35  ;;  %v6291_v41 = vpop.permute.xlu0 %6290  ;;  %v6395_v9 = vmul.f32 %v18101_v40, %v6075_v56  ;;  %v6396_v28 = vmul.f32 %v18103_v7, %v6076_v59  ;;  %v6971_v4 = vmul.f32 %v16235_v30, %v6075_v56 }
 0x6c6   : > { %v7030_v8 = vand.u32 2147483647, %v6998_v27  ;;  %v6936_v58 = vmul.f32 %v18039_v42, %v6424_v47  ;;  %v6362_v13 = vmul.f32 %v6291_v41, %v18100_v37  ;;  %v18105_v27 = vld [vmem:[#allocation191_spill] sm:$0xff] }
 0x6c7   : > { %v7001_v32 = vadd.f32 %v6969_v33, %v6937_v38  ;;  %v6397_v47 = vmul.f32 %v18105_v27, %v6077_v46  ;;  %v6078_v33 = vld [vmem:[%s15961_s30 + $0xe0] sm:$0xff] }
 0x6c8   : > { %v7000_v15 = vadd.f32 %v6968_v12, %v6936_v58  ;;  %v6426_v6 = vadd.f32 %v6394_v60, %v6362_v13  ;;  %v6293_v18 = vpop.permute.xlu1 %6292  ;;  %7114 = vrot.lane.b32.xlu1 %v7030_v8, %s9678_s15  ;;  %v6972_v60 = vmul.f32 %v16219_v61, %v6076_v59  ;;  %v18107_v8 = vld [vmem:[#allocation193_spill] sm:$0xff]  ;;  %v6973_v13 = vmul.f32 %v16264_v62, %v6077_v46 }
 0x6c9   : > { %v7033_v53 = vand.u32 2147483647, %v7001_v32  ;;  %v6363_v48 = vmul.f32 %v6293_v18, %v18102_v54  ;;  %v6398_v58 = vmul.f32 %v18107_v8, %v6078_v33  ;;  %v6079_v32 = vld [vmem:[%s15961_s30 + $0xe8] sm:$0xff]  ;;  %v18111_v46 = vsub.f32 1.0, %v18005_v11 }
 0x6ca   : > { %v7032_v42 = vand.u32 2147483647, %v7000_v15  ;;  %v6938_v57 = vmul.f32 %v18049_v52, %v6426_v6  ;;  %v18108_v6 = vsub.f32 1.0, %v18107_v8 }
 0x6cb   : > { %v6427_v51 = vadd.f32 %v6395_v9, %v6363_v48  ;;  %7120 = vrot.lane.b32.xlu0 %v7033_v53, %s9678_s15  ;;  %v18109_v9 = vld [vmem:[#allocation123_spill] sm:$0xff]  ;;  %v6974_v48 = vmul.f32 %v16248_v31, %v6078_v33 }
 0x6cc   : > { %v7002_v24 = vadd.f32 %v6970_v19, %v6938_v57  ;;  %7118 = vrot.lane.b32.xlu1 %v7032_v42, %s9678_s15  ;;  %v6295_v26 = vpop.permute.xlu0 %6294  ;;  %v6399_v53 = vmul.f32 %v18109_v9, %v6079_v32  ;;  %v18110_v59 = vsub.f32 1.0, %v18109_v9 }
 0x6cd   : > { %v6939_v23 = vmul.f32 %v18068_v2, %v6427_v51  ;;  %v6364_v14 = vmul.f32 %v6295_v26, %v18104_v49  ;;  %v18106_v2 = vsub.f32 1.0, %v18105_v27  ;;  %v6975_v51 = vmul.f32 %v16292_v0, %v6079_v32  ;;  %v6080_v49 = vld [vmem:[%s15961_s30 + $0xf0] sm:$0xff]  ;;  %v18117_v32 = vld [vmem:[#allocation109_spill] sm:$0xff] }
 0x6ce   : > { %v7034_v29 = vand.u32 2147483647, %v7002_v24  ;;  %v18112_v0 = vld [vmem:[#allocation156_spill] sm:$0xff] }
 0x6cf   : > { %v7003_v52 = vadd.f32 %v6971_v4, %v6939_v23  ;;  %v6428_v35 = vadd.f32 %v6396_v28, %v6364_v14  ;;  %v6081_v4 = vld [vmem:[%s15961_s30 + $0xf8] sm:$0xff] }
 0x6d0   : > { %v6297_v39 = vpop.permute.xlu1 %6296  ;;  %7122 = vrot.lane.b32.xlu1 %v7034_v29, %s9678_s15  ;;  %v6401_v14 = vmul.f32 %v18005_v11, %v6081_v4  ;;  %v18113_v29 = vsub.f32 1.0, %v18112_v0  ;;  %v18115_v11 = vld [vmem:[#allocation41_spill] sm:$0xff] }
 0x6d1   : > { %v7035_v38 = vand.u32 2147483647, %v7003_v52  ;;  %v6940_v30 = vmul.f32 %v18062_v3, %v6428_v35  ;;  %v6365_v41 = vmul.f32 %v6297_v39, %v18106_v2  ;;  %v6400_v35 = vmul.f32 %v18112_v0, %v6080_v49  ;;  %v18114_v39 = vld [vmem:[#allocation42_spill] sm:$0xff] }
 0x6d2   : > { %v6689_v33 = vmul.f32 %v18114_v39, %v16029_v45 }
 0x6d3   : > { %v7004_v12 = vadd.f32 %v6972_v60, %v6940_v30  ;;  %v6429_v56 = vadd.f32 %v6397_v47, %v6365_v41  ;;  %7124 = vrot.lane.b32.xlu0 %v7035_v38, %s9678_s15 }
 0x6d4   : > { %v6299_v37 = vpop.permute.xlu0 %6298 }
 0x6d5   : > { %v7036_v15 = vand.u32 2147483647, %v7004_v12  ;;  %v6941_v61 = vmul.f32 %v18082_v25, %v6429_v56  ;;  %v6366_v18 = vmul.f32 %v6299_v37, %v18108_v6  ;;  %v6688_v56 = vmul.f32 %v18115_v11, %v16015_v50 }
 0x6d7   : > { %v7005_v3 = vadd.f32 %v6973_v13, %v6941_v61  ;;  %v6430_v40 = vadd.f32 %v6398_v58, %v6366_v18  ;;  %7126 = vrot.lane.b32.xlu1 %v7036_v15, %s9678_s15 }
 0x6d8   : > { %v6301_v54 = vpop.permute.xlu1 %6300 }
 0x6d9   : > { %v7037_v19 = vand.u32 2147483647, %v7005_v3  ;;  %v6942_v62 = vmul.f32 %v18073_v44, %v6430_v40  ;;  %v6367_v25 = vmul.f32 %v6301_v54, %v18110_v59  ;;  %v18118_v3 = vld [vmem:[#allocation63_spill] sm:$0xff] }
 0x6db   : > { %v7006_v42 = vadd.f32 %v6974_v48, %v6942_v62  ;;  %v6431_v57 = vadd.f32 %v6399_v53, %v6367_v25  ;;  %7128 = vrot.lane.b32.xlu0 %v7037_v19, %s9678_s15  ;;  %v18119_v53 = vld [vmem:[#allocation138_spill] sm:$0xff] }
 0x6dc   : > { %v6303_v44 = vpop.permute.xlu0 %6302  ;;  %v18120_v19 = vld [vmem:[#allocation38_spill] sm:$0xff] }
 0x6dd   : > { %v7038_v24 = vand.u32 2147483647, %v7006_v42  ;;  %v6943_v26 = vmul.f32 %v18092_v5, %v6431_v57  ;;  %v6368_v52 = vmul.f32 %v6303_v44, %v18113_v29  ;;  %v18121_v25 = vld [vmem:[#allocation46_spill] sm:$0xff] }
 0x6de   : > { %v18126_v29 = vld [vmem:[#allocation190_spill] sm:$0xff] }
 0x6df   : > { %v7007_v7 = vadd.f32 %v6975_v51, %v6943_v26  ;;  %7130 = vrot.lane.b32.xlu1 %v7038_v24, %s9678_s15  ;;  %v6432_v27 = vadd.f32 %v6400_v35, %v6368_v52  ;;  %v18122_v51 = vld [vmem:[#allocation78_spill] sm:$0xff] }
 0x6e0   : > { %v6305_v31 = vpop.permute.xlu1 %6304 }
 0x6e1   : > { %v7039_v28 = vand.u32 2147483647, %v7007_v7  ;;  %v6369_v23 = vmul.f32 %v6305_v31, %v18111_v46  ;;  %v6944_v12 = vmul.f32 %v18115_v11, %v6432_v27  ;;  %v18123_v7 = vld [vmem:[#allocation126_spill] sm:$0xff]  ;;  %v9660_v46 = vld [vmem:[%s15520_s12 + $0x48] sm:$0xff] }
 0x6e3   : > { %7132 = vrot.lane.b32.xlu0 %v7039_v28, %s9678_s15  ;;  %v6433_v5 = vadd.f32 %v6401_v14, %v6369_v23  ;;  %v6859_v23 = vmul.f32 %v9660_v46, %v15963_v16  ;;  %v18127_v16 = vld [vmem:[#allocation155_spill] sm:$0xff] }
 0x6e5   : > { %v6945_v60 = vmul.f32 %v18114_v39, %v6433_v5 }
 0x6e9   : > { %v6848_v47 = vpop.permute.xlu0 %6847 }
 0x6ea   : > { %v6881_v38 = vmul.f32 %v6848_v47, %v16007_v43  ;;  %v6977_v30 = vmul.f32 %v6848_v47, %v6081_v4  ;;  %v18116_v43 = vld [vmem:[#allocation161_spill] sm:$0xff] }
 0x6eb   : > { %v18124_v4 = vld [vmem:[#allocation137_spill] sm:$0xff] }
 0x6ec   : > { %v16385_v2 = vadd.f32 %v6881_v38, %v6689_v33  ;;  %v7009_v41 = vadd.f32 %v6977_v30, %v6945_v60  ;;  %v18128_v38 = vld [vmem:[#allocation194_spill] sm:$0xff] }
 0x6ed   : > { %v6843_v8 = vpop.permute.xlu1 %6842  ;;  %v7077_v45 = vpop.permute.xlu0 %7076  ;;  %v6670_v30 = vmul.f32 %v18058_v63, %v18128_v38 }
 0x6ee   : > { %v7041_v58 = vand.u32 2147483647, %v7009_v41  ;;  %v6880_v37 = vmul.f32 %v6843_v8, %v18116_v43  ;;  %v6976_v13 = vmul.f32 %v6843_v8, %v6080_v49  ;;  %v7171_v15 = vsel %vm2794_vm4, %v18117_v32, %v7077_v45  ;;  %v18125_v49 = vld [vmem:[#allocation107_spill] sm:$0xff] }
 0x6ef   : > { %7203 = vst.msk [vmem:[%s16391_s23 + $0x8] sm:$0xff] %vm1496_vm6, %v7171_v15  ;;  %v6667_v14 = vmul.f32 %v18037_v21, %v18125_v49  ;;  %v9661_v21 = vld [vmem:[%s15520_s12 + $0x60] sm:$0xff]  ;;  %v18139_v49 = vld [vmem:[#allocation19_spill] sm:$0xff] }
 0x6f0   : > { %v16401_v61 = vadd.f32 %v6880_v37, %v6688_v56  ;;  %v7008_v6 = vadd.f32 %v6976_v13, %v6944_v12  ;;  %7136 = vrot.lane.b32.xlu0 %v7041_v58, %s9678_s15  ;;  %v6862_v60 = vmul.f32 %v9661_v21, %v15979_v34 }
 0x6f1   : > { %v7075_v50 = vpop.permute.xlu1 %7074  ;;  %v6891_v5 = vadd.f32 %v6859_v23, %v6667_v14 }
 0x6f2   : > { %v7040_v18 = vand.u32 2147483647, %v7008_v6  ;;  %v7170_v40 = vsel %vm2794_vm4, %v18118_v3, %v7075_v50  ;;  %v6894_v11 = vadd.f32 %v6862_v60, %v6670_v30  ;;  %v18130_v6 = vld [vmem:[#allocation153_spill] sm:$0xff] }
 0x6f3   : > { %7202 = vst.msk [vmem:[%s16391_s23] sm:$0xff] %vm1496_vm6, %v7170_v40  ;;  %v18132_v40 = vld [vmem:[#allocation165_spill] sm:$0xff] }
 0x6f4   : > { %7134 = vrot.lane.b32.xlu1 %v7040_v18, %s9678_s15  ;;  %v18131_v18 = vld [vmem:[#allocation195_spill] sm:$0xff] }
 0x6f5   : > { %v7079_v9 = vpop.permute.xlu1 %7078 }
 0x6f6   : > { %v7172_v54 = vsel %vm2794_vm4, %v18119_v53, %v7079_v9  ;;  %v7081_v48 = vpop.permute.xlu0 %7080 }
 0x6f7   : > { %7204 = vst.msk [vmem:[%s16391_s23 + $0x10] sm:$0xff] %vm1496_vm6, %v7172_v54  ;;  %v7173_v62 = vsel %vm2794_vm4, %v18120_v19, %v7081_v48  ;;  %v18133_v54 = vld [vmem:[#allocation4_spill] sm:$0xff] }
 0x6f8   : > { %7205 = vst.msk [vmem:[%s16391_s23 + $0x18] sm:$0xff] %vm1496_vm6, %v7173_v62  ;;  %v18134_v62 = vld [vmem:[#allocation163_spill] sm:$0xff] }
 0x6fb   : > { %v7083_v59 = vpop.permute.xlu1 %7082 }
 0x6fc   : > { %v7174_v42 = vsel %vm2794_vm4, %v18121_v25, %v7083_v59 }
 0x6fd   : > { %7206 = vst.msk [vmem:[%s16391_s23 + $0x20] sm:$0xff] %vm1496_vm6, %v7174_v42  ;;  %v18135_v42 = vld [vmem:[#allocation65_spill] sm:$0xff] }
 0x6fe   : > { %v7085_v57 = vpop.permute.xlu0 %7084 }
 0x6ff   : > { %v7175_v24 = vsel %vm2794_vm4, %v18122_v51, %v7085_v57 }
 0x700   : > { %7207 = vst.msk [vmem:[%s16391_s23 + $0x28] sm:$0xff] %vm1496_vm6, %v7175_v24  ;;  %v18136_v24 = vld [vmem:[#allocation149_spill] sm:$0xff] }
 0x702   : > { %v7087_v26 = vpop.permute.xlu1 %7086 }
 0x703   : > { %v7176_v31 = vsel %vm2794_vm4, %v18123_v7, %v7087_v26 }
 0x704   : > { %7208 = vst.msk [vmem:[%s16391_s23 + $0x30] sm:$0xff] %vm1496_vm6, %v7176_v31  ;;  %v18137_v31 = vld [vmem:[#allocation150_spill] sm:$0xff] }
 0x706   : > { %v7089_v28 = vpop.permute.xlu0 %7088 }
 0x707   : > { %v7177_v44 = vsel %vm2794_vm4, %v18124_v4, %v7089_v28 }
 0x708   : > { %7209 = vst.msk [vmem:[%s16391_s23 + $0x38] sm:$0xff] %vm1496_vm6, %v7177_v44  ;;  %v18138_v44 = vld [vmem:[#allocation82_spill] sm:$0xff] }
 0x70a   : > { %v7091_v0 = vpop.permute.xlu1 %7090 }
 0x70b   : > { %v7178_v52 = vsel %vm2794_vm4, %v18126_v29, %v7091_v0 }
 0x70c   : > { %7210 = vst.msk [vmem:[%s16391_s23 + $0x40] sm:$0xff] %vm1496_vm6, %v7178_v52 }
 0x70e   : > { %v7093_v35 = vpop.permute.xlu0 %7092 }
 0x70f   : > { %v7179_v27 = vsel %vm2794_vm4, %v6891_v5, %v7093_v35 }
 0x710   : > { %7211 = vst.msk [vmem:[%s16391_s23 + $0x48] sm:$0xff] %vm1496_vm6, %v7179_v27 }
 0x712   : > { %v7095_v47 = vpop.permute.xlu1 %7094 }
 0x713   : > { %v7180_v39 = vsel %vm2794_vm4, %v18127_v16, %v7095_v47 }
 0x714   : > { %7212 = vst.msk [vmem:[%s16391_s23 + $0x50] sm:$0xff] %vm1496_vm6, %v7180_v39 }
 0x716   : > { %v7097_v33 = vpop.permute.xlu0 %7096 }
 0x717   : > { %v7181_v41 = vsel %vm2794_vm4, %v16039_v20, %v7097_v33 }
 0x718   : > { %7213 = vst.msk [vmem:[%s16391_s23 + $0x58] sm:$0xff] %vm1496_vm6, %v7181_v41 }
 0x71b   : > { %v7099_v12 = vpop.permute.xlu1 %7098 }
 0x71c   : > { %v7182_v56 = vsel %vm2794_vm4, %v6894_v11, %v7099_v12 }
 0x71d   : > { %7214 = vst.msk [vmem:[%s16391_s23 + $0x60] sm:$0xff] %vm1496_vm6, %v7182_v56 }
 0x71e   : > { %v7101_v8 = vpop.permute.xlu0 %7100 }
 0x71f   : > { %v7183_v34 = vsel %vm2794_vm4, %v16066_v36, %v7101_v8 }
 0x720   : > { %7215 = vst.msk [vmem:[%s16391_s23 + $0x68] sm:$0xff] %vm1496_vm6, %v7183_v34 }
 0x722   : > { %v7103_v63 = vpop.permute.xlu1 %7102 }
 0x723   : > { %v7184_v20 = vsel %vm2794_vm4, %v16052_v1, %v7103_v63 }
 0x724   : > { %7216 = vst.msk [vmem:[%s16391_s23 + $0x70] sm:$0xff] %vm1496_vm6, %v7184_v20 }
 0x726   : > { %v7105_v45 = vpop.permute.xlu0 %7104 }
 0x727   : > { %v7185_v58 = vsel %vm2794_vm4, %v16096_v55, %v7105_v45  ;;  %v18129_v55 = vld [vmem:[#allocation154_spill] sm:$0xff] }
 0x728   : > { %7217 = vst.msk [vmem:[%s16391_s23 + $0x78] sm:$0xff] %vm1496_vm6, %v7185_v58 }
 0x72d   : > { %v7107_v43 = vpop.permute.xlu1 %7106 }
 0x72e   : > { %v7186_v36 = vsel %vm2794_vm4, %v16081_v10, %v7107_v43  ;;  %v7109_v37 = vpop.permute.xlu0 %7108 }
 0x72f   : > { %7218 = vst.msk [vmem:[%s16391_s23 + $0x80] sm:$0xff] %vm1496_vm6, %v7186_v36  ;;  %v7187_v1 = vsel %vm2794_vm4, %v16126_v22, %v7109_v37 }
 0x730   : > { %7219 = vst.msk [vmem:[%s16391_s23 + $0x88] sm:$0xff] %vm1496_vm6, %v7187_v1 }
 0x732   : > { %v7111_v13 = vpop.permute.xlu1 %7110 }
 0x733   : > { %v7113_v32 = vpop.permute.xlu0 %7112  ;;  %v7188_v15 = vsel %vm2794_vm4, %v18129_v55, %v7111_v13 }
 0x734   : > { %v7189_v50 = vsel %vm2794_vm4, %v18130_v6, %v7113_v32  ;;  %7220 = vst.msk [vmem:[%s16391_s23 + $0x90] sm:$0xff] %vm1496_vm6, %v7188_v15 }
 0x735   : > { %7221 = vst.msk [vmem:[%s16391_s23 + $0x98] sm:$0xff] %vm1496_vm6, %v7189_v50 }
 0x737   : > { %v7117_v10 = vpop.permute.xlu0 %7116 }
 0x738   : > { %v7191_v22 = vsel %vm2794_vm4, %v18131_v18, %v7117_v10 }
 0x739   : > { %7223 = vst.msk [vmem:[%s16391_s23 + $0xa8] sm:$0xff] %vm1496_vm6, %v7191_v22 }
 0x73a   : > { %v7115_v3 = vpop.permute.xlu1 %7114 }
 0x73b   : > { %v7190_v9 = vsel %vm2794_vm4, %v18132_v40, %v7115_v3 }
 0x73c   : > { %7222 = vst.msk [vmem:[%s16391_s23 + $0xa0] sm:$0xff] %vm1496_vm6, %v7190_v9 }
 0x73d   : > { %v7121_v53 = vpop.permute.xlu0 %7120 }
 0x73e   : > { %v7193_v48 = vsel %vm2794_vm4, %v18133_v54, %v7121_v53  ;;  %v7119_v19 = vpop.permute.xlu1 %7118 }
 0x73f   : > { %7225 = vst.msk [vmem:[%s16391_s23 + $0xb8] sm:$0xff] %vm1496_vm6, %v7193_v48  ;;  %v7192_v59 = vsel %vm2794_vm4, %v18134_v62, %v7119_v19 }
 0x740   : > { %7224 = vst.msk [vmem:[%s16391_s23 + $0xb0] sm:$0xff] %vm1496_vm6, %v7192_v59 }
 0x742   : > { %v7123_v25 = vpop.permute.xlu1 %7122 }
 0x743   : > { %v7194_v57 = vsel %vm2794_vm4, %v18135_v42, %v7123_v25 }
 0x744   : > { %7226 = vst.msk [vmem:[%s16391_s23 + $0xc0] sm:$0xff] %vm1496_vm6, %v7194_v57 }
 0x745   : > { %v7125_v51 = vpop.permute.xlu0 %7124 }
 0x746   : > { %v7195_v26 = vsel %vm2794_vm4, %v18136_v24, %v7125_v51 }
 0x747   : > { %7227 = vst.msk [vmem:[%s16391_s23 + $0xc8] sm:$0xff] %vm1496_vm6, %v7195_v26 }
 0x749   : > { %v7127_v7 = vpop.permute.xlu1 %7126 }
 0x74a   : > { %v7196_v28 = vsel %vm2794_vm4, %v18137_v31, %v7127_v7 }
 0x74b   : > { %7228 = vst.msk [vmem:[%s16391_s23 + $0xd0] sm:$0xff] %vm1496_vm6, %v7196_v28 }
 0x74d   : > { %v7129_v4 = vpop.permute.xlu0 %7128 }
 0x74e   : > { %v7197_v46 = vsel %vm2794_vm4, %v18138_v44, %v7129_v4 }
 0x74f   : > { %7229 = vst.msk [vmem:[%s16391_s23 + $0xd8] sm:$0xff] %vm1496_vm6, %v7197_v46 }
 0x751   : > { %v7131_v23 = vpop.permute.xlu1 %7130 }
 0x752   : > { %v7198_v14 = vsel %vm2794_vm4, %v18139_v49, %v7131_v23 }
 0x753   : > { %7230 = vst.msk [vmem:[%s16391_s23 + $0xe0] sm:$0xff] %vm1496_vm6, %v7198_v14 }
 0x755   : > { %v7133_v0 = vpop.permute.xlu0 %7132 }
 0x756   : > { %v7199_v29 = vsel %vm2794_vm4, %v16306_v17, %v7133_v0 }
 0x757   : > { %7231 = vst.msk [vmem:[%s16391_s23 + $0xe8] sm:$0xff] %vm1496_vm6, %v7199_v29 }
 0x762   : > { %v7137_v52 = vpop.permute.xlu0 %7136 }
 0x763   : > { %v7201_v5 = vsel %vm2794_vm4, %v16385_v2, %v7137_v52 }
 0x764   : > { %7233 = vst.msk [vmem:[%s16391_s23 + $0xf8] sm:$0xff] %vm1496_vm6, %v7201_v5 }
 0x766   : > { %v7135_v35 = vpop.permute.xlu1 %7134 }
 0x767   : > { %v7200_v27 = vsel %vm2794_vm4, %v16401_v61, %v7135_v35 }
 0x768   : > { %7232 = vst.msk [vmem:[%s16391_s23 + $0xf0] sm:$0xff] %vm1496_vm6, %v7200_v27 }
 0x769 PF: > { %s21_s17 = sadd.s32 1, %s9668_s17  }
 0x76a   : > { %p18_p4 = scmp.ge.s32.totalorder %s21_s17, 4  }
 0x76c   :  { %20 = sbr.rel (!%p18_p4) target bundleno = 1 (0x1), region = 103 }

</bundles_post_ra>
